<compile_context>
chip_gen: v7x
topology: tpu7x:2x2x1
jax: 0.10.0
libtpu: 0.0.40
codegen_flags: <defaults>
</compile_context>

<pallas_src>
import functools

import jax
import jax.numpy as jnp
import numpy as np
from jax.experimental import pallas as pl
from jax.experimental.pallas import tpu as pltpu


def _vq_kernel(z_ref, emb_ref, esq_ref, zq_ref, idx_ref, dmin_ref, *, n_e):
    z = z_ref[...]                                   # (e_dim, TT), input dtype
    emb = emb_ref[...]                               # (n_e, e_dim)

    # MXU: ez[c, tok] = e_c . z_tok (contraction over e_dim, no transpose of z)
    ez = jnp.dot(emb, z, preferred_element_type=jnp.float32)         # (n_e, TT)

    # Reduced distance: argmin_c(||e_c||^2 + ||z||^2 - 2 e_c.z) ==
    # argmin_c(||e_c||^2 - 2 e_c.z), since ||z||^2 is a per-token constant.
    d = esq_ref[...] - 2.0 * ez                                      # (n_e, TT)

    # argmin over codes (first-occurrence tie-break, like torch.argmin);
    # min and equality-compare use the SAME tensor d.
    d_min = jnp.min(d, axis=0, keepdims=True)                        # (1, TT)
    iota = jax.lax.broadcasted_iota(jnp.int32, (n_e, 1), 0)          # column iota
    idx = jnp.min(jnp.where(d == d_min, iota, n_e), axis=0, keepdims=True)
    idx_ref[...] = idx                                               # (1, TT)

    # one-hot codes; z_q = E^T @ onehot produced directly in (C, token) layout
    # via a transposed-LHS contraction over n_e (MXU-native, no emb_t input).
    onehot = (iota == idx).astype(emb.dtype)                         # (n_e, TT)
    zq = jax.lax.dot_general(emb, onehot, (((0,), (0,)), ((), ())),
                             preferred_element_type=jnp.float32)     # (e_dim, TT)
    zq_ref[...] = zq.astype(zq_ref.dtype)

    # Per-token full squared distance for the loss: ||z - e_idx||^2 =
    # d'_min + ||z||^2, clamped at 0 against FP cancellation.  Summed in the
    # wrapper (which also drops padded tail tokens for free).
    zf = z.astype(jnp.float32)
    z2 = jnp.sum(zf * zf, axis=0, keepdims=True)                     # (1, TT)
    dmin_ref[...] = jnp.maximum(d_min + z2, 0.0)


def _round_up(x, m):
    return (x + m - 1) // m * m


def vector_quantizer_2d(z_nchw, embedding, beta=0.25, *, tile_hw=1024):
    """Forward pass of VectorQuantizer2d.

    Args:
      z_nchw:    (B, C, H, W) float with C == e_dim.
      embedding: (n_e, e_dim) float codebook.
    Returns:
      z_q (B, C, H, W), loss (scalar), perplexity (scalar), codes (B, H, W) int32
    """
    B, C, H, W = z_nchw.shape
    n_e, e_dim = embedding.shape
    assert C == e_dim, "channel dim must equal the codebook embedding dim"
    HW = H * W
    N = B * HW

    # Lane-dense token tile (multiple of 128); pad H*W to a tile multiple and
    # slice the pad tokens back off after the kernel.
    tt = max(128, min(_round_up(tile_hw, 128), _round_up(HW, 128)))
    # TODO(synk): re-derive tt from a VMEM budget and add n_e blocking (running
    # min/argmin over code blocks) for production codebooks (n_e >= 1024) on
    # v7x's 64 MiB VMEM.
    hw_pad = _round_up(HW, tt)
    num_t = hw_pad // tt

    z3 = z_nchw.reshape(B, C, HW)                     # pure reshape, no transpose
    if hw_pad != HW:
        z3 = jnp.pad(z3, ((0, 0), (0, 0), (0, hw_pad - HW)))

    emb = embedding
    e_sq = jnp.sum(emb.astype(jnp.float32) ** 2, axis=1, keepdims=True)  # (n_e,1)

    kernel = functools.partial(_vq_kernel, n_e=n_e)
    itemsize = jnp.dtype(z_nchw.dtype).itemsize

    cost = pl.CostEstimate(
        flops=int(4 * n_e * e_dim * B * hw_pad),              # two MXU matmuls
        transcendentals=0,
        bytes_accessed=int(2 * B * C * hw_pad * itemsize      # z in + z_q out
                           + 2 * B * hw_pad * 4               # idx + d_min out
                           + n_e * (e_dim + 1) * 4))          # codebook + norms

    # Rough live-VMEM budget: double-buffered z/zq blocks, resident codebook,
    # and (n_e, tt) f32 temporaries (d / masked iota / onehot) with headroom.
    vmem_bytes = (4 * C * tt * itemsize + 2 * n_e * (e_dim + 1) * 4
                  + 8 * tt * 4 + 6 * n_e * tt * 4)
    vmem_limit = int(min(max(vmem_bytes, 32 * 1024 * 1024), 64 * 1024 * 1024))

    zq3, idx3, dmin3 = pl.pallas_call(
        kernel,
        out_shape=(
            jax.ShapeDtypeStruct((B, C, hw_pad), z_nchw.dtype),
            jax.ShapeDtypeStruct((B, 1, hw_pad), jnp.int32),
            jax.ShapeDtypeStruct((B, 1, hw_pad), jnp.float32),
        ),
        grid_spec=pltpu.PrefetchScalarGridSpec(
            num_scalar_prefetch=0,
            grid=(B, num_t),
            in_specs=[
                pl.BlockSpec((None, C, tt), lambda b, t: (b, 0, t)),
                pl.BlockSpec((n_e, e_dim), lambda b, t: (0, 0)),
                pl.BlockSpec((n_e, 1), lambda b, t: (0, 0)),
            ],
            out_specs=[
                pl.BlockSpec((None, C, tt), lambda b, t: (b, 0, t)),
                pl.BlockSpec((None, 1, tt), lambda b, t: (b, 0, t)),
                pl.BlockSpec((None, 1, tt), lambda b, t: (b, 0, t)),
            ],
        ),
        compiler_params=pltpu.CompilerParams(
            dimension_semantics=("parallel", "parallel"),
            vmem_limit_bytes=vmem_limit),
        cost_estimate=cost,
    )(z3, emb, e_sq)

    codes = idx3[:, 0, :HW]                          # (B, HW) int32, pad dropped
    dmin = dmin3[:, 0, :HW]                          # (B, HW) f32,  pad dropped

    # loss forward value: mean((sg[z_q]-z)^2) + beta*mean((z_q-sg[z])^2)
    #                   == (1+beta) * mean over all B*HW*C elements
    loss = (1.0 + beta) * jnp.sum(dmin) / (N * e_dim)

    # perplexity from code-usage histogram (tiny wrapper-side scatter-add;
    # f32 counts are exact up to 2^24 tokens per code).
    counts = jnp.zeros((n_e,), jnp.float32).at[codes.reshape(-1)].add(1.0)
    e_mean = counts / N
    perplexity = jnp.exp(-jnp.sum(e_mean * jnp.log(e_mean + 1e-10)))

    # straight-through estimator forward value: z + sg[z_q - z] == z_q (NCHW)
    z_q = zq3[:, :, :HW].reshape(B, C, H, W)
    return z_q, loss, perplexity, codes.reshape(B, H, W)


def _reference(z_nchw, embedding, beta):
    """Plain-JAX reference mirroring the PyTorch forward."""
    B, C, H, W = z_nchw.shape
    n_e, e_dim = embedding.shape
    zp = jnp.transpose(z_nchw, (0, 2, 3, 1))
    zf = zp.reshape(-1, e_dim).astype(jnp.float32)
    emb = embedding.astype(jnp.float32)
    # Reduced distance: same argmin as the full ||z - e||^2 of the PyTorch
    # module (||z||^2 is constant per row), matching the kernel's formulation
    # so FP near-ties break identically.
    d = (jnp.sum(emb ** 2, axis=1)
         - 2.0 * jnp.dot(zf, emb.T, precision=jax.lax.Precision.HIGHEST))
    idx = jnp.argmin(d, axis=1)
    zq = emb[idx]
    loss = (1.0 + beta) * jnp.mean((zq - zf) ** 2)
    counts = jnp.zeros((n_e,), jnp.float32).at[idx].add(1.0)
    e_mean = counts / zf.shape[0]
    perplexity = jnp.exp(-jnp.sum(e_mean * jnp.log(e_mean + 1e-10)))
    zq_out = jnp.transpose(zq.reshape(zp.shape), (0, 3, 1, 2)).astype(z_nchw.dtype)
    return zq_out, loss, perplexity, idx.reshape(B, H, W).astype(jnp.int32)


def _check(z, embedding, beta):
    z_q, loss, perplexity, codes = jax.block_until_ready(
        vector_quantizer_2d(z, embedding, beta=beta))
    zq_ref, loss_ref, perp_ref, codes_ref = _reference(z, embedding, beta)
    np.testing.assert_array_equal(np.asarray(codes), np.asarray(codes_ref))
    np.testing.assert_allclose(np.asarray(z_q), np.asarray(zq_ref),
                               rtol=1e-4, atol=1e-5)
    np.testing.assert_allclose(float(loss), float(loss_ref), rtol=1e-4, atol=1e-6)
    np.testing.assert_allclose(float(perplexity), float(perp_ref),
                               rtol=1e-4, atol=1e-4)


if __name__ == "__main__":
    n_e, e_dim, beta = 256, 64, 0.25

    key = jax.random.PRNGKey(0)
    k_emb, k_z1, k_z2 = jax.random.split(key, 3)

    # deterministic init: embedding ~ U(-1/n_e, 1/n_e), like the PyTorch module
    embedding = jax.random.uniform(
        k_emb, (n_e, e_dim), jnp.float32, minval=-1.0 / n_e, maxval=1.0 / n_e)

    # aligned spatial size (H*W multiple of the tile)
    z1 = jax.random.normal(k_z1, (2, e_dim, 32, 32), jnp.float32)
    _check(z1, embedding, beta)

    # ragged spatial size (H*W = 400, exercises the pad-and-slice path)
    z2 = jax.random.normal(k_z2, (2, e_dim, 20, 20), jnp.float32)
    _check(z2, embedding, beta)

    print("KERNEL_OK")
</pallas_src>

<mosaic_0001>
module attributes {stable_mosaic.version = 11 : i64} {
  func.func @_vq_kernel(%arg0: i32, %arg1: i32, %arg2: memref<1x64x1024xf32, #tpu.memory_space<vmem>>, %arg3: memref<256x64xf32, #tpu.memory_space<vmem>>, %arg4: memref<256x1xf32, #tpu.memory_space<vmem>>, %arg5: memref<1x64x1024xf32, #tpu.memory_space<vmem>>, %arg6: memref<1x1x1024xi32, #tpu.memory_space<vmem>>, %arg7: memref<1x1x1024xf32, #tpu.memory_space<vmem>>) attributes {dimension_semantics = [#tpu.dimension_semantics<parallel>, #tpu.dimension_semantics<parallel>], iteration_bounds = array<i64: 2, 1>, scalar_prefetch = 0 : i64, scratch_operands = 0 : i64, tpu.core_type = #tpu.core_type<tc>, window_params = [{transform_indices = @transform_0, window_bounds = array<i64: 1, 64, 1024>}, {pipeline_mode = #tpu.pipeline_mode<synchronous>, transform_indices = @transform_1, window_bounds = array<i64: 256, 64>}, {pipeline_mode = #tpu.pipeline_mode<synchronous>, transform_indices = @transform_2, window_bounds = array<i64: 256, 1>}, {transform_indices = @transform_3, window_bounds = array<i64: 1, 64, 1024>}, {transform_indices = @transform_4, window_bounds = array<i64: 1, 1, 1024>}, {transform_indices = @transform_5, window_bounds = array<i64: 1, 1, 1024>}]} {
    %c0 = arith.constant 0 : index
    %c0_0 = arith.constant 0 : index
    %c0_1 = arith.constant 0 : index
    %0 = vector.load %arg2[%c0, %c0_0, %c0_1] : memref<1x64x1024xf32, #tpu.memory_space<vmem>>, vector<1x64x1024xf32>
    %1 = vector.shape_cast %0 : vector<1x64x1024xf32> to vector<64x1024xf32>
    %c0_2 = arith.constant 0 : index
    %c0_3 = arith.constant 0 : index
    %2 = vector.load %arg3[%c0_2, %c0_3] : memref<256x64xf32, #tpu.memory_space<vmem>>, vector<256x64xf32>
    %cst = arith.constant dense<0.000000e+00> : vector<256x1024xf32>
    %3 = tpu.matmul %2, %1, %cst {dimension_numbers = #tpu.dot_dimension_numbers<[1], [0], [0], [1], [0, 0, 1, 1], [], []>} : vector<256x64xf32>, vector<64x1024xf32>, vector<256x1024xf32> -> vector<256x1024xf32>
    %c0_4 = arith.constant 0 : index
    %c0_5 = arith.constant 0 : index
    %4 = vector.load %arg4[%c0_4, %c0_5] : memref<256x1xf32, #tpu.memory_space<vmem>>, vector<256x1xf32>
    %cst_6 = arith.constant 2.000000e+00 : f32
    %5 = vector.broadcast %cst_6 : f32 to vector<256x1024xf32>
    %6 = arith.mulf %5, %3 : vector<256x1024xf32>
    %7 = vector.broadcast %4 : vector<256x1xf32> to vector<256x1024xf32>
    %8 = arith.subf %7, %6 : vector<256x1024xf32>
    %cst_7 = arith.constant dense<0x7F800000> : vector<1024xf32>
    %9 = vector.multi_reduction <minimumf>, %8, %cst_7 [0] : vector<256x1024xf32> to vector<1024xf32>
    %10 = vector.shape_cast %9 : vector<1024xf32> to vector<1x1024xf32>
    %11 = tpu.iota {dimensions = array<i32: 0>} : vector<256x1xi32>
    %12 = vector.broadcast %10 : vector<1x1024xf32> to vector<256x1024xf32>
    %13 = arith.cmpf oeq, %8, %12 : vector<256x1024xf32>
    %c256_i32 = arith.constant 256 : i32
    %14 = vector.shape_cast %11 : vector<256x1xi32> to vector<256x1xi32>
    %15 = vector.broadcast %14 : vector<256x1xi32> to vector<256x1024xi32>
    %16 = vector.broadcast %c256_i32 : i32 to vector<256x1024xi32>
    %17 = arith.select %13, %15, %16 : vector<256x1024xi1>, vector<256x1024xi32>
    %cst_8 = arith.constant dense<2147483647> : vector<1024xi32>
    %18 = vector.multi_reduction <minsi>, %17, %cst_8 [0] : vector<256x1024xi32> to vector<1024xi32>
    %19 = vector.shape_cast %18 : vector<1024xi32> to vector<1x1024xi32>
    %c0_9 = arith.constant 0 : index
    %c0_10 = arith.constant 0 : index
    %c0_11 = arith.constant 0 : index
    %20 = vector.load %arg6[%c0_9, %c0_10, %c0_11] : memref<1x1x1024xi32, #tpu.memory_space<vmem>>, vector<1x1x1024xi32>
    %21 = vector.shape_cast %20 : vector<1x1x1024xi32> to vector<1x1024xi32>
    %22 = vector.shape_cast %19 : vector<1x1024xi32> to vector<1x1x1024xi32>
    tpu.vector_store %arg6[%c0_9, %c0_10, %c0_11], %22 {strides = array<i32>} : memref<1x1x1024xi32, #tpu.memory_space<vmem>>, vector<1x1x1024xi32>,
    %23 = vector.broadcast %11 : vector<256x1xi32> to vector<256x1024xi32>
    %24 = vector.broadcast %19 : vector<1x1024xi32> to vector<256x1024xi32>
    %25 = arith.cmpi eq, %23, %24 : vector<256x1024xi32>
    %26 = arith.extui %25 : vector<256x1024xi1> to vector<256x1024xi32>
    %27 = arith.sitofp %26 : vector<256x1024xi32> to vector<256x1024xf32>
    %cst_12 = arith.constant dense<0.000000e+00> : vector<64x1024xf32>
    %28 = tpu.matmul %2, %27, %cst_12 {dimension_numbers = #tpu.dot_dimension_numbers<[0], [0], [1], [1], [0, 1, 1, 1], [], []>} : vector<256x64xf32>, vector<256x1024xf32>, vector<64x1024xf32> -> vector<64x1024xf32>
    %c0_13 = arith.constant 0 : index
    %c0_14 = arith.constant 0 : index
    %c0_15 = arith.constant 0 : index
    %29 = vector.load %arg5[%c0_13, %c0_14, %c0_15] : memref<1x64x1024xf32, #tpu.memory_space<vmem>>, vector<1x64x1024xf32>
    %30 = vector.shape_cast %29 : vector<1x64x1024xf32> to vector<64x1024xf32>
    %31 = vector.shape_cast %28 : vector<64x1024xf32> to vector<1x64x1024xf32>
    tpu.vector_store %arg5[%c0_13, %c0_14, %c0_15], %31 {strides = array<i32>} : memref<1x64x1024xf32, #tpu.memory_space<vmem>>, vector<1x64x1024xf32>,
    %32 = arith.mulf %1, %1 : vector<64x1024xf32>
    %cst_16 = arith.constant dense<0.000000e+00> : vector<1024xf32>
    %33 = vector.multi_reduction <add>, %32, %cst_16 [0] : vector<64x1024xf32> to vector<1024xf32>
    %34 = vector.shape_cast %33 : vector<1024xf32> to vector<1x1024xf32>
    %35 = arith.addf %10, %34 : vector<1x1024xf32>
    %cst_17 = arith.constant 0.000000e+00 : f32
    %36 = vector.broadcast %cst_17 : f32 to vector<1x1024xf32>
    %37 = arith.maximumf %35, %36 : vector<1x1024xf32>
    %c0_18 = arith.constant 0 : index
    %c0_19 = arith.constant 0 : index
    %c0_20 = arith.constant 0 : index
    %38 = vector.load %arg7[%c0_18, %c0_19, %c0_20] : memref<1x1x1024xf32, #tpu.memory_space<vmem>>, vector<1x1x1024xf32>
    %39 = vector.shape_cast %38 : vector<1x1x1024xf32> to vector<1x1024xf32>
    %40 = vector.shape_cast %37 : vector<1x1024xf32> to vector<1x1x1024xf32>
    tpu.vector_store %arg7[%c0_18, %c0_19, %c0_20], %40 {strides = array<i32>} : memref<1x1x1024xf32, #tpu.memory_space<vmem>>, vector<1x1x1024xf32>,
    return
  }
  func.func @transform_0(%arg0: i32, %arg1: i32) -> (i32, i32, i32) {
    %c0_i32 = arith.constant 0 : i32
    %c0_i32_0 = arith.constant 0 : i32
    return %arg0, %c0_i32, %arg1 : i32, i32, i32
  }
  func.func @transform_1(%arg0: i32, %arg1: i32) -> (i32, i32) {
    %c0_i32 = arith.constant 0 : i32
    %c0_i32_0 = arith.constant 0 : i32
    %c0_i32_1 = arith.constant 0 : i32
    return %c0_i32, %c0_i32_0 : i32, i32
  }
  func.func @transform_2(%arg0: i32, %arg1: i32) -> (i32, i32) {
    %c0_i32 = arith.constant 0 : i32
    %c0_i32_0 = arith.constant 0 : i32
    %c0_i32_1 = arith.constant 0 : i32
    return %c0_i32, %c0_i32_0 : i32, i32
  }
  func.func @transform_3(%arg0: i32, %arg1: i32) -> (i32, i32, i32) {
    %c0_i32 = arith.constant 0 : i32
    %c0_i32_0 = arith.constant 0 : i32
    return %arg0, %c0_i32, %arg1 : i32, i32, i32
  }
  func.func @transform_4(%arg0: i32, %arg1: i32) -> (i32, i32, i32) {
    %c0_i32 = arith.constant 0 : i32
    %c0_i32_0 = arith.constant 0 : i32
    return %arg0, %c0_i32, %arg1 : i32, i32, i32
  }
  func.func @transform_5(%arg0: i32, %arg1: i32) -> (i32, i32, i32) {
    %c0_i32 = arith.constant 0 : i32
    %c0_i32_0 = arith.constant 0 : i32
    return %arg0, %c0_i32, %arg1 : i32, i32, i32
  }
}

</mosaic_0001>

<bundles_post_ra>
// kernel: tpu_custom_call.1
= control target key start
LH: loop header
LB: loop body
LE: loop exit
PB: predicated region body
PF: predicated region fallthrough
CT: control target
= control target key end

     0   :  { %11 = vsyncpa [#allocation3], 0  ;;  %s12937_s0 = inlined_call_operand.hbm [shape: f32[2,64,1024], index: 0, kind: input, shape index: {}]   ;;  %s12938_s1 = inlined_call_operand.vmem [shape: f32[256,64], index: 1, kind: input, shape index: {}]   ;;  %s12939_s2 = inlined_call_operand.vmem [shape: f32[256,1], index: 2, kind: input, shape index: {}]   ;;  %s12940_s3 = inlined_call_operand.hbm [shape: f32[2,64,1024], index: 3, kind: output, shape index: {0}]   ;;  %s12941_s4 = inlined_call_operand.hbm [shape: s32[2,1,1024], index: 4, kind: output, shape index: {1}]   ;;  %s12942_s5 = inlined_call_operand.hbm [shape: f32[2,1,1024], index: 5, kind: output, shape index: {2}]  }
   0x1   :  { %13 = vsyncpa [#allocation3 + $0x1], 0 }
   0x2   :  { %14 = vsyncpa [#allocation4], 0 }
   0x3   :  { %16 = vsyncpa [#allocation4 + $0x1], 0 }
   0x4   :  { %17 = vsyncpa [#allocation7], 0 }
   0x5   :  { %19 = vsyncpa [#allocation7 + $0x1], 0  ;;  %s6863_s18 = smov 0   ;;  %s6865_s19 = smov 0  }
   0x6   :  { %s6867_s20 = smov 0   ;;  %s6869_s21 = smov 0  }
   0x7   :  { %s6871_s22 = smov 0   ;;  %s6873_s23 = smov 0  }
   0x8 LB: > { %s6894_s24 = sadd.s32 4294967295, %s6819_s23   ;;  %s13537_s25 = sadd.s32 4294967294, %s6819_s23   ;;  %s6819_s23 = sphi %s6873_s23, %s25_s23   ;;  %s6815_s22 = sphi %s6871_s22, %s14612_s22   ;;  %s6811_s21 = sphi %s6869_s21, %s14611_s21   ;;  %s6807_s20 = sphi %s6867_s20, %s14610_s20   ;;  %s6803_s19 = sphi %s6865_s19, %s14609_s19   ;;  %s6799_s18 = sphi %s6863_s18, %s14608_s18  }
   0x9   : > { %s37_s26 = sadd.s32 1, %s6815_s22  ;;  %s46_s27 = sadd.s32 1, %s6807_s20 }
   0xa   : > { %p39_p0 = scmp.ge.s32.totalorder %s37_s26, 2  ;;  %p53_p1 = scmp.ne.s32.totalorder %s6807_s20, %s6803_s19 }
   0xb   : > { %p54_p2 = scmp.eq.s32.totalorder %s6819_s23, 0  ;;  %p59_p3 = scmp.ne.s32.totalorder %s6803_s19, %s6799_s18 }
   0xc   : > { %s14614_s26 = smov (%p39_p0, %s37_s26), 0  ;;  %p60_p5 = scmp.eq.s32.totalorder %s6894_s24, 0 }
   0xd   : > { %p6906_p4 = por %p54_p2, %p53_p1  ;;  %s41_s29 = ssub.s32 %s6815_s22, %s14614_s26 }
   0xe   : > { %p127_p6 = scmp.eq.s32.totalorder %s6894_s24, 1  ;;  %p44_p7 = scmp.eq.s32.totalorder %s41_s29, 0 }
   0xf   : > { %p6914_p8 = por %p60_p5, %p59_p3  ;;  %p133_p10 = scmp.eq.s32.totalorder %s13537_s25, 1 }
  0x10   : > { %p6918_p9 = por %p127_p6, %p53_p1  ;;  %p6483_p13 = scmp.lt.s32.totalorder %s6819_s23, 2 }
  0x11   : > { %s6925_s7 = scalar_select %p44_p7, %s6807_s20, %s46_s27  }
  0x12   : > { %s13540_s6 = scalar_select %p6918_p9, 1, 0 }
  0x13   : > { %p6927_p11 = por %p133_p10, %p59_p3  ;;  %s215_s9 = sand.u32 1, %s6807_s20  }
  0x14   : > { %s5478_s10 = sshll.u32 %s215_s9, 9  ;;  %s6137_s11 = sshll.u32 %s6815_s22, 13 }
  0x15   : > { %s13541_s8 = scalar_select %p6927_p11, 1, 0 }
  0x16   : > { %s6938_s14 = scalar_lea.hbm %s12937_s0, %s6137_s11  ;;  %s219_s15 = scalar_lea.vmem [#allocation2], %s5478_s10 }
  0x17   : > { %s228_s16 = sshll.u32 %s219_s15, 4  ;;  %p6944_p0 = pnand %p6483_p13, %p6906_p4  ;;  %s6940_s16 = int_to_ptr.vmem [resolvable:$true] %s228_s16 }
  0x18   : > { %s6949_s27 = scalar_lea.sflag [#allocation3], %s215_s9  ;;  %s6647_s29 = scalar_lea.hbm %s6938_s14, 8192 }
  0x19   : > { %p6648_p2 = scmp.ne.s32.totalorder %s6938_s14, %s6647_s29  ;;  %p6649_p3 = pneg %p6944_p0 }
  0x1a   : > { %s6652_s28 = scalar_lea.hbm %s12937_s0, 16384  ;;  %p6653_p4 = scmp.lt.u32.totalorder %s6938_s14, %s12937_s0 }
  0x1b   : > { %p6650_p5 = pnand %p6649_p3, %p6648_p2  ;;  %p6654_p7 = scmp.lt.u32.totalorder %s6652_s28, %s6647_s29 }
  0x1c   : > { %p6656_p13 = scmp.lt.u32.totalorder %s6647_s29, %s6938_s14 }
  0x1d   : > { %p6651_p6 = pneg %p6650_p5  ;;  %p6655_p10 = por %p6654_p7, %p6653_p4 }
  0x1f   : > { %p6657_p12 = por %p6656_p13, %p6655_p10 }
  0x21   : > { %p6658_p1 = pnand %p6657_p12, %p6651_p6 }
  0x23   : > { %6661 = shalt.err (!%p6658_p1)
}
  0x24   : > { %s6662_s9 = scalar_lea.vmem %s6940_s16, 8192  ;;  %s6821_s15 = smov [#allocation2]  }
  0x25   : > { %p6663_p2 = scmp.ne.s32.totalorder %s6940_s16, %s6662_s9  ;;  %s6667_s10 = sshll.u32 %s6821_s15, 4  ;;  %s6668_s10 = int_to_ptr.vmem [resolvable:$false] %s6667_s10 }
  0x26   : > { %s6669_s11 = scalar_lea.vmem %s6668_s10, 16384  ;;  %p6670_p9 = scmp.lt.s32.totalorder %s6940_s16, %s6668_s10 }
  0x27   : > { %p6665_p5 = pnand %p6663_p2, %p6649_p3  ;;  %p6671_p4 = scmp.lt.s32.totalorder %s6669_s11, %s6662_s9 }
  0x29   : > { %p6666_p11 = pneg %p6665_p5  ;;  %p6672_p7 = por %p6671_p4, %p6670_p9 }
  0x2b   : > { %p6673_p10 = pnand %p6672_p7, %p6666_p11 }
  0x2d   : > { %6676 = shalt.err (!%p6673_p10)
}
  0x2e   : > { %s6822_s29 = smov 1024   ;;  %s6823_s28 = smov 64  }
  0x2f   : > { %6472 = dma.hbm_to_vmem [thread:$0]  (!%p6944_p0), %s6938_s14, 8192, %s6940_s16, %s6949_s27, %s6822_s29, %s6822_s29, %s6823_s28  }
  0x30   : > { %p236_p12 = scmp.lt.s32.totalorder %s6819_s23, 3  ;;  %p13543_p1 = scmp.ge.s32.totalorder %s6819_s23, 1 }
  0x32   : > { %p237_p3 = pnand %p13543_p1, %p236_p12 }
  0x34   : > { %240 = sbr.rel (%p237_p3) target bundleno = 1224 (0x4c8), region = 32 }
  0x3b   : > { %s6981_s12 = sand.u32 1, %s6803_s19  }
  0x3c   : > { %s5482_s13 = sshll.u32 %s6981_s12, 9  ;;  %s243_s9 = scalar_lea.sflag [#allocation3], %s6981_s12 }
  0x3d   : > { %s6987_s15 = scalar_lea.vmem [#allocation2], %s5482_s13 }
  0x3e   : > { %6786 = dma.done.wait (%p6914_p8), %s243_s9, 8192  }
  0x3f   : > { %6788 = vsyncadd (%p6914_p8), %s243_s9, 4294959104  ;;  %v6824_v0 = vmov 0.0   ;;  %v6825_v1 = vmov 0   ;;  %v288_v2 = vld [vmem:[%s6987_s15 + $0x8] sm:$0xff]  ;;  %v290_v4 = vld [vmem:[%s6987_s15 + $0x18] sm:$0xff]  ;;  %vm383_vm0 = vcmask 523264  }
  0x40   : > { %544 = vmatprep.mubr.f32.mxu0 %v6824_v0  ;;  %801 = vmatprep.mubr.f32.mxu1 %v6824_v0  ;;  %v296_v3 = vld [vmem:[%s6987_s15 + $0x48] sm:$0xff]  ;;  %v5020_v6 = vmul.f32 %v288_v2, %v288_v2  ;;  %v298_v8 = vld [vmem:[%s6987_s15 + $0x58] sm:$0xff]  ;;  %v5022_v9 = vmul.f32 %v290_v4, %v290_v4  ;;  %v287_v10 = vld [vmem:[%s6987_s15] sm:$0xff]  ;;  %s5484_s11 = sshll.u32 %s6981_s12, 3  ;;  %s12751_s9 = scalar_lea.vmem [#allocation5], %s5482_s13 }
  0x41   : > { %6541 = vset.pattern.permute.xlu0 %v6825_v1  ;;  %6542 = vset.pattern.permute.xlu1 %v6825_v1  ;;  %v6141_v5 = vpack.c.bf16 %v296_v3, %v288_v2  ;;  %v5028_v7 = vmul.f32 %v296_v3, %v296_v3  ;;  %v295_v11 = vld [vmem:[%s6987_s15 + $0x40] sm:$0xff]  ;;  %v6157_v12 = vpack.c.bf16 %v298_v8, %v290_v4  ;;  %v289_v16 = vld [vmem:[%s6987_s15 + $0x10] sm:$0xff]  ;;  %v304_v18 = vld [vmem:[%s6987_s15 + $0x88] sm:$0xff]  ;;  %s12545_s29 = scalar_lea.vmem [#allocation8], %s5484_s11  ;;  %s12737_s28 = scalar_lea.vmem [#allocation6], %s5484_s11 }
  0x42   : > { %v5030_v13 = vmul.f32 %v298_v8, %v298_v8  ;;  %v6143_v14 = vpack.c.bf16 %v295_v11, %v287_v10  ;;  %v5019_v15 = vmul.f32 %v287_v10, %v287_v10  ;;  %v297_v17 = vld [vmem:[%s6987_s15 + $0x50] sm:$0xff]  ;;  %v5027_v20 = vmul.f32 %v295_v11, %v295_v11  ;;  %v312_v23 = vld [vmem:[%s6987_s15 + $0xc8] sm:$0xff]  ;;  %v306_v24 = vld [vmem:[%s6987_s15 + $0x98] sm:$0xff]  ;;  %s5267_s13 = sand.u32 1, %s6894_s24   ;;  %s6139_s30 = sshll.u32 %s6811_s21, 7 }
  0x43   : > { %6142 = vmatprep.subr.bf16.mxu0 %v6141_v5  ;;  %v5096_v19 = vadd.f32 %v5028_v7, %v5020_v6  ;;  %v6159_v21 = vpack.c.bf16 %v297_v17, %v289_v16  ;;  %v5021_v22 = vmul.f32 %v289_v16, %v289_v16  ;;  %v314_v25 = vld [vmem:[%s6987_s15 + $0xd8] sm:$0xff]  ;;  %6158 = vmatprep.subr.bf16.mxu1 %v6157_v12  ;;  %v303_v29 = vld [vmem:[%s6987_s15 + $0x80] sm:$0xff]  ;;  %v305_v31 = vld [vmem:[%s6987_s15 + $0x90] sm:$0xff]  ;;  %s12784_s17 = scalar_lea.hbm %s12941_s4, %s6139_s30  ;;  %s5307_s27 = sshll.u32 %s12737_s28, 4  ;;  %s12789_s27 = int_to_ptr.vmem [resolvable:$true] %s5307_s27 }
  0x44   : > { %v5122_v26 = vadd.f32 %v5030_v13, %v5022_v9  ;;  %6144 = vmatpush1.bf16.msra.mxu0 %v6143_v14  ;;  %v5029_v27 = vmul.f32 %v297_v17, %v297_v17  ;;  %v6145_v28 = vpack.c.bf16 %v312_v23, %v304_v18  ;;  %v311_v30 = vld [vmem:[%s6987_s15 + $0xc0] sm:$0xff]  ;;  %v5083_v32 = vadd.f32 %v5027_v20, %v5019_v15  ;;  %v313_v36 = vld [vmem:[%s6987_s15 + $0xd0] sm:$0xff]  ;;  %v320_v37 = vld [vmem:[%s6987_s15 + $0x108] sm:$0xff]  ;;  %s12793_s24 = scalar_lea.sflag [#allocation7], %s5267_s13  ;;  %s6677_s10 = scalar_lea.vmem %s12789_s27, 128 }
  0x45   : > { %6160 = vmatpush1.bf16.msra.mxu1 %v6159_v21  ;;  %v5036_v33 = vmul.f32 %v304_v18, %v304_v18  ;;  %v5044_v34 = vmul.f32 %v312_v23, %v312_v23  ;;  %v6161_v35 = vpack.c.bf16 %v314_v25, %v306_v24  ;;  %v328_v38 = vld [vmem:[%s6987_s15 + $0x148] sm:$0xff]  ;;  %v5038_v40 = vmul.f32 %v306_v24, %v306_v24  ;;  %v322_v47 = vld [vmem:[%s6987_s15 + $0x118] sm:$0xff]  ;;  %v319_v53 = vld [vmem:[%s6987_s15 + $0x100] sm:$0xff]  ;;  %p6678_p8 = scmp.ne.s32.totalorder %s12789_s27, %s6677_s10  ;;  %p14604_p9 = scmp.ne.s32.totalorder %s13540_s6, 0 }
  0x46   : > { %v5109_v39 = vadd.f32 %v5029_v27, %v5021_v22  ;;  %6146 = vmatprep.subr.bf16.mxu0 %v6145_v28  ;;  %v5046_v41 = vmul.f32 %v314_v25, %v314_v25  ;;  %v6147_v42 = vpack.c.bf16 %v311_v30, %v303_v29  ;;  %v5035_v44 = vmul.f32 %v303_v29, %v303_v29  ;;  %v330_v48 = vld [vmem:[%s6987_s15 + $0x158] sm:$0xff]  ;;  %v327_v54 = vld [vmem:[%s6987_s15 + $0x140] sm:$0xff]  ;;  %v321_v63 = vld [vmem:[%s6987_s15 + $0x110] sm:$0xff] }
  0x47   : > { %v5097_v43 = vadd.f32 %v5096_v19, %v5036_v33  ;;  %6162 = vmatprep.subr.bf16.mxu1 %v6161_v35  ;;  %v5043_v45 = vmul.f32 %v311_v30, %v311_v30  ;;  %v6163_v46 = vpack.c.bf16 %v313_v36, %v305_v31  ;;  %v5123_v49 = vadd.f32 %v5122_v26, %v5038_v40  ;;  %v329_v1 = vld [vmem:[%s6987_s15 + $0x150] sm:$0xff]  ;;  %v336_v6 = vld [vmem:[%s6987_s15 + $0x188] sm:$0xff]  ;;  %v338_v12 = vld [vmem:[%s6987_s15 + $0x198] sm:$0xff]  ;;  %p6679_p11 = pnand %p6678_p8, %p14604_p9 }
  0x48   : > { %6148 = vmatpush1.bf16.msra.mxu0 %v6147_v42  ;;  %v5037_v50 = vmul.f32 %v305_v31, %v305_v31  ;;  %v5045_v51 = vmul.f32 %v313_v36, %v313_v36  ;;  %v6149_v52 = vpack.c.bf16 %v328_v38, %v320_v37  ;;  %v5084_v56 = vadd.f32 %v5083_v32, %v5035_v44  ;;  %v344_v7 = vld [vmem:[%s6987_s15 + $0x1c8] sm:$0xff]  ;;  %v346_v13 = vld [vmem:[%s6987_s15 + $0x1d8] sm:$0xff]  ;;  %v335_v18 = vld [vmem:[%s6987_s15 + $0x180] sm:$0xff] }
  0x49   : > { %v5098_v55 = vadd.f32 %v5097_v43, %v5044_v34  ;;  %6164 = vmatpush1.bf16.msra.mxu1 %v6163_v46  ;;  %v5052_v57 = vmul.f32 %v320_v37, %v320_v37  ;;  %v5060_v58 = vmul.f32 %v328_v38, %v328_v38  ;;  %v5124_v59 = vadd.f32 %v5123_v49, %v5046_v41  ;;  %v343_v19 = vld [vmem:[%s6987_s15 + $0x1c0] sm:$0xff]  ;;  %v337_v28 = vld [vmem:[%s6987_s15 + $0x190] sm:$0xff]  ;;  %v292_v34 = vld [vmem:[%s6987_s15 + $0x28] sm:$0xff]  ;;  %p6680_p0 = pneg %p6679_p11 }
  0x4a   : > { %v5110_v60 = vadd.f32 %v5109_v39, %v5037_v50  ;;  %6150 = vmatprep.subr.bf16.mxu0 %v6149_v52  ;;  %v6165_v61 = vpack.c.bf16 %v330_v48, %v322_v47  ;;  %v5054_v62 = vmul.f32 %v322_v47, %v322_v47  ;;  %v5085_v2 = vadd.f32 %v5084_v56, %v5043_v45  ;;  %v345_v29 = vld [vmem:[%s6987_s15 + $0x1d0] sm:$0xff]  ;;  %v300_v35 = vld [vmem:[%s6987_s15 + $0x68] sm:$0xff]  ;;  %v294_v40 = vld [vmem:[%s6987_s15 + $0x38] sm:$0xff] }
  0x4b   : > { %v5099_v3 = vadd.f32 %v5098_v55, %v5052_v57  ;;  %v5062_v4 = vmul.f32 %v330_v48, %v330_v48  ;;  %v6151_v5 = vpack.c.bf16 %v327_v54, %v319_v53  ;;  %v5051_v10 = vmul.f32 %v319_v53, %v319_v53  ;;  %v302_v41 = vld [vmem:[%s6987_s15 + $0x78] sm:$0xff]  ;;  %v7036_v46 = vld [vmem:[%s12938_s1] sm:$0xff] }
  0x4c   : > { %v5111_v8 = vadd.f32 %v5110_v60, %v5045_v51  ;;  %6166 = vmatprep.subr.bf16.mxu1 %v6165_v61  ;;  %v5125_v9 = vadd.f32 %v5124_v59, %v5054_v62  ;;  %v5059_v11 = vmul.f32 %v327_v54, %v327_v54  ;;  %v6167_v15 = vpack.c.bf16 %v329_v1, %v321_v63  ;;  %v291_v51 = vld [vmem:[%s6987_s15 + $0x20] sm:$0xff]  ;;  %v293_v59 = vld [vmem:[%s6987_s15 + $0x30] sm:$0xff] }
  0x4d   : > { %v5100_v14 = vadd.f32 %v5099_v3, %v5060_v58  ;;  %6152 = vmatpush1.bf16.msra.mxu0 %v6151_v5  ;;  %v5053_v16 = vmul.f32 %v321_v63, %v321_v63  ;;  %v5061_v17 = vmul.f32 %v329_v1, %v329_v1  ;;  %v5086_v21 = vadd.f32 %v5085_v2, %v5051_v10  ;;  %v299_v52 = vld [vmem:[%s6987_s15 + $0x60] sm:$0xff]  ;;  %v301_v60 = vld [vmem:[%s6987_s15 + $0x70] sm:$0xff]  ;;  %v7053_v1 = vld [vmem:[%s12938_s1 + $0x8] sm:$0xff] }
  0x4e   : > { %v5126_v20 = vadd.f32 %v5125_v9, %v5062_v4  ;;  %v6153_v22 = vpack.c.bf16 %v344_v7, %v336_v6  ;;  %v5068_v23 = vmul.f32 %v336_v6, %v336_v6  ;;  %6168 = vmatpush1.bf16.msra.mxu1 %v6167_v15  ;;  %v5076_v25 = vmul.f32 %v344_v7, %v344_v7  ;;  %v308_v6 = vld [vmem:[%s6987_s15 + $0xa8] sm:$0xff]  ;;  %v7066_v10 = vld [vmem:[%s12938_s1 + $0x10] sm:$0xff] }
  0x4f   : > { %v5112_v24 = vadd.f32 %v5111_v8, %v5053_v16  ;;  %v6169_v26 = vpack.c.bf16 %v346_v13, %v338_v12  ;;  %v5070_v27 = vmul.f32 %v338_v12, %v338_v12  ;;  %v5087_v30 = vadd.f32 %v5086_v21, %v5059_v11  ;;  %v316_v7 = vld [vmem:[%s6987_s15 + $0xe8] sm:$0xff]  ;;  %v310_v12 = vld [vmem:[%s6987_s15 + $0xb8] sm:$0xff]  ;;  %v315_v21 = vld [vmem:[%s6987_s15 + $0xe0] sm:$0xff] }
  0x50   : > { %6154 = vmatprep.subr.bf16.mxu0 %v6153_v22  ;;  %v5101_v31 = vadd.f32 %v5100_v14, %v5068_v23  ;;  %v5078_v32 = vmul.f32 %v346_v13, %v346_v13  ;;  %v6155_v33 = vpack.c.bf16 %v343_v19, %v335_v18  ;;  %v5067_v38 = vmul.f32 %v335_v18, %v335_v18  ;;  %v318_v13 = vld [vmem:[%s6987_s15 + $0xf8] sm:$0xff]  ;;  %v1508_v14 = vld [vmem:[%s12939_s2] sm:$0xff] }
  0x51   : > { %v5113_v36 = vadd.f32 %v5112_v24, %v5061_v17  ;;  %6170 = vmatprep.subr.bf16.mxu1 %v6169_v26  ;;  %v5127_v37 = vadd.f32 %v5126_v20, %v5070_v27  ;;  %v5075_v39 = vmul.f32 %v343_v19, %v343_v19  ;;  %v6171_v43 = vpack.c.bf16 %v345_v29, %v337_v28  ;;  %v1510_v17 = vld [vmem:[%s12939_s2 + $0x10] sm:$0xff]  ;;  %v307_v20 = vld [vmem:[%s6987_s15 + $0xa0] sm:$0xff]  ;;  %v1509_v24 = vld [vmem:[%s12939_s2 + $0x8] sm:$0xff] }
  0x52   : > { %v7031_v42 = vadd.f32 %v5101_v31, %v5076_v25  ;;  %6156 = vmatpush1.bf16.msra.mxu0 %v6155_v33  ;;  %v5069_v44 = vmul.f32 %v337_v28, %v337_v28  ;;  %v5077_v45 = vmul.f32 %v345_v29, %v345_v29  ;;  %v5088_v48 = vadd.f32 %v5087_v30, %v5067_v38  ;;  %v7091_v25 = vld [vmem:[%s12938_s1 + $0x18] sm:$0xff]  ;;  %v309_v28 = vld [vmem:[%s6987_s15 + $0xb0] sm:$0xff] }
  0x53   : > { %v7038_v47 = vadd.f32 %v5127_v37, %v5078_v32  ;;  %v6173_v49 = vpack.c.bf16 %v300_v35, %v292_v34  ;;  %v5024_v50 = vmul.f32 %v292_v34, %v292_v34  ;;  %6172 = vmatpush1.bf16.msra.mxu1 %v6171_v43  ;;  %v5032_v54 = vmul.f32 %v300_v35, %v300_v35  ;;  %v317_v29 = vld [vmem:[%s6987_s15 + $0xf0] sm:$0xff]  ;;  %v324_v35 = vld [vmem:[%s6987_s15 + $0x128] sm:$0xff]  ;;  %v7108_v43 = vld [vmem:[%s12938_s1 + $0x20] sm:$0xff] }
  0x54   : > { %v5114_v53 = vadd.f32 %v5113_v36, %v5069_v44  ;;  %v6189_v55 = vpack.c.bf16 %v302_v41, %v294_v40  ;;  %v7042_v56 = vadd.f32 %v5088_v48, %v5075_v39  ;;  %v5026_v57 = vmul.f32 %v294_v40, %v294_v40  ;;  %1798 = vperm.xlu0 %6541, %v1508_v14   ;;  %v332_v36 = vld [vmem:[%s6987_s15 + $0x168] sm:$0xff]  ;;  %v326_v40 = vld [vmem:[%s6987_s15 + $0x138] sm:$0xff] }
  0x55   : > { %5486 = vmatmul.mubr.msk.f32.vlgmr.msra.gmra.mrb[0].mxu0 %vm383_vm0, %v7036_v46  ;;  %6174 = vmatprep.subr.bf16.mxu0 %v6173_v49  ;;  %v5034_v58 = vmul.f32 %v302_v41, %v302_v41  ;;  %v5148_v62 = vadd.f32 %v5032_v54, %v5024_v50  ;;  %v6175_v63 = vpack.c.bf16 %v299_v52, %v291_v51  ;;  %v334_v41 = vld [vmem:[%s6987_s15 + $0x178] sm:$0xff] }
  0x56   : > { %v7048_v61 = vadd.f32 %v5114_v53, %v5077_v45  ;;  %6190 = vmatprep.subr.bf16.mxu1 %v6189_v55  ;;  %5518 = vmatmul.mubr.msk.f32.vlgmr.msra.gmra.mrb[0].mxu1 %vm383_vm0, %v7036_v46  ;;  %v5023_v3 = vmul.f32 %v291_v51, %v291_v51  ;;  %v5031_v4 = vmul.f32 %v299_v52, %v299_v52  ;;  %v323_v52 = vld [vmem:[%s6987_s15 + $0x120] sm:$0xff]  ;;  %v342_v14 = vld [vmem:[%s6987_s15 + $0x1b8] sm:$0xff] }
  0x57   : > { %v5174_v2 = vadd.f32 %v5034_v58, %v5026_v57  ;;  %550 = vmatprep.mubr.f32.mxu0 %v6824_v0  ;;  %6176 = vmatpush1.bf16.msra.mxu0 %v6175_v63  ;;  %v6191_v5 = vpack.c.bf16 %v301_v60, %v293_v59  ;;  %v5025_v8 = vmul.f32 %v293_v59, %v293_v59  ;;  %v331_v53 = vld [vmem:[%s6987_s15 + $0x160] sm:$0xff]  ;;  %v325_v58 = vld [vmem:[%s6987_s15 + $0x130] sm:$0xff] }
  0x58   : > { %807 = vmatprep.mubr.f32.mxu1 %v6824_v0  ;;  %v5033_v9 = vmul.f32 %v301_v60, %v301_v60  ;;  %v5135_v11 = vadd.f32 %v5031_v4, %v5023_v3  ;;  %v6177_v16 = vpack.c.bf16 %v316_v7, %v308_v6  ;;  %v5040_v18 = vmul.f32 %v308_v6, %v308_v6  ;;  %v333_v59 = vld [vmem:[%s6987_s15 + $0x170] sm:$0xff]  ;;  %v340_v6 = vld [vmem:[%s6987_s15 + $0x1a8] sm:$0xff] }
  0x59   : > { %5487 = vmatmul.mubr.msk.f32.gmra.mrb[2].mxu0 %vm383_vm0, %v7053_v1  ;;  %6192 = vmatpush1.bf16.msra.mxu1 %v6191_v5  ;;  %v5048_v19 = vmul.f32 %v316_v7, %v316_v7  ;;  %v6193_v22 = vpack.c.bf16 %v318_v13, %v310_v12  ;;  %v5042_v23 = vmul.f32 %v310_v12, %v310_v12  ;;  %v348_v7 = vld [vmem:[%s6987_s15 + $0x1e8] sm:$0xff] }
  0x5a   : > { %556 = vmatprep.mubr.f32.mxu0 %v6824_v0  ;;  %v5161_v15 = vadd.f32 %v5033_v9, %v5025_v8  ;;  %5519 = vmatmul.mubr.msk.f32.gmra.mrb[2].mxu1 %vm383_vm0, %v7053_v1  ;;  %v5149_v26 = vadd.f32 %v5148_v62, %v5040_v18  ;;  %v5050_v27 = vmul.f32 %v318_v13, %v318_v13  ;;  %v1511_v13 = vld [vmem:[%s12939_s2 + $0x18] sm:$0xff] }
  0x5b   : > { %813 = vmatprep.mubr.f32.mxu1 %v6824_v0  ;;  %1808 = vperm.xlu1 %6542, %v1510_v17   ;;  %v5175_v30 = vadd.f32 %v5174_v2, %v5042_v23  ;;  %v6179_v31 = vpack.c.bf16 %v315_v21, %v307_v20  ;;  %v5039_v33 = vmul.f32 %v307_v20, %v307_v20  ;;  %v7123_v2 = vld [vmem:[%s12938_s1 + $0x28] sm:$0xff]  ;;  %v339_v23 = vld [vmem:[%s6987_s15 + $0x1a0] sm:$0xff] }
  0x5c   : > { %6178 = vmatprep.subr.bf16.mxu0 %v6177_v16  ;;  %6194 = vmatprep.subr.bf16.mxu1 %v6193_v22  ;;  %v5150_v32 = vadd.f32 %v5149_v26, %v5048_v19  ;;  %v5047_v34 = vmul.f32 %v315_v21, %v315_v21  ;;  %v6195_v38 = vpack.c.bf16 %v317_v29, %v309_v28  ;;  %v1512_v19 = vld [vmem:[%s12939_s2 + $0x20] sm:$0xff]  ;;  %v7146_v26 = vld [vmem:[%s12938_s1 + $0x30] sm:$0xff] }
  0x5d   : > { %5488 = vmatmul.mubr.msk.f32.gmra.mrb[4].mxu0 %vm383_vm0, %v7066_v10  ;;  %1803 = vperm.xlu0 %6541, %v1509_v24   ;;  %v5176_v37 = vadd.f32 %v5175_v30, %v5050_v27  ;;  %v5041_v39 = vmul.f32 %v309_v28, %v309_v28  ;;  %v5136_v44 = vadd.f32 %v5135_v11, %v5039_v33  ;;  %v347_v24 = vld [vmem:[%s6987_s15 + $0x1e0] sm:$0xff]  ;;  %v341_v33 = vld [vmem:[%s6987_s15 + $0x1b0] sm:$0xff] }
  0x5e   : > { %562 = vmatprep.mubr.f32.mxu0 %v6824_v0  ;;  %5520 = vmatmul.mubr.msk.f32.gmra.mrb[4].mxu1 %vm383_vm0, %v7066_v10  ;;  %v5049_v45 = vmul.f32 %v317_v29, %v317_v29  ;;  %v6181_v49 = vpack.c.bf16 %v332_v36, %v324_v35  ;;  %v5056_v50 = vmul.f32 %v324_v35, %v324_v35 }
  0x5f   : > { %819 = vmatprep.mubr.f32.mxu1 %v6824_v0  ;;  %6180 = vmatpush1.bf16.msra.mxu0 %v6179_v31  ;;  %v5162_v48 = vadd.f32 %v5161_v15, %v5041_v39  ;;  %v5064_v51 = vmul.f32 %v332_v36, %v332_v36  ;;  %v5137_v54 = vadd.f32 %v5136_v44, %v5047_v34  ;;  %v350_v15 = vld [vmem:[%s6987_s15 + $0x1f8] sm:$0xff]  ;;  %v349_v34 = vld [vmem:[%s6987_s15 + $0x1f0] sm:$0xff]  ;;  %s6828_s15 = smov [#allocation6]  }
  0x60   : > { %6196 = vmatpush1.bf16.msra.mxu1 %v6195_v38  ;;  %v6197_v55 = vpack.c.bf16 %v334_v41, %v326_v40  ;;  %v5058_v57 = vmul.f32 %v326_v40, %v326_v40  ;;  %6182 = vmatprep.subr.bf16.mxu0 %v6181_v49  ;;  %v5151_v62 = vadd.f32 %v5150_v32, %v5056_v50  ;;  %v1513_v38 = vld [vmem:[%s12939_s2 + $0x28] sm:$0xff]  ;;  %v7164_v44 = vld [vmem:[%s12938_s1 + $0x38] sm:$0xff]  ;;  %v1514_v50 = vld [vmem:[%s12939_s2 + $0x30] sm:$0xff]  ;;  %s6681_s11 = sshll.u32 %s6828_s15, 4  ;;  %s6682_s11 = int_to_ptr.vmem [resolvable:$false] %s6681_s11 }
  0x61   : > { %5489 = vmatmul.mubr.msk.f32.gmra.mrb[6].mxu0 %vm383_vm0, %v7091_v25  ;;  %v5163_v60 = vadd.f32 %v5162_v48, %v5049_v45  ;;  %v5066_v63 = vmul.f32 %v334_v41, %v334_v41  ;;  %v6183_v4 = vpack.c.bf16 %v331_v53, %v323_v52  ;;  %v5055_v5 = vmul.f32 %v323_v52, %v323_v52  ;;  %p6684_p6 = scmp.lt.s32.totalorder %s12789_s27, %s6682_s11 }
  0x62   : > { %568 = vmatprep.mubr.f32.mxu0 %v6824_v0  ;;  %5521 = vmatmul.mubr.msk.f32.gmra.mrb[6].mxu1 %vm383_vm0, %v7091_v25  ;;  %v5177_v3 = vadd.f32 %v5176_v37, %v5058_v57  ;;  %v5152_v8 = vadd.f32 %v5151_v62, %v5064_v51  ;;  %v5063_v9 = vmul.f32 %v331_v53, %v331_v53  ;;  %v7185_v57 = vld [vmem:[%s12938_s1 + $0x40] sm:$0xff]  ;;  %v7204_v62 = vld [vmem:[%s12938_s1 + $0x48] sm:$0xff] }
  0x63   : > { %825 = vmatprep.mubr.f32.mxu1 %v6824_v0  ;;  %6198 = vmatprep.subr.bf16.mxu1 %v6197_v55  ;;  %v6199_v11 = vpack.c.bf16 %v333_v59, %v325_v58  ;;  %v5057_v12 = vmul.f32 %v325_v58, %v325_v58  ;;  %v5138_v17 = vadd.f32 %v5137_v54, %v5055_v5  ;;  %v1515_v55 = vld [vmem:[%s12939_s2 + $0x38] sm:$0xff]  ;;  %v1520_v5 = vld [vmem:[%s12939_s2 + $0x60] sm:$0xff] }
  0x64   : > { %v5178_v16 = vadd.f32 %v5177_v3, %v5066_v63  ;;  %6184 = vmatpush1.bf16.msra.mxu0 %v6183_v4  ;;  %v5065_v18 = vmul.f32 %v333_v59, %v333_v59  ;;  %v6185_v21 = vpack.c.bf16 %v348_v7, %v340_v6  ;;  %v5072_v22 = vmul.f32 %v340_v6, %v340_v6  ;;  %v1516_v59 = vld [vmem:[%s12939_s2 + $0x40] sm:$0xff]  ;;  %v1518_v63 = vld [vmem:[%s12939_s2 + $0x50] sm:$0xff]  ;;  %v1519_v3 = vld [vmem:[%s12939_s2 + $0x58] sm:$0xff] }
  0x65   : > { %5490 = vmatmul.mubr.msk.f32.gmra.mrb[8].mxu0 %vm383_vm0, %v7108_v43  ;;  %6200 = vmatpush1.bf16.msra.mxu1 %v6199_v11  ;;  %v5164_v20 = vadd.f32 %v5163_v60, %v5057_v12  ;;  %v5139_v27 = vadd.f32 %v5138_v17, %v5063_v9  ;;  %v5080_v28 = vmul.f32 %v348_v7, %v348_v7  ;;  %v1517_v60 = vld [vmem:[%s12939_s2 + $0x48] sm:$0xff]  ;;  %v7221_v4 = vld [vmem:[%s12938_s1 + $0x50] sm:$0xff]  ;;  %v7238_v7 = vld [vmem:[%s12938_s1 + $0x58] sm:$0xff] }
  0x66   : > { %574 = vmatprep.mubr.f32.mxu0 %v6824_v0  ;;  %5522 = vmatmul.mubr.msk.f32.gmra.mrb[8].mxu1 %vm383_vm0, %v7108_v43  ;;  %v6201_v29 = vpack.c.bf16 %v350_v15, %v342_v14  ;;  %v5153_v31 = vadd.f32 %v5152_v8, %v5072_v22  ;;  %v5074_v32 = vmul.f32 %v342_v14, %v342_v14  ;;  %v1521_v6 = vld [vmem:[%s12939_s2 + $0x68] sm:$0xff]  ;;  %v1522_v8 = vld [vmem:[%s12939_s2 + $0x70] sm:$0xff]  ;;  %v1523_v9 = vld [vmem:[%s12939_s2 + $0x78] sm:$0xff] }
  0x67   : > { %831 = vmatprep.mubr.f32.mxu1 %v6824_v0  ;;  %1813 = vperm.xlu1 %6542, %v1511_v13   ;;  %v5165_v30 = vadd.f32 %v5164_v20, %v5065_v18  ;;  %v5082_v35 = vmul.f32 %v350_v15, %v350_v15  ;;  %v6187_v36 = vpack.c.bf16 %v347_v24, %v339_v23  ;;  %v7255_v11 = vld [vmem:[%s12938_s1 + $0x60] sm:$0xff]  ;;  %v1525_v13 = vld [vmem:[%s12939_s2 + $0x88] sm:$0xff]  ;;  %v1526_v15 = vld [vmem:[%s12939_s2 + $0x90] sm:$0xff] }
  0x68   : > { %1818 = vperm.xlu0 %6541, %v1512_v19   ;;  %6186 = vmatprep.subr.bf16.mxu0 %v6185_v21  ;;  %v5071_v37 = vmul.f32 %v339_v23, %v339_v23  ;;  %v7158_v39 = vadd.f32 %v5153_v31, %v5080_v28  ;;  %v5179_v40 = vadd.f32 %v5178_v16, %v5074_v32  ;;  %v1524_v12 = vld [vmem:[%s12939_s2 + $0x80] sm:$0xff]  ;;  %v7272_v14 = vld [vmem:[%s12938_s1 + $0x68] sm:$0xff]  ;;  %v1527_v16 = vld [vmem:[%s12939_s2 + $0x98] sm:$0xff] }
  0x69   : > { %5491 = vmatmul.mubr.msk.f32.gmra.mrb[10].mxu0 %vm383_vm0, %v7123_v2  ;;  %6202 = vmatprep.subr.bf16.mxu1 %v6201_v29  ;;  %v5079_v41 = vmul.f32 %v347_v24, %v347_v24  ;;  %v6203_v48 = vpack.c.bf16 %v349_v34, %v341_v33  ;;  %v5073_v49 = vmul.f32 %v341_v33, %v341_v33  ;;  %v7289_v17 = vld [vmem:[%s12938_s1 + $0x70] sm:$0xff]  ;;  %v1528_v18 = vld [vmem:[%s12939_s2 + $0xa0] sm:$0xff]  ;;  %v1529_v19 = vld [vmem:[%s12939_s2 + $0xa8] sm:$0xff] }
  0x6a   : > { %580 = vmatprep.mubr.f32.mxu0 %v6824_v0  ;;  %5523 = vmatmul.mubr.msk.f32.gmra.mrb[10].mxu1 %vm383_vm0, %v7123_v2  ;;  %13544 = vst [vmem:[#allocation12_spill] sm:$0xff] %v7158_v39  ;;  %v5140_v45 = vadd.f32 %v5139_v27, %v5071_v37  ;;  %v7171_v51 = vadd.f32 %v5179_v40, %v5082_v35  ;;  %v7306_v20 = vld [vmem:[%s12938_s1 + $0x78] sm:$0xff]  ;;  %v1530_v21 = vld [vmem:[%s12939_s2 + $0xb0] sm:$0xff]  ;;  %v7323_v23 = vld [vmem:[%s12938_s1 + $0x80] sm:$0xff] }
  0x6b   : > { %837 = vmatprep.mubr.f32.mxu1 %v6824_v0  ;;  %6188 = vmatpush1.bf16.msra.mxu0 %v6187_v36  ;;  %v5081_v52 = vmul.f32 %v349_v34, %v349_v34  ;;  %v5166_v54 = vadd.f32 %v5165_v30, %v5073_v49  ;;  %v1531_v22 = vld [vmem:[%s12939_s2 + $0xb8] sm:$0xff]  ;;  %v1532_v24 = vld [vmem:[%s12939_s2 + $0xc0] sm:$0xff]  ;;  %v1533_v27 = vld [vmem:[%s12939_s2 + $0xc8] sm:$0xff] }
  0x6c   : > { %13545 = vst [vmem:[#allocation13_spill] sm:$0xff] %v7171_v51  ;;  %1823 = vperm.xlu1 %6542, %v1513_v38   ;;  %v7174_v53 = vadd.f32 %v5140_v45, %v5079_v41  ;;  %6204 = vmatpush1.bf16.msra.mxu1 %v6203_v48  ;;  %v7340_v28 = vld [vmem:[%s12938_s1 + $0x88] sm:$0xff]  ;;  %v1534_v29 = vld [vmem:[%s12939_s2 + $0xd0] sm:$0xff]  ;;  %v1535_v30 = vld [vmem:[%s12939_s2 + $0xd8] sm:$0xff] }
  0x6d   : > { %5492 = vmatmul.mubr.msk.f32.gmra.mrb[12].mxu0 %vm383_vm0, %v7146_v26  ;;  %1828 = vperm.xlu0 %6541, %v1514_v50   ;;  %v7187_v58 = vadd.f32 %v5166_v54, %v5081_v52  ;;  %v7357_v31 = vld [vmem:[%s12938_s1 + $0x90] sm:$0xff]  ;;  %v1536_v32 = vld [vmem:[%s12939_s2 + $0xe0] sm:$0xff]  ;;  %v1537_v33 = vld [vmem:[%s12939_s2 + $0xe8] sm:$0xff] }
  0x6e   : > { %586 = vmatprep.mubr.f32.mxu0 %v6824_v0  ;;  %5524 = vmatmul.mubr.msk.f32.gmra.mrb[12].mxu1 %vm383_vm0, %v7146_v26  ;;  %v7374_v34 = vld [vmem:[%s12938_s1 + $0x98] sm:$0xff]  ;;  %v1538_v35 = vld [vmem:[%s12939_s2 + $0xf0] sm:$0xff]  ;;  %v7391_v37 = vld [vmem:[%s12938_s1 + $0xa0] sm:$0xff] }
  0x6f   : > { %843 = vmatprep.mubr.f32.mxu1 %v6824_v0  ;;  %13546 = vst [vmem:[#allocation14_spill] sm:$0xff] %v7187_v58  ;;  %v1539_v36 = vld [vmem:[%s12939_s2 + $0xf8] sm:$0xff]  ;;  %v7402_v38 = vld [vmem:[%s12938_s1 + $0xa8] sm:$0xff]  ;;  %v7413_v40 = vld [vmem:[%s12938_s1 + $0xb0] sm:$0xff] }
  0x70   : > { %1833 = vperm.xlu1 %6542, %v1515_v55   ;;  %v7424_v41 = vld [vmem:[%s12938_s1 + $0xb8] sm:$0xff]  ;;  %v7435_v45 = vld [vmem:[%s12938_s1 + $0xc0] sm:$0xff]  ;;  %v7446_v48 = vld [vmem:[%s12938_s1 + $0xc8] sm:$0xff] }
  0x71   : > { %5493 = vmatmul.mubr.msk.f32.gmra.mrb[14].mxu0 %vm383_vm0, %v7164_v44  ;;  %1838 = vperm.xlu0 %6541, %v1516_v59   ;;  %v7457_v49 = vld [vmem:[%s12938_s1 + $0xd0] sm:$0xff]  ;;  %v7468_v50 = vld [vmem:[%s12938_s1 + $0xd8] sm:$0xff]  ;;  %v7479_v52 = vld [vmem:[%s12938_s1 + $0xe0] sm:$0xff] }
  0x72   : > { %592 = vmatprep.mubr.f32.mxu0 %v6824_v0  ;;  %5525 = vmatmul.mubr.msk.f32.gmra.mrb[14].mxu1 %vm383_vm0, %v7164_v44  ;;  %v7490_v54 = vld [vmem:[%s12938_s1 + $0xe8] sm:$0xff]  ;;  %v7501_v55 = vld [vmem:[%s12938_s1 + $0xf0] sm:$0xff]  ;;  %v7512_v59 = vld [vmem:[%s12938_s1 + $0xf8] sm:$0xff] }
  0x73   : > { %849 = vmatprep.mubr.f32.mxu1 %v6824_v0 }
  0x74   : > { %1843 = vperm.xlu1 %6542, %v1517_v60  }
  0x75   : > { %5494 = vmatmul.mubr.msk.f32.gmra.mrb[16].mxu0 %vm383_vm0, %v7185_v57  ;;  %1848 = vperm.xlu0 %6541, %v1518_v63  }
  0x76   : > { %598 = vmatprep.mubr.f32.mxu0 %v6824_v0  ;;  %5526 = vmatmul.mubr.msk.f32.gmra.mrb[16].mxu1 %vm383_vm0, %v7185_v57 }
  0x77   : > { %855 = vmatprep.mubr.f32.mxu1 %v6824_v0 }
  0x78   : > { %1853 = vperm.xlu1 %6542, %v1519_v3  }
  0x79   : > { %5495 = vmatmul.mubr.msk.f32.gmra.mrb[18].mxu0 %vm383_vm0, %v7204_v62  ;;  %1858 = vperm.xlu0 %6541, %v1520_v5  }
  0x7a   : > { %604 = vmatprep.mubr.f32.mxu0 %v6824_v0  ;;  %5527 = vmatmul.mubr.msk.f32.gmra.mrb[18].mxu1 %vm383_vm0, %v7204_v62 }
  0x7b   : > { %861 = vmatprep.mubr.f32.mxu1 %v6824_v0 }
  0x7c   : > { %1863 = vperm.xlu1 %6542, %v1521_v6  }
  0x7d   : > { %5496 = vmatmul.mubr.msk.f32.gmra.mrb[20].mxu0 %vm383_vm0, %v7221_v4  ;;  %1868 = vperm.xlu0 %6541, %v1522_v8  }
  0x7e   : > { %610 = vmatprep.mubr.f32.mxu0 %v6824_v0  ;;  %5528 = vmatmul.mubr.msk.f32.gmra.mrb[20].mxu1 %vm383_vm0, %v7221_v4 }
  0x7f   : > { %867 = vmatprep.mubr.f32.mxu1 %v6824_v0 }
  0x80   : > { %1873 = vperm.xlu1 %6542, %v1523_v9  }
  0x81   : > { %5497 = vmatmul.mubr.msk.f32.gmra.mrb[22].mxu0 %vm383_vm0, %v7238_v7  ;;  %1878 = vperm.xlu0 %6541, %v1524_v12  }
  0x82   : > { %616 = vmatprep.mubr.f32.mxu0 %v6824_v0  ;;  %5529 = vmatmul.mubr.msk.f32.gmra.mrb[22].mxu1 %vm383_vm0, %v7238_v7 }
  0x83   : > { %873 = vmatprep.mubr.f32.mxu1 %v6824_v0 }
  0x84   : > { %1883 = vperm.xlu1 %6542, %v1525_v13  }
  0x85   : > { %5498 = vmatmul.mubr.msk.f32.gmra.mrb[24].mxu0 %vm383_vm0, %v7255_v11  ;;  %1888 = vperm.xlu0 %6541, %v1526_v15  }
  0x86   : > { %622 = vmatprep.mubr.f32.mxu0 %v6824_v0  ;;  %5530 = vmatmul.mubr.msk.f32.gmra.mrb[24].mxu1 %vm383_vm0, %v7255_v11 }
  0x87   : > { %879 = vmatprep.mubr.f32.mxu1 %v6824_v0 }
  0x88   : > { %1893 = vperm.xlu1 %6542, %v1527_v16   ;;  %v5129_v16 = vrot.slane %v7038_v47, 4 }
  0x89   : > { %5499 = vmatmul.mubr.msk.f32.gmra.mrb[26].mxu0 %vm383_vm0, %v7272_v14  ;;  %1898 = vperm.xlu0 %6541, %v1528_v18  }
  0x8a   : > { %628 = vmatprep.mubr.f32.mxu0 %v6824_v0  ;;  %5531 = vmatmul.mubr.msk.f32.gmra.mrb[26].mxu1 %vm383_vm0, %v7272_v14 }
  0x8b   : > { %885 = vmatprep.mubr.f32.mxu1 %v6824_v0 }
  0x8c   : > { %1903 = vperm.xlu1 %6542, %v1529_v19  }
  0x8d   : > { %5500 = vmatmul.mubr.msk.f32.gmra.mrb[28].mxu0 %vm383_vm0, %v7289_v17  ;;  %1908 = vperm.xlu0 %6541, %v1530_v21  }
  0x8e   : > { %634 = vmatprep.mubr.f32.mxu0 %v6824_v0  ;;  %5532 = vmatmul.mubr.msk.f32.gmra.mrb[28].mxu1 %vm383_vm0, %v7289_v17 }
  0x8f   : > { %891 = vmatprep.mubr.f32.mxu1 %v6824_v0 }
  0x90   : > { %1913 = vperm.xlu1 %6542, %v1531_v22   ;;  %v5130_v22 = vadd.f32 %v5129_v16, %v7038_v47 }
  0x91   : > { %5501 = vmatmul.mubr.msk.f32.gmra.mrb[30].mxu0 %vm383_vm0, %v7306_v20  ;;  %1918 = vperm.xlu0 %6541, %v1532_v24   ;;  %v5090_v24 = vrot.slane %v7042_v56, 4 }
  0x92   : > { %640 = vmatprep.mubr.f32.mxu0 %v6824_v0  ;;  %5533 = vmatmul.mubr.msk.f32.gmra.mrb[30].mxu1 %vm383_vm0, %v7306_v20 }
  0x93   : > { %897 = vmatprep.mubr.f32.mxu1 %v6824_v0 }
  0x94   : > { %1923 = vperm.xlu1 %6542, %v1533_v27  }
  0x95   : > { %5502 = vmatmul.mubr.msk.f32.gmra.mrb[32].mxu0 %vm383_vm0, %v7323_v23  ;;  %1928 = vperm.xlu0 %6541, %v1534_v29  }
  0x96   : > { %646 = vmatprep.mubr.f32.mxu0 %v6824_v0  ;;  %5534 = vmatmul.mubr.msk.f32.gmra.mrb[32].mxu1 %vm383_vm0, %v7323_v23 }
  0x97   : > { %903 = vmatprep.mubr.f32.mxu1 %v6824_v0 }
  0x98   : > { %1933 = vperm.xlu1 %6542, %v1535_v30   ;;  %v5131_v30 = vrot.slane %v5130_v22, 2 }
  0x99   : > { %5503 = vmatmul.mubr.msk.f32.gmra.mrb[34].mxu0 %vm383_vm0, %v7340_v28  ;;  %1938 = vperm.xlu0 %6541, %v1536_v32  }
  0x9a   : > { %652 = vmatprep.mubr.f32.mxu0 %v6824_v0  ;;  %5535 = vmatmul.mubr.msk.f32.gmra.mrb[34].mxu1 %vm383_vm0, %v7340_v28 }
  0x9b   : > { %909 = vmatprep.mubr.f32.mxu1 %v6824_v0 }
  0x9c   : > { %1943 = vperm.xlu1 %6542, %v1537_v33   ;;  %v5091_v33 = vadd.f32 %v5090_v24, %v7042_v56 }
  0x9d   : > { %5504 = vmatmul.mubr.msk.f32.gmra.mrb[36].mxu0 %vm383_vm0, %v7357_v31  ;;  %1948 = vperm.xlu0 %6541, %v1538_v35  }
  0x9e   : > { %658 = vmatprep.mubr.f32.mxu0 %v6824_v0  ;;  %5536 = vmatmul.mubr.msk.f32.gmra.mrb[36].mxu1 %vm383_vm0, %v7357_v31 }
  0x9f   : > { %915 = vmatprep.mubr.f32.mxu1 %v6824_v0 }
  0xa0   : > { %1953 = vperm.xlu1 %6542, %v1539_v36  }
  0xa1   : > { %5505 = vmatmul.mubr.msk.f32.gmra.mrb[38].mxu0 %vm383_vm0, %v7374_v34 }
  0xa2   : > { %664 = vmatprep.mubr.f32.mxu0 %v6824_v0  ;;  %5537 = vmatmul.mubr.msk.f32.gmra.mrb[38].mxu1 %vm383_vm0, %v7374_v34 }
  0xa3   : > { %921 = vmatprep.mubr.f32.mxu1 %v6824_v0 }
  0xa5   : > { %5506 = vmatmul.mubr.msk.f32.gmra.mrb[40].mxu0 %vm383_vm0, %v7391_v37 }
  0xa6   : > { %670 = vmatprep.mubr.f32.mxu0 %v6824_v0  ;;  %5538 = vmatmul.mubr.msk.f32.gmra.mrb[40].mxu1 %vm383_vm0, %v7391_v37 }
  0xa7   : > { %927 = vmatprep.mubr.f32.mxu1 %v6824_v0 }
  0xa9   : > { %5507 = vmatmul.mubr.msk.f32.gmra.mrb[42].mxu0 %vm383_vm0, %v7402_v38 }
  0xaa   : > { %676 = vmatprep.mubr.f32.mxu0 %v6824_v0  ;;  %5539 = vmatmul.mubr.msk.f32.gmra.mrb[42].mxu1 %vm383_vm0, %v7402_v38 }
  0xab   : > { %933 = vmatprep.mubr.f32.mxu1 %v6824_v0 }
  0xad   : > { %5508 = vmatmul.mubr.msk.f32.gmra.mrb[44].mxu0 %vm383_vm0, %v7413_v40 }
  0xae   : > { %682 = vmatprep.mubr.f32.mxu0 %v6824_v0  ;;  %5540 = vmatmul.mubr.msk.f32.gmra.mrb[44].mxu1 %vm383_vm0, %v7413_v40 }
  0xaf   : > { %939 = vmatprep.mubr.f32.mxu1 %v6824_v0 }
  0xb1   : > { %5509 = vmatmul.mubr.msk.f32.gmra.mrb[46].mxu0 %vm383_vm0, %v7424_v41 }
  0xb2   : > { %688 = vmatprep.mubr.f32.mxu0 %v6824_v0  ;;  %5541 = vmatmul.mubr.msk.f32.gmra.mrb[46].mxu1 %vm383_vm0, %v7424_v41 }
  0xb3   : > { %945 = vmatprep.mubr.f32.mxu1 %v6824_v0 }
  0xb5   : > { %5510 = vmatmul.mubr.msk.f32.gmra.mrb[48].mxu0 %vm383_vm0, %v7435_v45 }
  0xb6   : > { %694 = vmatprep.mubr.f32.mxu0 %v6824_v0  ;;  %5542 = vmatmul.mubr.msk.f32.gmra.mrb[48].mxu1 %vm383_vm0, %v7435_v45 }
  0xb7   : > { %951 = vmatprep.mubr.f32.mxu1 %v6824_v0 }
  0xb9   : > { %5511 = vmatmul.mubr.msk.f32.gmra.mrb[50].mxu0 %vm383_vm0, %v7446_v48 }
  0xba   : > { %700 = vmatprep.mubr.f32.mxu0 %v6824_v0  ;;  %5543 = vmatmul.mubr.msk.f32.gmra.mrb[50].mxu1 %vm383_vm0, %v7446_v48 }
  0xbb   : > { %957 = vmatprep.mubr.f32.mxu1 %v6824_v0 }
  0xbd   : > { %5512 = vmatmul.mubr.msk.f32.gmra.mrb[52].mxu0 %vm383_vm0, %v7457_v49 }
  0xbe   : > { %706 = vmatprep.mubr.f32.mxu0 %v6824_v0  ;;  %5544 = vmatmul.mubr.msk.f32.gmra.mrb[52].mxu1 %vm383_vm0, %v7457_v49 }
  0xbf   : > { %963 = vmatprep.mubr.f32.mxu1 %v6824_v0 }
  0xc1   : > { %5513 = vmatmul.mubr.msk.f32.gmra.mrb[54].mxu0 %vm383_vm0, %v7468_v50 }
  0xc2   : > { %712 = vmatprep.mubr.f32.mxu0 %v6824_v0  ;;  %5545 = vmatmul.mubr.msk.f32.gmra.mrb[54].mxu1 %vm383_vm0, %v7468_v50 }
  0xc3   : > { %969 = vmatprep.mubr.f32.mxu1 %v6824_v0 }
  0xc5   : > { %5514 = vmatmul.mubr.msk.f32.gmra.mrb[56].mxu0 %vm383_vm0, %v7479_v52 }
  0xc6   : > { %718 = vmatprep.mubr.f32.mxu0 %v6824_v0  ;;  %5546 = vmatmul.mubr.msk.f32.gmra.mrb[56].mxu1 %vm383_vm0, %v7479_v52 }
  0xc7   : > { %975 = vmatprep.mubr.f32.mxu1 %v6824_v0 }
  0xc9   : > { %5515 = vmatmul.mubr.msk.f32.gmra.mrb[58].mxu0 %vm383_vm0, %v7490_v54 }
  0xca   : > { %724 = vmatprep.mubr.f32.mxu0 %v6824_v0  ;;  %5547 = vmatmul.mubr.msk.f32.gmra.mrb[58].mxu1 %vm383_vm0, %v7490_v54 }
  0xcb   : > { %981 = vmatprep.mubr.f32.mxu1 %v6824_v0 }
  0xcd   : > { %5516 = vmatmul.mubr.msk.f32.gmra.mrb[60].mxu0 %vm383_vm0, %v7501_v55 }
  0xce   : > { %730 = vmatprep.mubr.f32.mxu0 %v6824_v0  ;;  %5548 = vmatmul.mubr.msk.f32.gmra.mrb[60].mxu1 %vm383_vm0, %v7501_v55 }
  0xcf   : > { %987 = vmatprep.mubr.f32.mxu1 %v6824_v0 }
  0xd1   : > { %5517 = vmatmul.mubr.msk.f32.gmra.mrb[62].mxu0 %vm383_vm0, %v7512_v59 }
  0xd2   : > { %1058 = vmatprep.mubr.f32.mxu0 %v6824_v0  ;;  %5549 = vmatmul.mubr.msk.f32.gmra.mrb[62].mxu1 %vm383_vm0, %v7512_v59 }
  0xd3   : > { %1315 = vmatprep.mubr.f32.mxu1 %v6824_v0 }
  0xd5   : > { %5550 = vmatmul.mubr.msk.f32.vlgmr.msra.gmra.mrb[64].mxu0 %vm383_vm0, %v7036_v46 }
  0xd6   : > { %1064 = vmatprep.mubr.f32.mxu0 %v6824_v0  ;;  %5582 = vmatmul.mubr.msk.f32.vlgmr.msra.gmra.mrb[64].mxu1 %vm383_vm0, %v7036_v46 }
  0xd7   : > { %1321 = vmatprep.mubr.f32.mxu1 %v6824_v0 }
  0xd9   : > { %5551 = vmatmul.mubr.msk.f32.gmra.mrb[66].mxu0 %vm383_vm0, %v7053_v1 }
  0xda   : > { %1070 = vmatprep.mubr.f32.mxu0 %v6824_v0  ;;  %5583 = vmatmul.mubr.msk.f32.gmra.mrb[66].mxu1 %vm383_vm0, %v7053_v1 }
  0xdb   : > { %1327 = vmatprep.mubr.f32.mxu1 %v6824_v0 }
  0xdd   : > { %5552 = vmatmul.mubr.msk.f32.gmra.mrb[68].mxu0 %vm383_vm0, %v7066_v10 }
  0xde   : > { %1076 = vmatprep.mubr.f32.mxu0 %v6824_v0  ;;  %5584 = vmatmul.mubr.msk.f32.gmra.mrb[68].mxu1 %vm383_vm0, %v7066_v10 }
  0xdf   : > { %1333 = vmatprep.mubr.f32.mxu1 %v6824_v0 }
  0xe1   : > { %5553 = vmatmul.mubr.msk.f32.gmra.mrb[70].mxu0 %vm383_vm0, %v7091_v25 }
  0xe2   : > { %1082 = vmatprep.mubr.f32.mxu0 %v6824_v0  ;;  %5585 = vmatmul.mubr.msk.f32.gmra.mrb[70].mxu1 %vm383_vm0, %v7091_v25 }
  0xe3   : > { %1339 = vmatprep.mubr.f32.mxu1 %v6824_v0 }
  0xe5   : > { %5554 = vmatmul.mubr.msk.f32.gmra.mrb[72].mxu0 %vm383_vm0, %v7108_v43 }
  0xe6   : > { %1088 = vmatprep.mubr.f32.mxu0 %v6824_v0  ;;  %5586 = vmatmul.mubr.msk.f32.gmra.mrb[72].mxu1 %vm383_vm0, %v7108_v43 }
  0xe7   : > { %1345 = vmatprep.mubr.f32.mxu1 %v6824_v0 }
  0xe9   : > { %5555 = vmatmul.mubr.msk.f32.gmra.mrb[74].mxu0 %vm383_vm0, %v7123_v2 }
  0xea   : > { %1094 = vmatprep.mubr.f32.mxu0 %v6824_v0  ;;  %5587 = vmatmul.mubr.msk.f32.gmra.mrb[74].mxu1 %vm383_vm0, %v7123_v2 }
  0xeb   : > { %1351 = vmatprep.mubr.f32.mxu1 %v6824_v0 }
  0xed   : > { %5556 = vmatmul.mubr.msk.f32.gmra.mrb[76].mxu0 %vm383_vm0, %v7146_v26 }
  0xee   : > { %1100 = vmatprep.mubr.f32.mxu0 %v6824_v0  ;;  %5588 = vmatmul.mubr.msk.f32.gmra.mrb[76].mxu1 %vm383_vm0, %v7146_v26 }
  0xef   : > { %1357 = vmatprep.mubr.f32.mxu1 %v6824_v0 }
  0xf1   : > { %5557 = vmatmul.mubr.msk.f32.gmra.mrb[78].mxu0 %vm383_vm0, %v7164_v44 }
  0xf2   : > { %1106 = vmatprep.mubr.f32.mxu0 %v6824_v0  ;;  %5589 = vmatmul.mubr.msk.f32.gmra.mrb[78].mxu1 %vm383_vm0, %v7164_v44 }
  0xf3   : > { %1363 = vmatprep.mubr.f32.mxu1 %v6824_v0 }
  0xf5   : > { %5558 = vmatmul.mubr.msk.f32.gmra.mrb[80].mxu0 %vm383_vm0, %v7185_v57 }
  0xf6   : > { %1112 = vmatprep.mubr.f32.mxu0 %v6824_v0  ;;  %5590 = vmatmul.mubr.msk.f32.gmra.mrb[80].mxu1 %vm383_vm0, %v7185_v57 }
  0xf7   : > { %1369 = vmatprep.mubr.f32.mxu1 %v6824_v0 }
  0xf9   : > { %5559 = vmatmul.mubr.msk.f32.gmra.mrb[82].mxu0 %vm383_vm0, %v7204_v62 }
  0xfa   : > { %1118 = vmatprep.mubr.f32.mxu0 %v6824_v0  ;;  %5591 = vmatmul.mubr.msk.f32.gmra.mrb[82].mxu1 %vm383_vm0, %v7204_v62 }
  0xfb   : > { %1375 = vmatprep.mubr.f32.mxu1 %v6824_v0 }
  0xfd   : > { %5560 = vmatmul.mubr.msk.f32.gmra.mrb[84].mxu0 %vm383_vm0, %v7221_v4 }
  0xfe   : > { %1124 = vmatprep.mubr.f32.mxu0 %v6824_v0  ;;  %5592 = vmatmul.mubr.msk.f32.gmra.mrb[84].mxu1 %vm383_vm0, %v7221_v4 }
  0xff   : > { %1381 = vmatprep.mubr.f32.mxu1 %v6824_v0 }
 0x101   : > { %5561 = vmatmul.mubr.msk.f32.gmra.mrb[86].mxu0 %vm383_vm0, %v7238_v7 }
 0x102   : > { %1130 = vmatprep.mubr.f32.mxu0 %v6824_v0  ;;  %5593 = vmatmul.mubr.msk.f32.gmra.mrb[86].mxu1 %vm383_vm0, %v7238_v7 }
 0x103   : > { %1387 = vmatprep.mubr.f32.mxu1 %v6824_v0 }
 0x105   : > { %5562 = vmatmul.mubr.msk.f32.gmra.mrb[88].mxu0 %vm383_vm0, %v7255_v11 }
 0x106   : > { %1136 = vmatprep.mubr.f32.mxu0 %v6824_v0  ;;  %5594 = vmatmul.mubr.msk.f32.gmra.mrb[88].mxu1 %vm383_vm0, %v7255_v11 }
 0x107   : > { %1393 = vmatprep.mubr.f32.mxu1 %v6824_v0 }
 0x109   : > { %5563 = vmatmul.mubr.msk.f32.gmra.mrb[90].mxu0 %vm383_vm0, %v7272_v14 }
 0x10a   : > { %1142 = vmatprep.mubr.f32.mxu0 %v6824_v0  ;;  %5595 = vmatmul.mubr.msk.f32.gmra.mrb[90].mxu1 %vm383_vm0, %v7272_v14  ;;  %v5103_v14 = vrot.slane %v7031_v42, 4 }
 0x10b   : > { %1399 = vmatprep.mubr.f32.mxu1 %v6824_v0 }
 0x10d   : > { %5564 = vmatmul.mubr.msk.f32.gmra.mrb[92].mxu0 %vm383_vm0, %v7289_v17 }
 0x10e   : > { %1148 = vmatprep.mubr.f32.mxu0 %v6824_v0  ;;  %5596 = vmatmul.mubr.msk.f32.gmra.mrb[92].mxu1 %vm383_vm0, %v7289_v17 }
 0x10f   : > { %1405 = vmatprep.mubr.f32.mxu1 %v6824_v0 }
 0x111   : > { %5565 = vmatmul.mubr.msk.f32.gmra.mrb[94].mxu0 %vm383_vm0, %v7306_v20 }
 0x112   : > { %1154 = vmatprep.mubr.f32.mxu0 %v6824_v0  ;;  %5597 = vmatmul.mubr.msk.f32.gmra.mrb[94].mxu1 %vm383_vm0, %v7306_v20  ;;  %v5104_v20 = vadd.f32 %v5103_v14, %v7031_v42 }
 0x113   : > { %1411 = vmatprep.mubr.f32.mxu1 %v6824_v0 }
 0x114   : > { %v5105_v29 = vrot.slane %v5104_v20, 2 }
 0x115   : > { %5566 = vmatmul.mubr.msk.f32.gmra.mrb[96].mxu0 %vm383_vm0, %v7323_v23 }
 0x116   : > { %1160 = vmatprep.mubr.f32.mxu0 %v6824_v0  ;;  %5598 = vmatmul.mubr.msk.f32.gmra.mrb[96].mxu1 %vm383_vm0, %v7323_v23 }
 0x117   : > { %1417 = vmatprep.mubr.f32.mxu1 %v6824_v0 }
 0x119   : > { %5567 = vmatmul.mubr.msk.f32.gmra.mrb[98].mxu0 %vm383_vm0, %v7340_v28 }
 0x11a   : > { %1166 = vmatprep.mubr.f32.mxu0 %v6824_v0  ;;  %5599 = vmatmul.mubr.msk.f32.gmra.mrb[98].mxu1 %vm383_vm0, %v7340_v28  ;;  %v5116_v28 = vrot.slane %v7048_v61, 4 }
 0x11b   : > { %1423 = vmatprep.mubr.f32.mxu1 %v6824_v0 }
 0x11c   : > { %v5117_v35 = vadd.f32 %v5116_v28, %v7048_v61 }
 0x11d   : > { %5568 = vmatmul.mubr.msk.f32.gmra.mrb[100].mxu0 %vm383_vm0, %v7357_v31 }
 0x11e   : > { %1172 = vmatprep.mubr.f32.mxu0 %v6824_v0  ;;  %5600 = vmatmul.mubr.msk.f32.gmra.mrb[100].mxu1 %vm383_vm0, %v7357_v31  ;;  %v7762_v31 = vpop.permute.xlu0 %1798 }
 0x11f   : > { %1429 = vmatprep.mubr.f32.mxu1 %v6824_v0  ;;  %13547 = vst [vmem:[#allocation15_spill] sm:$0xff] %v7762_v31 }
 0x121   : > { %5569 = vmatmul.mubr.msk.f32.gmra.mrb[102].mxu0 %vm383_vm0, %v7374_v34 }
 0x122   : > { %1178 = vmatprep.mubr.f32.mxu0 %v6824_v0  ;;  %5601 = vmatmul.mubr.msk.f32.gmra.mrb[102].mxu1 %vm383_vm0, %v7374_v34  ;;  %v7796_v14 = vpop.permute.xlu0 %1803 }
 0x123   : > { %1435 = vmatprep.mubr.f32.mxu1 %v6824_v0 }
 0x125   : > { %5570 = vmatmul.mubr.msk.f32.gmra.mrb[104].mxu0 %vm383_vm0, %v7391_v37 }
 0x126   : > { %1184 = vmatprep.mubr.f32.mxu0 %v6824_v0  ;;  %5602 = vmatmul.mubr.msk.f32.gmra.mrb[104].mxu1 %vm383_vm0, %v7391_v37  ;;  %v7777_v37 = vadd.f32 %v5105_v29, %v5104_v20 }
 0x127   : > { %1441 = vmatprep.mubr.f32.mxu1 %v6824_v0 }
 0x128   : > { %v7648_v46 = vpop.f32.mrb[0].mxu0 }
 0x129   : > { %v7651_v1 = vpop.f32.mrb[1].mxu0  ;;  %5571 = vmatmul.mubr.msk.f32.gmra.mrb[106].mxu0 %vm383_vm0, %v7402_v38  ;;  %v7655_v10 = vpop.f32.mrb[0].mxu1 }
 0x12a   : > { %1190 = vmatprep.mubr.f32.mxu0 %v6824_v0  ;;  %v7658_v25 = vpop.f32.mrb[1].mxu1  ;;  %5603 = vmatmul.mubr.msk.f32.gmra.mrb[106].mxu1 %vm383_vm0, %v7402_v38  ;;  %v1541_v20 = vmul.f32 2.0, %v7651_v1 }
 0x12b   : > { %1447 = vmatprep.mubr.f32.mxu1 %v6824_v0  ;;  %v1543_v1 = vmul.f32 2.0, %v7658_v25 }
 0x12c   : > { %v7662_v43 = vpop.f32.mrb[2].mxu0 }
 0x12d   : > { %v7665_v2 = vpop.f32.mrb[3].mxu0  ;;  %5572 = vmatmul.mubr.msk.f32.gmra.mrb[108].mxu0 %vm383_vm0, %v7413_v40  ;;  %v7669_v26 = vpop.f32.mrb[2].mxu1  ;;  %v1548_v61 = vmul.f32 2.0, %v7662_v43  ;;  %v1540_v43 = vmul.f32 2.0, %v7648_v46 }
 0x12e   : > { %1196 = vmatprep.mubr.f32.mxu0 %v6824_v0  ;;  %v7672_v44 = vpop.f32.mrb[3].mxu1  ;;  %5604 = vmatmul.mubr.msk.f32.gmra.mrb[108].mxu1 %vm383_vm0, %v7413_v40  ;;  %v7782_v40 = vadd.f32 %v5131_v30, %v5130_v22 }
 0x12f   : > { %1453 = vmatprep.mubr.f32.mxu1 %v6824_v0  ;;  %v1551_v22 = vmul.f32 2.0, %v7672_v44  ;;  %v7821_v44 = vsub.f32 %v7796_v14, %v1548_v61 }
 0x130   : > { %v7676_v57 = vpop.f32.mrb[4].mxu0 }
 0x131   : > { %v7679_v60 = vpop.f32.mrb[5].mxu0  ;;  %5573 = vmatmul.mubr.msk.f32.gmra.mrb[110].mxu0 %vm383_vm0, %v7424_v41  ;;  %v7683_v62 = vpop.f32.mrb[4].mxu1  ;;  %v1556_v28 = vmul.f32 2.0, %v7676_v57 }
 0x132   : > { %1202 = vmatprep.mubr.f32.mxu0 %v6824_v0  ;;  %v7686_v63 = vpop.f32.mrb[5].mxu1  ;;  %5605 = vmatmul.mubr.msk.f32.gmra.mrb[110].mxu1 %vm383_vm0, %v7424_v41  ;;  %v5092_v41 = vrot.slane %v5091_v33, 2  ;;  %v1557_v29 = vmul.f32 2.0, %v7679_v60 }
 0x133   : > { %1459 = vmatprep.mubr.f32.mxu1 %v6824_v0  ;;  %v1559_v60 = vmul.f32 2.0, %v7686_v63 }
 0x134   : > { %v7690_v3 = vpop.f32.mrb[6].mxu0  ;;  %v7817_v46 = vadd.f32 %v5092_v41, %v5091_v33  ;;  %v7847_v33 = vsub.f32 %v7796_v14, %v1551_v22  ;;  %v7874_v22 = vsub.f32 %v7762_v31, %v1543_v1 }
 0x135   : > { %v7693_v4 = vpop.f32.mrb[7].mxu0  ;;  %5574 = vmatmul.mubr.msk.f32.gmra.mrb[112].mxu0 %vm383_vm0, %v7435_v45  ;;  %v7697_v5 = vpop.f32.mrb[6].mxu1 }
 0x136   : > { %1208 = vmatprep.mubr.f32.mxu0 %v6824_v0  ;;  %v7700_v6 = vpop.f32.mrb[7].mxu1  ;;  %5606 = vmatmul.mubr.msk.f32.gmra.mrb[112].mxu1 %vm383_vm0, %v7435_v45  ;;  %v7789_v45 = vpop.permute.xlu1 %1808  ;;  %13552 = vst [vmem:[#allocation20_spill] sm:$0xff] %v7847_v33  ;;  %13558 = vst [vmem:[#allocation26_spill] sm:$0xff] %v7874_v22  ;;  %v2323_v1 = vmin.f32 %v7874_v22, %v7847_v33 }
 0x137   : > { %1465 = vmatprep.mubr.f32.mxu1 %v6824_v0  ;;  %13548 = vst [vmem:[#allocation16_spill] sm:$0xff] %v7789_v45  ;;  %v7853_v63 = vsub.f32 %v7789_v45, %v1556_v28  ;;  %v1567_v58 = vmul.f32 2.0, %v7700_v6 }
 0x138   : > { %v7704_v7 = vpop.f32.mrb[8].mxu0 }
 0x139   : > { %v7707_v8 = vpop.f32.mrb[9].mxu0  ;;  %5575 = vmatmul.mubr.msk.f32.gmra.mrb[114].mxu0 %vm383_vm0, %v7446_v48  ;;  %v7711_v9 = vpop.f32.mrb[8].mxu1  ;;  %13553 = vst [vmem:[#allocation21_spill] sm:$0xff] %v7853_v63 }
 0x13a   : > { %1214 = vmatprep.mubr.f32.mxu0 %v6824_v0  ;;  %v7714_v11 = vpop.f32.mrb[9].mxu1  ;;  %5607 = vmatmul.mubr.msk.f32.gmra.mrb[114].mxu1 %vm383_vm0, %v7446_v48  ;;  %v1574_v33 = vmul.f32 2.0, %v7711_v9 }
 0x13b   : > { %1471 = vmatprep.mubr.f32.mxu1 %v6824_v0 }
 0x13c   : > { %v7718_v12 = vpop.f32.mrb[10].mxu0 }
 0x13d   : > { %v7721_v13 = vpop.f32.mrb[11].mxu0  ;;  %5576 = vmatmul.mubr.msk.f32.gmra.mrb[116].mxu0 %vm383_vm0, %v7457_v49  ;;  %v7726_v15 = vpop.f32.mrb[10].mxu1 }
 0x13e   : > { %1220 = vmatprep.mubr.f32.mxu0 %v6824_v0  ;;  %v7730_v17 = vpop.f32.mrb[11].mxu1  ;;  %5608 = vmatmul.mubr.msk.f32.gmra.mrb[116].mxu1 %vm383_vm0, %v7457_v49  ;;  %v5118_v49 = vrot.slane %v5117_v35, 2  ;;  %v1582_v9 = vmul.f32 2.0, %v7726_v15 }
 0x13f   : > { %1477 = vmatprep.mubr.f32.mxu1 %v6824_v0 }
 0x140   : > { %v7734_v18 = vpop.f32.mrb[12].mxu0 }
 0x141   : > { %v7737_v19 = vpop.f32.mrb[13].mxu0  ;;  %5577 = vmatmul.mubr.msk.f32.gmra.mrb[118].mxu0 %vm383_vm0, %v7468_v50  ;;  %v7742_v21 = vpop.f32.mrb[12].mxu1 }
 0x142   : > { %1226 = vmatprep.mubr.f32.mxu0 %v6824_v0  ;;  %v7746_v23 = vpop.f32.mrb[13].mxu1  ;;  %5609 = vmatmul.mubr.msk.f32.gmra.mrb[118].mxu1 %vm383_vm0, %v7468_v50  ;;  %v1550_v50 = vmul.f32 2.0, %v7669_v26  ;;  %v1542_v26 = vmul.f32 2.0, %v7655_v10  ;;  %v7827_v10 = vadd.f32 %v5118_v49, %v5117_v35  ;;  %v1564_v35 = vmul.f32 2.0, %v7690_v3 }
 0x143   : > { %1483 = vmatprep.mubr.f32.mxu1 %v6824_v0  ;;  %v7859_v49 = vsub.f32 %v7789_v45, %v1557_v29 }
 0x144   : > { %v7751_v27 = vpop.f32.mrb[14].mxu0  ;;  %v7830_v57 = vsub.f32 %v7796_v14, %v1550_v50  ;;  %v7856_v61 = vsub.f32 %v7762_v31, %v1542_v26  ;;  %v7861_v50 = vpop.permute.xlu1 %1813  ;;  %v1566_v26 = vmul.f32 2.0, %v7697_v5 }
 0x145   : > { %v7755_v42 = vpop.f32.mrb[15].mxu0  ;;  %5578 = vmatmul.mubr.msk.f32.gmra.mrb[120].mxu0 %vm383_vm0, %v7479_v52  ;;  %v7759_v47 = vpop.f32.mrb[14].mxu1  ;;  %13555 = vst [vmem:[#allocation23_spill] sm:$0xff] %v7859_v49  ;;  %13556 = vst [vmem:[#allocation24_spill] sm:$0xff] %v7861_v50  ;;  %v7892_v5 = vsub.f32 %v7861_v50, %v1564_v35 }
 0x146   : > { %1232 = vmatprep.mubr.f32.mxu0 %v6824_v0  ;;  %v7764_v32 = vpop.f32.mrb[15].mxu1  ;;  %5610 = vmatmul.mubr.msk.f32.gmra.mrb[120].mxu1 %vm383_vm0, %v7479_v52  ;;  %v1549_v52 = vmul.f32 2.0, %v7665_v2  ;;  %v1558_v2 = vmul.f32 2.0, %v7683_v62  ;;  %13549 = vst [vmem:[#allocation17_spill] sm:$0xff] %v7830_v57  ;;  %v7841_v62 = vsub.f32 %v7762_v31, %v1540_v43  ;;  %13554 = vst [vmem:[#allocation22_spill] sm:$0xff] %v7856_v61 }
 0x147   : > { %1489 = vmatprep.mubr.f32.mxu1 %v6824_v0  ;;  %13560 = vst [vmem:[#allocation28_spill] sm:$0xff] %v7892_v5 }
 0x148   : > { %v7769_v34 = vpop.f32.mrb[16].mxu0  ;;  %v2212_v3 = vmin.f32 %v7841_v62, %v7821_v44 }
 0x149   : > { %v7773_v36 = vpop.f32.mrb[17].mxu0  ;;  %5579 = vmatmul.mubr.msk.f32.gmra.mrb[122].mxu0 %vm383_vm0, %v7490_v54  ;;  %v7779_v38 = vpop.f32.mrb[16].mxu1 }
 0x14a   : > { %1238 = vmatprep.mubr.f32.mxu0 %v6824_v0  ;;  %v7784_v56 = vpop.f32.mrb[17].mxu1  ;;  %5611 = vmatmul.mubr.msk.f32.gmra.mrb[122].mxu1 %vm383_vm0, %v7490_v54 }
 0x14b   : > { %1495 = vmatprep.mubr.f32.mxu1 %v6824_v0 }
 0x14c   : > { %v7791_v48 = vpop.f32.mrb[18].mxu0 }
 0x14d   : > { %v7798_v16 = vpop.f32.mrb[19].mxu0  ;;  %5580 = vmatmul.mubr.msk.f32.gmra.mrb[124].mxu0 %vm383_vm0, %v7501_v55  ;;  %v7806_v24 = vpop.f32.mrb[18].mxu1 }
 0x14e   : > { %1244 = vmatprep.mubr.f32.mxu0 %v6824_v0  ;;  %v7813_v30 = vpop.f32.mrb[19].mxu1  ;;  %5612 = vmatmul.mubr.msk.f32.gmra.mrb[124].mxu1 %vm383_vm0, %v7501_v55  ;;  %v7833_v55 = vsub.f32 %v7796_v14, %v1549_v52  ;;  %v1565_v52 = vmul.f32 2.0, %v7693_v4  ;;  %v2286_v4 = vmin.f32 %v7856_v61, %v7830_v57  ;;  %v1573_v57 = vmul.f32 2.0, %v7707_v8 }
 0x14f   : > { %1501 = vmatprep.mubr.f32.mxu1 %v6824_v0  ;;  %v7844_v0 = vsub.f32 %v7762_v31, %v1541_v20  ;;  %v7871_v20 = vsub.f32 %v7789_v45, %v1558_v2  ;;  %v1572_v31 = vmul.f32 2.0, %v7704_v7  ;;  %v7910_v7 = vsub.f32 %v7861_v50, %v1566_v26 }
 0x150   : > { %v7824_v54 = vpop.f32.mrb[20].mxu0  ;;  %13550 = vst [vmem:[#allocation18_spill] sm:$0xff] %v7833_v55  ;;  %v7903_v6 = vsub.f32 %v7861_v50, %v1565_v52  ;;  %v1575_v8 = vmul.f32 2.0, %v7714_v11  ;;  %v7918_v52 = vsub.f32 %v7861_v50, %v1567_v58 }
 0x151   : > { %v7836_v25 = vpop.f32.mrb[21].mxu0  ;;  %5581 = vmatmul.mubr.msk.f32.gmra.mrb[126].mxu0 %vm383_vm0, %v7512_v59  ;;  %13551 = vst [vmem:[#allocation19_spill] sm:$0xff] %v7844_v0  ;;  %v7850_v41 = vpop.f32.mrb[20].mxu1  ;;  %13557 = vst [vmem:[#allocation25_spill] sm:$0xff] %v7871_v20  ;;  %v2249_v29 = vmin.f32 %v7844_v0, %v7833_v55  ;;  %v2213_v55 = vmin.f32 %v2212_v3, %v7853_v63  ;;  %v2287_v35 = vmin.f32 %v2286_v4, %v7871_v20 }
 0x152   : > { %v7864_v43 = vpop.f32.mrb[21].mxu1  ;;  %5613 = vmatmul.mubr.msk.f32.gmra.mrb[126].mxu1 %vm383_vm0, %v7512_v59  ;;  %v7884_v59 = vsub.f32 %v7789_v45, %v1559_v60  ;;  %v7900_v0 = vpop.permute.xlu0 %1818  ;;  %13562 = vst [vmem:[#allocation30_spill] sm:$0xff] %v7903_v6  ;;  %13563 = vst [vmem:[#allocation31_spill] sm:$0xff] %v7910_v7  ;;  %v1580_v3 = vmul.f32 2.0, %v7718_v12  ;;  %v1581_v4 = vmul.f32 2.0, %v7721_v13  ;;  %v1588_v13 = vmul.f32 2.0, %v7734_v18 }
 0x153   : > { %v2250_v60 = vmin.f32 %v2249_v29, %v7859_v49  ;;  %13561 = vst [vmem:[#allocation29_spill] sm:$0xff] %v7900_v0  ;;  %13564 = vst [vmem:[#allocation32_spill] sm:$0xff] %v7918_v52  ;;  %v7920_v49 = vpop.permute.xlu1 %1823  ;;  %v2214_v26 = vmin.f32 %v2213_v55, %v7892_v5  ;;  %v7928_v11 = vsub.f32 %v7900_v0, %v1572_v31 }
 0x154   : > { %v7877_v28 = vpop.f32.mrb[22].mxu0  ;;  %13559 = vst [vmem:[#allocation27_spill] sm:$0xff] %v7884_v59  ;;  %v2324_v29 = vmin.f32 %v2323_v1, %v7884_v59  ;;  %13565 = vst [vmem:[#allocation33_spill] sm:$0xff] %v7920_v49  ;;  %v7931_v12 = vsub.f32 %v7900_v0, %v1573_v57  ;;  %v1583_v1 = vmul.f32 2.0, %v7730_v17  ;;  %v7938_v15 = vsub.f32 %v7900_v0, %v1574_v33 }
 0x155   : > { %v7887_v2 = vpop.f32.mrb[23].mxu0  ;;  %v7896_v61 = vpop.f32.mrb[22].mxu1  ;;  %13566 = vst [vmem:[#allocation34_spill] sm:$0xff] %v7928_v11  ;;  %v2251_v50 = vmin.f32 %v2250_v60, %v7903_v6  ;;  %v1589_v59 = vmul.f32 2.0, %v7737_v19  ;;  %v2288_v31 = vmin.f32 %v2287_v35, %v7910_v7  ;;  %v7948_v57 = vsub.f32 %v7900_v0, %v1575_v8 }
 0x156   : > { %v7906_v22 = vpop.f32.mrb[23].mxu1  ;;  %13567 = vst [vmem:[#allocation35_spill] sm:$0xff] %v7931_v12  ;;  %13568 = vst [vmem:[#allocation36_spill] sm:$0xff] %v7938_v15  ;;  %v7945_v5 = vpop.permute.xlu0 %1828  ;;  %v7951_v17 = vsub.f32 %v7920_v49, %v1580_v3  ;;  %v1590_v60 = vmul.f32 2.0, %v7742_v21  ;;  %v2325_v18 = vmin.f32 %v2324_v29, %v7918_v52  ;;  %v7958_v19 = vsub.f32 %v7920_v49, %v1582_v9 }
 0x157   : > { %13569 = vst [vmem:[#allocation37_spill] sm:$0xff] %v7945_v5  ;;  %13570 = vst [vmem:[#allocation38_spill] sm:$0xff] %v7948_v57  ;;  %v7961_v6 = vsub.f32 %v7920_v49, %v1581_v4  ;;  %v1596_v35 = vmul.f32 2.0, %v7751_v27  ;;  %v2215_v8 = vmin.f32 %v2214_v26, %v7928_v11  ;;  %v2252_v3 = vmin.f32 %v2251_v50, %v7931_v12  ;;  %v7968_v0 = vpop.permute.xlu1 %1833 }
 0x158   : > { %v7914_v45 = vpop.f32.mrb[24].mxu0  ;;  %13571 = vst [vmem:[#allocation39_spill] sm:$0xff] %v7951_v17  ;;  %13572 = vst [vmem:[#allocation40_spill] sm:$0xff] %v7958_v19  ;;  %v7971_v21 = vsub.f32 %v7920_v49, %v1583_v1  ;;  %v1591_v29 = vmul.f32 2.0, %v7746_v23  ;;  %v2289_v4 = vmin.f32 %v2288_v31, %v7938_v15  ;;  %v7978_v52 = vsub.f32 %v7945_v5, %v1588_v13 }
 0x159   : > { %v7924_v20 = vpop.f32.mrb[25].mxu0  ;;  %v7934_v58 = vpop.f32.mrb[24].mxu1  ;;  %13573 = vst [vmem:[#allocation41_spill] sm:$0xff] %v7961_v6  ;;  %13574 = vst [vmem:[#allocation42_spill] sm:$0xff] %v7968_v0  ;;  %v7981_v27 = vsub.f32 %v7945_v5, %v1589_v59  ;;  %v1604_v26 = vmul.f32 2.0, %v7769_v34  ;;  %v2326_v12 = vmin.f32 %v2325_v18, %v7948_v57  ;;  %v2216_v23 = vmin.f32 %v2215_v8, %v7951_v17 }
 0x15a   : > { %v7942_v55 = vpop.f32.mrb[25].mxu1  ;;  %13575 = vst [vmem:[#allocation43_spill] sm:$0xff] %v7971_v21  ;;  %13576 = vst [vmem:[#allocation44_spill] sm:$0xff] %v7978_v52  ;;  %v7987_v1 = vpop.permute.xlu0 %1838  ;;  %v7991_v49 = vsub.f32 %v7945_v5, %v1590_v60  ;;  %v1597_v31 = vmul.f32 2.0, %v7755_v42  ;;  %v2290_v15 = vmin.f32 %v2289_v4, %v7958_v19  ;;  %v2253_v59 = vmin.f32 %v2252_v3, %v7961_v6 }
 0x15b   : > { %13577 = vst [vmem:[#allocation45_spill] sm:$0xff] %v7981_v27  ;;  %13578 = vst [vmem:[#allocation46_spill] sm:$0xff] %v7987_v1  ;;  %v7997_v34 = vsub.f32 %v7968_v0, %v1596_v35  ;;  %v1612_v11 = vmul.f32 2.0, %v7791_v48  ;;  %v2327_v57 = vmin.f32 %v2326_v12, %v7971_v21  ;;  %v8003_v8 = vpop.permute.xlu1 %1843  ;;  %v8006_v60 = vsub.f32 %v7945_v5, %v1591_v29 }
 0x15c   : > { %v7954_v33 = vpop.f32.mrb[26].mxu0  ;;  %13579 = vst [vmem:[#allocation47_spill] sm:$0xff] %v7991_v49  ;;  %13581 = vst [vmem:[#allocation49_spill] sm:$0xff] %v8003_v8  ;;  %v1598_v42 = vmul.f32 2.0, %v7759_v47  ;;  %v1599_v4 = vmul.f32 2.0, %v7764_v32  ;;  %v2217_v35 = vmin.f32 %v2216_v23, %v7978_v52  ;;  %v2254_v3 = vmin.f32 %v2253_v59, %v7981_v27 }
 0x15d   : > { %v7964_v7 = vpop.f32.mrb[27].mxu0  ;;  %v7974_v9 = vpop.f32.mrb[26].mxu1  ;;  %13580 = vst [vmem:[#allocation48_spill] sm:$0xff] %v7997_v34  ;;  %13582 = vst [vmem:[#allocation50_spill] sm:$0xff] %v8006_v60  ;;  %v8015_v48 = vsub.f32 %v7987_v1, %v1604_v26  ;;  %v1620_v12 = vmul.f32 2.0, %v7824_v54  ;;  %v2291_v29 = vmin.f32 %v2290_v15, %v7991_v49  ;;  %v8024_v47 = vsub.f32 %v7968_v0, %v1597_v31 }
 0x15e   : > { %v7984_v50 = vpop.f32.mrb[27].mxu1  ;;  %v8020_v6 = vpop.permute.xlu0 %1848  ;;  %v1606_v32 = vmul.f32 2.0, %v7779_v38  ;;  %v1605_v23 = vmul.f32 2.0, %v7773_v36  ;;  %v2218_v59 = vmin.f32 %v2217_v35, %v7997_v34  ;;  %v1607_v26 = vmul.f32 2.0, %v7784_v56 }
 0x15f   : > { %13583 = vst [vmem:[#allocation51_spill] sm:$0xff] %v8015_v48  ;;  %13584 = vst [vmem:[#allocation52_spill] sm:$0xff] %v8020_v6  ;;  %v8031_v54 = vsub.f32 %v8003_v8, %v1612_v11  ;;  %v1628_v27 = vmul.f32 2.0, %v7877_v28  ;;  %v2328_v15 = vmin.f32 %v2327_v57, %v8006_v60  ;;  %v8037_v31 = vpop.permute.xlu1 %1853  ;;  %v8040_v38 = vsub.f32 %v7968_v0, %v1598_v42 }
 0x160   : > { %v630_v13 = vpop.f32.mrb[28].mxu0  ;;  %13585 = vst [vmem:[#allocation53_spill] sm:$0xff] %v8024_v47  ;;  %13587 = vst [vmem:[#allocation55_spill] sm:$0xff] %v8037_v31  ;;  %v8043_v36 = vsub.f32 %v7968_v0, %v1599_v4  ;;  %v1613_v35 = vmul.f32 2.0, %v7798_v16  ;;  %v2219_v11 = vmin.f32 %v2218_v59, %v8015_v48  ;;  %v1614_v28 = vmul.f32 2.0, %v7806_v24 }
 0x161   : > { %v8000_v18 = vpop.f32.mrb[29].mxu0  ;;  %v8010_v19 = vpop.f32.mrb[28].mxu1  ;;  %13586 = vst [vmem:[#allocation54_spill] sm:$0xff] %v8031_v54  ;;  %13588 = vst [vmem:[#allocation56_spill] sm:$0xff] %v8040_v38  ;;  %v8051_v49 = vsub.f32 %v8020_v6, %v1620_v12  ;;  %v1636_v57 = vmul.f32 2.0, %v7914_v45  ;;  %v2255_v4 = vmin.f32 %v2254_v3, %v8024_v47  ;;  %v8060_v0 = vsub.f32 %v7987_v1, %v1606_v32 }
 0x162   : > { %v8018_v21 = vpop.f32.mrb[29].mxu1  ;;  %13589 = vst [vmem:[#allocation57_spill] sm:$0xff] %v8043_v36  ;;  %v8056_v42 = vpop.permute.xlu0 %1858  ;;  %v8063_v16 = vsub.f32 %v7987_v1, %v1605_v23  ;;  %v1615_v59 = vmul.f32 2.0, %v7813_v30  ;;  %v8067_v12 = vsub.f32 %v7987_v1, %v1607_v26  ;;  %v2220_v45 = vmin.f32 %v2219_v11, %v8031_v54 }
 0x163   : > { %13590 = vst [vmem:[#allocation58_spill] sm:$0xff] %v8051_v49  ;;  %13591 = vst [vmem:[#allocation59_spill] sm:$0xff] %v8056_v42  ;;  %v8071_v48 = vsub.f32 %v8037_v31, %v1628_v27  ;;  %v1644_v34 = vmul.f32 2.0, %v7954_v33  ;;  %v2292_v32 = vmin.f32 %v2291_v29, %v8040_v38  ;;  %v2329_v23 = vmin.f32 %v2328_v15, %v8043_v36  ;;  %v8078_v47 = vpop.permute.xlu1 %1863 }
 0x164   : > { %v636_v5 = vpop.f32.mrb[30].mxu0  ;;  %13592 = vst [vmem:[#allocation60_spill] sm:$0xff] %v8060_v0  ;;  %13593 = vst [vmem:[#allocation61_spill] sm:$0xff] %v8063_v16  ;;  %v8081_v30 = vsub.f32 %v8003_v8, %v1613_v35  ;;  %v1621_v26 = vmul.f32 2.0, %v7836_v25  ;;  %v8087_v27 = vsub.f32 %v8003_v8, %v1614_v28  ;;  %v2221_v33 = vmin.f32 %v2220_v45, %v8051_v49 }
 0x165   : > { %v8034_v52 = vpop.f32.mrb[31].mxu0  ;;  %v8046_v56 = vpop.f32.mrb[30].mxu1  ;;  %13594 = vst [vmem:[#allocation62_spill] sm:$0xff] %v8067_v12  ;;  %13595 = vst [vmem:[#allocation63_spill] sm:$0xff] %v8078_v47  ;;  %v8091_v11 = vsub.f32 %v8056_v42, %v1636_v57  ;;  %v1652_v29 = vmul.f32 2.0, %v630_v13  ;;  %v2293_v35 = vmin.f32 %v2292_v32, %v8060_v0  ;;  %v2256_v36 = vmin.f32 %v2255_v4, %v8063_v16 }
 0x166   : > { %v8054_v60 = vpop.f32.mrb[31].mxu1  ;;  %13596 = vst [vmem:[#allocation64_spill] sm:$0xff] %v8081_v30  ;;  %13597 = vst [vmem:[#allocation65_spill] sm:$0xff] %v8087_v27  ;;  %v8095_v15 = vpop.permute.xlu0 %1868  ;;  %v8100_v25 = vsub.f32 %v8003_v8, %v1615_v59  ;;  %v1622_v28 = vmul.f32 2.0, %v7850_v41  ;;  %v2330_v45 = vmin.f32 %v2329_v23, %v8067_v12  ;;  %v2222_v57 = vmin.f32 %v2221_v33, %v8071_v48 }
 0x167   : > { %13598 = vst [vmem:[#allocation66_spill] sm:$0xff] %v8095_v15  ;;  %v8106_v13 = vsub.f32 %v8078_v47, %v1644_v34  ;;  %v1660_v49 = vmul.f32 2.0, %v636_v5  ;;  %v8110_v63 = vpop.permute.xlu1 %1873  ;;  %v2257_v4 = vmin.f32 %v2256_v36, %v8081_v30  ;;  %v8114_v59 = vsub.f32 %v8020_v6, %v1621_v26 }
 0x168   : > { %v642_v24 = vpop.f32.mrb[32].mxu0  ;;  %13599 = vst [vmem:[#allocation67_spill] sm:$0xff] %v8100_v25  ;;  %13601 = vst [vmem:[#allocation69_spill] sm:$0xff] %v8110_v63  ;;  %v1623_v41 = vmul.f32 2.0, %v7864_v43  ;;  %v1629_v32 = vmul.f32 2.0, %v7887_v2  ;;  %v2294_v33 = vmin.f32 %v2293_v35, %v8087_v27  ;;  %v2223_v34 = vmin.f32 %v2222_v57, %v8091_v11 }
 0x169   : > { %v8074_v3 = vpop.f32.mrb[33].mxu0  ;;  %v8084_v1 = vpop.f32.mrb[32].mxu1  ;;  %13600 = vst [vmem:[#allocation68_spill] sm:$0xff] %v8106_v13  ;;  %13602 = vst [vmem:[#allocation70_spill] sm:$0xff] %v8114_v59  ;;  %v8123_v5 = vsub.f32 %v8095_v15, %v1652_v29  ;;  %v1668_v8 = vmul.f32 2.0, %v642_v24  ;;  %v2331_v26 = vmin.f32 %v2330_v45, %v8100_v25  ;;  %v8131_v43 = vsub.f32 %v8020_v6, %v1622_v28 }
 0x16a   : > { %v8093_v38 = vpop.f32.mrb[33].mxu1  ;;  %v8127_v36 = vpop.permute.xlu0 %1878  ;;  %v1630_v2 = vmul.f32 2.0, %v7896_v61  ;;  %v1631_v30 = vmul.f32 2.0, %v7906_v22  ;;  %v1637_v57 = vmul.f32 2.0, %v7924_v20  ;;  %v2224_v29 = vmin.f32 %v2223_v34, %v8106_v13 }
 0x16b   : > { %13603 = vst [vmem:[#allocation71_spill] sm:$0xff] %v8123_v5  ;;  %13604 = vst [vmem:[#allocation72_spill] sm:$0xff] %v8127_v36  ;;  %v8138_v24 = vsub.f32 %v8110_v63, %v1660_v49  ;;  %v8142_v0 = vpop.permute.xlu1 %1883  ;;  %v2258_v28 = vmin.f32 %v2257_v4, %v8114_v59  ;;  %v8146_v45 = vsub.f32 %v8020_v6, %v1623_v41  ;;  %v1638_v20 = vmul.f32 2.0, %v7934_v58 }
 0x16c   : > { %v648_v54 = vpop.f32.mrb[34].mxu0  ;;  %13605 = vst [vmem:[#allocation73_spill] sm:$0xff] %v8131_v43  ;;  %13606 = vst [vmem:[#allocation74_spill] sm:$0xff] %v8142_v0  ;;  %v8149_v61 = vsub.f32 %v8037_v31, %v1629_v32  ;;  %v1639_v49 = vmul.f32 2.0, %v7942_v55  ;;  %v8157_v34 = vsub.f32 %v8127_v36, %v1668_v8  ;;  %v2295_v41 = vmin.f32 %v2294_v33, %v8131_v43 }
 0x16d   : > { %v8108_v17 = vpop.f32.mrb[35].mxu0  ;;  %v8118_v23 = vpop.f32.mrb[34].mxu1  ;;  %v1676_v16 = vmul.f32 2.0, %v648_v54  ;;  %13607 = vst [vmem:[#allocation75_spill] sm:$0xff] %v8146_v45  ;;  %v2225_v54 = vmin.f32 %v2224_v29, %v8123_v5  ;;  %v8165_v32 = vsub.f32 %v8037_v31, %v1630_v2  ;;  %v8168_v58 = vsub.f32 %v8037_v31, %v1631_v30 }
 0x16e   : > { %v8125_v12 = vpop.f32.mrb[35].mxu1  ;;  %13608 = vst [vmem:[#allocation76_spill] sm:$0xff] %v8149_v61  ;;  %13609 = vst [vmem:[#allocation77_spill] sm:$0xff] %v8157_v34  ;;  %v8161_v4 = vpop.permute.xlu0 %1888  ;;  %v1646_v55 = vmul.f32 2.0, %v7974_v9  ;;  %v8172_v29 = vsub.f32 %v8056_v42, %v1637_v57  ;;  %v2332_v33 = vmin.f32 %v2331_v26, %v8146_v45  ;;  %v8184_v30 = vsub.f32 %v8056_v42, %v1638_v20 }
 0x16f   : > { %13610 = vst [vmem:[#allocation78_spill] sm:$0xff] %v8161_v4  ;;  %13611 = vst [vmem:[#allocation79_spill] sm:$0xff] %v8165_v32  ;;  %v2226_v8 = vmin.f32 %v2225_v54, %v8138_v24  ;;  %v8181_v2 = vpop.permute.xlu1 %1893  ;;  %v1645_v9 = vmul.f32 2.0, %v7964_v7  ;;  %v1654_v57 = vmul.f32 2.0, %v8010_v19  ;;  %v2259_v54 = vmin.f32 %v2258_v28, %v8149_v61 }
 0x170   : > { %v654_v35 = vpop.f32.mrb[36].mxu0  ;;  %13612 = vst [vmem:[#allocation80_spill] sm:$0xff] %v8168_v58  ;;  %13613 = vst [vmem:[#allocation81_spill] sm:$0xff] %v8172_v29  ;;  %v2296_v20 = vmin.f32 %v2295_v41, %v8165_v32  ;;  %v2333_v7 = vmin.f32 %v2332_v33, %v8168_v58  ;;  %v8203_v19 = vsub.f32 %v8078_v47, %v1646_v55  ;;  %v1662_v28 = vmul.f32 2.0, %v8046_v56 }
 0x171   : > { %v8140_v27 = vpop.f32.mrb[37].mxu0  ;;  %v8152_v22 = vpop.f32.mrb[36].mxu1  ;;  %v1684_v25 = vmul.f32 2.0, %v654_v35  ;;  %v8176_v35 = vsub.f32 %v8142_v0, %v1676_v16  ;;  %13614 = vst [vmem:[#allocation82_spill] sm:$0xff] %v8181_v2  ;;  %13615 = vst [vmem:[#allocation83_spill] sm:$0xff] %v8184_v30  ;;  %v8190_v16 = vsub.f32 %v8056_v42, %v1639_v49  ;;  %v2260_v42 = vmin.f32 %v2259_v54, %v8172_v29 }
 0x172   : > { %v8159_v13 = vpop.f32.mrb[37].mxu1  ;;  %v8198_v45 = vpop.permute.xlu0 %1898  ;;  %13619 = vst [vmem:[#allocation87_spill] sm:$0xff] %v8203_v19  ;;  %v2297_v41 = vmin.f32 %v2296_v20, %v8184_v30  ;;  %v8215_v33 = vsub.f32 %v8078_v47, %v1645_v9  ;;  %v8218_v55 = vsub.f32 %v8095_v15, %v1654_v57  ;;  %v1670_v56 = vmul.f32 2.0, %v8084_v1 }
 0x173   : > { %13616 = vst [vmem:[#allocation84_spill] sm:$0xff] %v8190_v16  ;;  %v8194_v43 = vsub.f32 %v8161_v4, %v1684_v25  ;;  %13618 = vst [vmem:[#allocation86_spill] sm:$0xff] %v8198_v45  ;;  %v2334_v54 = vmin.f32 %v2333_v7, %v8190_v16  ;;  %v8229_v20 = vpop.permute.xlu1 %1903  ;;  %v1653_v57 = vmul.f32 2.0, %v8000_v18  ;;  %v8234_v1 = vsub.f32 %v8110_v63, %v1662_v28 }
 0x174   : > { %v660_v6 = vpop.f32.mrb[38].mxu0  ;;  %13621 = vst [vmem:[#allocation89_spill] sm:$0xff] %v8215_v33  ;;  %13622 = vst [vmem:[#allocation90_spill] sm:$0xff] %v8218_v55  ;;  %v2298_v9 = vmin.f32 %v2297_v41, %v8203_v19  ;;  %v1678_v7 = vmul.f32 2.0, %v8118_v23  ;;  %v8245_v18 = vsub.f32 %v8127_v36, %v1670_v56  ;;  %v1686_v28 = vmul.f32 2.0, %v8152_v22 }
 0x175   : > { %v1692_v59 = vmul.f32 2.0, %v660_v6  ;;  %v8178_v5 = vpop.f32.mrb[39].mxu0  ;;  %v917_v31 = vpop.f32.mrb[38].mxu1  ;;  %v2227_v6 = vmin.f32 %v2226_v8, %v8157_v34  ;;  %13617 = vst [vmem:[#allocation85_spill] sm:$0xff] %v8194_v43  ;;  %13623 = vst [vmem:[#allocation91_spill] sm:$0xff] %v8229_v20  ;;  %v8261_v56 = vsub.f32 %v8095_v15, %v1653_v57 }
 0x176   : > { %v8196_v26 = vpop.f32.mrb[39].mxu1  ;;  %13624 = vst [vmem:[#allocation92_spill] sm:$0xff] %v8234_v1  ;;  %v2299_v41 = vmin.f32 %v2298_v9, %v8218_v55  ;;  %13625 = vst [vmem:[#allocation93_spill] sm:$0xff] %v8245_v18  ;;  %v8265_v9 = vsub.f32 %v8142_v0, %v1678_v7  ;;  %v1671_v7 = vmul.f32 2.0, %v8093_v38 }
 0x177   : > { %v2228_v8 = vmin.f32 %v2227_v6, %v8176_v35  ;;  %v8209_v25 = vsub.f32 %v8181_v2, %v1692_v59  ;;  %v1647_v6 = vmul.f32 2.0, %v7984_v50  ;;  %v1655_v50 = vmul.f32 2.0, %v8018_v21  ;;  %13628 = vst [vmem:[#allocation96_spill] sm:$0xff] %v8261_v56 }
 0x178   : > { %v666_v49 = vpop.f32.mrb[40].mxu0  ;;  %v2300_v22 = vmin.f32 %v2299_v41, %v8234_v1  ;;  %13629 = vst [vmem:[#allocation97_spill] sm:$0xff] %v8265_v9  ;;  %v1669_v41 = vmul.f32 2.0, %v8074_v3 }
 0x179   : > { %13620 = vst [vmem:[#allocation88_spill] sm:$0xff] %v8209_v25  ;;  %v1700_v61 = vmul.f32 2.0, %v666_v49  ;;  %v8211_v34 = vpop.f32.mrb[41].mxu0  ;;  %v923_v58 = vpop.f32.mrb[40].mxu1  ;;  %v2229_v59 = vmin.f32 %v2228_v8, %v8194_v43  ;;  %v1661_v8 = vmul.f32 2.0, %v8034_v52  ;;  %v2261_v43 = vmin.f32 %v2260_v42, %v8215_v33 }
 0x17a   : > { %v8227_v29 = vpop.f32.mrb[41].mxu1  ;;  %v8249_v19 = vsub.f32 %v8078_v47, %v1647_v6  ;;  %v1663_v52 = vmul.f32 2.0, %v8054_v60  ;;  %v8258_v42 = vpop.permute.xlu0 %1908  ;;  %v1694_v6 = vmul.f32 2.0, %v917_v31  ;;  %v8268_v60 = vsub.f32 %v8095_v15, %v1655_v50 }
 0x17b   : > { %v8225_v49 = vsub.f32 %v8198_v45, %v1700_v61  ;;  %v2230_v61 = vmin.f32 %v2229_v59, %v8209_v25  ;;  %13627 = vst [vmem:[#allocation95_spill] sm:$0xff] %v8258_v42  ;;  %v2301_v57 = vmin.f32 %v2300_v22, %v8245_v18  ;;  %v8280_v31 = vsub.f32 %v8161_v4, %v1686_v28  ;;  %v8291_v22 = vpop.permute.xlu1 %1913 }
 0x17c   : > { %v672_v16 = vpop.f32.mrb[42].mxu0  ;;  %13626 = vst [vmem:[#allocation94_spill] sm:$0xff] %v8249_v19  ;;  %13630 = vst [vmem:[#allocation98_spill] sm:$0xff] %v8268_v60  ;;  %v2335_v50 = vmin.f32 %v2334_v54, %v8249_v19  ;;  %v1702_v15 = vmul.f32 2.0, %v923_v58  ;;  %v2262_v3 = vmin.f32 %v2261_v43, %v8261_v56  ;;  %v1677_v28 = vmul.f32 2.0, %v8108_v17 }
 0x17d   : > { %v1708_v30 = vmul.f32 2.0, %v672_v16  ;;  %v8240_v32 = vpop.f32.mrb[43].mxu0  ;;  %v929_v23 = vpop.f32.mrb[42].mxu1  ;;  %v2231_v21 = vmin.f32 %v2230_v61, %v8225_v49  ;;  %13632 = vst [vmem:[#allocation100_spill] sm:$0xff] %v8280_v31  ;;  %13634 = vst [vmem:[#allocation102_spill] sm:$0xff] %v8291_v22  ;;  %v2302_v38 = vmin.f32 %v2301_v57, %v8265_v9  ;;  %v8297_v18 = vsub.f32 %v8181_v2, %v1694_v6 }
 0x17e   : > { %v8256_v59 = vpop.f32.mrb[43].mxu1  ;;  %v1710_v58 = vmul.f32 2.0, %v929_v23  ;;  %v8305_v43 = vsub.f32 %v8127_v36, %v1669_v41  ;;  %v8308_v57 = vsub.f32 %v8127_v36, %v1671_v7  ;;  %v8313_v23 = vsub.f32 %v8198_v45, %v1702_v15 }
 0x17f   : > { %v8254_v16 = vsub.f32 %v8229_v20, %v1708_v30  ;;  %v8271_v30 = vsub.f32 %v8110_v63, %v1661_v8  ;;  %v8284_v8 = vsub.f32 %v8110_v63, %v1663_v52  ;;  %13635 = vst [vmem:[#allocation103_spill] sm:$0xff] %v8297_v18  ;;  %v2336_v52 = vmin.f32 %v2335_v50, %v8268_v60 }
 0x180   : > { %v678_v47 = vpop.f32.mrb[44].mxu0  ;;  %13636 = vst [vmem:[#allocation104_spill] sm:$0xff] %v8305_v43  ;;  %13637 = vst [vmem:[#allocation105_spill] sm:$0xff] %v8308_v57  ;;  %v2303_v17 = vmin.f32 %v2302_v38, %v8280_v31  ;;  %v8323_v41 = vsub.f32 %v8142_v0, %v1677_v28  ;;  %v1679_v7 = vmul.f32 2.0, %v8125_v12  ;;  %v1685_v38 = vmul.f32 2.0, %v8140_v27 }
 0x181   : > { %13631 = vst [vmem:[#allocation99_spill] sm:$0xff] %v8271_v30  ;;  %v2232_v61 = vmin.f32 %v2231_v21, %v8254_v16  ;;  %v1716_v33 = vmul.f32 2.0, %v678_v47  ;;  %v8274_v55 = vpop.f32.mrb[45].mxu0  ;;  %v935_v1 = vpop.f32.mrb[44].mxu1  ;;  %13633 = vst [vmem:[#allocation101_spill] sm:$0xff] %v8284_v8  ;;  %v2263_v25 = vmin.f32 %v2262_v3, %v8271_v30  ;;  %v2337_v56 = vmin.f32 %v2336_v52, %v8284_v8 }
 0x182   : > { %v8289_v21 = vpop.f32.mrb[45].mxu1  ;;  %13638 = vst [vmem:[#allocation106_spill] sm:$0xff] %v8313_v23  ;;  %v8320_v3 = vpop.permute.xlu0 %1918  ;;  %13640 = vst [vmem:[#allocation108_spill] sm:$0xff] %v8323_v41  ;;  %v2304_v52 = vmin.f32 %v2303_v17, %v8297_v18  ;;  %v8329_v15 = vsub.f32 %v8229_v20, %v1710_v58  ;;  %v1687_v12 = vmul.f32 2.0, %v8159_v13  ;;  %v1693_v27 = vmul.f32 2.0, %v8178_v5 }
 0x183   : > { %v8287_v47 = vsub.f32 %v8258_v42, %v1716_v33  ;;  %13639 = vst [vmem:[#allocation107_spill] sm:$0xff] %v8320_v3  ;;  %v2264_v30 = vmin.f32 %v2263_v25, %v8305_v43  ;;  %v2338_v28 = vmin.f32 %v2337_v56, %v8308_v57  ;;  %v8347_v18 = vpop.permute.xlu1 %1923  ;;  %v8351_v13 = vsub.f32 %v8142_v0, %v1679_v7 }
 0x184   : > { %v684_v54 = vpop.f32.mrb[46].mxu0  ;;  %13641 = vst [vmem:[#allocation109_spill] sm:$0xff] %v8329_v15  ;;  %v2305_v17 = vmin.f32 %v2304_v52, %v8313_v23  ;;  %13643 = vst [vmem:[#allocation111_spill] sm:$0xff] %v8347_v18  ;;  %v8354_v5 = vsub.f32 %v8161_v4, %v1685_v38  ;;  %v1695_v56 = vmul.f32 2.0, %v8196_v26  ;;  %v8368_v7 = vsub.f32 %v8181_v2, %v1693_v27 }
 0x185   : > { %v2233_v33 = vmin.f32 %v2232_v61, %v8287_v47  ;;  %v1724_v63 = vmul.f32 2.0, %v684_v54  ;;  %v8301_v19 = vpop.f32.mrb[47].mxu0  ;;  %v941_v6 = vpop.f32.mrb[46].mxu1  ;;  %v1718_v61 = vmul.f32 2.0, %v935_v1  ;;  %v2265_v25 = vmin.f32 %v2264_v30, %v8323_v41  ;;  %13644 = vst [vmem:[#allocation112_spill] sm:$0xff] %v8351_v13 }
 0x186   : > { %v8318_v54 = vpop.f32.mrb[47].mxu1  ;;  %v1726_v1 = vmul.f32 2.0, %v941_v6  ;;  %13645 = vst [vmem:[#allocation113_spill] sm:$0xff] %v8354_v5  ;;  %v2306_v52 = vmin.f32 %v2305_v17, %v8329_v15  ;;  %v8365_v30 = vsub.f32 %v8161_v4, %v1687_v12  ;;  %13648 = vst [vmem:[#allocation116_spill] sm:$0xff] %v8368_v7  ;;  %v1701_v38 = vmul.f32 2.0, %v8211_v34  ;;  %v8379_v12 = vpop.permute.xlu0 %1928 }
 0x187   : > { %v8316_v50 = vsub.f32 %v8291_v22, %v1724_v63  ;;  %v8340_v58 = vsub.f32 %v8258_v42, %v1718_v61  ;;  %v1703_v26 = vmul.f32 2.0, %v8227_v29  ;;  %13650 = vst [vmem:[#allocation118_spill] sm:$0xff] %v8379_v12  ;;  %v2339_v27 = vmin.f32 %v2338_v28, %v8351_v13 }
 0x188   : > { %v690_v36 = vpop.f32.mrb[48].mxu0  ;;  %13647 = vst [vmem:[#allocation115_spill] sm:$0xff] %v8365_v30  ;;  %v2266_v4 = vmin.f32 %v2265_v25, %v8354_v5  ;;  %v8384_v34 = vsub.f32 %v8181_v2, %v1695_v56  ;;  %v1709_v29 = vmul.f32 2.0, %v8240_v32  ;;  %v8395_v25 = vsub.f32 %v8198_v45, %v1701_v38 }
 0x189   : > { %v2234_v63 = vmin.f32 %v2233_v33, %v8316_v50  ;;  %v1732_v8 = vmul.f32 2.0, %v690_v36  ;;  %v8332_v60 = vpop.f32.mrb[49].mxu0  ;;  %v947_v31 = vpop.f32.mrb[48].mxu1  ;;  %13642 = vst [vmem:[#allocation110_spill] sm:$0xff] %v8340_v58  ;;  %v2307_v17 = vmin.f32 %v2306_v52, %v8340_v58  ;;  %v2340_v23 = vmin.f32 %v2339_v27, %v8365_v30 }
 0x18a   : > { %v1734_v36 = vmul.f32 2.0, %v947_v31  ;;  %v8345_v6 = vpop.f32.mrb[49].mxu1  ;;  %13651 = vst [vmem:[#allocation119_spill] sm:$0xff] %v8384_v34  ;;  %v2267_v28 = vmin.f32 %v2266_v4, %v8368_v7  ;;  %13652 = vst [vmem:[#allocation120_spill] sm:$0xff] %v8395_v25  ;;  %v1711_v56 = vmul.f32 2.0, %v8256_v59  ;;  %v8399_v2 = vsub.f32 %v8198_v45, %v1703_v26  ;;  %v8407_v27 = vpop.permute.xlu1 %1933 }
 0x18b   : > { %v8343_v33 = vsub.f32 %v8320_v3, %v1732_v8  ;;  %v8359_v8 = vsub.f32 %v8291_v22, %v1726_v1  ;;  %13654 = vst [vmem:[#allocation122_spill] sm:$0xff] %v8407_v27  ;;  %v2341_v4 = vmin.f32 %v2340_v23, %v8384_v34  ;;  %v8411_v38 = vsub.f32 %v8229_v20, %v1709_v29  ;;  %v8431_v5 = vpop.permute.xlu0 %1938 }
 0x18c   : > { %v696_v61 = vpop.f32.mrb[50].mxu0  ;;  %v8374_v1 = vsub.f32 %v8320_v3, %v1734_v36  ;;  %13653 = vst [vmem:[#allocation121_spill] sm:$0xff] %v8399_v2  ;;  %v1717_v59 = vmul.f32 2.0, %v8274_v55  ;;  %v1719_v26 = vmul.f32 2.0, %v8289_v21  ;;  %v2268_v7 = vmin.f32 %v2267_v28, %v8395_v25  ;;  %13658 = vst [vmem:[#allocation126_spill] sm:$0xff] %v8431_v5 }
 0x18d   : > { %13646 = vst [vmem:[#allocation114_spill] sm:$0xff] %v8359_v8  ;;  %v2235_v31 = vmin.f32 %v2234_v63, %v8343_v33  ;;  %v1740_v57 = vmul.f32 2.0, %v696_v61  ;;  %v8362_v43 = vpop.f32.mrb[51].mxu0  ;;  %v953_v0 = vpop.f32.mrb[50].mxu1  ;;  %v2308_v36 = vmin.f32 %v2307_v17, %v8359_v8  ;;  %13655 = vst [vmem:[#allocation123_spill] sm:$0xff] %v8411_v38  ;;  %v8422_v23 = vsub.f32 %v8229_v20, %v1711_v56 }
 0x18e   : > { %13649 = vst [vmem:[#allocation117_spill] sm:$0xff] %v8374_v1  ;;  %v1742_v61 = vmul.f32 2.0, %v953_v0  ;;  %v955_v41 = vpop.f32.mrb[51].mxu1  ;;  %v1725_v29 = vmul.f32 2.0, %v8301_v19  ;;  %v1727_v55 = vmul.f32 2.0, %v8318_v54  ;;  %v2342_v34 = vmin.f32 %v2341_v4, %v8399_v2  ;;  %v8458_v25 = vpop.permute.xlu1 %1943 }
 0x18f   : > { %v8377_v63 = vsub.f32 %v8347_v18, %v1740_v57  ;;  %13657 = vst [vmem:[#allocation125_spill] sm:$0xff] %v8422_v23  ;;  %v2269_v28 = vmin.f32 %v2268_v7, %v8411_v38  ;;  %v8435_v56 = vsub.f32 %v8258_v42, %v1717_v59  ;;  %v8438_v19 = vsub.f32 %v8258_v42, %v1719_v26 }
 0x190   : > { %v702_v52 = vpop.f32.mrb[52].mxu0  ;;  %v8390_v57 = vsub.f32 %v8347_v18, %v1742_v61  ;;  %v1733_v54 = vmul.f32 2.0, %v8332_v60  ;;  %v2343_v7 = vmin.f32 %v2342_v34, %v8422_v23  ;;  %v8448_v59 = vsub.f32 %v8291_v22, %v1725_v29  ;;  %13664 = vst [vmem:[#allocation132_spill] sm:$0xff] %v8458_v25 }
 0x191   : > { %v2236_v58 = vmin.f32 %v2235_v31, %v8377_v63  ;;  %v1748_v0 = vmul.f32 2.0, %v702_v52  ;;  %v704_v15 = vpop.f32.mrb[53].mxu0  ;;  %v959_v32 = vpop.f32.mrb[52].mxu1  ;;  %v2309_v31 = vmin.f32 %v2308_v36, %v8374_v1  ;;  %13659 = vst [vmem:[#allocation127_spill] sm:$0xff] %v8435_v56  ;;  %13660 = vst [vmem:[#allocation128_spill] sm:$0xff] %v8438_v19  ;;  %v8451_v26 = vsub.f32 %v8291_v22, %v1727_v55 }
 0x192   : > { %v1750_v61 = vmul.f32 2.0, %v959_v32  ;;  %v8405_v52 = vpop.f32.mrb[53].mxu1  ;;  %13662 = vst [vmem:[#allocation130_spill] sm:$0xff] %v8448_v59  ;;  %v1741_v60 = vmul.f32 2.0, %v8362_v43  ;;  %v1743_v38 = vmul.f32 2.0, %v955_v41  ;;  %v2270_v34 = vmin.f32 %v2269_v28, %v8435_v56 }
 0x193   : > { %v8403_v17 = vsub.f32 %v8379_v12, %v1748_v0  ;;  %v2310_v36 = vmin.f32 %v2309_v31, %v8390_v57  ;;  %13663 = vst [vmem:[#allocation131_spill] sm:$0xff] %v8451_v26  ;;  %v2344_v29 = vmin.f32 %v2343_v7, %v8438_v19  ;;  %v8463_v55 = vsub.f32 %v8320_v3, %v1733_v54 }
 0x194   : > { %v708_v45 = vpop.f32.mrb[54].mxu0  ;;  %v8418_v32 = vsub.f32 %v8379_v12, %v1750_v61  ;;  %v1749_v22 = vmul.f32 2.0, %v704_v15  ;;  %v2271_v1 = vmin.f32 %v2270_v34, %v8448_v59  ;;  %v8475_v7 = vsub.f32 %v8347_v18, %v1741_v60 }
 0x195   : > { %v2237_v0 = vmin.f32 %v2236_v58, %v8403_v17  ;;  %v1756_v30 = vmul.f32 2.0, %v708_v45  ;;  %v710_v13 = vpop.f32.mrb[55].mxu0  ;;  %v965_v21 = vpop.f32.mrb[54].mxu1  ;;  %13665 = vst [vmem:[#allocation133_spill] sm:$0xff] %v8463_v55  ;;  %v2345_v28 = vmin.f32 %v2344_v29, %v8451_v26  ;;  %v8478_v19 = vsub.f32 %v8347_v18, %v1743_v38 }
 0x196   : > { %13656 = vst [vmem:[#allocation124_spill] sm:$0xff] %v8418_v32  ;;  %v2311_v31 = vmin.f32 %v2310_v36, %v8418_v32  ;;  %v1758_v61 = vmul.f32 2.0, %v965_v21  ;;  %v967_v45 = vpop.f32.mrb[55].mxu1  ;;  %v1735_v36 = vmul.f32 2.0, %v8345_v6  ;;  %13668 = vst [vmem:[#allocation136_spill] sm:$0xff] %v8475_v7  ;;  %v1757_v54 = vmul.f32 2.0, %v710_v13 }
 0x197   : > { %v8429_v58 = vsub.f32 %v8407_v27, %v1756_v30  ;;  %13669 = vst [vmem:[#allocation137_spill] sm:$0xff] %v8478_v19  ;;  %v2272_v34 = vmin.f32 %v2271_v1, %v8463_v55  ;;  %v8488_v29 = vsub.f32 %v8379_v12, %v1749_v22  ;;  %v1751_v13 = vmul.f32 2.0, %v8405_v52 }
 0x198   : > { %v714_v4 = vpop.f32.mrb[56].mxu0  ;;  %v8444_v21 = vsub.f32 %v8407_v27, %v1758_v61  ;;  %v8466_v41 = vsub.f32 %v8320_v3, %v1735_v36  ;;  %v8484_v3 = vpop.permute.xlu0 %1948  ;;  %v8498_v1 = vsub.f32 %v8407_v27, %v1757_v54  ;;  %v1759_v22 = vmul.f32 2.0, %v967_v45 }
 0x199   : > { %v2238_v30 = vmin.f32 %v2237_v0, %v8429_v58  ;;  %v1764_v20 = vmul.f32 2.0, %v714_v4  ;;  %v716_v2 = vpop.f32.mrb[57].mxu0  ;;  %v971_v42 = vpop.f32.mrb[56].mxu1  ;;  %13670 = vst [vmem:[#allocation138_spill] sm:$0xff] %v8484_v3  ;;  %13671 = vst [vmem:[#allocation139_spill] sm:$0xff] %v8488_v29  ;;  %v2273_v59 = vmin.f32 %v2272_v34, %v8475_v7  ;;  %v8509_v34 = vsub.f32 %v8379_v12, %v1751_v13 }
 0x19a   : > { %13661 = vst [vmem:[#allocation129_spill] sm:$0xff] %v8444_v21  ;;  %v2312_v6 = vmin.f32 %v2311_v31, %v8444_v21  ;;  %v1766_v61 = vmul.f32 2.0, %v971_v42  ;;  %v973_v4 = vpop.f32.mrb[57].mxu1  ;;  %13666 = vst [vmem:[#allocation134_spill] sm:$0xff] %v8466_v41  ;;  %v1765_v60 = vmul.f32 2.0, %v716_v2  ;;  %v2346_v38 = vmin.f32 %v2345_v28, %v8466_v41  ;;  %v8505_v41 = vpop.permute.xlu1 %1953 }
 0x19b   : > { %v8456_v0 = vsub.f32 %v8431_v5, %v1764_v20  ;;  %13673 = vst [vmem:[#allocation141_spill] sm:$0xff] %v8498_v1  ;;  %13674 = vst [vmem:[#allocation142_spill] sm:$0xff] %v8505_v41 }
 0x19c   : > { %v720_v43 = vpop.f32.mrb[58].mxu0  ;;  %v8470_v20 = vsub.f32 %v8431_v5, %v1766_v61  ;;  %v2347_v2 = vmin.f32 %v2346_v38, %v8478_v19  ;;  %13675 = vst [vmem:[#allocation143_spill] sm:$0xff] %v8509_v34  ;;  %v8512_v45 = vsub.f32 %v8431_v5, %v1765_v60 }
 0x19d   : > { %v2239_v31 = vmin.f32 %v2238_v30, %v8456_v0  ;;  %v1772_v42 = vmul.f32 2.0, %v720_v43  ;;  %v722_v23 = vpop.f32.mrb[59].mxu0  ;;  %v977_v15 = vpop.f32.mrb[58].mxu1 }
 0x19e   : > { %13667 = vst [vmem:[#allocation135_spill] sm:$0xff] %v8470_v20  ;;  %v2313_v36 = vmin.f32 %v2312_v6, %v8470_v20  ;;  %v1774_v61 = vmul.f32 2.0, %v977_v15  ;;  %v979_v43 = vpop.f32.mrb[59].mxu1  ;;  %v1773_v55 = vmul.f32 2.0, %v722_v23  ;;  %13676 = vst [vmem:[#allocation144_spill] sm:$0xff] %v8512_v45  ;;  %v1767_v23 = vmul.f32 2.0, %v973_v4 }
 0x19f   : > { %v8482_v30 = vsub.f32 %v8458_v25, %v1772_v42  ;;  %v1775_v60 = vmul.f32 2.0, %v979_v43  ;;  %v2348_v8 = vmin.f32 %v2347_v2, %v8509_v34  ;;  %v5094_v2 = vrot.slane %v7817_v46, 1 }
 0x1a0   : > { %v726_v26 = vpop.f32.mrb[60].mxu0  ;;  %v8494_v42 = vsub.f32 %v8458_v25, %v1774_v61  ;;  %v8523_v13 = vsub.f32 %v8458_v25, %v1773_v55 }
 0x1a1   : > { %v2240_v6 = vmin.f32 %v2239_v31, %v8482_v30  ;;  %v1780_v15 = vmul.f32 2.0, %v726_v26  ;;  %v728_v18 = vpop.f32.mrb[61].mxu0  ;;  %v983_v56 = vpop.f32.mrb[60].mxu1  ;;  %v2274_v26 = vmin.f32 %v2273_v59, %v8488_v29  ;;  %v8520_v59 = vsub.f32 %v8407_v27, %v1759_v22 }
 0x1a2   : > { %13672 = vst [vmem:[#allocation140_spill] sm:$0xff] %v8494_v42  ;;  %v2314_v52 = vmin.f32 %v2313_v36, %v8494_v42  ;;  %v1782_v31 = vmul.f32 2.0, %v983_v56  ;;  %v985_v61 = vpop.f32.mrb[61].mxu1  ;;  %13679 = vst [vmem:[#allocation147_spill] sm:$0xff] %v8523_v13  ;;  %v8532_v22 = vsub.f32 %v8431_v5, %v1767_v23  ;;  %v8549_v5 = vsub.f32 %v8458_v25, %v1775_v60 }
 0x1a3   : > { %v8503_v28 = vsub.f32 %v8484_v3, %v1780_v15  ;;  %v1781_v15 = vmul.f32 2.0, %v728_v18  ;;  %v2275_v7 = vmin.f32 %v2274_v26, %v8498_v1  ;;  %13678 = vst [vmem:[#allocation146_spill] sm:$0xff] %v8520_v59 }
 0x1a4   : > { %v732_v54 = vpop.f32.mrb[62].mxu0  ;;  %v8516_v36 = vsub.f32 %v8484_v3, %v1782_v31  ;;  %13681 = vst [vmem:[#allocation149_spill] sm:$0xff] %v8532_v22  ;;  %13684 = vst [vmem:[#allocation152_spill] sm:$0xff] %v8549_v5 }
 0x1a5   : > { %v2241_v38 = vmin.f32 %v2240_v6, %v8503_v28  ;;  %v1788_v56 = vmul.f32 2.0, %v732_v54  ;;  %v734_v19 = vpop.f32.mrb[63].mxu0  ;;  %v989_v12 = vpop.f32.mrb[62].mxu1  ;;  %v2508_v54 = vlaneseq  ;;  %v2276_v26 = vmin.f32 %v2275_v7, %v8512_v45 }
 0x1a6   : > { %13677 = vst [vmem:[#allocation145_spill] sm:$0xff] %v8516_v36  ;;  %v2315_v4 = vmin.f32 %v2314_v52, %v8516_v36  ;;  %v1790_v31 = vmul.f32 2.0, %v989_v12  ;;  %v1789_v29 = vmul.f32 2.0, %v734_v19  ;;  %v991_v18 = vpop.f32.mrb[63].mxu1  ;;  %v8537_v43 = vsub.f32 %v8484_v3, %v1781_v15 }
 0x1a7   : > { %v8527_v6 = vsub.f32 %v8505_v41, %v1788_v56  ;;  %v1783_v52 = vmul.f32 2.0, %v985_v61  ;;  %v2349_v7 = vmin.f32 %v2348_v8, %v8520_v59  ;;  %v2277_v23 = vmin.f32 %v2276_v26, %v8523_v13 }
 0x1a8   : > { %v8534_v55 = vpop.f32.mrb[64].mxu0  ;;  %13682 = vst [vmem:[#allocation150_spill] sm:$0xff] %v8537_v43  ;;  %v8541_v12 = vsub.f32 %v8505_v41, %v1790_v31  ;;  %v1791_v31 = vmul.f32 2.0, %v991_v18  ;;  %v5120_v45 = vrot.slane %v7827_v10, 1  ;;  %v5142_v8 = vrot.slane %v7174_v53, 4 }
 0x1a9   : > { %13680 = vst [vmem:[#allocation148_spill] sm:$0xff] %v8527_v6  ;;  %v2242_v56 = vmin.f32 %v2241_v38, %v8527_v6  ;;  %v8543_v19 = vpop.f32.mrb[65].mxu0  ;;  %v8551_v27 = vpop.f32.mrb[64].mxu1  ;;  %v8557_v38 = vsub.f32 %v8505_v41, %v1789_v29  ;;  %v8563_v26 = vshrl.u32 %v2508_v54, 7  ;;  %v2350_v25 = vmin.f32 %v2349_v7, %v8532_v22 }
 0x1aa   : > { %13683 = vst [vmem:[#allocation151_spill] sm:$0xff] %v8541_v12  ;;  %v8554_v61 = vmin.f32 %v2315_v4, %v8541_v12  ;;  %v8559_v34 = vpop.f32.mrb[65].mxu1  ;;  %v2278_v59 = vmin.f32 %v2277_v23, %v8537_v43  ;;  %v8570_v4 = vsub.f32 %v8484_v3, %v1783_v52  ;;  %v13688_v18 = vrot.slane %v7777_v37, 1 }
 0x1ab   : > { %v2243_v15 = vrot.slane %v2242_v56, 4  ;;  %13685 = vst [vmem:[#allocation153_spill] sm:$0xff] %v8557_v38  ;;  %13686 = vst [vmem:[#allocation154_spill] sm:$0xff] %v8563_v26  ;;  %v13690_v54 = vrot.slane %v7782_v40, 1  ;;  %v8583_v12 = vadd.f32 %v5094_v2, %v7817_v46  ;;  %v2351_v52 = vmin.f32 %v2350_v25, %v8549_v5 }
 0x1ac   : > { %v8565_v60 = vpop.f32.mrb[66].mxu0  ;;  %13687 = vst [vmem:[#allocation155_spill] sm:$0xff] %v8570_v4  ;;  %v8575_v1 = vadd.f32 %v13688_v18, %v7777_v37  ;;  %v8593_v18 = vadd.f32 %v5120_v45, %v7827_v10  ;;  %v8598_v46 = vadd.f32 %v5142_v8, %v7174_v53  ;;  %v8603_v25 = vadd.s32 8, %v8563_v26 }
 0x1ad   : > { %v2244_v29 = vmin.f32 %v2242_v56, %v2243_v15  ;;  %v1068_v13 = vpop.f32.mrb[67].mxu0  ;;  %v8580_v9 = vadd.f32 %v13690_v54, %v7782_v40  ;;  %v8585_v7 = vpop.f32.mrb[66].mxu1  ;;  %v2279_v56 = vmin.f32 %v2278_v59, %v8557_v38  ;;  %v8590_v15 = vsub.f32 %v8505_v41, %v1791_v31 }
 0x1ae   : > { %13689 = vst [vmem:[#allocation156_spill] sm:$0xff] %v8575_v1  ;;  %v1325_v37 = vpop.f32.mrb[67].mxu1  ;;  %13693 = vst [vmem:[#allocation159_spill] sm:$0xff] %v8593_v18  ;;  %v8606_v59 = vadd.s32 16, %v8563_v26  ;;  %v2352_v31 = vmin.f32 %v2351_v52, %v8570_v4  ;;  %v8612_v45 = vadd.s32 24, %v8563_v26  ;;  %v8615_v54 = vadd.s32 32, %v8563_v26 }
 0x1af   : > { %13691 = vst [vmem:[#allocation157_spill] sm:$0xff] %v8580_v9  ;;  %v2245_v23 = vrot.slane %v2244_v29, 2  ;;  %13692 = vst [vmem:[#allocation158_spill] sm:$0xff] %v8590_v15  ;;  %v8618_v53 = vadd.s32 40, %v8563_v26  ;;  %v8621_v8 = vadd.s32 48, %v8563_v26  ;;  %v2280_v52 = vrot.slane %v2279_v56, 4 }
 0x1b0   : > { %13694 = vst [vmem:[#allocation160_spill] sm:$0xff] %v8598_v46  ;;  %v8600_v2 = vpop.f32.mrb[68].mxu0  ;;  %13695 = vst [vmem:[#allocation161_spill] sm:$0xff] %v8603_v25  ;;  %v8626_v46 = vadd.s32 56, %v8563_v26  ;;  %v8635_v39 = vadd.s32 72, %v8563_v26  ;;  %v8638_v3 = vadd.s32 80, %v8563_v26 }
 0x1b1   : > { %13696 = vst [vmem:[#allocation162_spill] sm:$0xff] %v8606_v59  ;;  %v2246_v41 = vmin.f32 %v2244_v29, %v2245_v23  ;;  %v8609_v10 = vpop.f32.mrb[69].mxu0  ;;  %13697 = vst [vmem:[#allocation163_spill] sm:$0xff] %v8612_v45  ;;  %v8623_v40 = vpop.f32.mrb[68].mxu1  ;;  %v8629_v29 = vadd.s32 64, %v8563_v26  ;;  %v2353_v23 = vmin.f32 %v2352_v31, %v8590_v15  ;;  %v8641_v9 = vadd.s32 88, %v8563_v26 }
 0x1b2   : > { %13698 = vst [vmem:[#allocation164_spill] sm:$0xff] %v8615_v54  ;;  %13699 = vst [vmem:[#allocation165_spill] sm:$0xff] %v8618_v53  ;;  %v8632_v51 = vpop.f32.mrb[69].mxu1  ;;  %v8646_v22 = vadd.s32 96, %v8563_v26  ;;  %v8649_v38 = vadd.s32 104, %v8563_v26  ;;  %v8652_v31 = vadd.s32 112, %v8563_v26 }
 0x1b3   : > { %13700 = vst [vmem:[#allocation166_spill] sm:$0xff] %v8621_v8  ;;  %13701 = vst [vmem:[#allocation167_spill] sm:$0xff] %v8626_v46  ;;  %v2247_v4 = vrot.slane %v2246_v41, 1  ;;  %v8655_v15 = vadd.s32 120, %v8563_v26  ;;  %v8660_v1 = vadd.s32 128, %v8563_v26  ;;  %v8663_v18 = vadd.s32 136, %v8563_v26 }
 0x1b4   : > { %13702 = vst [vmem:[#allocation168_spill] sm:$0xff] %v8629_v29  ;;  %13703 = vst [vmem:[#allocation169_spill] sm:$0xff] %v8635_v39  ;;  %v8643_v5 = vpop.f32.mrb[70].mxu0 }
 0x1b5   : > { %13704 = vst [vmem:[#allocation170_spill] sm:$0xff] %v8638_v3  ;;  %13705 = vst [vmem:[#allocation171_spill] sm:$0xff] %v8641_v9  ;;  %v8657_v43 = vpop.f32.mrb[71].mxu0  ;;  %v2354_v9 = vrot.slane %v2353_v23, 4 }
 0x1b6   : > { %13706 = vst [vmem:[#allocation172_spill] sm:$0xff] %v8643_v5  ;;  %13707 = vst [vmem:[#allocation173_spill] sm:$0xff] %v8646_v22  ;;  %v8666_v5 = vadd.s32 144, %v8563_v26  ;;  %v2317_v22 = vrot.slane %v8554_v61, 4 }
 0x1b7   : > { %13708 = vst [vmem:[#allocation174_spill] sm:$0xff] %v8649_v38  ;;  %13709 = vst [vmem:[#allocation175_spill] sm:$0xff] %v8652_v31  ;;  %v8669_v38 = vpop.f32.mrb[70].mxu1  ;;  %v8672_v31 = vadd.s32 152, %v8563_v26 }
 0x1b8   : > { %13710 = vst [vmem:[#allocation176_spill] sm:$0xff] %v8655_v15  ;;  %13711 = vst [vmem:[#allocation177_spill] sm:$0xff] %v8657_v43  ;;  %v8675_v15 = vadd.s32 160, %v8563_v26  ;;  %v2281_v43 = vmin.f32 %v2279_v56, %v2280_v52  ;;  %v8677_v3 = vpop.f32.mrb[71].mxu1  ;;  %v8690_v39 = vpop.f32.mrb[72].mxu0  ;;  %v8696_v56 = vadd.s32 200, %v8563_v26 }
 0x1b9   : > { %13712 = vst [vmem:[#allocation178_spill] sm:$0xff] %v8660_v1  ;;  %13713 = vst [vmem:[#allocation179_spill] sm:$0xff] %v8663_v18  ;;  %v8680_v1 = vadd.s32 168, %v8563_v26  ;;  %v8683_v18 = vadd.s32 176, %v8563_v26  ;;  %v8699_v52 = vadd.s32 208, %v8563_v26 }
 0x1ba   : > { %13714 = vst [vmem:[#allocation180_spill] sm:$0xff] %v8666_v5  ;;  %13715 = vst [vmem:[#allocation181_spill] sm:$0xff] %v8669_v38  ;;  %v8686_v5 = vadd.s32 184, %v8563_v26  ;;  %v8688_v38 = vmin.f32 %v2246_v41, %v2247_v4  ;;  %v2318_v41 = vmin.f32 %v8554_v61, %v2317_v22  ;;  %v1552_v4 = vmul.f32 2.0, %v8565_v60 }
 0x1bb   : > { %13716 = vst [vmem:[#allocation182_spill] sm:$0xff] %v8672_v31  ;;  %13717 = vst [vmem:[#allocation183_spill] sm:$0xff] %v8675_v15  ;;  %v8693_v31 = vadd.s32 192, %v8563_v26  ;;  %v1554_v15 = vmul.f32 2.0, %v8585_v7  ;;  %v1544_v60 = vmul.f32 2.0, %v8534_v55  ;;  %v1546_v7 = vmul.f32 2.0, %v8551_v27 }
 0x1bc   : > { %13718 = vst [vmem:[#allocation184_spill] sm:$0xff] %v8677_v3  ;;  %13719 = vst [vmem:[#allocation185_spill] sm:$0xff] %v8680_v1  ;;  %v8702_v3 = vadd.s32 216, %v8563_v26  ;;  %v2282_v1 = vrot.slane %v2281_v43, 2  ;;  %v2319_v61 = vrot.slane %v2318_v41, 2  ;;  %vm2541_vm13 = vcmp.eq.f32.partialorder %v7841_v62, %v8688_v38 }
 0x1bd   : > { %13720 = vst [vmem:[#allocation186_spill] sm:$0xff] %v8683_v18  ;;  %13721 = vst [vmem:[#allocation187_spill] sm:$0xff] %v8686_v5  ;;  %v8704_v18 = vpop.f32.mrb[73].mxu0  ;;  %v8707_v5 = vadd.s32 224, %v8563_v26  ;;  %vm2549_vm14 = vcmp.eq.f32.partialorder %v7821_v44, %v8688_v38  ;;  %v13745_v44 = vld [vmem:[#allocation15_spill] sm:$0xff]  ;;  %vm2629_vm8 = vcmp.eq.f32.partialorder %v8071_v48, %v8688_v38  ;;  %vm2637_vm6 = vcmp.eq.f32.partialorder %v8091_v11, %v8688_v38 }
 0x1be   : > { %13722 = vst [vmem:[#allocation188_spill] sm:$0xff] %v8690_v39  ;;  %13723 = vst [vmem:[#allocation189_spill] sm:$0xff] %v8693_v31  ;;  %v1553_v39 = vmul.f32 2.0, %v1068_v13  ;;  %v8711_v31 = vpop.f32.mrb[72].mxu1  ;;  %v8724_v13 = vpop.f32.mrb[74].mxu0  ;;  %v2283_v27 = vmin.f32 %v2281_v43, %v2282_v1  ;;  %v8784_v1 = vsub.f32 %v13745_v44, %v1544_v60  ;;  %v8787_v43 = vsub.f32 %v13745_v44, %v1546_v7 }
 0x1bf   : > { %13724 = vst [vmem:[#allocation190_spill] sm:$0xff] %v8696_v56  ;;  %13725 = vst [vmem:[#allocation191_spill] sm:$0xff] %v8699_v52  ;;  %v2355_v56 = vmin.f32 %v2353_v23, %v2354_v9  ;;  %v1555_v52 = vmul.f32 2.0, %v1325_v37  ;;  %v8714_v29 = vpop.f32.mrb[73].mxu1  ;;  %v8734_v9 = vpop.f32.mrb[75].mxu0  ;;  %v1545_v37 = vmul.f32 2.0, %v8543_v19  ;;  %vm2661_vm5 = vcmp.eq.f32.partialorder %v8138_v24, %v8688_v38 }
 0x1c0   : > { %13726 = vst [vmem:[#allocation192_spill] sm:$0xff] %v8702_v3  ;;  %13727 = vst [vmem:[#allocation193_spill] sm:$0xff] %v8704_v18  ;;  %v8744_v22 = vpop.f32.mrb[74].mxu1  ;;  %v8759_v18 = vsub.f32 %v7796_v14, %v1552_v4  ;;  %v8776_v4 = vsub.f32 %v7796_v14, %v1553_v39  ;;  %v2797_v39 = vsel %vm2541_vm13, %v8563_v26, 256  ;;  %v2805_v6 = vsel %vm2549_vm14, %v8603_v25, 256  ;;  %v13798_v48 = vld [vmem:[#allocation176_spill] sm:$0xff] }
 0x1c1   : > { %13728 = vst [vmem:[#allocation194_spill] sm:$0xff] %v8707_v5  ;;  %13729 = vst [vmem:[#allocation195_spill] sm:$0xff] %v8711_v31  ;;  %v8749_v23 = vpop.f32.mrb[75].mxu1  ;;  %v2356_v55 = vrot.slane %v2355_v56, 2  ;;  %v2320_v31 = vmin.f32 %v2318_v41, %v2319_v61  ;;  %v13752_v61 = vld [vmem:[#allocation21_spill] sm:$0xff]  ;;  %v2284_v60 = vrot.slane %v2283_v27, 1  ;;  %vm3053_vm13 = vcmp.lt.s32.totalorder %v2797_v39, %v2805_v6 }
 0x1c2   : > { %13730 = vst [vmem:[#allocation196_spill] sm:$0xff] %v8714_v29  ;;  %13731 = vst [vmem:[#allocation197_spill] sm:$0xff] %v8724_v13  ;;  %v8755_v13 = vadd.s32 240, %v8563_v26  ;;  %v1547_v29 = vmul.f32 2.0, %v8559_v34  ;;  %v8773_v34 = vsub.f32 %v7796_v14, %v1554_v15  ;;  %v8781_v62 = vpop.f32.mrb[76].mxu1  ;;  %vm2557_vm15 = vcmp.eq.f32.partialorder %v13752_v61, %v8688_v38  ;;  %v13799_v11 = vld [vmem:[#allocation178_spill] sm:$0xff] }
 0x1c3   : > { %13732 = vst [vmem:[#allocation198_spill] sm:$0xff] %v8734_v9  ;;  %13733 = vst [vmem:[#allocation199_spill] sm:$0xff] %v8744_v22  ;;  %v8752_v9 = vadd.s32 232, %v8563_v26  ;;  %v8761_v22 = vpop.f32.mrb[76].mxu0  ;;  %v8792_v15 = vpop.f32.mrb[77].mxu1  ;;  %v8804_v7 = vmin.f32 %v2355_v56, %v2356_v55  ;;  %v13756_v56 = vld [vmem:[#allocation28_spill] sm:$0xff]  ;;  %v8823_v55 = vadd.f32 %v8583_v12, %v8688_v38  ;;  %v8838_v12 = vmin.f32 %v2283_v27, %v2284_v60 }
 0x1c4   : > { %13734 = vst [vmem:[#allocation200_spill] sm:$0xff] %v8749_v23  ;;  %13736 = vst [vmem:[#allocation202_spill] sm:$0xff] %v8755_v13  ;;  %v8767_v19 = vpop.f32.mrb[77].mxu0  ;;  %v8770_v23 = vadd.s32 248, %v8563_v26  ;;  %vm2565_vm0 = vcmp.eq.f32.partialorder %v13756_v56, %v8688_v38  ;;  %v13763_v56 = vld [vmem:[#allocation34_spill] sm:$0xff]  ;;  %v13769_v27 = vld [vmem:[#allocation44_spill] sm:$0xff] }
 0x1c5   : > { %13735 = vst [vmem:[#allocation201_spill] sm:$0xff] %v8752_v9  ;;  %13737 = vst [vmem:[#allocation203_spill] sm:$0xff] %v8759_v18  ;;  %v8800_v41 = vpop.f32.mrb[78].mxu0  ;;  %v8817_v61 = vpop.f32.mrb[78].mxu1  ;;  %vm2573_vm14 = vcmp.eq.f32.partialorder %v13763_v56, %v8688_v38  ;;  %v13770_v60 = vld [vmem:[#allocation48_spill] sm:$0xff]  ;;  %v13814_v42 = vld [vmem:[#allocation186_spill] sm:$0xff] }
 0x1c6   : > { %13738 = vst [vmem:[#allocation204_spill] sm:$0xff] %v8761_v22  ;;  %13739 = vst [vmem:[#allocation205_spill] sm:$0xff] %v8767_v19  ;;  %v8779_v22 = vsub.f32 %v7796_v14, %v1555_v52  ;;  %v8790_v19 = vsub.f32 %v13745_v44, %v1545_v37  ;;  %v8797_v14 = vsub.f32 %v13745_v44, %v1547_v29  ;;  %v1560_v52 = vmul.f32 2.0, %v8600_v2  ;;  %v13777_v56 = vld [vmem:[#allocation68_spill] sm:$0xff]  ;;  %v13824_v20 = vld [vmem:[#allocation191_spill] sm:$0xff] }
 0x1c7   : > { %13740 = vst [vmem:[#allocation206_spill] sm:$0xff] %v8770_v23  ;;  %13741 = vst [vmem:[#allocation207_spill] sm:$0xff] %v8773_v34  ;;  %v1562_v44 = vmul.f32 2.0, %v8623_v40  ;;  %v2321_v37 = vrot.slane %v2320_v31, 1  ;;  %v2813_v29 = vsel %vm2557_vm15, %v8606_v59, 256  ;;  %v8832_v40 = vmul.f32 2.0, %v8609_v10 }
 0x1c8   : > { %13742 = vst [vmem:[#allocation208_spill] sm:$0xff] %v8776_v4  ;;  %13743 = vst [vmem:[#allocation209_spill] sm:$0xff] %v8779_v22  ;;  %v8848_v10 = vmul.f32 2.0, %v8632_v51  ;;  %vm2597_vm11 = vcmp.eq.f32.partialorder %v13770_v60, %v8688_v38  ;;  %v13773_v51 = vld [vmem:[#allocation54_spill] sm:$0xff]  ;;  %v13786_v60 = vld [vmem:[#allocation88_spill] sm:$0xff] }
 0x1c9   : > { %13744 = vst [vmem:[#allocation210_spill] sm:$0xff] %v8781_v62  ;;  %13746 = vst [vmem:[#allocation15_spill] sm:$0xff] %v8784_v1  ;;  %v8825_v62 = vpop.f32.mrb[79].mxu1  ;;  %v13793_v1 = vld [vmem:[#allocation171_spill] sm:$0xff] }
 0x1ca   : > { %13747 = vst [vmem:[#allocation211_spill] sm:$0xff] %v8787_v43  ;;  %13748 = vst [vmem:[#allocation212_spill] sm:$0xff] %v8790_v19  ;;  %v13779_v19 = vld [vmem:[#allocation71_spill] sm:$0xff] }
 0x1cb   : > { %13749 = vst [vmem:[#allocation213_spill] sm:$0xff] %v8792_v15  ;;  %13750 = vst [vmem:[#allocation214_spill] sm:$0xff] %v8797_v14  ;;  %v8808_v15 = vpop.f32.mrb[79].mxu0  ;;  %v13768_v14 = vld [vmem:[#allocation39_spill] sm:$0xff] }
 0x1cc   : > { %13751 = vst [vmem:[#allocation215_spill] sm:$0xff] %v8800_v41  ;;  %13753 = vst [vmem:[#allocation21_spill] sm:$0xff] %v8804_v7  ;;  %v13759_v41 = vld [vmem:[#allocation16_spill] sm:$0xff]  ;;  %vm2581_vm15 = vcmp.eq.f32.partialorder %v13768_v14, %v8688_v38  ;;  %v13782_v14 = vld [vmem:[#allocation85_spill] sm:$0xff] }
 0x1cd   : > { %13754 = vst [vmem:[#allocation216_spill] sm:$0xff] %v8808_v15  ;;  %13755 = vst [vmem:[#allocation217_spill] sm:$0xff] %v8817_v61  ;;  %v3054_v15 = vsel %vm3053_vm13, %v2797_v39, %v2805_v6  ;;  %v8829_v2 = vsub.f32 %v13759_v41, %v1560_v52  ;;  %v8834_v61 = vpop.f32.mrb[80].mxu0  ;;  %v2821_v6 = vsel %vm2565_vm0, %v8612_v45, 256  ;;  %v8845_v52 = vsub.f32 %v13759_v41, %v1562_v44  ;;  %v13803_v7 = vld [vmem:[#allocation180_spill] sm:$0xff] }
 0x1ce   : > { %13757 = vst [vmem:[#allocation28_spill] sm:$0xff] %v8823_v55  ;;  %13758 = vst [vmem:[#allocation218_spill] sm:$0xff] %v8825_v62  ;;  %vm3055_vm12 = vcmp.lt.s32.totalorder %v3054_v15, %v2813_v29  ;;  %v8841_v62 = vpop.f32.mrb[81].mxu0  ;;  %vm2589_vm13 = vcmp.eq.f32.partialorder %v13769_v27, %v8688_v38  ;;  %vm2613_vm0 = vcmp.eq.f32.partialorder %v13773_v51, %v8688_v38  ;;  %v13795_v51 = vld [vmem:[#allocation174_spill] sm:$0xff] }
 0x1cf   : > { %13760 = vst [vmem:[#allocation219_spill] sm:$0xff] %v8829_v2  ;;  %13761 = vst [vmem:[#allocation220_spill] sm:$0xff] %v8832_v40  ;;  %v3056_v39 = vsel %vm3055_vm12, %v3054_v15, %v2813_v29  ;;  %v13772_v15 = vld [vmem:[#allocation51_spill] sm:$0xff]  ;;  %v2829_v29 = vsel %vm2573_vm14, %v8615_v54, 256  ;;  %vm2645_vm14 = vcmp.eq.f32.partialorder %v13777_v56, %v8688_v38  ;;  %v13805_v55 = vld [vmem:[#allocation182_spill] sm:$0xff] }
 0x1d0   : > { %13762 = vst [vmem:[#allocation221_spill] sm:$0xff] %v8834_v61  ;;  %13764 = vst [vmem:[#allocation34_spill] sm:$0xff] %v8841_v62  ;;  %v8850_v61 = vpop.f32.mrb[80].mxu1  ;;  %vm3057_vm10 = vcmp.lt.s32.totalorder %v3056_v39, %v2821_v6  ;;  %vm2605_vm12 = vcmp.eq.f32.partialorder %v13772_v15, %v8688_v38  ;;  %v8868_v62 = vpop.f32.mrb[82].mxu0  ;;  %v13794_v15 = vld [vmem:[#allocation173_spill] sm:$0xff] }
 0x1d1   : > { %13765 = vst [vmem:[#allocation222_spill] sm:$0xff] %v8845_v52  ;;  %13766 = vst [vmem:[#allocation223_spill] sm:$0xff] %v8848_v10  ;;  %v8858_v22 = vpop.f32.mrb[81].mxu1  ;;  %v3058_v44 = vsel %vm3057_vm10, %v3056_v39, %v2821_v6  ;;  %v8876_v4 = vpop.f32.mrb[83].mxu0  ;;  %v2837_v6 = vsel %vm2581_vm15, %v8618_v53, 256  ;;  %vm2653_vm10 = vcmp.eq.f32.partialorder %v13779_v19, %v8688_v38  ;;  %v2893_v2 = vsel %vm2637_vm6, %v13794_v15, 256 }
 0x1d2   : > { %13767 = vst [vmem:[#allocation224_spill] sm:$0xff] %v8850_v61  ;;  %13771 = vst [vmem:[#allocation39_spill] sm:$0xff] %v8858_v22  ;;  %v13775_v61 = vld [vmem:[#allocation58_spill] sm:$0xff]  ;;  %vm3059_vm7 = vcmp.lt.s32.totalorder %v3058_v44, %v2829_v29  ;;  %v8874_v22 = vmin.f32 %v2320_v31, %v2321_v37  ;;  %v13780_v31 = vld [vmem:[#allocation77_spill] sm:$0xff]  ;;  %v2901_v10 = vsel %vm2645_vm14, %v13795_v51, 256  ;;  %vm13808_vm6 = vcmp.eq.f32.partialorder %v8225_v49, %v8688_v38 }
 0x1d3   : > { %13774 = vst [vmem:[#allocation44_spill] sm:$0xff] %v8868_v62  ;;  %vm2621_vm9 = vcmp.eq.f32.partialorder %v13775_v61, %v8688_v38  ;;  %13776 = vst [vmem:[#allocation48_spill] sm:$0xff] %v8876_v4  ;;  %v3060_v39 = vsel %vm3059_vm7, %v3058_v44, %v2829_v29  ;;  %v8886_v62 = vpop.f32.mrb[82].mxu1  ;;  %vm2669_vm4 = vcmp.eq.f32.partialorder %v13780_v31, %v8688_v38  ;;  %v2845_v29 = vsel %vm2589_vm13, %v8621_v8, 256  ;;  %v8904_v4 = vpop.f32.mrb[84].mxu0 }
 0x1d4   : > { %13778 = vst [vmem:[#allocation51_spill] sm:$0xff] %v8886_v62  ;;  %vm3061_vm3 = vcmp.lt.s32.totalorder %v3060_v39, %v2837_v6  ;;  %v8894_v37 = vpop.f32.mrb[83].mxu1  ;;  %13783 = vst [vmem:[#allocation58_spill] sm:$0xff] %v8904_v4  ;;  %v2853_v62 = vsel %vm2597_vm11, %v8626_v46, 256  ;;  %vm2693_vm11 = vcmp.eq.f32.partialorder %v13786_v60, %v8688_v38  ;;  %v13791_v4 = vld [vmem:[#allocation170_spill] sm:$0xff]  ;;  %v8974_v56 = vsel %vm2669_vm4, %v13799_v11, 256 }
 0x1d5   : > { %13781 = vst [vmem:[#allocation54_spill] sm:$0xff] %v8894_v37  ;;  %v3062_v44 = vsel %vm3061_vm3, %v3060_v39, %v2837_v6  ;;  %v8914_v37 = vpop.f32.mrb[85].mxu0  ;;  %v8922_v27 = vpop.f32.mrb[84].mxu1  ;;  %v2877_v43 = vsel %vm2621_vm9, %v13791_v4, 256  ;;  %v8994_v31 = vsel %vm2693_vm11, %v13805_v55, 256  ;;  %v13810_v6 = vld [vmem:[#allocation17_spill] sm:$0xff]  ;;  %vm13815_vm14 = vcmp.eq.f32.partialorder %v8287_v47, %v8688_v38 }
 0x1d6   : > { %vm3063_vm15 = vcmp.lt.s32.totalorder %v3062_v44, %v2845_v29  ;;  %13784 = vst [vmem:[#allocation68_spill] sm:$0xff] %v8914_v37  ;;  %13785 = vst [vmem:[#allocation71_spill] sm:$0xff] %v8922_v27  ;;  %v8930_v39 = vpop.f32.mrb[85].mxu1  ;;  %v13790_v37 = vld [vmem:[#allocation169_spill] sm:$0xff]  ;;  %v8944_v18 = vpop.f32.mrb[86].mxu0  ;;  %vm2551_vm9 = vcmp.eq.f32.partialorder %v13810_v6, %v8874_v22  ;;  %v9020_v49 = vsel %vm13815_vm14, %v13814_v42, 256  ;;  %vm13831_vm14 = vcmp.eq.f32.partialorder %v8482_v30, %v8688_v38 }
 0x1d7   : > { %v3064_v34 = vsel %vm3063_vm15, %v3062_v44, %v2845_v29  ;;  %13788 = vst [vmem:[#allocation77_spill] sm:$0xff] %v8930_v39  ;;  %v13789_v29 = vld [vmem:[#allocation168_spill] sm:$0xff]  ;;  %v2869_v27 = vsel %vm2613_vm0, %v13790_v37, 256  ;;  %13792 = vst [vmem:[#allocation85_spill] sm:$0xff] %v8944_v18  ;;  %v2885_v39 = vsel %vm2629_vm8, %v13793_v1, 256  ;;  %v8958_v61 = vpop.f32.mrb[87].mxu0  ;;  %vm13813_vm0 = vcmp.eq.f32.partialorder %v8254_v16, %v8688_v38 }
 0x1d8   : > { %vm3065_vm1 = vcmp.lt.s32.totalorder %v3064_v34, %v2853_v62  ;;  %v2861_v44 = vsel %vm2605_vm12, %v13789_v29, 256  ;;  %13796 = vst [vmem:[#allocation88_spill] sm:$0xff] %v8958_v61  ;;  %v8968_v18 = vsel %vm2661_vm5, %v13798_v48, 256  ;;  %v8976_v40 = vpop.f32.mrb[86].mxu1  ;;  %v13801_v61 = vld [vmem:[#allocation179_spill] sm:$0xff]  ;;  %vm13804_vm5 = vcmp.eq.f32.partialorder %v13782_v14, %v8688_v38  ;;  %v13809_v14 = vld [vmem:[#allocation22_spill] sm:$0xff] }
 0x1d9   : > { %v3066_v52 = vsel %vm3065_vm1, %v3064_v34, %v2853_v62  ;;  %v13797_v34 = vld [vmem:[#allocation175_spill] sm:$0xff]  ;;  %13800 = vst [vmem:[#allocation178_spill] sm:$0xff] %v8976_v40  ;;  %vm13802_vm1 = vcmp.eq.f32.partialorder %v8176_v35, %v8688_v38  ;;  %v8988_v24 = vsel %vm13804_vm5, %v13803_v7, 256  ;;  %vm2543_vm8 = vcmp.eq.f32.partialorder %v13809_v14, %v8874_v22  ;;  %v9008_v36 = vpop.f32.mrb[88].mxu0  ;;  %v13812_v60 = vld [vmem:[#allocation185_spill] sm:$0xff] }
 0x1da   : > { %vm3067_vm12 = vcmp.lt.s32.totalorder %v3066_v52, %v2861_v44  ;;  %v2909_v62 = vsel %vm2653_vm10, %v13797_v34, 256  ;;  %v8982_v19 = vsel %vm13802_vm1, %v13801_v61, 256  ;;  %13811 = vst [vmem:[#allocation180_spill] sm:$0xff] %v9008_v36  ;;  %vm13817_vm10 = vcmp.eq.f32.partialorder %v8316_v50, %v8688_v38  ;;  %v9028_v6 = vpop.f32.mrb[89].mxu0  ;;  %v13819_v14 = vld [vmem:[#allocation189_spill] sm:$0xff]  ;;  %v13821_v36 = vld [vmem:[#allocation190_spill] sm:$0xff] }
 0x1db   : > { %v3068_v41 = vsel %vm3067_vm12, %v3066_v52, %v2861_v44  ;;  %v8996_v52 = vpop.f32.mrb[87].mxu1  ;;  %v13807_v44 = vld [vmem:[#allocation183_spill] sm:$0xff]  ;;  %13818 = vst [vmem:[#allocation182_spill] sm:$0xff] %v9028_v6  ;;  %vm13820_vm12 = vcmp.eq.f32.partialorder %v8343_v33, %v8688_v38  ;;  %vm13822_vm1 = vcmp.eq.f32.partialorder %v8377_v63, %v8688_v38  ;;  %vm13825_vm5 = vcmp.eq.f32.partialorder %v8403_v17, %v8688_v38 }
 0x1dc   : > { %vm3069_vm4 = vcmp.lt.s32.totalorder %v3068_v41, %v2869_v27  ;;  %13806 = vst [vmem:[#allocation179_spill] sm:$0xff] %v8996_v52  ;;  %v9002_v35 = vsel %vm13808_vm6, %v13807_v44, 256  ;;  %v9014_v52 = vsel %vm13813_vm0, %v13812_v60, 256  ;;  %v9034_v16 = vsel %vm13820_vm12, %v13819_v14, 256  ;;  %v9048_v6 = vpop.f32.mrb[88].mxu1 }
 0x1dd   : > { %v3070_v40 = vsel %vm3069_vm4, %v3068_v41, %v2869_v27  ;;  %v13816_v41 = vld [vmem:[#allocation187_spill] sm:$0xff]  ;;  %v9040_v47 = vsel %vm13822_vm1, %v13821_v36, 256  ;;  %v9046_v50 = vsel %vm13825_vm5, %v13824_v20, 256  ;;  %13826 = vst [vmem:[#allocation22_spill] sm:$0xff] %v9048_v6  ;;  %vm13827_vm4 = vcmp.eq.f32.partialorder %v8429_v58, %v8688_v38  ;;  %v9058_v32 = vpop.f32.mrb[89].mxu1  ;;  %v9074_v6 = vpop.f32.mrb[90].mxu0 }
 0x1de   : > { %v9026_v27 = vsel %vm13817_vm10, %v13816_v41, 256  ;;  %vm3071_vm11 = vcmp.lt.s32.totalorder %v3070_v40, %v2877_v43  ;;  %13823 = vst [vmem:[#allocation183_spill] sm:$0xff] %v9040_v47  ;;  %v9054_v33 = vsel %vm13827_vm4, %v8702_v3, 256  ;;  %v2799_v63 = vsel %vm2543_vm8, %v8563_v26, 256  ;;  %13828 = vst [vmem:[#allocation17_spill] sm:$0xff] %v9058_v32  ;;  %v9090_v30 = vpop.f32.mrb[91].mxu0 }
 0x1df   : > { %v3072_v21 = vsel %vm3071_vm11, %v3070_v40, %v2877_v43  ;;  %v2807_v47 = vsel %vm2551_vm9, %v8603_v25, 256  ;;  %vm13829_vm0 = vcmp.eq.f32.partialorder %v8456_v0, %v8688_v38  ;;  %v9070_v58 = vsel %vm13831_vm14, %v8752_v9, 256  ;;  %v13833_v40 = vld [vmem:[#allocation25_spill] sm:$0xff]  ;;  %13834 = vst [vmem:[#allocation189_spill] sm:$0xff] %v9074_v6  ;;  %v13837_v0 = vld [vmem:[#allocation148_spill] sm:$0xff] }
 0x1e0   : > { %vm3073_vm6 = vcmp.lt.s32.totalorder %v3072_v21, %v2885_v39  ;;  %v9064_v17 = vsel %vm13829_vm0, %v8707_v5, 256  ;;  %13832 = vst [vmem:[#allocation186_spill] sm:$0xff] %v9070_v58  ;;  %vm2559_vm8 = vcmp.eq.f32.partialorder %v13833_v40, %v8874_v22  ;;  %vm13835_vm9 = vcmp.eq.f32.partialorder %v8503_v28, %v8688_v38  ;;  %v13842_v40 = vld [vmem:[#allocation36_spill] sm:$0xff]  ;;  %v13843_v28 = vld [vmem:[#allocation159_spill] sm:$0xff] }
 0x1e1   : > { %13830 = vst [vmem:[#allocation185_spill] sm:$0xff] %v9064_v17  ;;  %v3074_v43 = vsel %vm3073_vm6, %v3072_v21, %v2885_v39  ;;  %v9080_v32 = vsel %vm13835_vm9, %v8755_v13, 256  ;;  %vm13838_vm10 = vcmp.eq.f32.partialorder %v13837_v0, %v8688_v38  ;;  %v13840_v21 = vld [vmem:[#allocation31_spill] sm:$0xff]  ;;  %vm2575_vm1 = vcmp.eq.f32.partialorder %v13842_v40, %v8874_v22  ;;  %v13846_v38 = vld [vmem:[#allocation40_spill] sm:$0xff] }
 0x1e2   : > { %13836 = vst [vmem:[#allocation25_spill] sm:$0xff] %v9080_v32  ;;  %v9086_v17 = vsel %vm13838_vm10, %v8770_v23, 256  ;;  %vm3075_vm11 = vcmp.lt.s32.totalorder %v3074_v43, %v2893_v2  ;;  %vm2567_vm12 = vcmp.eq.f32.partialorder %v13840_v21, %v8874_v22  ;;  %13841 = vst [vmem:[#allocation31_spill] sm:$0xff] %v9090_v30  ;;  %vm3195_vm5 = vcmp.lt.s32.totalorder %v2799_v63, %v2807_v47  ;;  %v9098_v32 = vpop.f32.mrb[90].mxu1  ;;  %v13849_v30 = vld [vmem:[#allocation56_spill] sm:$0xff] }
 0x1e3   : > { %13839 = vst [vmem:[#allocation148_spill] sm:$0xff] %v9086_v17  ;;  %v3076_v39 = vsel %vm3075_vm11, %v3074_v43, %v2893_v2  ;;  %v9096_v6 = vadd.f32 %v13843_v28, %v8874_v22  ;;  %13845 = vst [vmem:[#allocation159_spill] sm:$0xff] %v9098_v32  ;;  %vm2583_vm6 = vcmp.eq.f32.partialorder %v13846_v38, %v8874_v22  ;;  %v2815_v0 = vsel %vm2559_vm8, %v8606_v59, 256  ;;  %v9103_v58 = vpop.f32.mrb[91].mxu1  ;;  %v13848_v43 = vld [vmem:[#allocation47_spill] sm:$0xff]  ;;  %v9109_v28 = vpop.f32.mrb[92].mxu0 }
 0x1e4   : > { %vm3077_vm4 = vcmp.lt.s32.totalorder %v3076_v39, %v2901_v10  ;;  %v3196_v17 = vsel %vm3195_vm5, %v2799_v63, %v2807_v47  ;;  %13847 = vst [vmem:[#allocation40_spill] sm:$0xff] %v9103_v58  ;;  %vm2591_vm0 = vcmp.eq.f32.partialorder %v13848_v43, %v8874_v22  ;;  %vm2599_vm14 = vcmp.eq.f32.partialorder %v13849_v30, %v8874_v22  ;;  %v13851_v32 = vld [vmem:[#allocation60_spill] sm:$0xff]  ;;  %v13853_v58 = vld [vmem:[#allocation65_spill] sm:$0xff]  ;;  %v13856_v59 = vld [vmem:[#allocation79_spill] sm:$0xff] }
 0x1e5   : > { %13844 = vst [vmem:[#allocation36_spill] sm:$0xff] %v9096_v6  ;;  %v3078_v2 = vsel %vm3077_vm4, %v3076_v39, %v2901_v10  ;;  %vm3197_vm9 = vcmp.lt.s32.totalorder %v3196_v17, %v2815_v0  ;;  %13850 = vst [vmem:[#allocation47_spill] sm:$0xff] %v9109_v28  ;;  %vm2607_vm11 = vcmp.eq.f32.partialorder %v13851_v32, %v8874_v22  ;;  %v2823_v47 = vsel %vm2567_vm12, %v8612_v45, 256  ;;  %v9117_v10 = vpop.f32.mrb[93].mxu0  ;;  %v13854_v6 = vld [vmem:[#allocation73_spill] sm:$0xff]  ;;  %v9123_v28 = vpop.f32.mrb[92].mxu1 }
 0x1e6   : > { %vm3079_vm10 = vcmp.lt.s32.totalorder %v3078_v2, %v2909_v62  ;;  %v3198_v63 = vsel %vm3197_vm9, %v3196_v17, %v2815_v0  ;;  %13852 = vst [vmem:[#allocation56_spill] sm:$0xff] %v9117_v10  ;;  %vm2615_vm8 = vcmp.eq.f32.partialorder %v13853_v58, %v8874_v22  ;;  %vm2623_vm5 = vcmp.eq.f32.partialorder %v13854_v6, %v8874_v22  ;;  %v9132_v21 = vpop.f32.mrb[93].mxu1  ;;  %v13859_v10 = vld [vmem:[#allocation87_spill] sm:$0xff]  ;;  %v13861_v45 = vld [vmem:[#allocation90_spill] sm:$0xff] }
 0x1e7   : > { %v3080_v39 = vsel %vm3079_vm10, %v3078_v2, %v2909_v62  ;;  %vm3199_vm4 = vcmp.lt.s32.totalorder %v3198_v63, %v2823_v47  ;;  %13855 = vst [vmem:[#allocation60_spill] sm:$0xff] %v9123_v28  ;;  %vm2631_vm7 = vcmp.eq.f32.partialorder %v13856_v59, %v8874_v22  ;;  %v2831_v17 = vsel %vm2575_vm1, %v8615_v54, 256  ;;  %13857 = vst [vmem:[#allocation65_spill] sm:$0xff] %v9132_v21  ;;  %v13858_v2 = vld [vmem:[#allocation83_spill] sm:$0xff]  ;;  %v9139_v28 = vpop.f32.mrb[94].mxu0  ;;  %v9155_v21 = vpop.f32.mrb[94].mxu1 }
 0x1e8   : > { %vm3081_vm15 = vcmp.lt.s32.totalorder %v3080_v39, %v8968_v18  ;;  %v3200_v62 = vsel %vm3199_vm4, %v3198_v63, %v2823_v47  ;;  %vm2639_vm12 = vcmp.eq.f32.partialorder %v13858_v2, %v8874_v22  ;;  %vm2647_vm9 = vcmp.eq.f32.partialorder %v13859_v10, %v8874_v22  ;;  %13860 = vst [vmem:[#allocation73_spill] sm:$0xff] %v9139_v28  ;;  %v9148_v47 = vpop.f32.mrb[95].mxu0  ;;  %v13864_v28 = vld [vmem:[#allocation93_spill] sm:$0xff]  ;;  %v13880_v2 = vld [vmem:[#allocation19_spill] sm:$0xff]  ;;  %v13881_v10 = vld [vmem:[#allocation18_spill] sm:$0xff] }
 0x1e9   : > { %v3082_v0 = vsel %vm3081_vm15, %v3080_v39, %v8968_v18  ;;  %vm3201_vm10 = vcmp.lt.s32.totalorder %v3200_v62, %v2831_v17  ;;  %v2839_v40 = vsel %vm2583_vm6, %v8618_v53, 256  ;;  %13862 = vst [vmem:[#allocation79_spill] sm:$0xff] %v9148_v47  ;;  %v13863_v39 = vld [vmem:[#allocation92_spill] sm:$0xff]  ;;  %13865 = vst [vmem:[#allocation83_spill] sm:$0xff] %v9155_v21  ;;  %v13866_v54 = vld [vmem:[#allocation97_spill] sm:$0xff]  ;;  %v2847_v38 = vsel %vm2591_vm0, %v8621_v8, 256 }
 0x1ea   : > { %vm3083_vm2 = vcmp.lt.s32.totalorder %v3082_v0, %v8974_v56  ;;  %v3202_v18 = vsel %vm3201_vm10, %v3200_v62, %v2831_v17  ;;  %vm2663_vm15 = vcmp.eq.f32.partialorder %v13863_v39, %v8874_v22  ;;  %v9164_v17 = vpop.f32.mrb[95].mxu1  ;;  %v13869_v47 = vld [vmem:[#allocation103_spill] sm:$0xff]  ;;  %v13870_v21 = vld [vmem:[#allocation106_spill] sm:$0xff]  ;;  %v2855_v43 = vsel %vm2599_vm14, %v8626_v46, 256 }
 0x1eb   : > { %v3084_v63 = vsel %vm3083_vm2, %v3082_v0, %v8974_v56  ;;  %vm3203_vm4 = vcmp.lt.s32.totalorder %v3202_v18, %v2839_v40  ;;  %13867 = vst [vmem:[#allocation87_spill] sm:$0xff] %v9164_v17  ;;  %v13868_v0 = vld [vmem:[#allocation100_spill] sm:$0xff]  ;;  %v9183_v17 = vpop.f32.mrb[96].mxu0  ;;  %v9185_v8 = vpop.f32.mrb[96].mxu1  ;;  %v13875_v53 = vld [vmem:[#allocation114_spill] sm:$0xff]  ;;  %v2879_v32 = vsel %vm2623_vm5, %v13791_v4, 256  ;;  %vm2550_vm5 = vcmp.eq.f32.partialorder %v13881_v10, %v8838_v12 }
 0x1ec   : > { %vm3085_vm3 = vcmp.lt.s32.totalorder %v3084_v63, %v8982_v19  ;;  %v3204_v56 = vsel %vm3203_vm4, %v3202_v18, %v2839_v40  ;;  %vm2687_vm2 = vcmp.eq.f32.partialorder %v13868_v0, %v8874_v22  ;;  %v13871_v18 = vld [vmem:[#allocation109_spill] sm:$0xff]  ;;  %13873 = vst [vmem:[#allocation90_spill] sm:$0xff] %v9183_v17  ;;  %13874 = vst [vmem:[#allocation92_spill] sm:$0xff] %v9185_v8  ;;  %v2871_v8 = vsel %vm2615_vm8, %v13790_v37, 256  ;;  %v13928_v10 = vld [vmem:[#allocation64_spill] sm:$0xff] }
 0x1ed   : > { %v3086_v62 = vsel %vm3085_vm3, %v3084_v63, %v8982_v19  ;;  %vm3205_vm10 = vcmp.lt.s32.totalorder %v3204_v56, %v2847_v38  ;;  %vm2711_vm3 = vcmp.eq.f32.partialorder %v13871_v18, %v8874_v22  ;;  %v13872_v63 = vld [vmem:[#allocation110_spill] sm:$0xff]  ;;  %vm2727_vm6 = vcmp.eq.f32.partialorder %v13875_v53, %v8874_v22  ;;  %v13878_v17 = vld [vmem:[#allocation117_spill] sm:$0xff] }
 0x1ee   : > { %vm3087_vm1 = vcmp.lt.s32.totalorder %v3086_v62, %v8988_v24  ;;  %v3206_v40 = vsel %vm3205_vm10, %v3204_v56, %v2847_v38  ;;  %vm2719_vm0 = vcmp.eq.f32.partialorder %v13872_v63, %v8874_v22  ;;  %v9194_v38 = vpop.f32.mrb[97].mxu0  ;;  %v9196_v56 = vpop.f32.mrb[97].mxu1  ;;  %vm2735_vm14 = vcmp.eq.f32.partialorder %v13878_v17, %v8874_v22  ;;  %v13898_v17 = vld [vmem:[#allocation129_spill] sm:$0xff] }
 0x1ef   : > { %v3088_v19 = vsel %vm3087_vm1, %v3086_v62, %v8988_v24  ;;  %vm3207_vm4 = vcmp.lt.s32.totalorder %v3206_v40, %v2855_v43  ;;  %v2863_v24 = vsel %vm2607_vm11, %v13789_v29, 256  ;;  %13876 = vst [vmem:[#allocation93_spill] sm:$0xff] %v9194_v38  ;;  %13877 = vst [vmem:[#allocation97_spill] sm:$0xff] %v9196_v56  ;;  %v2895_v58 = vsel %vm2639_vm12, %v13794_v15, 256 }
 0x1f0   : > { %vm3089_vm13 = vcmp.lt.s32.totalorder %v3088_v19, %v8994_v31  ;;  %v3208_v30 = vsel %vm3207_vm4, %v3206_v40, %v2855_v43  ;;  %vm2542_vm8 = vcmp.eq.f32.partialorder %v13880_v2, %v8838_v12  ;;  %vm13884_vm12 = vcmp.eq.f32.partialorder %v13864_v28, %v8874_v22 }
 0x1f1   : > { %v3090_v62 = vsel %vm3089_vm13, %v3088_v19, %v8994_v31  ;;  %vm3209_vm1 = vcmp.lt.s32.totalorder %v3208_v30, %v2863_v24  ;;  %v2887_v31 = vsel %vm2631_vm7, %v13793_v1, 256  ;;  %v2903_v19 = vsel %vm2647_vm9, %v13795_v51, 256 }
 0x1f2   : > { %vm3091_vm10 = vcmp.lt.s32.totalorder %v3090_v62, %v9002_v35  ;;  %v3210_v43 = vsel %vm3209_vm1, %v3208_v30, %v2863_v24  ;;  %vm13879_vm7 = vcmp.eq.f32.partialorder %v13861_v45, %v8874_v22  ;;  %v9238_v24 = vpop.f32.mrb[98].mxu0  ;;  %v9240_v30 = vpop.f32.mrb[98].mxu1  ;;  %v9247_v39 = vsel %vm13884_vm12, %v13799_v11, 256 }
 0x1f3   : > { %v3092_v40 = vsel %vm3091_vm10, %v3090_v62, %v9002_v35  ;;  %vm3211_vm13 = vcmp.lt.s32.totalorder %v3210_v43, %v2871_v8  ;;  %v2911_v59 = vsel %vm13879_vm7, %v13797_v34, 256  ;;  %v9232_v35 = vsel %vm2663_vm15, %v13798_v48, 256  ;;  %13882 = vst [vmem:[#allocation100_spill] sm:$0xff] %v9238_v24  ;;  %13883 = vst [vmem:[#allocation103_spill] sm:$0xff] %v9240_v30  ;;  %v9255_v62 = vpop.f32.mrb[99].mxu0  ;;  %v13905_v30 = vld [vmem:[#allocation140_spill] sm:$0xff] }
 0x1f4   : > { %vm3093_vm11 = vcmp.lt.s32.totalorder %v3092_v40, %v9014_v52  ;;  %v3212_v6 = vsel %vm3211_vm13, %v3210_v43, %v2871_v8  ;;  %vm13885_vm9 = vcmp.eq.f32.partialorder %v13866_v54, %v8874_v22  ;;  %13886 = vst [vmem:[#allocation106_spill] sm:$0xff] %v9255_v62  ;;  %v9257_v43 = vpop.f32.mrb[99].mxu1  ;;  %vm13888_vm1 = vcmp.eq.f32.partialorder %v13869_v47, %v8874_v22  ;;  %v13891_v47 = vld [vmem:[#allocation23_spill] sm:$0xff] }
 0x1f5   : > { %v3094_v45 = vsel %vm3093_vm11, %v3092_v40, %v9014_v52  ;;  %v9253_v8 = vsel %vm13885_vm9, %v13801_v61, 256  ;;  %vm3213_vm15 = vcmp.lt.s32.totalorder %v3212_v6, %v2879_v32  ;;  %13887 = vst [vmem:[#allocation109_spill] sm:$0xff] %v9257_v43  ;;  %v9264_v52 = vsel %vm2687_vm2, %v13803_v7, 256  ;;  %v9272_v40 = vpop.f32.mrb[100].mxu0 }
 0x1f6   : > { %vm3095_vm4 = vcmp.lt.s32.totalorder %v3094_v45, %v9020_v49  ;;  %v9270_v54 = vsel %vm13888_vm1, %v13805_v55, 256  ;;  %v3214_v28 = vsel %vm3213_vm15, %v3212_v6, %v2879_v32  ;;  %13889 = vst [vmem:[#allocation110_spill] sm:$0xff] %v9272_v40  ;;  %vm13890_vm10 = vcmp.eq.f32.partialorder %v13870_v21, %v8874_v22  ;;  %v9289_v32 = vpop.f32.mrb[100].mxu1  ;;  %v9304_v6 = vpop.f32.mrb[101].mxu0  ;;  %v13902_v40 = vld [vmem:[#allocation135_spill] sm:$0xff] }
 0x1f7   : > { %v3096_v62 = vsel %vm3095_vm4, %v3094_v45, %v9020_v49  ;;  %v9279_v43 = vsel %vm13890_vm10, %v13807_v44, 256  ;;  %v9285_v0 = vsel %vm2711_vm3, %v13812_v60, 256  ;;  %vm3215_vm2 = vcmp.lt.s32.totalorder %v3214_v28, %v2887_v31  ;;  %13892 = vst [vmem:[#allocation114_spill] sm:$0xff] %v9289_v32  ;;  %13893 = vst [vmem:[#allocation117_spill] sm:$0xff] %v9304_v6  ;;  %v9319_v53 = vpop.f32.mrb[101].mxu1  ;;  %v9336_v6 = vpop.f32.mrb[102].mxu0 }
 0x1f8   : > { %vm2558_vm13 = vcmp.eq.f32.partialorder %v13891_v47, %v8838_v12  ;;  %vm3097_vm11 = vcmp.lt.s32.totalorder %v3096_v62, %v9026_v27  ;;  %v9296_v49 = vsel %vm2719_vm0, %v13814_v42, 256  ;;  %v9302_v21 = vsel %vm2727_vm6, %v13816_v41, 256  ;;  %13895 = vst [vmem:[#allocation19_spill] sm:$0xff] %v9319_v53  ;;  %13901 = vst [vmem:[#allocation18_spill] sm:$0xff] %v9336_v6  ;;  %v13910_v6 = vld [vmem:[#allocation183_spill] sm:$0xff] }
 0x1f9   : > { %v3216_v18 = vsel %vm3215_vm2, %v3214_v28, %v2887_v31  ;;  %v3098_v45 = vsel %vm3097_vm11, %v3096_v62, %v9026_v27  ;;  %v9311_v32 = vsel %vm2735_vm14, %v13819_v14, 256  ;;  %vm13894_vm3 = vcmp.eq.f32.partialorder %v8390_v57, %v8874_v22  ;;  %v13896_v31 = vld [vmem:[#allocation124_spill] sm:$0xff]  ;;  %v13900_v28 = vld [vmem:[#allocation30_spill] sm:$0xff] }
 0x1fa   : > { %v9317_v63 = vsel %vm13894_vm3, %v13821_v36, 256  ;;  %vm3217_vm0 = vcmp.lt.s32.totalorder %v3216_v18, %v2895_v58  ;;  %vm3099_vm6 = vcmp.lt.s32.totalorder %v3098_v45, %v9034_v16  ;;  %vm13897_vm7 = vcmp.eq.f32.partialorder %v13896_v31, %v8874_v22 }
 0x1fb   : > { %v9326_v27 = vsel %vm13897_vm7, %v13824_v20, 256  ;;  %vm13899_vm14 = vcmp.eq.f32.partialorder %v13898_v17, %v8874_v22  ;;  %v3218_v57 = vsel %vm3217_vm0, %v3216_v18, %v2895_v58  ;;  %vm2566_vm12 = vcmp.eq.f32.partialorder %v13900_v28, %v8838_v12  ;;  %v9351_v58 = vpop.f32.mrb[102].mxu1  ;;  %v9353_v18 = vpop.f32.mrb[103].mxu0  ;;  %v13952_v28 = vld [vmem:[#allocation120_spill] sm:$0xff] }
 0x1fc   : > { %v9332_v62 = vsel %vm13899_vm14, %v8702_v3, 256  ;;  %v3100_v53 = vsel %vm3099_vm6, %v3098_v45, %v9034_v16  ;;  %vm13903_vm9 = vcmp.eq.f32.partialorder %v13902_v40, %v8874_v22  ;;  %vm13906_vm15 = vcmp.eq.f32.partialorder %v13905_v30, %v8874_v22  ;;  %13908 = vst [vmem:[#allocation129_spill] sm:$0xff] %v9351_v58  ;;  %13909 = vst [vmem:[#allocation30_spill] sm:$0xff] %v9353_v18  ;;  %v13911_v16 = vld [vmem:[#allocation145_spill] sm:$0xff]  ;;  %v13914_v45 = vld [vmem:[#allocation151_spill] sm:$0xff]  ;;  %v9368_v56 = vpop.f32.mrb[103].mxu1 }
 0x1fd   : > { %v9343_v31 = vsel %vm13903_vm9, %v8707_v5, 256  ;;  %v9349_v17 = vsel %vm13906_vm15, %v8752_v9, 256  ;;  %vm3219_vm4 = vcmp.lt.s32.totalorder %v3218_v57, %v2903_v19  ;;  %vm3101_vm1 = vcmp.lt.s32.totalorder %v3100_v53, %v13910_v6  ;;  %13917 = vst [vmem:[#allocation183_spill] sm:$0xff] %v9368_v56 }
 0x1fe   : > { %13904 = vst [vmem:[#allocation23_spill] sm:$0xff] %v9343_v31  ;;  %13907 = vst [vmem:[#allocation124_spill] sm:$0xff] %v9349_v17  ;;  %vm13912_vm10 = vcmp.eq.f32.partialorder %v13911_v16, %v8874_v22  ;;  %vm13915_vm2 = vcmp.eq.f32.partialorder %v13914_v45, %v8874_v22  ;;  %v3220_v24 = vsel %vm3219_vm4, %v3218_v57, %v2903_v19  ;;  %v13919_v17 = vld [vmem:[#allocation35_spill] sm:$0xff]  ;;  %v9374_v16 = vpop.f32.mrb[104].mxu0  ;;  %v13921_v22 = vld [vmem:[#allocation41_spill] sm:$0xff] }
 0x1ff   : > { %v9360_v40 = vsel %vm13912_vm10, %v8755_v13, 256  ;;  %v9366_v30 = vsel %vm13915_vm2, %v8770_v23, 256  ;;  %v3102_v58 = vsel %vm3101_vm1, %v3100_v53, %v13910_v6  ;;  %vm3221_vm11 = vcmp.lt.s32.totalorder %v3220_v24, %v2911_v59  ;;  %13920 = vst [vmem:[#allocation145_spill] sm:$0xff] %v9374_v16  ;;  %v13922_v19 = vld [vmem:[#allocation45_spill] sm:$0xff]  ;;  %v9393_v53 = vpop.f32.mrb[105].mxu0  ;;  %v13932_v16 = vld [vmem:[#allocation76_spill] sm:$0xff] }
 0x200   : > { %13913 = vst [vmem:[#allocation135_spill] sm:$0xff] %v9360_v40  ;;  %13916 = vst [vmem:[#allocation140_spill] sm:$0xff] %v9366_v30  ;;  %vm2574_vm3 = vcmp.eq.f32.partialorder %v13919_v17, %v8838_v12  ;;  %vm3103_vm0 = vcmp.lt.s32.totalorder %v3102_v58, %v9046_v50  ;;  %v3222_v40 = vsel %vm3221_vm11, %v3220_v24, %v2911_v59  ;;  %v2798_v6 = vsel %vm2542_vm8, %v8563_v26, 256  ;;  %v9391_v24 = vpop.f32.mrb[104].mxu1  ;;  %v13926_v45 = vld [vmem:[#allocation61_spill] sm:$0xff] }
 0x201   : > { %vm2582_vm6 = vcmp.eq.f32.partialorder %v13921_v22, %v8838_v12  ;;  %vm2590_vm7 = vcmp.eq.f32.partialorder %v13922_v19, %v8838_v12  ;;  %v3104_v57 = vsel %vm3103_vm0, %v3102_v58, %v9046_v50  ;;  %vm3223_vm14 = vcmp.lt.s32.totalorder %v3222_v40, %v9232_v35  ;;  %13923 = vst [vmem:[#allocation151_spill] sm:$0xff] %v9391_v24  ;;  %v13925_v58 = vld [vmem:[#allocation53_spill] sm:$0xff]  ;;  %v9401_v2 = vpop.f32.mrb[105].mxu1  ;;  %v9409_v24 = vpop.f32.mrb[106].mxu0 }
 0x202   : > { %v2806_v59 = vsel %vm2550_vm5, %v8603_v25, 256  ;;  %13924 = vst [vmem:[#allocation35_spill] sm:$0xff] %v9393_v53  ;;  %vm3105_vm9 = vcmp.lt.s32.totalorder %v3104_v57, %v9054_v33  ;;  %v3224_v50 = vsel %vm3223_vm14, %v3222_v40, %v9232_v35  ;;  %vm2598_vm15 = vcmp.eq.f32.partialorder %v13925_v58, %v8838_v12  ;;  %13927 = vst [vmem:[#allocation41_spill] sm:$0xff] %v9401_v2  ;;  %v13929_v53 = vld [vmem:[#allocation70_spill] sm:$0xff]  ;;  %v13931_v35 = vld [vmem:[#allocation185_spill] sm:$0xff]  ;;  %v9421_v56 = vpop.f32.mrb[107].mxu0 }
 0x203   : > { %vm2606_vm4 = vcmp.eq.f32.partialorder %v13926_v45, %v8838_v12  ;;  %v3106_v38 = vsel %vm3105_vm9, %v3104_v57, %v9054_v33  ;;  %vm3225_vm8 = vcmp.lt.s32.totalorder %v3224_v50, %v9247_v39  ;;  %vm2614_vm5 = vcmp.eq.f32.partialorder %v13928_v10, %v8838_v12  ;;  %13930 = vst [vmem:[#allocation45_spill] sm:$0xff] %v9409_v24  ;;  %v13933_v2 = vld [vmem:[#allocation81_spill] sm:$0xff]  ;;  %v13934_v33 = vld [vmem:[#allocation162_spill] sm:$0xff]  ;;  %v13938_v25 = vld [vmem:[#allocation156_spill] sm:$0xff]  ;;  %v9433_v47 = vpop.f32.mrb[106].mxu1 }
 0x204   : > { %vm2622_vm1 = vcmp.eq.f32.partialorder %v13929_v53, %v8838_v12  ;;  %vm3107_vm10 = vcmp.lt.s32.totalorder %v3106_v38, %v13931_v35  ;;  %v3226_v40 = vsel %vm3225_vm8, %v3224_v50, %v9247_v39  ;;  %vm2630_vm2 = vcmp.eq.f32.partialorder %v13932_v16, %v8838_v12  ;;  %13935 = vst [vmem:[#allocation53_spill] sm:$0xff] %v9421_v56  ;;  %v13936_v39 = vld [vmem:[#allocation89_spill] sm:$0xff]  ;;  %v13937_v50 = vld [vmem:[#allocation96_spill] sm:$0xff] }
 0x205   : > { %v2814_v57 = vsel %vm2558_vm13, %v13934_v33, 256  ;;  %vm3124_vm0 = vcmp.lt.s32.totalorder %v2798_v6, %v2806_v59  ;;  %v3108_v24 = vsel %vm3107_vm10, %v3106_v38, %v13931_v35  ;;  %vm3227_vm14 = vcmp.lt.s32.totalorder %v3226_v40, %v9253_v8  ;;  %13940 = vst [vmem:[#allocation64_spill] sm:$0xff] %v9433_v47  ;;  %v13941_v33 = vld [vmem:[#allocation186_spill] sm:$0xff]  ;;  %v13942_v38 = vld [vmem:[#allocation99_spill] sm:$0xff]  ;;  %v9439_v35 = vpop.f32.mrb[107].mxu1  ;;  %v9451_v47 = vpop.f32.mrb[108].mxu0 }
 0x206   : > { %v3125_v18 = vsel %vm3124_vm0, %v2798_v6, %v2806_v59  ;;  %v9431_v26 = vadd.f32 %v13938_v25, %v8838_v12  ;;  %vm3109_vm13 = vcmp.lt.s32.totalorder %v3108_v24, %v13941_v33  ;;  %v3228_v56 = vsel %vm3227_vm14, %v3226_v40, %v9253_v8  ;;  %13943 = vst [vmem:[#allocation70_spill] sm:$0xff] %v9439_v35  ;;  %v13944_v6 = vld [vmem:[#allocation104_spill] sm:$0xff]  ;;  %v13946_v59 = vld [vmem:[#allocation163_spill] sm:$0xff]  ;;  %v9459_v23 = vpop.f32.mrb[109].mxu0 }
 0x207   : > { %vm3126_vm11 = vcmp.lt.s32.totalorder %v3125_v18, %v2814_v57  ;;  %v3110_v30 = vsel %vm3109_vm13, %v3108_v24, %v13941_v33  ;;  %vm3229_vm0 = vcmp.lt.s32.totalorder %v3228_v56, %v9264_v52  ;;  %v13945_v25 = vld [vmem:[#allocation108_spill] sm:$0xff]  ;;  %v2822_v8 = vsel %vm2566_vm12, %v13946_v59, 256  ;;  %13947 = vst [vmem:[#allocation185_spill] sm:$0xff] %v9451_v47  ;;  %v13949_v33 = vld [vmem:[#allocation113_spill] sm:$0xff]  ;;  %13951 = vst [vmem:[#allocation76_spill] sm:$0xff] %v9459_v23 }
 0x208   : > { %13939 = vst [vmem:[#allocation61_spill] sm:$0xff] %v9431_v26  ;;  %vm2678_vm9 = vcmp.eq.f32.partialorder %v13945_v25, %v8838_v12  ;;  %v3127_v40 = vsel %vm3126_vm11, %v3125_v18, %v2814_v57  ;;  %v13948_v26 = vld [vmem:[#allocation25_spill] sm:$0xff]  ;;  %v3230_v24 = vsel %vm3229_vm0, %v3228_v56, %v9264_v52  ;;  %vm2686_vm13 = vcmp.eq.f32.partialorder %v13949_v33, %v8838_v12  ;;  %v13950_v35 = vld [vmem:[#allocation116_spill] sm:$0xff]  ;;  %v9469_v57 = vpop.f32.mrb[108].mxu1  ;;  %v13956_v23 = vld [vmem:[#allocation123_spill] sm:$0xff] }
 0x209   : > { %vm3111_vm14 = vcmp.lt.s32.totalorder %v3110_v30, %v13948_v26  ;;  %vm3128_vm10 = vcmp.lt.s32.totalorder %v3127_v40, %v2822_v8  ;;  %vm3231_vm12 = vcmp.lt.s32.totalorder %v3230_v24, %v9270_v54  ;;  %v13953_v18 = vld [vmem:[#allocation164_spill] sm:$0xff]  ;;  %13954 = vst [vmem:[#allocation81_spill] sm:$0xff] %v9469_v57  ;;  %v9481_v17 = vpop.f32.mrb[109].mxu1  ;;  %v2854_v9 = vsel %vm2598_vm15, %v8626_v46, 256 }
 0x20a   : > { %v3112_v31 = vsel %vm3111_vm14, %v3110_v30, %v13948_v26  ;;  %v2830_v56 = vsel %vm2574_vm3, %v13953_v18, 256  ;;  %v3129_v52 = vsel %vm3128_vm10, %v3127_v40, %v2822_v8  ;;  %v13955_v47 = vld [vmem:[#allocation148_spill] sm:$0xff]  ;;  %v3232_v59 = vsel %vm3231_vm12, %v3230_v24, %v9270_v54  ;;  %v13957_v26 = vld [vmem:[#allocation127_spill] sm:$0xff]  ;;  %v13958_v30 = vld [vmem:[#allocation165_spill] sm:$0xff]  ;;  %13959 = vst [vmem:[#allocation89_spill] sm:$0xff] %v9481_v17 }
 0x20b   : > { %vm3113_vm0 = vcmp.lt.s32.totalorder %v3112_v31, %v13955_v47  ;;  %vm2710_vm14 = vcmp.eq.f32.partialorder %v13956_v23, %v8838_v12  ;;  %vm2718_vm8 = vcmp.eq.f32.partialorder %v13957_v26, %v8838_v12  ;;  %v2838_v13 = vsel %vm2582_vm6, %v13958_v30, 256  ;;  %v13960_v54 = vld [vmem:[#allocation130_spill] sm:$0xff]  ;;  %v13961_v40 = vld [vmem:[#allocation133_spill] sm:$0xff]  ;;  %v9493_v30 = vpop.f32.mrb[110].mxu0  ;;  %v13971_v46 = vld [vmem:[#allocation144_spill] sm:$0xff] }
 0x20c   : > { %vm3130_vm11 = vcmp.lt.s32.totalorder %v3129_v52, %v2830_v56  ;;  %v3114_v8 = vsel %vm3113_vm0, %v3112_v31, %v13955_v47  ;;  %vm3233_vm3 = vcmp.lt.s32.totalorder %v3232_v59, %v9279_v43  ;;  %vm2726_vm10 = vcmp.eq.f32.partialorder %v13960_v54, %v8838_v12  ;;  %v13962_v24 = vld [vmem:[#allocation166_spill] sm:$0xff]  ;;  %13963 = vst [vmem:[#allocation96_spill] sm:$0xff] %v9493_v30  ;;  %v13964_v31 = vld [vmem:[#allocation136_spill] sm:$0xff]  ;;  %v13965_v47 = vld [vmem:[#allocation139_spill] sm:$0xff]  ;;  %v9504_v19 = vpop.f32.mrb[111].mxu0 }
 0x20d   : > { %v2846_v57 = vsel %vm2590_vm7, %v13962_v24, 256  ;;  %v3131_v22 = vsel %vm3130_vm11, %v3129_v52, %v2830_v56  ;;  %v3115_v18 = vrot.slane %v3114_v8, 4  ;;  %v3234_v17 = vsel %vm3233_vm3, %v3232_v59, %v9279_v43  ;;  %13966 = vst [vmem:[#allocation156_spill] sm:$0xff] %v9504_v19  ;;  %v13967_v56 = vld [vmem:[#allocation141_spill] sm:$0xff]  ;;  %v9517_v52 = vpop.f32.mrb[110].mxu1 }
 0x20e   : > { %vm2742_vm6 = vcmp.eq.f32.partialorder %v13964_v31, %v8838_v12  ;;  %vm2750_vm0 = vcmp.eq.f32.partialorder %v13965_v47, %v8838_v12  ;;  %vm3132_vm12 = vcmp.lt.s32.totalorder %v3131_v22, %v2838_v13  ;;  %vm3235_vm7 = vcmp.lt.s32.totalorder %v3234_v17, %v9285_v0  ;;  %13968 = vst [vmem:[#allocation186_spill] sm:$0xff] %v9517_v52  ;;  %v9530_v10 = vpop.f32.mrb[111].mxu1 }
 0x20f   : > { %v2862_v43 = vsel %vm2606_vm4, %v13789_v29, 256  ;;  %v2870_v59 = vsel %vm2614_vm5, %v13790_v37, 256  ;;  %v3133_v58 = vsel %vm3132_vm12, %v3131_v22, %v2838_v13  ;;  %vm9519_vm15 = vcmp.lt.s32.totalorder %v3114_v8, %v3115_v18  ;;  %13972 = vst [vmem:[#allocation99_spill] sm:$0xff] %v9530_v10  ;;  %v13973_v13 = vld [vmem:[#allocation147_spill] sm:$0xff]  ;;  %v13974_v22 = vld [vmem:[#allocation150_spill] sm:$0xff]  ;;  %v9545_v10 = vpop.f32.mrb[112].mxu0 }
 0x210   : > { %v3236_v30 = vsel %vm3235_vm7, %v3234_v17, %v9285_v0  ;;  %vm2766_vm3 = vcmp.eq.f32.partialorder %v13971_v46, %v8838_v12  ;;  %v2878_v45 = vsel %vm2622_vm1, %v13791_v4, 256  ;;  %vm3134_vm4 = vcmp.lt.s32.totalorder %v3133_v58, %v2846_v57  ;;  %13976 = vst [vmem:[#allocation104_spill] sm:$0xff] %v9545_v10  ;;  %v13977_v4 = vld [vmem:[#allocation153_spill] sm:$0xff] }
 0x211   : > { %vm3237_vm5 = vcmp.lt.s32.totalorder %v3236_v30, %v9296_v49  ;;  %vm2774_vm12 = vcmp.eq.f32.partialorder %v13973_v13, %v8838_v12  ;;  %v2886_v0 = vsel %vm2630_vm2, %v13793_v1, 256  ;;  %vm13975_vm1 = vcmp.eq.f32.partialorder %v13933_v2, %v8838_v12 }
 0x212   : > { %v2894_v53 = vsel %vm13975_vm1, %v13794_v15, 256  ;;  %v3135_v17 = vsel %vm3134_vm4, %v3133_v58, %v2846_v57  ;;  %v3238_v52 = vsel %vm3237_vm5, %v3236_v30, %v9296_v49  ;;  %vm2790_vm7 = vcmp.eq.f32.partialorder %v13977_v4, %v8838_v12  ;;  %v9571_v57 = vpop.f32.mrb[112].mxu1  ;;  %v9573_v30 = vpop.f32.mrb[113].mxu0  ;;  %v14011_v4 = vld [vmem:[#allocation26_spill] sm:$0xff] }
 0x213   : > { %vm13978_vm11 = vcmp.eq.f32.partialorder %v13936_v39, %v8838_v12  ;;  %vm13979_vm2 = vcmp.eq.f32.partialorder %v13937_v50, %v8838_v12  ;;  %vm3136_vm4 = vcmp.lt.s32.totalorder %v3135_v17, %v2854_v9  ;;  %v3117_v2 = vsel %vm9519_vm15, %v3114_v8, %v3115_v18  ;;  %13981 = vst [vmem:[#allocation108_spill] sm:$0xff] %v9571_v57  ;;  %v9603_v8 = vpop.f32.mrb[114].mxu0  ;;  %v14026_v57 = vld [vmem:[#allocation67_spill] sm:$0xff] }
 0x214   : > { %v9554_v37 = vsel %vm13978_vm11, %v13795_v51, 256  ;;  %v9560_v16 = vsel %vm13979_vm2, %v13797_v34, 256  ;;  %vm3239_vm5 = vcmp.lt.s32.totalorder %v3238_v52, %v9302_v21  ;;  %vm13980_vm1 = vcmp.eq.f32.partialorder %v13942_v38, %v8838_v12  ;;  %13982 = vst [vmem:[#allocation25_spill] sm:$0xff] %v9573_v30  ;;  %13986 = vst [vmem:[#allocation116_spill] sm:$0xff] %v9603_v8  ;;  %v9640_v26 = vpop.f32.mrb[115].mxu0 }
 0x215   : > { %v9569_v49 = vsel %vm13980_vm1, %v13798_v48, 256  ;;  %v3137_v39 = vsel %vm3136_vm4, %v3135_v17, %v2854_v9  ;;  %v3240_v50 = vsel %vm3239_vm5, %v3238_v52, %v9302_v21  ;;  %vm13983_vm11 = vcmp.eq.f32.partialorder %v13944_v6, %v8838_v12  ;;  %v9588_v9 = vpop.f32.mrb[113].mxu1  ;;  %13990 = vst [vmem:[#allocation148_spill] sm:$0xff] %v9640_v26  ;;  %v9664_v31 = vpop.f32.mrb[116].mxu0 }
 0x216   : > { %v9580_v18 = vsel %vm13983_vm11, %v13799_v11, 256  ;;  %v9586_v38 = vsel %vm2678_vm9, %v13801_v61, 256  ;;  %vm3138_vm15 = vcmp.lt.s32.totalorder %v3137_v39, %v2862_v43  ;;  %13984 = vst [vmem:[#allocation113_spill] sm:$0xff] %v9588_v9  ;;  %vm3241_vm2 = vcmp.lt.s32.totalorder %v3240_v50, %v9311_v32  ;;  %13994 = vst [vmem:[#allocation130_spill] sm:$0xff] %v9664_v31  ;;  %v14010_v31 = vld [vmem:[#allocation124_spill] sm:$0xff] }
 0x217   : > { %v9595_v21 = vsel %vm2686_vm13, %v13803_v7, 256  ;;  %vm13985_vm4 = vcmp.eq.f32.partialorder %v13950_v35, %v8838_v12  ;;  %v3139_v25 = vsel %vm3138_vm15, %v3137_v39, %v2862_v43  ;;  %v3118_v19 = vrot.slane %v3117_v2, 2  ;;  %v9625_v43 = vpop.f32.mrb[114].mxu1 }
 0x218   : > { %v9601_v6 = vsel %vm13985_vm4, %v13805_v55, 256  ;;  %v3242_v58 = vsel %vm3241_vm2, %v3240_v50, %v9311_v32  ;;  %vm13987_vm9 = vcmp.eq.f32.partialorder %v13952_v28, %v8838_v12  ;;  %vm3140_vm13 = vcmp.lt.s32.totalorder %v3139_v25, %v2870_v59  ;;  %13988 = vst [vmem:[#allocation120_spill] sm:$0xff] %v9625_v43  ;;  %v14024_v43 = vld [vmem:[#allocation57_spill] sm:$0xff] }
 0x219   : > { %v9610_v52 = vsel %vm13987_vm9, %v13807_v44, 256  ;;  %vm3243_vm5 = vcmp.lt.s32.totalorder %v3242_v58, %v9317_v63  ;;  %v9617_v35 = vsel %vm2710_vm14, %v13812_v60, 256  ;;  %v9623_v32 = vsel %vm2718_vm8, %v13814_v42, 256 }
 0x21a   : > { %v3141_v33 = vsel %vm3140_vm13, %v3139_v25, %v2870_v59  ;;  %v3244_v28 = vsel %vm3243_vm5, %v3242_v58, %v9317_v63  ;;  %v9632_v17 = vsel %vm2726_vm10, %v13816_v41, 256  ;;  %vm13989_vm14 = vcmp.eq.f32.partialorder %v13961_v40, %v8838_v12  ;;  %v9655_v59 = vpop.f32.mrb[115].mxu1  ;;  %v13996_v25 = vld [vmem:[#allocation21_spill] sm:$0xff] }
 0x21b   : > { %v9638_v23 = vsel %vm13989_vm14, %v13819_v14, 256  ;;  %vm3142_vm1 = vcmp.lt.s32.totalorder %v3141_v33, %v2878_v45  ;;  %vm3245_vm8 = vcmp.lt.s32.totalorder %v3244_v28, %v9326_v27  ;;  %v9647_v63 = vsel %vm2742_vm6, %v13821_v36, 256  ;;  %13991 = vst [vmem:[#allocation123_spill] sm:$0xff] %v9655_v59  ;;  %v14000_v59 = vld [vmem:[#allocation202_spill] sm:$0xff]  ;;  %v9698_v13 = vpop.f32.mrb[116].mxu1 }
 0x21c   : > { %v9653_v54 = vsel %vm2750_vm0, %v13824_v20, 256  ;;  %v3143_v40 = vsel %vm3142_vm1, %v3141_v33, %v2878_v45  ;;  %vm3119_vm10 = vcmp.lt.s32.totalorder %v3117_v2, %v3118_v19  ;;  %v3246_v39 = vsel %vm3245_vm8, %v3244_v28, %v9326_v27  ;;  %v13998_v33 = vld [vmem:[#allocation201_spill] sm:$0xff]  ;;  %14006 = vst [vmem:[#allocation144_spill] sm:$0xff] %v9698_v13 }
 0x21d   : > { %vm13992_vm11 = vcmp.eq.f32.partialorder %v13967_v56, %v8838_v12  ;;  %vm3144_vm6 = vcmp.lt.s32.totalorder %v3143_v40, %v2886_v0  ;;  %vm3247_vm15 = vcmp.lt.s32.totalorder %v3246_v39, %v9332_v62  ;;  %v9671_v47 = vsel %vm2766_vm3, %v8707_v5, 256 }
 0x21e   : > { %v9662_v50 = vsel %vm13992_vm11, %v8702_v3, 256  ;;  %13995 = vst [vmem:[#allocation133_spill] sm:$0xff] %v9671_v47  ;;  %v3145_v45 = vsel %vm3144_vm6, %v3143_v40, %v2886_v0  ;;  %v13997_v27 = vrot.slane %v13996_v25, 1  ;;  %v3248_v56 = vsel %vm3247_vm15, %v3246_v39, %v9332_v62  ;;  %v14003_v40 = vld [vmem:[#allocation23_spill] sm:$0xff]  ;;  %v14039_v47 = vld [vmem:[#allocation112_spill] sm:$0xff] }
 0x21f   : > { %13993 = vst [vmem:[#allocation127_spill] sm:$0xff] %v9662_v50  ;;  %v9683_v28 = vsel %vm2774_vm12, %v13998_v33, 256  ;;  %vm14001_vm0 = vcmp.eq.f32.partialorder %v13974_v22, %v8838_v12  ;;  %vm3146_vm3 = vcmp.lt.s32.totalorder %v3145_v45, %v2894_v53  ;;  %v3120_v0 = vsel %vm3119_vm10, %v3117_v2, %v3118_v19  ;;  %v14008_v22 = vld [vmem:[#allocation36_spill] sm:$0xff]  ;;  %v14009_v2 = vld [vmem:[#allocation61_spill] sm:$0xff]  ;;  %v14016_v19 = vld [vmem:[#allocation135_spill] sm:$0xff] }
 0x220   : > { %v9676_v58 = vmin.f32 %v13996_v25, %v13997_v27  ;;  %13999 = vst [vmem:[#allocation136_spill] sm:$0xff] %v9683_v28  ;;  %v9689_v46 = vsel %vm14001_vm0, %v14000_v59, 256  ;;  %vm3249_vm2 = vcmp.lt.s32.totalorder %v3248_v56, %v14003_v40  ;;  %v14004_v25 = vld [vmem:[#allocation206_spill] sm:$0xff]  ;;  %v3147_v39 = vsel %vm3146_vm3, %v3145_v45, %v2894_v53  ;;  %v9700_v27 = vpop.f32.mrb[117].mxu0  ;;  %v14012_v12 = vld [vmem:[#allocation20_spill] sm:$0xff]  ;;  %v9712_v53 = vpop.f32.mrb[117].mxu1 }
 0x221   : > { %14002 = vst [vmem:[#allocation139_spill] sm:$0xff] %v9689_v46  ;;  %v9696_v62 = vsel %vm2790_vm7, %v14004_v25, 256  ;;  %14007 = vst [vmem:[#allocation147_spill] sm:$0xff] %v9700_v27  ;;  %v3250_v26 = vsel %vm3249_vm2, %v3248_v56, %v14003_v40  ;;  %vm3148_vm12 = vcmp.lt.s32.totalorder %v3147_v39, %v9554_v37  ;;  %v3121_v45 = vrot.slane %v3120_v0, 1  ;;  %v14014_v40 = vld [vmem:[#allocation27_spill] sm:$0xff]  ;;  %v9718_v9 = vpop.f32.mrb[118].mxu0 }
 0x222   : > { %14005 = vst [vmem:[#allocation141_spill] sm:$0xff] %v9696_v62  ;;  %vm3251_vm4 = vcmp.lt.s32.totalorder %v3250_v26, %v14010_v31  ;;  %v3149_v30 = vsel %vm3148_vm12, %v3147_v39, %v9554_v37  ;;  %vm2544_vm7 = vcmp.eq.f32.partialorder %v14011_v4, %v9676_v58  ;;  %vm2552_vm9 = vcmp.eq.f32.partialorder %v14012_v12, %v9676_v58  ;;  %v14017_v39 = vld [vmem:[#allocation32_spill] sm:$0xff]  ;;  %v14018_v27 = vld [vmem:[#allocation38_spill] sm:$0xff]  ;;  %v9734_v13 = vpop.f32.mrb[119].mxu0  ;;  %v14035_v62 = vld [vmem:[#allocation101_spill] sm:$0xff] }
 0x223   : > { %14013 = vst [vmem:[#allocation150_spill] sm:$0xff] %v9712_v53  ;;  %v3252_v56 = vsel %vm3251_vm4, %v3250_v26, %v14010_v31  ;;  %vm3150_vm13 = vcmp.lt.s32.totalorder %v3149_v30, %v9560_v16  ;;  %vm2560_vm5 = vcmp.eq.f32.partialorder %v14014_v40, %v9676_v58  ;;  %14015 = vst [vmem:[#allocation153_spill] sm:$0xff] %v9718_v9  ;;  %v14019_v26 = vld [vmem:[#allocation43_spill] sm:$0xff]  ;;  %v14020_v31 = vld [vmem:[#allocation50_spill] sm:$0xff]  ;;  %v9732_v9 = vpop.f32.mrb[118].mxu1  ;;  %v9753_v10 = vpop.f32.mrb[120].mxu0 }
 0x224   : > { %vm3253_vm14 = vcmp.lt.s32.totalorder %v3252_v56, %v14016_v19  ;;  %v3151_v37 = vsel %vm3150_vm13, %v3149_v30, %v9560_v16  ;;  %vm2568_vm1 = vcmp.eq.f32.partialorder %v14017_v39, %v9676_v58  ;;  %vm2576_vm8 = vcmp.eq.f32.partialorder %v14018_v27, %v9676_v58  ;;  %14021 = vst [vmem:[#allocation21_spill] sm:$0xff] %v9732_v9  ;;  %v14023_v16 = vld [vmem:[#allocation140_spill] sm:$0xff]  ;;  %v9746_v9 = vpop.f32.mrb[119].mxu1  ;;  %v9771_v28 = vpop.f32.mrb[121].mxu0  ;;  %v14045_v25 = vld [vmem:[#allocation161_spill] sm:$0xff]  ;;  %v14047_v33 = vld [vmem:[#allocation163_spill] sm:$0xff] }
 0x225   : > { %v3254_v53 = vsel %vm3253_vm14, %v3252_v56, %v14016_v19  ;;  %vm3152_vm10 = vcmp.lt.s32.totalorder %v3151_v37, %v9569_v49  ;;  %vm2584_vm11 = vcmp.eq.f32.partialorder %v14019_v26, %v9676_v58  ;;  %vm2592_vm6 = vcmp.eq.f32.partialorder %v14020_v31, %v9676_v58  ;;  %14022 = vst [vmem:[#allocation23_spill] sm:$0xff] %v9734_v13  ;;  %v14025_v19 = vld [vmem:[#allocation62_spill] sm:$0xff]  ;;  %v9769_v46 = vpop.f32.mrb[120].mxu1  ;;  %v9804_v5 = vpop.f32.mrb[122].mxu0  ;;  %v14050_v12 = vld [vmem:[#allocation128_spill] sm:$0xff]  ;;  %v14053_v39 = vld [vmem:[#allocation165_spill] sm:$0xff] }
 0x226   : > { %vm3255_vm15 = vcmp.lt.s32.totalorder %v3254_v53, %v14023_v16  ;;  %v3153_v30 = vsel %vm3152_vm10, %v3151_v37, %v9569_v49  ;;  %vm2600_vm0 = vcmp.eq.f32.partialorder %v14024_v43, %v9676_v58  ;;  %vm3122_vm2 = vcmp.lt.s32.totalorder %v3120_v0, %v3121_v45  ;;  %14027 = vst [vmem:[#allocation36_spill] sm:$0xff] %v9746_v9  ;;  %v14028_v49 = vld [vmem:[#allocation75_spill] sm:$0xff]  ;;  %v14029_v37 = vld [vmem:[#allocation80_spill] sm:$0xff]  ;;  %v14033_v9 = vld [vmem:[#allocation98_spill] sm:$0xff] }
 0x227   : > { %v3256_v56 = vsel %vm3255_vm15, %v3254_v53, %v14023_v16  ;;  %vm3154_vm12 = vcmp.lt.s32.totalorder %v3153_v30, %v9580_v18  ;;  %vm2624_vm13 = vcmp.eq.f32.partialorder %v14028_v49, %v9676_v58  ;;  %14030 = vst [vmem:[#allocation61_spill] sm:$0xff] %v9753_v10  ;;  %v14031_v53 = vld [vmem:[#allocation84_spill] sm:$0xff]  ;;  %v14032_v16 = vld [vmem:[#allocation94_spill] sm:$0xff]  ;;  %v14036_v10 = vld [vmem:[#allocation105_spill] sm:$0xff]  ;;  %v2824_v4 = vsel %vm2568_vm1, %v14047_v33, 256 }
 0x228   : > { %v3257_v13 = vrot.slane %v3256_v56, 4  ;;  %v3155_v8 = vsel %vm3154_vm12, %v3153_v30, %v9580_v18  ;;  %v9762_v18 = vsel %vm3122_vm2, %v3120_v0, %v3121_v45  ;;  %14037 = vst [vmem:[#allocation26_spill] sm:$0xff] %v9769_v46  ;;  %14038 = vst [vmem:[#allocation20_spill] sm:$0xff] %v9771_v28  ;;  %v14040_v0 = vld [vmem:[#allocation115_spill] sm:$0xff]  ;;  %v14042_v45 = vld [vmem:[#allocation121_spill] sm:$0xff]  ;;  %v9830_v27 = vsel %vm2592_vm6, %v13962_v24, 256 }
 0x229   : > { %vm3156_vm10 = vcmp.lt.s32.totalorder %v3155_v8, %v9586_v38  ;;  %14034 = vst [vmem:[#allocation124_spill] sm:$0xff] %v9762_v18  ;;  %vm2688_vm2 = vcmp.eq.f32.partialorder %v14040_v0, %v9676_v58  ;;  %vm2704_vm14 = vcmp.eq.f32.partialorder %v14042_v45, %v9676_v58  ;;  %v14043_v46 = vld [vmem:[#allocation154_spill] sm:$0xff]  ;;  %v14044_v18 = vld [vmem:[#allocation125_spill] sm:$0xff]  ;;  %14049 = vst [vmem:[#allocation135_spill] sm:$0xff] %v9804_v5 }
 0x22a   : > { %v3157_v30 = vsel %vm3156_vm10, %v3155_v8, %v9586_v38  ;;  %vm3258_vm15 = vcmp.lt.s32.totalorder %v3256_v56, %v3257_v13  ;;  %v14041_v8 = vld [vmem:[#allocation119_spill] sm:$0xff]  ;;  %v2800_v28 = vsel %vm2544_vm7, %v14043_v46, 256  ;;  %vm2712_vm3 = vcmp.eq.f32.partialorder %v14044_v18, %v9676_v58  ;;  %v9802_v46 = vpop.f32.mrb[121].mxu1  ;;  %v14052_v40 = vld [vmem:[#allocation164_spill] sm:$0xff]  ;;  %v14060_v24 = vld [vmem:[#allocation169_spill] sm:$0xff] }
 0x22b   : > { %vm3158_vm4 = vcmp.lt.s32.totalorder %v3157_v30, %v9595_v21  ;;  %vm2696_vm10 = vcmp.eq.f32.partialorder %v14041_v8, %v9676_v58  ;;  %14048 = vst [vmem:[#allocation27_spill] sm:$0xff] %v9802_v46  ;;  %v3259_v50 = vsel %vm3258_vm15, %v3256_v56, %v3257_v13  ;;  %vm2720_vm7 = vcmp.eq.f32.partialorder %v14050_v12, %v9676_v58  ;;  %v14055_v13 = vld [vmem:[#allocation137_spill] sm:$0xff]  ;;  %v14056_v56 = vld [vmem:[#allocation167_spill] sm:$0xff]  ;;  %v9844_v5 = vpop.f32.mrb[122].mxu1 }
 0x22c   : > { %v3159_v38 = vsel %vm3158_vm4, %v3157_v30, %v9595_v21  ;;  %v2808_v21 = vsel %vm2552_vm9, %v14045_v25, 256  ;;  %v14046_v30 = vld [vmem:[#allocation162_spill] sm:$0xff]  ;;  %v14051_v25 = vld [vmem:[#allocation131_spill] sm:$0xff]  ;;  %v9819_v46 = vsel %vm2584_vm11, %v14053_v39, 256  ;;  %vm2744_vm4 = vcmp.eq.f32.partialorder %v14055_v13, %v9676_v58  ;;  %14058 = vst [vmem:[#allocation32_spill] sm:$0xff] %v9844_v5 }
 0x22d   : > { %vm3160_vm12 = vcmp.lt.s32.totalorder %v3159_v38, %v9601_v6  ;;  %v2816_v59 = vsel %vm2560_vm5, %v14046_v30, 256  ;;  %vm2728_vm9 = vcmp.eq.f32.partialorder %v14051_v25, %v9676_v58  ;;  %v2832_v30 = vsel %vm2576_vm8, %v14052_v40, 256  ;;  %v14059_v31 = vld [vmem:[#allocation143_spill] sm:$0xff] }
 0x22e   : > { %v3161_v3 = vsel %vm3160_vm12, %v3159_v38, %v9601_v6  ;;  %v14054_v6 = vld [vmem:[#allocation134_spill] sm:$0xff]  ;;  %v9836_v26 = vsel %vm2600_vm0, %v14056_v56, 256  ;;  %vm14057_vm8 = vcmp.eq.f32.partialorder %v14025_v19, %v9676_v58  ;;  %vm2752_vm11 = vcmp.eq.f32.partialorder %v14059_v31, %v9676_v58 }
 0x22f   : > { %vm3162_vm5 = vcmp.lt.s32.totalorder %v3161_v3, %v9610_v52  ;;  %vm2736_vm1 = vcmp.eq.f32.partialorder %v14054_v6, %v9676_v58  ;;  %v9842_v38 = vsel %vm14057_vm8, %v13789_v29, 256  ;;  %vm14061_vm6 = vcmp.eq.f32.partialorder %v14026_v57, %v9676_v58  ;;  %v14062_v56 = vld [vmem:[#allocation170_spill] sm:$0xff]  ;;  %v14080_v29 = vld [vmem:[#allocation28_spill] sm:$0xff] }
 0x230   : > { %v3163_v39 = vsel %vm3162_vm5, %v3161_v3, %v9610_v52  ;;  %v9853_v43 = vsel %vm14061_vm6, %v14060_v24, 256  ;;  %v9859_v19 = vsel %vm2624_vm13, %v14062_v56, 256  ;;  %vm14063_vm0 = vcmp.eq.f32.partialorder %v14029_v37, %v9676_v58  ;;  %v9867_v52 = vpop.f32.mrb[123].mxu0  ;;  %v14065_v57 = vld [vmem:[#allocation146_spill] sm:$0xff]  ;;  %v14069_v56 = vld [vmem:[#allocation152_spill] sm:$0xff] }
 0x231   : > { %v9865_v3 = vsel %vm14063_vm0, %v13793_v1, 256  ;;  %14064 = vst [vmem:[#allocation38_spill] sm:$0xff] %v9867_v52  ;;  %v3260_v5 = vrot.slane %v3259_v50, 2  ;;  %vm3164_vm15 = vcmp.lt.s32.totalorder %v3163_v39, %v9617_v35  ;;  %vm2760_vm12 = vcmp.eq.f32.partialorder %v14065_v57, %v9676_v58  ;;  %v14068_v1 = vld [vmem:[#allocation149_spill] sm:$0xff]  ;;  %v14085_v6 = vld [vmem:[#allocation192_spill] sm:$0xff] }
 0x232   : > { %vm14066_vm5 = vcmp.eq.f32.partialorder %v14031_v53, %v9676_v58  ;;  %vm14067_vm13 = vcmp.eq.f32.partialorder %v14032_v16, %v9676_v58  ;;  %v3165_v52 = vsel %vm3164_vm15, %v3163_v39, %v9617_v35  ;;  %vm14070_vm0 = vcmp.eq.f32.partialorder %v14033_v9, %v9676_v58  ;;  %v9901_v35 = vpop.f32.mrb[123].mxu1  ;;  %v9903_v39 = vpop.f32.mrb[124].mxu0  ;;  %v14075_v9 = vld [vmem:[#allocation158_spill] sm:$0xff] }
 0x233   : > { %v9876_v49 = vsel %vm14066_vm5, %v13794_v15, 256  ;;  %v9882_v37 = vsel %vm14067_vm13, %v13795_v51, 256  ;;  %v9893_v53 = vsel %vm14070_vm0, %v13797_v34, 256  ;;  %vm14071_vm5 = vcmp.eq.f32.partialorder %v14035_v62, %v9676_v58  ;;  %14072 = vst [vmem:[#allocation43_spill] sm:$0xff] %v9901_v35  ;;  %14073 = vst [vmem:[#allocation50_spill] sm:$0xff] %v9903_v39  ;;  %v14074_v51 = vld [vmem:[#allocation155_spill] sm:$0xff] }
 0x234   : > { %v9899_v16 = vsel %vm14071_vm5, %v13798_v48, 256  ;;  %vm3266_vm13 = vcmp.lt.s32.totalorder %v2800_v28, %v2808_v21  ;;  %vm3166_vm15 = vcmp.lt.s32.totalorder %v3165_v52, %v9623_v32  ;;  %vm2792_vm0 = vcmp.eq.f32.partialorder %v14075_v9, %v9676_v58  ;;  %v14077_v34 = vld [vmem:[#allocation157_spill] sm:$0xff]  ;;  %v14102_v9 = vld [vmem:[#allocation24_spill] sm:$0xff] }
 0x235   : > { %vm14076_vm8 = vcmp.eq.f32.partialorder %v14036_v10, %v9676_v58  ;;  %v3267_v48 = vsel %vm3266_vm13, %v2800_v28, %v2808_v21  ;;  %v5190_v35 = vadd.f32 %v14077_v34, %v9676_v58  ;;  %v3167_v39 = vsel %vm3166_vm15, %v3165_v52, %v9623_v32  ;;  %v9932_v21 = vpop.f32.mrb[124].mxu1  ;;  %v9934_v32 = vpop.f32.mrb[125].mxu0 }
 0x236   : > { %v9914_v62 = vsel %vm14076_vm8, %v13799_v11, 256  ;;  %vm14078_vm5 = vcmp.eq.f32.partialorder %v14039_v47, %v9676_v58  ;;  %vm3268_vm6 = vcmp.lt.s32.totalorder %v3267_v48, %v2816_v59  ;;  %v14079_v24 = vmax.f32 %v14009_v2, 0.0  ;;  %v9960_v0 = vpop.f32.mrb[125].mxu1  ;;  %v9971_v45 = vpop.f32.mrb[126].mxu0 }
 0x237   : > { %v9923_v15 = vsel %vm14078_vm5, %v13801_v61, 256  ;;  %v14081_v40 = vmax.f32 %v14080_v29, 0.0  ;;  %vm3261_vm8 = vcmp.lt.s32.totalorder %v3259_v50, %v3260_v5  ;;  %vm3168_vm13 = vcmp.lt.s32.totalorder %v3167_v39, %v9632_v17 }
 0x238   : > { %v3269_v28 = vsel %vm3268_vm6, %v3267_v48, %v2816_v59  ;;  %v5198_v34 = vmax.f32 %v5190_v35, 0.0  ;;  %v3169_v47 = vsel %vm3168_vm13, %v3167_v39, %v9632_v17  ;;  %v9941_v2 = vsel %vm2688_vm2, %v13803_v7, 256  ;;  %v14086_v35 = vld [vmem:[#allocation172_spill] sm:$0xff] }
 0x239   : > { %v9929_v10 = vcombine.low %v14081_v40, %v14079_v24  ;;  %v9947_v29 = vsel %vm2696_vm10, %v13805_v55, 256  ;;  %vm3270_vm6 = vcmp.lt.s32.totalorder %v3269_v28, %v2824_v4  ;;  %vm3170_vm15 = vcmp.lt.s32.totalorder %v3169_v47, %v9638_v23 }
 0x23a   : > { %v9954_v48 = vsel %vm2704_vm14, %v13807_v44, 256  ;;  %v3271_v24 = vsel %vm3270_vm6, %v3269_v28, %v2824_v4  ;;  %v14083_v17 = vmax.f32 %v14008_v22, 0.0  ;;  %v9962_v40 = vsel %vm3261_vm8, %v3259_v50, %v3260_v5  ;;  %v14087_v28 = vld [vmem:[#allocation127_spill] sm:$0xff] }
 0x23b   : > { %14082 = vst [vmem:[#allocation140_spill] sm:$0xff] %v9929_v10  ;;  %v3171_v8 = vsel %vm3170_vm15, %v3169_v47, %v9638_v23  ;;  %v9969_v52 = vsel %vm2712_vm3, %v13812_v60, 256  ;;  %vm3272_vm2 = vcmp.lt.s32.totalorder %v3271_v24, %v2832_v30  ;;  %v9978_v22 = vsel %vm2720_vm7, %v13814_v42, 256  ;;  %v14106_v10 = vld [vmem:[#allocation184_spill] sm:$0xff] }
 0x23c   : > { %v9958_v59 = vcombine.low %v14083_v17, %v5198_v34  ;;  %vm3172_vm14 = vcmp.lt.s32.totalorder %v3171_v8, %v9647_v63  ;;  %v9984_v5 = vsel %vm2728_vm9, %v13816_v41, 256  ;;  %v3273_v23 = vsel %vm3272_vm2, %v3271_v24, %v2832_v30  ;;  %v14088_v34 = vld [vmem:[#allocation194_spill] sm:$0xff] }
 0x23d   : > { %v3173_v50 = vsel %vm3172_vm14, %v3171_v8, %v9647_v63  ;;  %v9991_v18 = vsel %vm2736_vm1, %v13819_v14, 256  ;;  %v9997_v4 = vsel %vm2744_vm4, %v13821_v36, 256  ;;  %vm3274_vm3 = vcmp.lt.s32.totalorder %v3273_v23, %v9819_v46  ;;  %v14092_v24 = vld [vmem:[#allocation202_spill] sm:$0xff]  ;;  %v14115_v36 = vld [vmem:[#allocation139_spill] sm:$0xff] }
 0x23e   : > { %14084 = vst [vmem:[#allocation57_spill] sm:$0xff] %v9958_v59  ;;  %vm3174_vm10 = vcmp.lt.s32.totalorder %v3173_v50, %v9653_v54  ;;  %v10006_v63 = vsel %vm2752_vm11, %v13824_v20, 256  ;;  %v3275_v30 = vsel %vm3274_vm3, %v3273_v23, %v9819_v46  ;;  %v10014_v13 = vsel %vm2760_vm12, %v14085_v6, 256  ;;  %v14090_v46 = vld [vmem:[#allocation201_spill] sm:$0xff]  ;;  %v14094_v8 = vld [vmem:[#allocation206_spill] sm:$0xff]  ;;  %v14096_v23 = vld [vmem:[#allocation220_spill] sm:$0xff] }
 0x23f   : > { %v3175_v12 = vsel %vm3174_vm10, %v3173_v50, %v9653_v54  ;;  %vm3276_vm7 = vcmp.lt.s32.totalorder %v3275_v30, %v9830_v27  ;;  %v1568_v39 = vmul.f32 2.0, %v14086_v35  ;;  %vm14089_vm1 = vcmp.eq.f32.partialorder %v14068_v1, %v9676_v58  ;;  %v14097_v50 = vld [vmem:[#allocation16_spill] sm:$0xff] }
 0x240   : > { %vm3176_vm9 = vcmp.lt.s32.totalorder %v3175_v12, %v14087_v28  ;;  %v10023_v31 = vsel %vm14089_vm1, %v14088_v34, 256  ;;  %vm14091_vm4 = vcmp.eq.f32.partialorder %v14069_v56, %v9676_v58  ;;  %v3277_v57 = vsel %vm3276_vm7, %v3275_v30, %v9830_v27  ;;  %v14095_v56 = vld [vmem:[#allocation133_spill] sm:$0xff]  ;;  %v14104_v59 = vld [vmem:[#allocation136_spill] sm:$0xff]  ;;  %v14113_v34 = vld [vmem:[#allocation207_spill] sm:$0xff] }
 0x241   : > { %v10029_v54 = vsel %vm14091_vm4, %v14090_v46, 256  ;;  %v3177_v47 = vsel %vm3176_vm9, %v3175_v12, %v14087_v28  ;;  %vm14093_vm11 = vcmp.eq.f32.partialorder %v14074_v51, %v9676_v58  ;;  %v10043_v1 = vsel %vm2792_vm0, %v14094_v8, 256  ;;  %v14099_v12 = vld [vmem:[#allocation181_spill] sm:$0xff]  ;;  %v14100_v28 = vld [vmem:[#allocation223_spill] sm:$0xff]  ;;  %v14111_v46 = vld [vmem:[#allocation222_spill] sm:$0xff] }
 0x242   : > { %v10037_v17 = vsel %vm14093_vm11, %v14092_v24, 256  ;;  %vm3278_vm12 = vcmp.lt.s32.totalorder %v3277_v57, %v9836_v26  ;;  %vm3178_vm5 = vcmp.lt.s32.totalorder %v3177_v47, %v14095_v56  ;;  %v10050_v30 = vsub.f32 %v14097_v50, %v14096_v23  ;;  %v14109_v24 = vld [vmem:[#allocation203_spill] sm:$0xff] }
 0x243   : > { %v3279_v27 = vsel %vm3278_vm12, %v3277_v57, %v9836_v26  ;;  %v1570_v51 = vmul.f32 2.0, %v14099_v12  ;;  %v3179_v35 = vsel %vm3178_vm5, %v3177_v47, %v14095_v56  ;;  %v10057_v58 = vsub.f32 %v14097_v50, %v14100_v28  ;;  %v14105_v57 = vld [vmem:[#allocation177_spill] sm:$0xff]  ;;  %v14107_v47 = vld [vmem:[#allocation219_spill] sm:$0xff] }
 0x244   : > { %14098 = vst [vmem:[#allocation62_spill] sm:$0xff] %v10050_v30  ;;  %vm3280_vm8 = vcmp.lt.s32.totalorder %v3279_v27, %v9842_v38  ;;  %v10060_v25 = vsub.f32 %v14102_v9, %v1568_v39  ;;  %vm3180_vm0 = vcmp.lt.s32.totalorder %v3179_v35, %v14104_v59  ;;  %v1569_v23 = vmul.f32 2.0, %v14105_v57  ;;  %v14108_v56 = vld [vmem:[#allocation15_spill] sm:$0xff] }
 0x245   : > { %14101 = vst [vmem:[#allocation67_spill] sm:$0xff] %v10057_v58  ;;  %v3281_v26 = vsel %vm3280_vm8, %v3279_v27, %v9842_v38  ;;  %v1571_v8 = vmul.f32 2.0, %v14106_v10  ;;  %v3181_v12 = vsel %vm3180_vm0, %v3179_v35, %v14104_v59  ;;  %v14110_v50 = vmin.f32 %v14108_v56, %v14109_v24  ;;  %v14112_v39 = vld [vmem:[#allocation211_spill] sm:$0xff]  ;;  %v14116_v10 = vld [vmem:[#allocation212_spill] sm:$0xff] }
 0x246   : > { %14103 = vst [vmem:[#allocation75_spill] sm:$0xff] %v10060_v25  ;;  %vm3282_vm13 = vcmp.lt.s32.totalorder %v3281_v26, %v9853_v43  ;;  %v14114_v6 = vmin.f32 %v14112_v39, %v14113_v34  ;;  %vm3182_vm6 = vcmp.lt.s32.totalorder %v3181_v12, %v14115_v36  ;;  %v14117_v27 = vld [vmem:[#allocation208_spill] sm:$0xff]  ;;  %v10083_v57 = vsub.f32 %v14102_v9, %v1570_v51  ;;  %v14126_v51 = vld [vmem:[#allocation141_spill] sm:$0xff] }
 0x247   : > { %v2361_v28 = vmin.f32 %v14110_v50, %v14107_v47  ;;  %v3283_v38 = vsel %vm3282_vm13, %v3281_v26, %v9853_v43  ;;  %v14118_v59 = vmin.f32 %v14116_v10, %v14117_v27  ;;  %v14120_v24 = vrot.slane %v9962_v40, 1  ;;  %v14123_v43 = vld [vmem:[#allocation214_spill] sm:$0xff]  ;;  %v14124_v26 = vld [vmem:[#allocation209_spill] sm:$0xff] }
 0x248   : > { %v2435_v20 = vmin.f32 %v14114_v6, %v14111_v46  ;;  %14119 = vst [vmem:[#allocation80_spill] sm:$0xff] %v10083_v57  ;;  %v3183_v6 = vsel %vm3182_vm6, %v3181_v12, %v14115_v36  ;;  %vm3284_vm2 = vcmp.lt.s32.totalorder %v3283_v38, %v9859_v19  ;;  %v14125_v46 = vmin.f32 %v14123_v43, %v14124_v26  ;;  %v14129_v12 = vld [vmem:[#allocation188_spill] sm:$0xff]  ;;  %v14130_v26 = vld [vmem:[#allocation195_spill] sm:$0xff] }
 0x249   : > { %v2398_v35 = vmin.f32 %v14118_v59, %v10050_v30  ;;  %vm10088_vm15 = vcmp.lt.s32.totalorder %v9962_v40, %v14120_v24  ;;  %v2362_v59 = vmin.f32 %v2361_v28, %v10060_v25  ;;  %vm3184_vm14 = vcmp.lt.s32.totalorder %v3183_v6, %v14126_v51  ;;  %v14135_v25 = vld [vmem:[#allocation198_spill] sm:$0xff] }
 0x24a   : > { %v2472_v27 = vmin.f32 %v14125_v46, %v10057_v58  ;;  %v3285_v30 = vsel %vm3284_vm2, %v3283_v38, %v9859_v19  ;;  %v10102_v24 = vsub.f32 %v14102_v9, %v1569_v23  ;;  %v10105_v10 = vsub.f32 %v14102_v9, %v1571_v8  ;;  %v14131_v19 = vld [vmem:[#allocation193_spill] sm:$0xff]  ;;  %v14132_v23 = vld [vmem:[#allocation196_spill] sm:$0xff] }
 0x24b   : > { %v3185_v36 = vsel %vm3184_vm14, %v3183_v6, %v14126_v51  ;;  %vm3286_vm3 = vcmp.lt.s32.totalorder %v3285_v30, %v9865_v3  ;;  %v1576_v34 = vmul.f32 2.0, %v14129_v12  ;;  %v1578_v46 = vmul.f32 2.0, %v14130_v26  ;;  %v14133_v9 = vld [vmem:[#allocation197_spill] sm:$0xff]  ;;  %v14134_v6 = vld [vmem:[#allocation199_spill] sm:$0xff] }
 0x24c   : > { %14127 = vst [vmem:[#allocation84_spill] sm:$0xff] %v10102_v24  ;;  %14128 = vst [vmem:[#allocation94_spill] sm:$0xff] %v10105_v10  ;;  %v3186_v58 = vrot.slane %v3185_v36, 4  ;;  %v3287_v28 = vsel %vm3286_vm3, %v3285_v30, %v9865_v3  ;;  %v2436_v43 = vmin.f32 %v2435_v20, %v10083_v57  ;;  %v1577_v38 = vmul.f32 2.0, %v14131_v19  ;;  %v14136_v20 = vld [vmem:[#allocation29_spill] sm:$0xff] }
 0x24d   : > { %vm3288_vm10 = vcmp.lt.s32.totalorder %v3287_v28, %v9876_v49  ;;  %v1579_v8 = vmul.f32 2.0, %v14132_v23  ;;  %v1584_v39 = vmul.f32 2.0, %v14133_v9  ;;  %v1586_v51 = vmul.f32 2.0, %v14134_v6 }
 0x24e   : > { %vm3187_vm7 = vcmp.lt.s32.totalorder %v3185_v36, %v3186_v58  ;;  %v3289_v12 = vsel %vm3288_vm10, %v3287_v28, %v9876_v49  ;;  %v2399_v26 = vmin.f32 %v2398_v35, %v10102_v24  ;;  %v1585_v47 = vmul.f32 2.0, %v14135_v25  ;;  %v14139_v49 = vld [vmem:[#allocation200_spill] sm:$0xff] }
 0x24f   : > { %v3188_v3 = vsel %vm3187_vm7, %v3185_v36, %v3186_v58  ;;  %vm3290_vm9 = vcmp.lt.s32.totalorder %v3289_v12, %v9882_v37  ;;  %v10123_v30 = vsub.f32 %v14136_v20, %v1576_v34  ;;  %v10126_v19 = vsub.f32 %v14136_v20, %v1578_v46  ;;  %v14141_v58 = vld [vmem:[#allocation33_spill] sm:$0xff]  ;;  %v14144_v28 = vld [vmem:[#allocation204_spill] sm:$0xff] }
 0x250   : > { %v3291_v23 = vsel %vm3290_vm9, %v3289_v12, %v9882_v37  ;;  %v2473_v9 = vmin.f32 %v2472_v27, %v10105_v10  ;;  %v10131_v6 = vsub.f32 %v14136_v20, %v1577_v38  ;;  %v1587_v35 = vmul.f32 2.0, %v14139_v49 }
 0x251   : > { %14137 = vst [vmem:[#allocation98_spill] sm:$0xff] %v10126_v19  ;;  %vm3292_vm1 = vcmp.lt.s32.totalorder %v3291_v23, %v9893_v53  ;;  %v10136_v25 = vsub.f32 %v14136_v20, %v1579_v8  ;;  %v10139_v34 = vsub.f32 %v14141_v58, %v1584_v39  ;;  %v10142_v36 = vsub.f32 %v14141_v58, %v1586_v51  ;;  %v14145_v20 = vld [vmem:[#allocation210_spill] sm:$0xff] }
 0x252   : > { %14138 = vst [vmem:[#allocation101_spill] sm:$0xff] %v10131_v6  ;;  %v3189_v46 = vrot.slane %v3188_v3, 2  ;;  %v3293_v37 = vsel %vm3292_vm1, %v3291_v23, %v9893_v53  ;;  %v10146_v27 = vsub.f32 %v14141_v58, %v1585_v47  ;;  %v1592_v38 = vmul.f32 2.0, %v14144_v28 }
 0x253   : > { %14140 = vst [vmem:[#allocation105_spill] sm:$0xff] %v10136_v25  ;;  %14142 = vst [vmem:[#allocation112_spill] sm:$0xff] %v10142_v36  ;;  %vm3294_vm4 = vcmp.lt.s32.totalorder %v3293_v37, %v9899_v16  ;;  %v2363_v12 = vmin.f32 %v2362_v59, %v10123_v30  ;;  %v2437_v8 = vmin.f32 %v2436_v43, %v10126_v19  ;;  %v1594_v39 = vmul.f32 2.0, %v14145_v20  ;;  %v14149_v20 = vld [vmem:[#allocation37_spill] sm:$0xff]  ;;  %v14272_v19 = vld [vmem:[#allocation82_spill] sm:$0xff] }
 0x254   : > { %14143 = vst [vmem:[#allocation115_spill] sm:$0xff] %v10146_v27  ;;  %v14146_v49 = vrot.slane %v9962_v40, 1  ;;  %v3295_v53 = vsel %vm3294_vm4, %v3293_v37, %v9899_v16  ;;  %v2400_v47 = vmin.f32 %v2399_v26, %v10131_v6  ;;  %v10163_v23 = vsub.f32 %v14141_v58, %v1587_v35  ;;  %v14151_v35 = vld [vmem:[#allocation205_spill] sm:$0xff] }
 0x255   : > { %vm3296_vm11 = vcmp.lt.s32.totalorder %v3295_v53, %v9914_v62  ;;  %v2474_v43 = vmin.f32 %v2473_v9, %v10136_v25  ;;  %v2364_v59 = vmin.f32 %v2363_v12, %v10139_v34  ;;  %v2438_v28 = vmin.f32 %v2437_v8, %v10142_v36  ;;  %v14152_v9 = vld [vmem:[#allocation213_spill] sm:$0xff] }
 0x256   : > { %v10158_v51 = vsel %vm10088_vm15, %v9962_v40, %v14146_v49  ;;  %14148 = vst [vmem:[#allocation121_spill] sm:$0xff] %v10163_v23  ;;  %vm3190_vm12 = vcmp.lt.s32.totalorder %v3188_v3, %v3189_v46  ;;  %v3297_v50 = vsel %vm3296_vm11, %v3295_v53, %v9914_v62  ;;  %v2401_v40 = vmin.f32 %v2400_v47, %v10146_v27  ;;  %v14153_v49 = vld [vmem:[#allocation215_spill] sm:$0xff]  ;;  %v14154_v53 = vld [vmem:[#allocation217_spill] sm:$0xff] }
 0x257   : > { %14147 = vst [vmem:[#allocation119_spill] sm:$0xff] %v10158_v51  ;;  %v10172_v16 = vsub.f32 %v14149_v20, %v1592_v38  ;;  %vm3298_vm5 = vcmp.lt.s32.totalorder %v3297_v50, %v9923_v15  ;;  %v10176_v26 = vsub.f32 %v14149_v20, %v1594_v39  ;;  %v1593_v58 = vmul.f32 2.0, %v14151_v35  ;;  %v14155_v38 = vld [vmem:[#allocation216_spill] sm:$0xff]  ;;  %v14156_v39 = vld [vmem:[#allocation218_spill] sm:$0xff]  ;;  %v14157_v6 = vld [vmem:[#allocation221_spill] sm:$0xff] }
 0x258   : > { %v1595_v37 = vmul.f32 2.0, %v14152_v9  ;;  %v3299_v12 = vsel %vm3298_vm5, %v3297_v50, %v9923_v15  ;;  %v2475_v8 = vmin.f32 %v2474_v43, %v10163_v23  ;;  %v1600_v62 = vmul.f32 2.0, %v14153_v49  ;;  %v14158_v50 = vld [vmem:[#allocation224_spill] sm:$0xff] }
 0x259   : > { %14150 = vst [vmem:[#allocation125_spill] sm:$0xff] %v10176_v26  ;;  %v1602_v47 = vmul.f32 2.0, %v14154_v53  ;;  %v10184_v25 = vsel %vm3190_vm12, %v3188_v3, %v3189_v46  ;;  %vm3300_vm8 = vcmp.lt.s32.totalorder %v3299_v12, %v9941_v2  ;;  %v1601_v10 = vmul.f32 2.0, %v14155_v38  ;;  %v10209_v38 = vpop.f32.mrb[126].mxu1 }
 0x25a   : > { %v1603_v27 = vmul.f32 2.0, %v14156_v39  ;;  %v3301_v35 = vsel %vm3300_vm8, %v3299_v12, %v9941_v2  ;;  %v2365_v9 = vmin.f32 %v2364_v59, %v10172_v16  ;;  %v1608_v15 = vmul.f32 2.0, %v14157_v6  ;;  %v14161_v12 = vld [vmem:[#allocation42_spill] sm:$0xff] }
 0x25b   : > { %v1610_v43 = vmul.f32 2.0, %v14158_v50  ;;  %vm3302_vm0 = vcmp.lt.s32.totalorder %v3301_v35, %v9947_v29  ;;  %v2439_v49 = vmin.f32 %v2438_v28, %v10176_v26  ;;  %v10196_v3 = vsub.f32 %v14149_v20, %v1593_v58  ;;  %v14165_v58 = vld [vmem:[#allocation34_spill] sm:$0xff] }
 0x25c   : > { %v10199_v46 = vsub.f32 %v14149_v20, %v1595_v37  ;;  %v3303_v2 = vsel %vm3302_vm0, %v3301_v35, %v9947_v29  ;;  %v10204_v59 = vsub.f32 %v14161_v12, %v1600_v62  ;;  %v10207_v6 = vsub.f32 %v14161_v12, %v1602_v47  ;;  %v14166_v39 = vld [vmem:[#allocation46_spill] sm:$0xff]  ;;  %v14168_v35 = vld [vmem:[#allocation39_spill] sm:$0xff] }
 0x25d   : > { %14159 = vst [vmem:[#allocation163_spill] sm:$0xff] %v10196_v3  ;;  %vm3304_vm13 = vcmp.lt.s32.totalorder %v3303_v2, %v9954_v48  ;;  %v10213_v28 = vsub.f32 %v14161_v12, %v1601_v10  ;;  %v10216_v20 = vsub.f32 %v14161_v12, %v1603_v27  ;;  %v1609_v37 = vmul.f32 2.0, %v14165_v58  ;;  %v14169_v27 = vld [vmem:[#allocation44_spill] sm:$0xff] }
 0x25e   : > { %14160 = vst [vmem:[#allocation128_spill] sm:$0xff] %v10199_v46  ;;  %14162 = vst [vmem:[#allocation131_spill] sm:$0xff] %v10207_v6  ;;  %v3305_v29 = vsel %vm3304_vm13, %v3303_v2, %v9954_v48  ;;  %v10221_v62 = vsub.f32 %v14166_v39, %v1608_v15  ;;  %v10224_v47 = vsub.f32 %v14166_v39, %v1610_v43  ;;  %v1611_v50 = vmul.f32 2.0, %v14168_v35  ;;  %v14170_v2 = vld [vmem:[#allocation51_spill] sm:$0xff] }
 0x25f   : > { %14163 = vst [vmem:[#allocation134_spill] sm:$0xff] %v10213_v28  ;;  %14164 = vst [vmem:[#allocation137_spill] sm:$0xff] %v10216_v20  ;;  %vm3306_vm6 = vcmp.lt.s32.totalorder %v3305_v29, %v9969_v52  ;;  %v2402_v10 = vmin.f32 %v2401_v40, %v10196_v3  ;;  %v2476_v53 = vmin.f32 %v2475_v8, %v10199_v46  ;;  %v1616_v12 = vmul.f32 2.0, %v14169_v27  ;;  %v10241_v8 = vpop.f32.mrb[127].mxu0  ;;  %v14180_v3 = vld [vmem:[#allocation77_spill] sm:$0xff] }
 0x260   : > { %14167 = vst [vmem:[#allocation143_spill] sm:$0xff] %v10224_v47  ;;  %v3307_v58 = vsel %vm3306_vm6, %v3305_v29, %v9969_v52  ;;  %v2366_v48 = vmin.f32 %v2365_v9, %v10204_v59  ;;  %v2440_v15 = vmin.f32 %v2439_v49, %v10207_v6  ;;  %v1618_v23 = vmul.f32 2.0, %v14170_v2  ;;  %v14173_v29 = vld [vmem:[#allocation49_spill] sm:$0xff]  ;;  %v14238_v6 = vld [vmem:[#allocation106_spill] sm:$0xff] }
 0x261   : > { %vm3308_vm15 = vcmp.lt.s32.totalorder %v3307_v58, %v9978_v22  ;;  %v2403_v43 = vmin.f32 %v2402_v10, %v10213_v28  ;;  %v2477_v35 = vmin.f32 %v2476_v53, %v10216_v20  ;;  %v10239_v40 = vsub.f32 %v14166_v39, %v1609_v37  ;;  %v14174_v53 = vld [vmem:[#allocation48_spill] sm:$0xff]  ;;  %v14175_v37 = vld [vmem:[#allocation54_spill] sm:$0xff] }
 0x262   : > { %v3309_v27 = vsel %vm3308_vm15, %v3307_v58, %v9978_v22  ;;  %v2367_v52 = vmin.f32 %v2366_v48, %v10221_v62  ;;  %v2441_v9 = vmin.f32 %v2440_v15, %v10224_v47  ;;  %v10247_v49 = vsub.f32 %v14166_v39, %v1611_v50  ;;  %v14177_v58 = vld [vmem:[#allocation58_spill] sm:$0xff]  ;;  %v14178_v15 = vld [vmem:[#allocation71_spill] sm:$0xff]  ;;  %v14179_v50 = vld [vmem:[#allocation68_spill] sm:$0xff] }
 0x263   : > { %14171 = vst [vmem:[#allocation146_spill] sm:$0xff] %v10239_v40  ;;  %vm3310_vm2 = vcmp.lt.s32.totalorder %v3309_v27, %v9984_v5  ;;  %v10251_v10 = vsub.f32 %v14173_v29, %v1616_v12  ;;  %v1617_v2 = vmul.f32 2.0, %v14174_v53  ;;  %v1619_v20 = vmul.f32 2.0, %v14175_v37 }
 0x264   : > { %14172 = vst [vmem:[#allocation149_spill] sm:$0xff] %v10247_v49  ;;  %v3311_v46 = vsel %vm3310_vm2, %v3309_v27, %v9984_v5  ;;  %v10257_v22 = vsub.f32 %v14173_v29, %v1618_v23  ;;  %v1624_v48 = vmul.f32 2.0, %v14177_v58  ;;  %v1626_v28 = vmul.f32 2.0, %v14178_v15  ;;  %v14181_v5 = vld [vmem:[#allocation85_spill] sm:$0xff]  ;;  %v14182_v23 = vld [vmem:[#allocation178_spill] sm:$0xff] }
 0x265   : > { %vm3312_vm14 = vcmp.lt.s32.totalorder %v3311_v46, %v9991_v18  ;;  %v2404_v39 = vmin.f32 %v2403_v43, %v10239_v40  ;;  %v1625_v12 = vmul.f32 2.0, %v14179_v50  ;;  %v1627_v24 = vmul.f32 2.0, %v14180_v3 }
 0x266   : > { %14176 = vst [vmem:[#allocation152_spill] sm:$0xff] %v10257_v22  ;;  %v3313_v53 = vsel %vm3312_vm14, %v3311_v46, %v9991_v18  ;;  %v2478_v37 = vmin.f32 %v2477_v35, %v10247_v49  ;;  %v1632_v27 = vmul.f32 2.0, %v14181_v5  ;;  %v1634_v47 = vmul.f32 2.0, %v14182_v23  ;;  %v14185_v46 = vld [vmem:[#allocation52_spill] sm:$0xff] }
 0x267   : > { %vm3314_vm3 = vcmp.lt.s32.totalorder %v3313_v53, %v9997_v4  ;;  %v2368_v58 = vmin.f32 %v2367_v52, %v10251_v10  ;;  %v10272_v15 = vsub.f32 %v14173_v29, %v1617_v2  ;;  %v10275_v43 = vsub.f32 %v14173_v29, %v1619_v20  ;;  %v14190_v20 = vld [vmem:[#allocation88_spill] sm:$0xff] }
 0x268   : > { %v3315_v3 = vsel %vm3314_vm3, %v3313_v53, %v9997_v4  ;;  %v2442_v18 = vmin.f32 %v2441_v9, %v10257_v22  ;;  %v10280_v35 = vsub.f32 %v14185_v46, %v1624_v48  ;;  %v10283_v50 = vsub.f32 %v14185_v46, %v1626_v28  ;;  %v14191_v53 = vld [vmem:[#allocation55_spill] sm:$0xff] }
 0x269   : > { %14183 = vst [vmem:[#allocation155_spill] sm:$0xff] %v10272_v15  ;;  %14184 = vst [vmem:[#allocation158_spill] sm:$0xff] %v10275_v43  ;;  %vm3316_vm10 = vcmp.lt.s32.totalorder %v3315_v3, %v10006_v63  ;;  %v10287_v52 = vsub.f32 %v14185_v46, %v1625_v12  ;;  %v10290_v2 = vsub.f32 %v14185_v46, %v1627_v24  ;;  %v1633_v29 = vmul.f32 2.0, %v14190_v20  ;;  %v14194_v28 = vld [vmem:[#allocation179_spill] sm:$0xff]  ;;  %v14195_v24 = vld [vmem:[#allocation180_spill] sm:$0xff] }
 0x26a   : > { %14186 = vst [vmem:[#allocation157_spill] sm:$0xff] %v10280_v35  ;;  %14187 = vst [vmem:[#allocation28_spill] sm:$0xff] %v10283_v50  ;;  %v3317_v4 = vsel %vm3316_vm10, %v3315_v3, %v10006_v63  ;;  %v10295_v9 = vsub.f32 %v14191_v53, %v1632_v27  ;;  %v10298_v48 = vsub.f32 %v14191_v53, %v1634_v47  ;;  %v1635_v5 = vmul.f32 2.0, %v14194_v28  ;;  %v14196_v3 = vld [vmem:[#allocation22_spill] sm:$0xff] }
 0x26b   : > { %14188 = vst [vmem:[#allocation172_spill] sm:$0xff] %v10287_v52  ;;  %14189 = vst [vmem:[#allocation127_spill] sm:$0xff] %v10290_v2  ;;  %vm3318_vm7 = vcmp.lt.s32.totalorder %v3317_v4, %v10014_v13  ;;  %v2405_v12 = vmin.f32 %v2404_v39, %v10272_v15  ;;  %v2479_v23 = vmin.f32 %v2478_v37, %v10275_v43  ;;  %v1640_v46 = vmul.f32 2.0, %v14195_v24 }
 0x26c   : > { %14192 = vst [vmem:[#allocation133_spill] sm:$0xff] %v10295_v9  ;;  %14193 = vst [vmem:[#allocation220_spill] sm:$0xff] %v10298_v48  ;;  %v3319_v20 = vsel %vm3318_vm7, %v3317_v4, %v10014_v13  ;;  %v2369_v63 = vmin.f32 %v2368_v58, %v10280_v35  ;;  %v2443_v27 = vmin.f32 %v2442_v18, %v10283_v50  ;;  %v1642_v49 = vmul.f32 2.0, %v14196_v3  ;;  %v14199_v18 = vld [vmem:[#allocation59_spill] sm:$0xff] }
 0x26d   : > { %vm3320_vm9 = vcmp.lt.s32.totalorder %v3319_v20, %v10023_v31  ;;  %v2406_v47 = vmin.f32 %v2405_v12, %v10287_v52  ;;  %v2480_v28 = vmin.f32 %v2479_v23, %v10290_v2  ;;  %v10313_v39 = vsub.f32 %v14191_v53, %v1633_v29  ;;  %v14201_v12 = vld [vmem:[#allocation182_spill] sm:$0xff]  ;;  %v14202_v23 = vld [vmem:[#allocation17_spill] sm:$0xff]  ;;  %v14207_v52 = vld [vmem:[#allocation40_spill] sm:$0xff] }
 0x26e   : > { %v3321_v37 = vsel %vm3320_vm9, %v3319_v20, %v10023_v31  ;;  %v2370_v24 = vmin.f32 %v2369_v63, %v10295_v9  ;;  %v2444_v13 = vmin.f32 %v2443_v27, %v10298_v48  ;;  %v10319_v58 = vsub.f32 %v14191_v53, %v1635_v5  ;;  %v14204_v20 = vld [vmem:[#allocation189_spill] sm:$0xff]  ;;  %v14205_v27 = vld [vmem:[#allocation159_spill] sm:$0xff] }
 0x26f   : > { %14197 = vst [vmem:[#allocation16_spill] sm:$0xff] %v10313_v39  ;;  %vm3322_vm1 = vcmp.lt.s32.totalorder %v3321_v37, %v10029_v54  ;;  %v10323_v4 = vsub.f32 %v14199_v18, %v1640_v46  ;;  %v1641_v3 = vmul.f32 2.0, %v14201_v12  ;;  %v1643_v2 = vmul.f32 2.0, %v14202_v23  ;;  %v14206_v5 = vld [vmem:[#allocation31_spill] sm:$0xff]  ;;  %v14358_v9 = vld [vmem:[#allocation173_spill] sm:$0xff] }
 0x270   : > { %14198 = vst [vmem:[#allocation181_spill] sm:$0xff] %v10319_v58  ;;  %v3323_v29 = vsel %vm3322_vm1, %v3321_v37, %v10029_v54  ;;  %v10329_v31 = vsub.f32 %v14199_v18, %v1642_v49  ;;  %v1648_v63 = vmul.f32 2.0, %v14204_v20  ;;  %v1650_v43 = vmul.f32 2.0, %v14205_v27  ;;  %v14208_v54 = vld [vmem:[#allocation47_spill] sm:$0xff]  ;;  %v14209_v49 = vld [vmem:[#allocation60_spill] sm:$0xff] }
 0x271   : > { %14200 = vst [vmem:[#allocation223_spill] sm:$0xff] %v10323_v4  ;;  %vm3324_vm4 = vcmp.lt.s32.totalorder %v3323_v29, %v10037_v17  ;;  %v2407_v53 = vmin.f32 %v2406_v47, %v10313_v39  ;;  %v1649_v46 = vmul.f32 2.0, %v14206_v5  ;;  %v1651_v15 = vmul.f32 2.0, %v14207_v52 }
 0x272   : > { %14203 = vst [vmem:[#allocation24_spill] sm:$0xff] %v10329_v31  ;;  %v3325_v12 = vsel %vm3324_vm4, %v3323_v29, %v10037_v17  ;;  %v2481_v23 = vmin.f32 %v2480_v28, %v10319_v58  ;;  %v1656_v37 = vmul.f32 2.0, %v14208_v54  ;;  %v1658_v40 = vmul.f32 2.0, %v14209_v49  ;;  %v14212_v29 = vld [vmem:[#allocation63_spill] sm:$0xff] }
 0x273   : > { %vm3326_vm11 = vcmp.lt.s32.totalorder %v3325_v12, %v10043_v1  ;;  %v2371_v20 = vmin.f32 %v2370_v24, %v10323_v4  ;;  %v10344_v27 = vsub.f32 %v14199_v18, %v1641_v3  ;;  %v10347_v47 = vsub.f32 %v14199_v18, %v1643_v2  ;;  %v14217_v3 = vld [vmem:[#allocation56_spill] sm:$0xff]  ;;  %v14218_v18 = vld [vmem:[#allocation66_spill] sm:$0xff]  ;;  %v14338_v4 = vld [vmem:[#allocation21_spill] sm:$0xff] }
 0x274   : > { %v3327_v52 = vsel %vm3326_vm11, %v3325_v12, %v10043_v1  ;;  %v2445_v17 = vmin.f32 %v2444_v13, %v10329_v31  ;;  %v10352_v28 = vsub.f32 %v14212_v29, %v1648_v63  ;;  %v10355_v5 = vsub.f32 %v14212_v29, %v1650_v43  ;;  %v14221_v13 = vld [vmem:[#allocation65_spill] sm:$0xff]  ;;  %v6615_v43 = vld [vmem:[%s12938_s1] sm:$0xff]  ;;  %v14223_v31 = vld [vmem:[#allocation83_spill] sm:$0xff] }
 0x275   : > { %14210 = vst [vmem:[#allocation136_spill] sm:$0xff] %v10344_v27  ;;  %14211 = vst [vmem:[#allocation177_spill] sm:$0xff] %v10347_v47  ;;  %v3328_v54 = vrot.slane %v3327_v52, 4  ;;  %v10358_v49 = vsub.f32 %v14212_v29, %v1649_v46  ;;  %v10361_v24 = vsub.f32 %v14212_v29, %v1651_v15  ;;  %v1657_v2 = vmul.f32 2.0, %v14217_v3  ;;  %v6616_v46 = vld [vmem:[%s12938_s1 + $0x80] sm:$0xff]  ;;  %v14222_v29 = vld [vmem:[#allocation73_spill] sm:$0xff] }
 0x276   : > { %14213 = vst [vmem:[#allocation184_spill] sm:$0xff] %v10352_v28  ;;  %14214 = vst [vmem:[#allocation15_spill] sm:$0xff] %v10355_v5  ;;  %v10365_v58 = vsub.f32 %v14218_v18, %v1656_v37  ;;  %v10368_v1 = vsub.f32 %v14218_v18, %v1658_v40  ;;  %v1659_v63 = vmul.f32 2.0, %v14221_v13  ;;  %v6543_v15 = vpack.i.bf16 %v6615_v43, %v6616_v46  ;;  %v14225_v46 = vld [vmem:[#allocation79_spill] sm:$0xff] }
 0x277   : > { %14215 = vst [vmem:[#allocation139_spill] sm:$0xff] %v10358_v49  ;;  %14216 = vst [vmem:[#allocation141_spill] sm:$0xff] %v10361_v24  ;;  %vm3329_vm12 = vcmp.lt.s32.totalorder %v3327_v52, %v3328_v54  ;;  %v2408_v12 = vmin.f32 %v2407_v53, %v10344_v27  ;;  %v2482_v37 = vmin.f32 %v2481_v23, %v10347_v47  ;;  %v1664_v3 = vmul.f32 2.0, %v14222_v29 }
 0x278   : > { %14219 = vst [vmem:[#allocation188_spill] sm:$0xff] %v10365_v58  ;;  %14220 = vst [vmem:[#allocation195_spill] sm:$0xff] %v10368_v1  ;;  %v3330_v40 = vsel %vm3329_vm12, %v3327_v52, %v3328_v54  ;;  %v2372_v39 = vmin.f32 %v2371_v20, %v10352_v28  ;;  %v2446_v13 = vmin.f32 %v2445_v17, %v10355_v5  ;;  %v1666_v48 = vmul.f32 2.0, %v14223_v31  ;;  %v14227_v31 = vld [vmem:[#allocation69_spill] sm:$0xff]  ;;  %v14229_v54 = vld [vmem:[#allocation87_spill] sm:$0xff] }
 0x279   : > { %6544 = vxpose.xlu0.b32.start [1/16] (narrow) %v6543_v15, 64  ;;  %v3331_v50 = vrot.slane %v3330_v40, 2  ;;  %v2409_v22 = vmin.f32 %v2408_v12, %v10358_v49  ;;  %v10385_v43 = vsub.f32 %v14218_v18, %v1657_v2  ;;  %v1665_v53 = vmul.f32 2.0, %v14225_v46  ;;  %v6617_v2 = vld [vmem:[%s12938_s1 + $0x8] sm:$0xff] }
 0x27a   : > { %v2483_v23 = vmin.f32 %v2482_v37, %v10361_v24  ;;  %v2373_v29 = vmin.f32 %v2372_v39, %v10365_v58  ;;  %v2447_v52 = vmin.f32 %v2446_v13, %v10368_v1  ;;  %v10392_v20 = vsub.f32 %v14218_v18, %v1659_v63  ;;  %v6618_v12 = vld [vmem:[%s12938_s1 + $0x88] sm:$0xff]  ;;  %v14231_v18 = vld [vmem:[#allocation90_spill] sm:$0xff]  ;;  %v14232_v13 = vld [vmem:[#allocation92_spill] sm:$0xff] }
 0x27b   : > { %14224 = vst [vmem:[#allocation193_spill] sm:$0xff] %v10385_v43  ;;  %vm3332_vm5 = vcmp.lt.s32.totalorder %v3330_v40, %v3331_v50  ;;  %v10395_v17 = vsub.f32 %v14227_v31, %v1664_v3  ;;  %v1667_v15 = vmul.f32 2.0, %v14229_v54  ;;  %v6545_v39 = vpack.i.bf16 %v6617_v2, %v6618_v12  ;;  %v14233_v3 = vld [vmem:[#allocation93_spill] sm:$0xff]  ;;  %v14236_v1 = vld [vmem:[#allocation100_spill] sm:$0xff] }
 0x27c   : > { %14226 = vst [vmem:[#allocation196_spill] sm:$0xff] %v10392_v20  ;;  %v10405_v37 = vsub.f32 %v14227_v31, %v1666_v48  ;;  %v1672_v63 = vmul.f32 2.0, %v14231_v18  ;;  %v1674_v46 = vmul.f32 2.0, %v14232_v13  ;;  %v1673_v24 = vmul.f32 2.0, %v14233_v3  ;;  %v14235_v49 = vld [vmem:[#allocation97_spill] sm:$0xff]  ;;  %v14237_v48 = vld [vmem:[#allocation103_spill] sm:$0xff] }
 0x27d   : > { %14228 = vst [vmem:[#allocation197_spill] sm:$0xff] %v10395_v17  ;;  %v2410_v54 = vmin.f32 %v2409_v22, %v10385_v43  ;;  %v10412_v47 = vsub.f32 %v14227_v31, %v1665_v53  ;;  %v1675_v27 = vmul.f32 2.0, %v14235_v49  ;;  %6546 = vxpose.xlu0.b32.cont [2/16] (narrow) %v6545_v39, 64  ;;  %v1680_v5 = vmul.f32 2.0, %v14236_v1  ;;  %v6619_v13 = vld [vmem:[%s12938_s1 + $0x10] sm:$0xff]  ;;  %v14240_v1 = vld [vmem:[#allocation109_spill] sm:$0xff] }
 0x27e   : > { %14230 = vst [vmem:[#allocation199_spill] sm:$0xff] %v10405_v37  ;;  %v10416_v2 = vsel %vm3332_vm5, %v3330_v40, %v3331_v50  ;;  %v1682_v12 = vmul.f32 2.0, %v14237_v48  ;;  %v1681_v18 = vmul.f32 2.0, %v14238_v6  ;;  %v6620_v22 = vld [vmem:[%s12938_s1 + $0x90] sm:$0xff]  ;;  %v2484_v49 = vmin.f32 %v2483_v23, %v10392_v20  ;;  %v14241_v3 = vld [vmem:[#allocation72_spill] sm:$0xff]  ;;  %v10469_v23 = vpop.f32.mrb[127].mxu1 }
 0x27f   : > { %14234 = vst [vmem:[#allocation198_spill] sm:$0xff] %v10412_v47  ;;  %v6547_v53 = vpack.i.bf16 %v6619_v13, %v6620_v22  ;;  %v2374_v39 = vmin.f32 %v2373_v29, %v10395_v17  ;;  %v10429_v50 = vsub.f32 %v14227_v31, %v1667_v15  ;;  %v1683_v40 = vmul.f32 2.0, %v14240_v1  ;;  %v14246_v15 = vld [vmem:[#allocation74_spill] sm:$0xff]  ;;  %v6621_v22 = vld [vmem:[%s12938_s1 + $0x18] sm:$0xff]  ;;  %v14280_v17 = vld [vmem:[#allocation53_spill] sm:$0xff] }
 0x280   : > { %v2448_v6 = vmin.f32 %v2447_v52, %v10405_v37  ;;  %v10434_v48 = vsub.f32 %v14241_v3, %v1672_v63  ;;  %v10437_v43 = vsub.f32 %v14241_v3, %v1674_v46  ;;  %v10440_v26 = vsub.f32 %v14241_v3, %v1673_v24  ;;  %v14250_v46 = vld [vmem:[#allocation110_spill] sm:$0xff] }
 0x281   : > { %14239 = vst [vmem:[#allocation29_spill] sm:$0xff] %v10429_v50  ;;  %v2411_v29 = vmin.f32 %v2410_v54, %v10412_v47  ;;  %v10445_v31 = vsub.f32 %v14241_v3, %v1675_v27  ;;  %v10448_v13 = vsub.f32 %v14246_v15, %v1680_v5  ;;  %6548 = vxpose.xlu0.b32.cont [3/16] (narrow) %v6547_v53, 64  ;;  %v1688_v24 = vmul.f32 2.0, %v14250_v46  ;;  %v6622_v27 = vld [vmem:[%s12938_s1 + $0x98] sm:$0xff]  ;;  %v14259_v47 = vld [vmem:[#allocation129_spill] sm:$0xff] }
 0x282   : > { %14242 = vst [vmem:[#allocation200_spill] sm:$0xff] %v10434_v48  ;;  %14243 = vst [vmem:[#allocation33_spill] sm:$0xff] %v10437_v43  ;;  %v10451_v52 = vsub.f32 %v14246_v15, %v1682_v12  ;;  %v10454_v63 = vsub.f32 %v14246_v15, %v1681_v18  ;;  %v6549_v54 = vpack.i.bf16 %v6621_v22, %v6622_v27  ;;  %v14252_v12 = vld [vmem:[#allocation114_spill] sm:$0xff]  ;;  %v14253_v18 = vld [vmem:[#allocation117_spill] sm:$0xff]  ;;  %v14254_v46 = vrot.slane %v10184_v25, 1 }
 0x283   : > { %14244 = vst [vmem:[#allocation204_spill] sm:$0xff] %v10440_v26  ;;  %14245 = vst [vmem:[#allocation210_spill] sm:$0xff] %v10445_v31  ;;  %v2485_v5 = vmin.f32 %v2484_v49, %v10429_v50  ;;  %v10465_v53 = vsub.f32 %v14246_v15, %v1683_v40  ;;  %v1690_v1 = vmul.f32 2.0, %v14252_v12  ;;  %v1689_v3 = vmul.f32 2.0, %v14253_v18  ;;  %v14257_v15 = vld [vmem:[#allocation19_spill] sm:$0xff]  ;;  %v14258_v18 = vld [vmem:[#allocation18_spill] sm:$0xff] }
 0x284   : > { %14247 = vst [vmem:[#allocation37_spill] sm:$0xff] %v10448_v13  ;;  %14248 = vst [vmem:[#allocation205_spill] sm:$0xff] %v10451_v52  ;;  %vm10474_vm8 = vcmp.lt.s32.totalorder %v10184_v25, %v14254_v46  ;;  %v2375_v22 = vmin.f32 %v2374_v39, %v10434_v48  ;;  %v2449_v49 = vmin.f32 %v2448_v6, %v10437_v43  ;;  %v1691_v27 = vmul.f32 2.0, %v14257_v15  ;;  %v6623_v46 = vld [vmem:[%s12938_s1 + $0x20] sm:$0xff] }
 0x285   : > { %14249 = vst [vmem:[#allocation213_spill] sm:$0xff] %v10454_v63  ;;  %14251 = vst [vmem:[#allocation215_spill] sm:$0xff] %v10465_v53  ;;  %v2412_v40 = vmin.f32 %v2411_v29, %v10440_v26  ;;  %v2486_v12 = vmin.f32 %v2485_v5, %v10445_v31  ;;  %6550 = vxpose.xlu0.b32.cont [4/16] (narrow) %v6549_v54, 64  ;;  %v1696_v50 = vmul.f32 2.0, %v14258_v18  ;;  %v1698_v37 = vmul.f32 2.0, %v14259_v47  ;;  %v6624_v39 = vld [vmem:[%s12938_s1 + $0xa0] sm:$0xff] }
 0x286   : > { %v6551_v6 = vpack.i.bf16 %v6623_v46, %v6624_v39  ;;  %v14260_v29 = vrot.slane %v10416_v2, 1  ;;  %v2376_v54 = vmin.f32 %v2375_v22, %v10448_v13  ;;  %v2450_v47 = vmin.f32 %v2449_v49, %v10451_v52  ;;  %v14263_v18 = vld [vmem:[#allocation78_spill] sm:$0xff]  ;;  %v14269_v22 = vld [vmem:[#allocation183_spill] sm:$0xff]  ;;  %v14270_v52 = vld [vmem:[#allocation145_spill] sm:$0xff] }
 0x287   : > { %v2413_v5 = vmin.f32 %v2412_v40, %v10454_v63  ;;  %v10502_v31 = vsub.f32 %v14263_v18, %v1688_v24  ;;  %v2487_v26 = vmin.f32 %v2486_v12, %v10465_v53  ;;  %v10506_v46 = vsub.f32 %v14263_v18, %v1690_v1  ;;  %v14271_v63 = vld [vmem:[#allocation151_spill] sm:$0xff] }
 0x288   : > { %vm10494_vm0 = vcmp.lt.s32.totalorder %v10416_v2, %v14260_v29  ;;  %v10509_v39 = vsub.f32 %v14263_v18, %v1689_v3  ;;  %v14267_v29 = vld [vmem:[#allocation30_spill] sm:$0xff]  ;;  %v10513_v36 = vsub.f32 %v14263_v18, %v1691_v27  ;;  %v1699_v49 = vmul.f32 2.0, %v14269_v22  ;;  %v14275_v3 = vld [vmem:[#allocation35_spill] sm:$0xff]  ;;  %v6625_v27 = vld [vmem:[%s12938_s1 + $0x28] sm:$0xff] }
 0x289   : > { %14264 = vst [vmem:[#allocation217_spill] sm:$0xff] %v10502_v31  ;;  %14265 = vst [vmem:[#allocation216_spill] sm:$0xff] %v10506_v46  ;;  %v1697_v43 = vmul.f32 2.0, %v14267_v29  ;;  %v1704_v40 = vmul.f32 2.0, %v14270_v52  ;;  %v1706_v24 = vmul.f32 2.0, %v14271_v63  ;;  %v10519_v57 = vsub.f32 %v14272_v19, %v1696_v50  ;;  %6552 = vxpose.xlu0.b32.cont [5/16] (narrow) %v6551_v6, 64 }
 0x28a   : > { %14266 = vst [vmem:[#allocation218_spill] sm:$0xff] %v10509_v39  ;;  %14268 = vst [vmem:[#allocation221_spill] sm:$0xff] %v10513_v36  ;;  %v10522_v1 = vsub.f32 %v14272_v19, %v1698_v37  ;;  %v1705_v12 = vmul.f32 2.0, %v14275_v3  ;;  %v6626_v18 = vld [vmem:[%s12938_s1 + $0xa8] sm:$0xff]  ;;  %v2377_v63 = vmin.f32 %v2376_v54, %v10502_v31  ;;  %v14278_v37 = vld [vmem:[#allocation64_spill] sm:$0xff]  ;;  %v2451_v6 = vmin.f32 %v2450_v47, %v10506_v46 }
 0x28b   : > { %14273 = vst [vmem:[#allocation224_spill] sm:$0xff] %v10519_v57  ;;  %v6553_v52 = vpack.i.bf16 %v6625_v27, %v6626_v18  ;;  %v14276_v29 = vld [vmem:[#allocation41_spill] sm:$0xff]  ;;  %v1714_v13 = vmul.f32 2.0, %v14278_v37  ;;  %v2414_v3 = vmin.f32 %v2413_v5, %v10509_v39  ;;  %v10538_v48 = vsub.f32 %v14272_v19, %v1697_v43  ;;  %v14282_v54 = vld [vmem:[#allocation86_spill] sm:$0xff] }
 0x28c   : > { %14274 = vst [vmem:[#allocation42_spill] sm:$0xff] %v10522_v1  ;;  %v1707_v50 = vmul.f32 2.0, %v14276_v29  ;;  %v14277_v22 = vld [vmem:[#allocation45_spill] sm:$0xff]  ;;  %v1713_v58 = vmul.f32 2.0, %v14280_v17  ;;  %v2488_v28 = vmin.f32 %v2487_v26, %v10513_v36  ;;  %v10543_v27 = vsub.f32 %v14272_v19, %v1699_v49  ;;  %v6627_v26 = vld [vmem:[%s12938_s1 + $0x30] sm:$0xff] }
 0x28d   : > { %v1712_v53 = vmul.f32 2.0, %v14277_v22  ;;  %14279 = vst [vmem:[#allocation34_spill] sm:$0xff] %v10538_v48  ;;  %v10546_v18 = vsub.f32 %v14282_v54, %v1704_v40  ;;  %v10549_v29 = vsub.f32 %v14282_v54, %v1706_v24  ;;  %v2378_v47 = vmin.f32 %v2377_v63, %v10519_v57  ;;  %6554 = vxpose.xlu0.b32.cont [6/16] (narrow) %v6553_v52, 64  ;;  %v6628_v19 = vld [vmem:[%s12938_s1 + $0xb0] sm:$0xff]  ;;  %v14287_v40 = vld [vmem:[#allocation91_spill] sm:$0xff] }
 0x28e   : > { %14281 = vst [vmem:[#allocation46_spill] sm:$0xff] %v10543_v27  ;;  %v2452_v5 = vmin.f32 %v2451_v6, %v10522_v1  ;;  %v10554_v43 = vsub.f32 %v14282_v54, %v1705_v12  ;;  %v6555_v17 = vpack.i.bf16 %v6627_v26, %v6628_v19  ;;  %v10563_v49 = vsub.f32 %v14282_v54, %v1707_v50  ;;  %v14290_v12 = vld [vmem:[#allocation70_spill] sm:$0xff]  ;;  %v14294_v54 = vld [vmem:[#allocation185_spill] sm:$0xff]  ;;  %v14321_v1 = vld [vmem:[#allocation164_spill] sm:$0xff] }
 0x28f   : > { %14283 = vst [vmem:[#allocation39_spill] sm:$0xff] %v10546_v18  ;;  %14284 = vst [vmem:[#allocation44_spill] sm:$0xff] %v10549_v29  ;;  %v10566_v24 = vsub.f32 %v14287_v40, %v1712_v53  ;;  %v10569_v63 = vsub.f32 %v14287_v40, %v1714_v13  ;;  %v1715_v52 = vmul.f32 2.0, %v14290_v12  ;;  %v14291_v22 = vrot.slane %v10184_v25, 1  ;;  %v14295_v12 = vld [vmem:[#allocation81_spill] sm:$0xff] }
 0x290   : > { %14285 = vst [vmem:[#allocation51_spill] sm:$0xff] %v10554_v43  ;;  %14286 = vst [vmem:[#allocation49_spill] sm:$0xff] %v10563_v49  ;;  %v2415_v6 = vmin.f32 %v2414_v3, %v10538_v48  ;;  %v10581_v50 = vsub.f32 %v14287_v40, %v1713_v58  ;;  %v1720_v53 = vmul.f32 2.0, %v14294_v54  ;;  %v2489_v26 = vmin.f32 %v2488_v28, %v10543_v27  ;;  %v6629_v28 = vld [vmem:[%s12938_s1 + $0x38] sm:$0xff]  ;;  %v14313_v48 = vld [vmem:[#allocation116_spill] sm:$0xff] }
 0x291   : > { %14288 = vst [vmem:[#allocation48_spill] sm:$0xff] %v10566_v24  ;;  %14289 = vst [vmem:[#allocation54_spill] sm:$0xff] %v10569_v63  ;;  %v10577_v37 = vsel %vm10474_vm8, %v10184_v25, %v14291_v22  ;;  %v2379_v13 = vmin.f32 %v2378_v47, %v10546_v18  ;;  %v10587_v19 = vmin.f32 %v2452_v5, %v10549_v29  ;;  %v1722_v36 = vmul.f32 2.0, %v14295_v12  ;;  %v6630_v3 = vld [vmem:[%s12938_s1 + $0xb8] sm:$0xff]  ;;  %v14298_v5 = vld [vmem:[#allocation96_spill] sm:$0xff] }
 0x292   : > { %14292 = vst [vmem:[#allocation58_spill] sm:$0xff] %v10577_v37  ;;  %14293 = vst [vmem:[#allocation71_spill] sm:$0xff] %v10581_v50  ;;  %v14296_v20 = vrot.slane %v10416_v2, 1  ;;  %v10598_v58 = vmin.f32 %v2415_v6, %v10554_v43  ;;  %6556 = vxpose.xlu0.b32.cont [7/16] (narrow) %v6555_v17, 64  ;;  %v6557_v47 = vpack.i.bf16 %v6629_v28, %v6630_v3  ;;  %v1728_v22 = vmul.f32 2.0, %v14298_v5  ;;  %v14300_v12 = vld [vmem:[#allocation95_spill] sm:$0xff] }
 0x293   : > { %v10608_v54 = vmin.f32 %v2489_v26, %v10563_v49  ;;  %v2454_v15 = vmin.f32 %v10587_v19, %v10569_v63  ;;  %v10614_v17 = vsub.f32 %v14287_v40, %v1715_v52  ;;  %v14302_v28 = vld [vmem:[#allocation76_spill] sm:$0xff]  ;;  %v14303_v5 = vld [vmem:[#allocation154_spill] sm:$0xff]  ;;  %v10625_v26 = vsub.f32 %v14300_v12, %v1722_v36  ;;  %v14306_v19 = vld [vmem:[#allocation161_spill] sm:$0xff] }
 0x294   : > { %v10595_v25 = vsel %vm10494_vm0, %v10416_v2, %v14296_v20  ;;  %v2380_v2 = vmin.f32 %v2379_v13, %v10566_v24  ;;  %v2417_v6 = vmin.f32 %v10598_v58, %v10581_v50  ;;  %v10619_v20 = vsub.f32 %v14300_v12, %v1720_v53  ;;  %v14305_v13 = vld [vmem:[#allocation89_spill] sm:$0xff]  ;;  %v14307_v40 = vld [vmem:[#allocation102_spill] sm:$0xff]  ;;  %v6631_v53 = vld [vmem:[%s12938_s1 + $0x40] sm:$0xff] }
 0x295   : > { %14297 = vst [vmem:[#allocation68_spill] sm:$0xff] %v10595_v25  ;;  %14299 = vst [vmem:[#allocation77_spill] sm:$0xff] %v10614_v17  ;;  %v1721_v3 = vmul.f32 2.0, %v14302_v28  ;;  %vm3672_vm13 = vcmp.eq.s32.totalorder %v14303_v5, %v10577_v37  ;;  %v1723_v49 = vmul.f32 2.0, %v14305_v13  ;;  %vm3680_vm6 = vcmp.eq.s32.totalorder %v14306_v19, %v10577_v37  ;;  %v6632_v58 = vld [vmem:[%s12938_s1 + $0xc0] sm:$0xff]  ;;  %v6637_v18 = vld [vmem:[%s12938_s1 + $0x58] sm:$0xff] }
 0x296   : > { %14301 = vst [vmem:[#allocation85_spill] sm:$0xff] %v10619_v20  ;;  %14304 = vst [vmem:[#allocation178_spill] sm:$0xff] %v10625_v26  ;;  %6558 = vxpose.xlu0.b32.cont [8/16] (narrow) %v6557_v47, 64  ;;  %v10631_v52 = vsub.f32 %v14307_v40, %v1728_v22  ;;  %v6559_v28 = vpack.i.bf16 %v6631_v53, %v6632_v58  ;;  %vm3674_vm2 = vcmp.eq.s32.totalorder %v14303_v5, %v10595_v25  ;;  %v13424_v36 = vmov 1.0|1.0   ;;  %v14308_v47 = vld [vmem:[#allocation124_spill] sm:$0xff] }
 0x297   : > { %vm6205_vm15 = vmpackc.low %vm3680_vm6, %vm3672_vm13  ;;  %vm3682_vm14 = vcmp.eq.s32.totalorder %v14306_v19, %v10595_v25  ;;  %vm3671_vm10 = vcmp.eq.s32.totalorder %v14303_v5, %v14308_v47  ;;  %vm3679_vm7 = vcmp.eq.s32.totalorder %v14306_v19, %v14308_v47  ;;  %vm3673_vm9 = vcmp.eq.s32.totalorder %v14303_v5, %v10158_v51  ;;  %v14309_v13 = vld [vmem:[#allocation104_spill] sm:$0xff]  ;;  %v14310_v58 = vld [vmem:[#allocation162_spill] sm:$0xff] }
 0x298   : > { %6206 = vmatprep.subr.msk.bf16.mxu0 %vm6205_vm15, %v13424_v36  ;;  %vm6269_vm3 = vmpackc.low %vm3682_vm14, %vm3674_vm2  ;;  %vm3681_vm1 = vcmp.eq.s32.totalorder %v14306_v19, %v10158_v51  ;;  %v2381_v22 = vmin.f32 %v2380_v2, %v10619_v20  ;;  %v1736_v53 = vmul.f32 2.0, %v14309_v13  ;;  %vm3688_vm11 = vcmp.eq.s32.totalorder %v14310_v58, %v10577_v37  ;;  %v14312_v13 = vld [vmem:[#allocation107_spill] sm:$0xff] }
 0x299   : > { %6270 = vmatprep.subr.msk.bf16.mxu1 %vm6269_vm3, %v13424_v36  ;;  %vm6207_vm4 = vmpackc.low %vm3679_vm7, %vm3671_vm10  ;;  %vm3696_vm12 = vcmp.eq.s32.totalorder %v14047_v33, %v10577_v37  ;;  %v2491_v27 = vmin.f32 %v10608_v54, %v10614_v17  ;;  %v10662_v50 = vsub.f32 %v14300_v12, %v1721_v3  ;;  %vm3690_vm8 = vcmp.eq.s32.totalorder %v14310_v58, %v10595_v25  ;;  %v6633_v54 = vld [vmem:[%s12938_s1 + $0x48] sm:$0xff]  ;;  %v14331_v20 = vld [vmem:[#allocation167_spill] sm:$0xff] }
 0x29a   : > { %6208 = vmatpush1.bf16.msk.msra.mxu0 %vm6207_vm4, %v13424_v36  ;;  %vm6271_vm5 = vmpackc.low %vm3681_vm1, %vm3673_vm9  ;;  %vm3698_vm0 = vcmp.eq.s32.totalorder %v14047_v33, %v10595_v25  ;;  %v2382_v2 = vmin.f32 %v2381_v22, %v10631_v52  ;;  %6560 = vxpose.xlu0.b32.cont [9/16] (narrow) %v6559_v28, 64  ;;  %v10672_v43 = vsub.f32 %v14312_v13, %v1736_v53  ;;  %v6634_v3 = vld [vmem:[%s12938_s1 + $0xc8] sm:$0xff]  ;;  %v1744_v39 = vmul.f32 2.0, %v14313_v48  ;;  %v14315_v28 = vld [vmem:[#allocation186_spill] sm:$0xff] }
 0x29b   : > { %14311 = vst [vmem:[#allocation52_spill] sm:$0xff] %v10662_v50  ;;  %6272 = vmatpush1.bf16.msk.msra.mxu1 %vm6271_vm5, %v13424_v36  ;;  %vm6209_vm13 = vmpackc.low %vm3696_vm12, %vm3688_vm11  ;;  %v6561_v17 = vpack.i.bf16 %v6633_v54, %v6634_v3  ;;  %v10682_v22 = vsub.f32 %v14300_v12, %v1723_v49  ;;  %v1730_v36 = vmul.f32 2.0, %v14315_v28  ;;  %v14316_v63 = vmov 1.0|1.0   ;;  %v14317_v49 = vld [vmem:[#allocation156_spill] sm:$0xff]  ;;  %v14318_v3 = vld [vmem:[#allocation99_spill] sm:$0xff] }
 0x29c   : > { %6210 = vmatprep.subr.msk.bf16.mxu0 %vm6209_vm13, %v14316_v63  ;;  %vm6273_vm6 = vmpackc.low %vm3698_vm0, %vm3690_vm8  ;;  %vm3687_vm15 = vcmp.eq.s32.totalorder %v14310_v58, %v14308_v47  ;;  %vm3695_vm2 = vcmp.eq.s32.totalorder %v14047_v33, %v14308_v47  ;;  %v10691_v53 = vmin.f32 %v2454_v15, %v10625_v26  ;;  %v10694_v54 = vmin.f32 %v2382_v2, %v10672_v43  ;;  %v14319_v2 = vld [vmem:[#allocation111_spill] sm:$0xff]  ;;  %v14320_v26 = vld [vmem:[#allocation108_spill] sm:$0xff] }
 0x29d   : > { %14314 = vst [vmem:[#allocation88_spill] sm:$0xff] %v10682_v22  ;;  %6274 = vmatprep.subr.msk.bf16.mxu1 %vm6273_vm6, %v14316_v63  ;;  %vm6211_vm14 = vmpackc.low %vm3695_vm2, %vm3687_vm15  ;;  %vm3689_vm3 = vcmp.eq.s32.totalorder %v14310_v58, %v10158_v51  ;;  %vm3697_vm10 = vcmp.eq.s32.totalorder %v14047_v33, %v10158_v51  ;;  %v10702_v48 = vmin.f32 %v2417_v6, %v10662_v50  ;;  %v1729_v12 = vmul.f32 2.0, %v14317_v49  ;;  %v14322_v6 = vld [vmem:[#allocation165_spill] sm:$0xff] }
 0x29e   : > { %v1731_v15 = vmul.f32 2.0, %v14318_v3  ;;  %6212 = vmatpush1.bf16.msk.msra.mxu0 %vm6211_vm14, %v14316_v63  ;;  %vm6275_vm7 = vmpackc.low %vm3697_vm10, %vm3689_vm3  ;;  %v10708_v28 = vsub.f32 %v14319_v2, %v1744_v39  ;;  %v1738_v29 = vmul.f32 2.0, %v14320_v26  ;;  %6562 = vxpose.xlu0.b32.cont [10/16] (narrow) %v6561_v17, 64  ;;  %vm3704_vm9 = vcmp.eq.s32.totalorder %v14321_v1, %v10577_v37  ;;  %v14324_v26 = vld [vmem:[#allocation120_spill] sm:$0xff] }
 0x29f   : > { %6276 = vmatpush1.bf16.msk.msra.mxu1 %vm6275_vm7, %v14316_v63  ;;  %vm3712_vm1 = vcmp.eq.s32.totalorder %v14322_v6, %v10577_v37  ;;  %vm3706_vm4 = vcmp.eq.s32.totalorder %v14321_v1, %v10595_v25  ;;  %v10719_v49 = vmin.f32 %v2491_v27, %v10682_v22  ;;  %v10722_v39 = vsub.f32 %v14307_v40, %v1730_v36  ;;  %v6635_v27 = vld [vmem:[%s12938_s1 + $0x50] sm:$0xff] }
 0x2a0   : > { %v2384_v17 = vmin.f32 %v10694_v54, %v10708_v28  ;;  %vm6213_vm11 = vmpackc.low %vm3712_vm1, %vm3704_vm9  ;;  %vm3714_vm12 = vcmp.eq.s32.totalorder %v14322_v6, %v10595_v25  ;;  %v1746_v3 = vmul.f32 2.0, %v14324_v26  ;;  %v6636_v36 = vld [vmem:[%s12938_s1 + $0xd0] sm:$0xff]  ;;  %vm3703_vm8 = vcmp.eq.s32.totalorder %v14321_v1, %v14308_v47 }
 0x2a1   : > { %14323 = vst [vmem:[#allocation55_spill] sm:$0xff] %v10722_v39  ;;  %6214 = vmatprep.subr.msk.bf16.mxu0 %vm6213_vm11, %v14316_v63  ;;  %vm6277_vm5 = vmpackc.low %vm3714_vm12, %vm3706_vm4  ;;  %v6563_v22 = vpack.i.bf16 %v6635_v27, %v6636_v36  ;;  %vm3711_vm0 = vcmp.eq.s32.totalorder %v14322_v6, %v14308_v47  ;;  %v10741_v54 = vsub.f32 %v14307_v40, %v1729_v12  ;;  %v14328_v36 = vld [vmem:[#allocation25_spill] sm:$0xff] }
 0x2a2   : > { %v10744_v26 = vsub.f32 %v14307_v40, %v1731_v15  ;;  %6278 = vmatprep.subr.msk.bf16.mxu1 %vm6277_vm5, %v14316_v63  ;;  %vm6215_vm13 = vmpackc.low %vm3711_vm0, %vm3703_vm8  ;;  %vm3705_vm6 = vcmp.eq.s32.totalorder %v14321_v1, %v10158_v51  ;;  %vm3713_vm15 = vcmp.eq.s32.totalorder %v14322_v6, %v10158_v51  ;;  %v10752_v27 = vsub.f32 %v14312_v13, %v1738_v29  ;;  %v14329_v40 = vld [vmem:[#allocation130_spill] sm:$0xff]  ;;  %v14332_v29 = vld [vmem:[#allocation113_spill] sm:$0xff] }
 0x2a3   : > { %14325 = vst [vmem:[#allocation179_spill] sm:$0xff] %v10741_v54  ;;  %v1737_v50 = vmul.f32 2.0, %v14328_v36  ;;  %6564 = vxpose.xlu0.b32.cont [11/16] (narrow) %v6563_v22, 64  ;;  %6216 = vmatpush1.bf16.msk.msra.mxu0 %vm6215_vm13, %v14316_v63  ;;  %vm6279_vm2 = vmpackc.low %vm3713_vm15, %vm3705_vm6  ;;  %v1752_v12 = vmul.f32 2.0, %v14329_v40  ;;  %v14330_v15 = vld [vmem:[#allocation166_spill] sm:$0xff]  ;;  %v2456_v46 = vmin.f32 %v10691_v53, %v10722_v39  ;;  %vm3728_vm3 = vcmp.eq.s32.totalorder %v14331_v20, %v10577_v37  ;;  %v14335_v53 = vld [vmem:[#allocation144_spill] sm:$0xff] }
 0x2a4   : > { %14326 = vst [vmem:[#allocation180_spill] sm:$0xff] %v10744_v26  ;;  %14327 = vst [vmem:[#allocation22_spill] sm:$0xff] %v10752_v27  ;;  %vm3720_vm14 = vcmp.eq.s32.totalorder %v14330_v15, %v10577_v37  ;;  %6280 = vmatpush1.bf16.msk.msra.mxu1 %vm6279_vm2, %v14316_v63  ;;  %vm3722_vm10 = vcmp.eq.s32.totalorder %v14330_v15, %v10595_v25  ;;  %vm3730_vm7 = vcmp.eq.s32.totalorder %v14331_v20, %v10595_v25  ;;  %v14334_v40 = vld [vmem:[#allocation118_spill] sm:$0xff] }
 0x2a5   : > { %v1739_v22 = vmul.f32 2.0, %v14332_v29  ;;  %v10770_v36 = vsub.f32 %v14319_v2, %v1746_v3  ;;  %v10773_v24 = vsub.f32 %v14334_v40, %v1752_v12  ;;  %v1754_v39 = vmul.f32 2.0, %v14335_v53  ;;  %vm6217_vm9 = vmpackc.low %vm3728_vm3, %vm3720_vm14  ;;  %v6638_v29 = vld [vmem:[%s12938_s1 + $0xd8] sm:$0xff] }
 0x2a6   : > { %6218 = vmatprep.subr.msk.bf16.mxu0 %vm6217_vm9, %v14316_v63  ;;  %vm6281_vm1 = vmpackc.low %vm3730_vm7, %vm3722_vm10  ;;  %v6565_v57 = vpack.i.bf16 %v6637_v18, %v6638_v29  ;;  %vm3719_vm4 = vcmp.eq.s32.totalorder %v14330_v15, %v14308_v47  ;;  %vm3727_vm11 = vcmp.eq.s32.totalorder %v14331_v20, %v14308_v47  ;;  %vm3721_vm12 = vcmp.eq.s32.totalorder %v14330_v15, %v10158_v51  ;;  %v14337_v18 = vld [vmem:[#allocation153_spill] sm:$0xff] }
 0x2a7   : > { %14333 = vst [vmem:[#allocation59_spill] sm:$0xff] %v10770_v36  ;;  %v2419_v3 = vmin.f32 %v10702_v48, %v10741_v54  ;;  %v2457_v12 = vmin.f32 %v2456_v46, %v10752_v27  ;;  %v10793_v53 = vsub.f32 %v14312_v13, %v1737_v50  ;;  %v2385_v31 = vmin.f32 %v2384_v17, %v10773_v24  ;;  %vm6219_vm5 = vmpackc.low %vm3727_vm11, %vm3719_vm4  ;;  %v14339_v46 = vld [vmem:[#allocation168_spill] sm:$0xff]  ;;  %v14348_v27 = vld [vmem:[#allocation123_spill] sm:$0xff] }
 0x2a8   : > { %6282 = vmatprep.subr.msk.bf16.mxu1 %vm6281_vm1, %v14316_v63  ;;  %6566 = vxpose.xlu0.b32.cont [12/16] (narrow) %v6565_v57, 64  ;;  %vm3729_vm8 = vcmp.eq.s32.totalorder %v14331_v20, %v10158_v51  ;;  %v1760_v29 = vmul.f32 2.0, %v14337_v18  ;;  %v1762_v48 = vmul.f32 2.0, %v14338_v4  ;;  %vm3736_vm0 = vcmp.eq.s32.totalorder %v14339_v46, %v10577_v37  ;;  %v14341_v57 = vld [vmem:[#allocation169_spill] sm:$0xff]  ;;  %v14349_v20 = vld [vmem:[#allocation170_spill] sm:$0xff] }
 0x2a9   : > { %14336 = vst [vmem:[#allocation182_spill] sm:$0xff] %v10793_v53  ;;  %6220 = vmatpush1.bf16.msk.msra.mxu0 %vm6219_vm5, %v14316_v63  ;;  %v2493_v50 = vmin.f32 %v10719_v49, %v10744_v26  ;;  %v10807_v17 = vsub.f32 %v14334_v40, %v1754_v39  ;;  %vm6283_vm13 = vmpackc.low %vm3729_vm8, %vm3721_vm12  ;;  %vm3744_vm6 = vcmp.eq.s32.totalorder %v14341_v57, %v10577_v37  ;;  %v14343_v49 = vld [vmem:[#allocation122_spill] sm:$0xff] }
 0x2aa   : > { %vm3738_vm15 = vcmp.eq.s32.totalorder %v14339_v46, %v10595_v25  ;;  %v10817_v4 = vsub.f32 %v14312_v13, %v1739_v22  ;;  %v2458_v18 = vmin.f32 %v2457_v12, %v10770_v36  ;;  %6284 = vmatpush1.bf16.msk.msra.mxu1 %vm6283_vm13, %v14316_v63  ;;  %v10822_v39 = vsub.f32 %v14343_v49, %v1760_v29  ;;  %vm6221_vm2 = vmpackc.low %vm3744_vm6, %vm3736_vm0  ;;  %v6639_v13 = vld [vmem:[%s12938_s1 + $0x60] sm:$0xff] }
 0x2ab   : > { %14340 = vst [vmem:[#allocation17_spill] sm:$0xff] %v10807_v17  ;;  %vm3746_vm14 = vcmp.eq.s32.totalorder %v14341_v57, %v10595_v25  ;;  %v10827_v26 = vsub.f32 %v14343_v49, %v1762_v48  ;;  %6222 = vmatprep.subr.msk.bf16.mxu0 %vm6221_vm2, %v14316_v63  ;;  %v6640_v22 = vld [vmem:[%s12938_s1 + $0xe0] sm:$0xff]  ;;  %vm3735_vm10 = vcmp.eq.s32.totalorder %v14339_v46, %v14308_v47 }
 0x2ac   : > { %14342 = vst [vmem:[#allocation189_spill] sm:$0xff] %v10817_v4  ;;  %vm6285_vm3 = vmpackc.low %vm3746_vm14, %vm3738_vm15  ;;  %v6567_v12 = vpack.i.bf16 %v6639_v13, %v6640_v22  ;;  %vm3743_vm7 = vcmp.eq.s32.totalorder %v14341_v57, %v14308_v47  ;;  %v10841_v29 = vmin.f32 %v2419_v3, %v10793_v53  ;;  %v14345_v48 = vld [vmem:[#allocation148_spill] sm:$0xff]  ;;  %v2386_v36 = vmin.f32 %v2385_v31, %v10822_v39  ;;  %v14346_v3 = vld [vmem:[#allocation61_spill] sm:$0xff] }
 0x2ad   : > { %14344 = vst [vmem:[#allocation159_spill] sm:$0xff] %v10827_v26  ;;  %v1745_v54 = vmul.f32 2.0, %v14345_v48  ;;  %6286 = vmatprep.subr.msk.bf16.mxu1 %vm6285_vm3, %v14316_v63  ;;  %vm6223_vm9 = vmpackc.low %vm3743_vm7, %vm3735_vm10  ;;  %vm3737_vm1 = vcmp.eq.s32.totalorder %v14339_v46, %v10158_v51  ;;  %v2459_v13 = vmin.f32 %v2458_v18, %v10807_v17  ;;  %vm3745_vm4 = vcmp.eq.s32.totalorder %v14341_v57, %v10158_v51  ;;  %v14347_v53 = vld [vmem:[#allocation26_spill] sm:$0xff]  ;;  %v14350_v46 = vld [vmem:[#allocation171_spill] sm:$0xff] }
 0x2ae   : > { %6568 = vxpose.xlu0.b32.cont [13/16] (narrow) %v6567_v12, 64  ;;  %6224 = vmatpush1.bf16.msk.msra.mxu0 %vm6223_vm9, %v14316_v63  ;;  %v1768_v22 = vmul.f32 2.0, %v14346_v3  ;;  %v1770_v48 = vmul.f32 2.0, %v14347_v53  ;;  %v1747_v31 = vmul.f32 2.0, %v14348_v27  ;;  %vm6287_vm11 = vmpackc.low %vm3745_vm4, %vm3737_vm1  ;;  %vm3752_vm12 = vcmp.eq.s32.totalorder %v14349_v20, %v10577_v37  ;;  %v14351_v12 = vld [vmem:[#allocation126_spill] sm:$0xff]  ;;  %v14354_v17 = vld [vmem:[#allocation147_spill] sm:$0xff] }
 0x2af   : > { %vm3760_vm5 = vcmp.eq.s32.totalorder %v14350_v46, %v10577_v37  ;;  %vm3754_vm8 = vcmp.eq.s32.totalorder %v14349_v20, %v10595_v25  ;;  %v2460_v18 = vmin.f32 %v2459_v13, %v10827_v26  ;;  %6288 = vmatpush1.bf16.msk.msra.mxu1 %vm6287_vm11, %v14316_v63  ;;  %vm3762_vm13 = vcmp.eq.s32.totalorder %v14350_v46, %v10595_v25  ;;  %v6641_v13 = vld [vmem:[%s12938_s1 + $0x68] sm:$0xff] }
 0x2b0   : > { %v10864_v3 = vsub.f32 %v14351_v12, %v1768_v22  ;;  %v10867_v53 = vsub.f32 %v14351_v12, %v1770_v48  ;;  %vm6225_vm0 = vmpackc.low %vm3760_vm5, %vm3752_vm12  ;;  %v10872_v27 = vsub.f32 %v14319_v2, %v1745_v54  ;;  %v1753_v57 = vmul.f32 2.0, %v14354_v17  ;;  %v6642_v22 = vld [vmem:[%s12938_s1 + $0xe8] sm:$0xff] }
 0x2b1   : > { %6226 = vmatprep.subr.msk.bf16.mxu0 %vm6225_vm0, %v14316_v63  ;;  %vm6289_vm6 = vmpackc.low %vm3762_vm13, %vm3754_vm8  ;;  %v6569_v48 = vpack.i.bf16 %v6641_v13, %v6642_v22  ;;  %vm3751_vm15 = vcmp.eq.s32.totalorder %v14349_v20, %v14308_v47  ;;  %vm3759_vm2 = vcmp.eq.s32.totalorder %v14350_v46, %v14308_v47  ;;  %vm3753_vm14 = vcmp.eq.s32.totalorder %v14349_v20, %v10158_v51  ;;  %v14355_v13 = vld [vmem:[#allocation150_spill] sm:$0xff] }
 0x2b2   : > { %14352 = vst [vmem:[#allocation31_spill] sm:$0xff] %v10867_v53  ;;  %14353 = vst [vmem:[#allocation40_spill] sm:$0xff] %v10872_v27  ;;  %v10885_v54 = vmin.f32 %v2386_v36, %v10864_v3  ;;  %v10888_v17 = vmin.f32 %v2460_v18, %v10867_v53  ;;  %6290 = vmatprep.subr.msk.bf16.mxu1 %vm6289_vm6, %v14316_v63  ;;  %v10896_v26 = vmin.f32 %v2493_v50, %v10817_v4  ;;  %v14356_v36 = vld [vmem:[#allocation135_spill] sm:$0xff]  ;;  %v14357_v53 = vld [vmem:[#allocation32_spill] sm:$0xff] }
 0x2b3   : > { %v1755_v22 = vmul.f32 2.0, %v14355_v13  ;;  %6570 = vxpose.xlu0.b32.cont [14/16] (narrow) %v6569_v48, 64  ;;  %vm6227_vm3 = vmpackc.low %vm3759_vm2, %vm3751_vm15  ;;  %vm3761_vm10 = vcmp.eq.s32.totalorder %v14350_v46, %v10158_v51  ;;  %v1776_v18 = vmul.f32 2.0, %v14356_v36  ;;  %v1778_v15 = vmul.f32 2.0, %v14357_v53  ;;  %v14359_v50 = vld [vmem:[#allocation174_spill] sm:$0xff]  ;;  %v14361_v36 = vld [vmem:[#allocation132_spill] sm:$0xff] }
 0x2b4   : > { %6228 = vmatpush1.bf16.msk.msra.mxu0 %vm6227_vm3, %v14316_v63  ;;  %vm6291_vm7 = vmpackc.low %vm3761_vm10, %vm3753_vm14  ;;  %vm3768_vm9 = vcmp.eq.s32.totalorder %v14358_v9, %v10577_v37  ;;  %vm3776_vm1 = vcmp.eq.s32.totalorder %v14359_v50, %v10577_v37  ;;  %vm3770_vm4 = vcmp.eq.s32.totalorder %v14358_v9, %v10595_v25  ;;  %v2421_v48 = vmin.f32 %v10841_v29, %v10872_v27  ;;  %v14364_v46 = vld [vmem:[#allocation23_spill] sm:$0xff]  ;;  %v6644_v29 = vld [vmem:[%s12938_s1 + $0xf0] sm:$0xff] }
 0x2b5   : > { %v10913_v13 = vsub.f32 %v14319_v2, %v1747_v31  ;;  %6292 = vmatpush1.bf16.msk.msra.mxu1 %vm6291_vm7, %v14316_v63  ;;  %v10917_v4 = vsub.f32 %v14361_v36, %v1776_v18  ;;  %vm6229_vm11 = vmpackc.low %vm3776_vm1, %vm3768_vm9  ;;  %vm3778_vm12 = vcmp.eq.s32.totalorder %v14359_v50, %v10595_v25  ;;  %v10922_v53 = vsub.f32 %v14334_v40, %v1753_v57  ;;  %v6643_v2 = vld [vmem:[%s12938_s1 + $0x70] sm:$0xff] }
 0x2b6   : > { %v1761_v20 = vmul.f32 2.0, %v14364_v46  ;;  %v10926_v35 = vsub.f32 %v14361_v36, %v1778_v15  ;;  %6230 = vmatprep.subr.msk.bf16.mxu0 %vm6229_vm11, %v14316_v63  ;;  %vm6293_vm5 = vmpackc.low %vm3778_vm12, %vm3770_vm4  ;;  %v6571_v31 = vpack.i.bf16 %v6643_v2, %v6644_v29  ;;  %vm3767_vm8 = vcmp.eq.s32.totalorder %v14358_v9, %v14308_v47  ;;  %v14366_v46 = vld [vmem:[#allocation36_spill] sm:$0xff] }
 0x2b7   : > { %14360 = vst [vmem:[#allocation47_spill] sm:$0xff] %v10913_v13  ;;  %14362 = vst [vmem:[#allocation60_spill] sm:$0xff] %v10917_v4  ;;  %v2388_v57 = vmin.f32 %v10885_v54, %v10917_v4  ;;  %6294 = vmatprep.subr.msk.bf16.mxu1 %vm6293_vm5, %v14316_v63  ;;  %vm3775_vm0 = vcmp.eq.s32.totalorder %v14359_v50, %v14308_v47  ;;  %vm3769_vm13 = vcmp.eq.s32.totalorder %v14358_v9, %v10158_v51  ;;  %v14367_v54 = vld [vmem:[#allocation50_spill] sm:$0xff] }
 0x2b8   : > { %14363 = vst [vmem:[#allocation63_spill] sm:$0xff] %v10922_v53  ;;  %v10945_v15 = vsub.f32 %v14334_v40, %v1755_v22  ;;  %v1763_v18 = vmul.f32 2.0, %v14366_v46  ;;  %v2462_v2 = vmin.f32 %v10888_v17, %v10926_v35  ;;  %6572 = vxpose.xlu0.b32.cont [15/16] (narrow) %v6571_v31, 64  ;;  %vm6231_vm6 = vmpackc.low %vm3775_vm0, %vm3767_vm8  ;;  %vm3777_vm15 = vcmp.eq.s32.totalorder %v14359_v50, %v10158_v51  ;;  %v14368_v40 = vld [vmem:[#allocation175_spill] sm:$0xff]  ;;  %v14369_v22 = vld [vmem:[#allocation176_spill] sm:$0xff] }
 0x2b9   : > { %6232 = vmatpush1.bf16.msk.msra.mxu0 %vm6231_vm6, %v14316_v63  ;;  %vm6295_vm2 = vmpackc.low %vm3777_vm15, %vm3769_vm13  ;;  %v1784_v29 = vmul.f32 2.0, %v14367_v54  ;;  %v1786_v27 = vmul.f32 2.0, %v9932_v21  ;;  %vm3784_vm14 = vcmp.eq.s32.totalorder %v14368_v40, %v10577_v37  ;;  %vm3792_vm3 = vcmp.eq.s32.totalorder %v14369_v22, %v10577_v37  ;;  %v14371_v46 = vld [vmem:[#allocation20_spill] sm:$0xff]  ;;  %v14372_v50 = vld [vmem:[#allocation138_spill] sm:$0xff] }
 0x2ba   : > { %14365 = vst [vmem:[#allocation56_spill] sm:$0xff] %v10945_v15  ;;  %v2495_v17 = vmin.f32 %v10896_v26, %v10913_v13  ;;  %v2422_v31 = vmin.f32 %v2421_v48, %v10922_v53  ;;  %6296 = vmatpush1.bf16.msk.msra.mxu1 %vm6295_vm2, %v14316_v63  ;;  %vm6233_vm10 = vmpackc.low %vm3792_vm3, %vm3784_vm14  ;;  %vm3786_vm7 = vcmp.eq.s32.totalorder %v14368_v40, %v10595_v25  ;;  %v1769_v54 = vmul.f32 2.0, %v14371_v46  ;;  %v6645_v48 = vld [vmem:[%s12938_s1 + $0x78] sm:$0xff] }
 0x2bb   : > { %vm3794_vm9 = vcmp.eq.s32.totalorder %v14369_v22, %v10595_v25  ;;  %v10968_v21 = vsub.f32 %v14343_v49, %v1761_v20  ;;  %v10972_v9 = vsub.f32 %v14372_v50, %v1784_v29  ;;  %v10975_v26 = vsub.f32 %v14372_v50, %v1786_v27  ;;  %6234 = vmatprep.subr.msk.bf16.mxu0 %vm6233_vm10, %v14316_v63  ;;  %v6646_v20 = vld [vmem:[%s12938_s1 + $0xf8] sm:$0xff] }
 0x2bc   : > { %vm6297_vm1 = vmpackc.low %vm3794_vm9, %vm3786_vm7  ;;  %v6573_v46 = vpack.i.bf16 %v6645_v48, %v6646_v20  ;;  %vm3783_vm4 = vcmp.eq.s32.totalorder %v14368_v40, %v14308_v47  ;;  %vm3791_vm11 = vcmp.eq.s32.totalorder %v14369_v22, %v14308_v47  ;;  %vm3785_vm12 = vcmp.eq.s32.totalorder %v14368_v40, %v10158_v51 }
 0x2bd   : > { %14370 = vst [vmem:[#allocation66_spill] sm:$0xff] %v10968_v21  ;;  %14373 = vst [vmem:[#allocation65_spill] sm:$0xff] %v10972_v9  ;;  %6298 = vmatprep.subr.msk.bf16.mxu1 %vm6297_vm1, %v14316_v63  ;;  %v10992_v27 = vmin.f32 %v2495_v17, %v10945_v15  ;;  %v10995_v29 = vsub.f32 %v14343_v49, %v1763_v18  ;;  %v2389_v13 = vmin.f32 %v2388_v57, %v10972_v9  ;;  %v14375_v18 = vld [vmem:[#allocation27_spill] sm:$0xff] }
 0x2be   : > { %v2463_v53 = vmin.f32 %v2462_v2, %v10975_v26  ;;  %vm6235_vm5 = vmpackc.low %vm3791_vm11, %vm3783_vm4  ;;  %6574 = vxpose.xlu0.b32.end [16/16] (narrow) %v6573_v46, 64  ;;  %vm3793_vm8 = vcmp.eq.s32.totalorder %v14369_v22, %v10158_v51  ;;  %v1792_v48 = vmul.f32 2.0, %v9971_v45  ;;  %v1794_v20 = vmul.f32 2.0, %v10209_v38  ;;  %v14377_v45 = vld [vmem:[#allocation142_spill] sm:$0xff]  ;;  %v14397_v9 = vld [vmem:[#allocation219_spill] sm:$0xff] }
 0x2bf   : > { %14374 = vst [vmem:[#allocation73_spill] sm:$0xff] %v10995_v29  ;;  %6236 = vmatpush1.bf16.msk.msra.mxu0 %vm6235_vm5, %v14316_v63  ;;  %vm3800_vm0 = vcmp.eq.s32.totalorder %v13799_v11, %v10577_v37  ;;  %v2423_v49 = vmin.f32 %v2422_v31, %v10968_v21  ;;  %v1771_v57 = vmul.f32 2.0, %v14375_v18  ;;  %vm6299_vm13 = vmpackc.low %vm3793_vm8, %vm3785_vm12  ;;  %vm3808_vm6 = vcmp.eq.s32.totalorder %v13801_v61, %v10577_v37  ;;  %v14380_v31 = vld [vmem:[#allocation38_spill] sm:$0xff] }
 0x2c0   : > { %vm3802_vm15 = vcmp.eq.s32.totalorder %v13799_v11, %v10595_v25  ;;  %v11013_v2 = vsub.f32 %v14351_v12, %v1769_v54  ;;  %6300 = vmatpush1.bf16.msk.msra.mxu1 %vm6299_vm13, %v14316_v63  ;;  %v11017_v38 = vsub.f32 %v14377_v45, %v1792_v48  ;;  %v11020_v17 = vsub.f32 %v14377_v45, %v1794_v20  ;;  %vm6237_vm2 = vmpackc.low %vm3808_vm6, %vm3800_vm0  ;;  %v14381_v54 = vld [vmem:[#allocation43_spill] sm:$0xff] }
 0x2c1   : > { %vm3810_vm14 = vcmp.eq.s32.totalorder %v13801_v61, %v10595_v25  ;;  %v1777_v46 = vmul.f32 2.0, %v14380_v31  ;;  %6238 = vmatprep.subr.msk.bf16.mxu0 %vm6237_vm2, %v14316_v63  ;;  %vm3799_vm10 = vcmp.eq.s32.totalorder %v13799_v11, %v14308_v47  ;;  %vm3807_vm7 = vcmp.eq.s32.totalorder %v13801_v61, %v14308_v47 }
 0x2c2   : > { %14376 = vst [vmem:[#allocation83_spill] sm:$0xff] %v11013_v2  ;;  %14378 = vst [vmem:[#allocation79_spill] sm:$0xff] %v11017_v38  ;;  %vm3801_vm9 = vcmp.eq.s32.totalorder %v13799_v11, %v10158_v51  ;;  %v1779_v48 = vmul.f32 2.0, %v14381_v54  ;;  %v2390_v20 = vmin.f32 %v2389_v13, %v11017_v38  ;;  %v11035_v18 = vmin.f32 %v2463_v53, %v11020_v17 }
 0x2c3   : > { %14379 = vst [vmem:[#allocation69_spill] sm:$0xff] %v11020_v17  ;;  %vm6301_vm3 = vmpackc.low %vm3810_vm14, %vm3802_vm15  ;;  %vm3809_vm4 = vcmp.eq.s32.totalorder %v13801_v61, %v10158_v51  ;;  %v2497_v31 = vmin.f32 %v10992_v27, %v10995_v29  ;;  %vm3816_vm12 = vcmp.eq.s32.totalorder %v13803_v7, %v10577_v37  ;;  %vm3824_vm5 = vcmp.eq.s32.totalorder %v13805_v55, %v10577_v37  ;;  %v14426_v17 = vld [vmem:[#allocation173_spill] sm:$0xff] }
 0x2c4   : > { %6302 = vmatprep.subr.msk.bf16.mxu1 %vm6301_vm3, %v14316_v63  ;;  %vm6239_vm1 = vmpackc.low %vm3807_vm7, %vm3799_vm10  ;;  %vm3818_vm8 = vcmp.eq.s32.totalorder %v13803_v7, %v10595_v25  ;;  %v11050_v13 = vmin.f32 %v2423_v49, %v11013_v2  ;;  %v11053_v53 = vsub.f32 %v14351_v12, %v1771_v57  ;;  %v2391_v54 = vrot.slane %v2390_v20, 4 }
 0x2c5   : > { %6240 = vmatpush1.bf16.msk.msra.mxu0 %vm6239_vm1, %v14316_v63  ;;  %vm6303_vm11 = vmpackc.low %vm3809_vm4, %vm3801_vm9  ;;  %vm3826_vm13 = vcmp.eq.s32.totalorder %v13805_v55, %v10595_v25  ;;  %v11059_v27 = vsub.f32 %v14361_v36, %v1777_v46  ;;  %vm3815_vm15 = vcmp.eq.s32.totalorder %v13803_v7, %v14308_v47  ;;  %vm3823_vm2 = vcmp.eq.s32.totalorder %v13805_v55, %v14308_v47 }
 0x2c6   : > { %14382 = vst [vmem:[#allocation87_spill] sm:$0xff] %v11053_v53  ;;  %6304 = vmatpush1.bf16.msk.msra.mxu1 %vm6303_vm11, %v14316_v63  ;;  %vm6241_vm0 = vmpackc.low %vm3824_vm5, %vm3816_vm12  ;;  %vm3817_vm14 = vcmp.eq.s32.totalorder %v13803_v7, %v10158_v51  ;;  %v11069_v12 = vsub.f32 %v14361_v36, %v1779_v48  ;;  %v1785_v49 = vmul.f32 2.0, %v9934_v32  ;;  %v2392_v57 = vmin.f32 %v2390_v20, %v2391_v54 }
 0x2c7   : > { %14383 = vst [vmem:[#allocation90_spill] sm:$0xff] %v11059_v27  ;;  %6242 = vmatprep.subr.msk.bf16.mxu0 %vm6241_vm0, %v14316_v63  ;;  %vm6305_vm6 = vmpackc.low %vm3826_vm13, %vm3818_vm8  ;;  %vm3825_vm10 = vcmp.eq.s32.totalorder %v13805_v55, %v10158_v51  ;;  %v1787_v46 = vmul.f32 2.0, %v9960_v0  ;;  %vm3832_vm9 = vcmp.eq.s32.totalorder %v13807_v44, %v10577_v37  ;;  %vm3840_vm1 = vcmp.eq.s32.totalorder %v13812_v60, %v10577_v37 }
 0x2c8   : > { %14384 = vst [vmem:[#allocation92_spill] sm:$0xff] %v11069_v12  ;;  %6306 = vmatprep.subr.msk.bf16.mxu1 %vm6305_vm6, %v14316_v63  ;;  %vm6243_vm3 = vmpackc.low %vm3823_vm2, %vm3815_vm15  ;;  %vm3834_vm4 = vcmp.eq.s32.totalorder %v13807_v44, %v10595_v25  ;;  %v2393_v32 = vrot.slane %v2392_v57, 2  ;;  %v1793_v36 = vmul.f32 2.0, %v10241_v8  ;;  %v1795_v48 = vmul.f32 2.0, %v10469_v23 }
 0x2c9   : > { %6244 = vmatpush1.bf16.msk.msra.mxu0 %vm6243_vm3, %v14316_v63  ;;  %vm6307_vm7 = vmpackc.low %vm3825_vm10, %vm3817_vm14  ;;  %vm3842_vm12 = vcmp.eq.s32.totalorder %v13812_v60, %v10595_v25  ;;  %v2498_v0 = vmin.f32 %v2497_v31, %v11053_v53  ;;  %vm3831_vm8 = vcmp.eq.s32.totalorder %v13807_v44, %v14308_v47  ;;  %vm3839_vm0 = vcmp.eq.s32.totalorder %v13812_v60, %v14308_v47 }
 0x2ca   : > { %6308 = vmatpush1.bf16.msk.msra.mxu1 %vm6307_vm7, %v14316_v63  ;;  %vm6245_vm11 = vmpackc.low %vm3840_vm1, %vm3832_vm9  ;;  %vm3833_vm13 = vcmp.eq.s32.totalorder %v13807_v44, %v10158_v51  ;;  %v2425_v8 = vmin.f32 %v11050_v13, %v11059_v27  ;;  %v11099_v23 = vsub.f32 %v14372_v50, %v1785_v49  ;;  %v2394_v20 = vmin.f32 %v2392_v57, %v2393_v32  ;;  %v14390_v32 = vld [vmem:[#allocation12_spill] sm:$0xff] }
 0x2cb   : > { %6246 = vmatprep.subr.msk.bf16.mxu0 %vm6245_vm11, %v14316_v63  ;;  %vm6309_vm5 = vmpackc.low %vm3842_vm12, %vm3834_vm4  ;;  %vm3841_vm15 = vcmp.eq.s32.totalorder %v13812_v60, %v10158_v51  ;;  %v11105_v31 = vsub.f32 %v14372_v50, %v1787_v46  ;;  %vm3848_vm14 = vcmp.eq.s32.totalorder %v13814_v42, %v10577_v37  ;;  %vm3856_vm3 = vcmp.eq.s32.totalorder %v13816_v41, %v10577_v37  ;;  %v14389_v46 = vld [vmem:[#allocation190_spill] sm:$0xff] }
 0x2cc   : > { %14385 = vst [vmem:[#allocation93_spill] sm:$0xff] %v11099_v23  ;;  %6310 = vmatprep.subr.msk.bf16.mxu1 %vm6309_vm5, %v14316_v63  ;;  %vm6247_vm6 = vmpackc.low %vm3839_vm0, %vm3831_vm8  ;;  %vm3850_vm10 = vcmp.eq.s32.totalorder %v13814_v42, %v10595_v25  ;;  %v2499_v13 = vmin.f32 %v2498_v0, %v11069_v12  ;;  %v11116_v54 = vsub.f32 %v14377_v45, %v1793_v36  ;;  %v2395_v49 = vrot.slane %v2394_v20, 1  ;;  %v14392_v0 = vld [vmem:[#allocation13_spill] sm:$0xff] }
 0x2cd   : > { %14386 = vst [vmem:[#allocation97_spill] sm:$0xff] %v11105_v31  ;;  %6248 = vmatpush1.bf16.msk.msra.mxu0 %vm6247_vm6, %v14316_v63  ;;  %vm6311_vm2 = vmpackc.low %vm3841_vm15, %vm3833_vm13  ;;  %v11119_v50 = vsub.f32 %v14377_v45, %v1795_v48  ;;  %vm3858_vm9 = vcmp.eq.s32.totalorder %v13816_v41, %v10595_v25  ;;  %vm3847_vm4 = vcmp.eq.s32.totalorder %v13814_v42, %v14308_v47  ;;  %v14391_v36 = vrot.slane %v14390_v32, 4 }
 0x2ce   : > { %14387 = vst [vmem:[#allocation100_spill] sm:$0xff] %v11116_v54  ;;  %6312 = vmatpush1.bf16.msk.msra.mxu1 %vm6311_vm2, %v14316_v63  ;;  %vm6249_vm7 = vmpackc.low %vm3856_vm3, %vm3848_vm14  ;;  %vm3855_vm11 = vcmp.eq.s32.totalorder %v13816_v41, %v14308_v47  ;;  %vm3849_vm12 = vcmp.eq.s32.totalorder %v13814_v42, %v10158_v51  ;;  %vm3857_vm8 = vcmp.eq.s32.totalorder %v13816_v41, %v10158_v51  ;;  %v14393_v12 = vrot.slane %v14392_v0, 4 }
 0x2cf   : > { %14388 = vst [vmem:[#allocation103_spill] sm:$0xff] %v11119_v50  ;;  %6250 = vmatprep.subr.msk.bf16.mxu0 %vm6249_vm7, %v14316_v63  ;;  %vm6313_vm1 = vmpackc.low %vm3858_vm9, %vm3850_vm10  ;;  %v2426_v45 = vmin.f32 %v2425_v8, %v11099_v23  ;;  %v2500_v57 = vmin.f32 %v2499_v13, %v11105_v31  ;;  %vm3864_vm13 = vcmp.eq.s32.totalorder %v13819_v14, %v10577_v37  ;;  %v14394_v8 = vld [vmem:[#allocation160_spill] sm:$0xff]  ;;  %v14395_v13 = vld [vmem:[#allocation14_spill] sm:$0xff]  ;;  %v2465_v51 = vrot.slane %v11035_v18, 4 }
 0x2d0   : > { %6314 = vmatprep.subr.msk.bf16.mxu1 %vm6313_vm1, %v14316_v63  ;;  %vm6251_vm5 = vmpackc.low %vm3855_vm11, %vm3847_vm4  ;;  %vm3872_vm6 = vcmp.eq.s32.totalorder %v14389_v46, %v10577_v37  ;;  %v5156_v48 = vadd.f32 %v14391_v36, %v14390_v32  ;;  %v5182_v53 = vadd.f32 %v14393_v12, %v14392_v0  ;;  %v5144_v29 = vrot.slane %v14394_v8, 2 }
 0x2d1   : > { %6252 = vmatpush1.bf16.msk.msra.mxu0 %vm6251_vm5, %v14316_v63  ;;  %vm6315_vm0 = vmpackc.low %vm3857_vm8, %vm3849_vm12  ;;  %v5168_v31 = vrot.slane %v14395_v13, 4  ;;  %v11150_v15 = vmin.f32 %v2394_v20, %v2395_v49  ;;  %v2427_v37 = vmin.f32 %v2426_v45, %v11116_v54  ;;  %v2501_v47 = vmin.f32 %v2500_v57, %v11119_v50  ;;  %v14396_v45 = vld [vmem:[#allocation203_spill] sm:$0xff] }
 0x2d2   : > { %6316 = vmatpush1.bf16.msk.msra.mxu1 %vm6315_vm0, %v14316_v63  ;;  %vm6253_vm15 = vmpackc.low %vm3872_vm6, %vm3864_vm13  ;;  %v5157_v32 = vrot.slane %v5156_v48, 2  ;;  %v5183_v36 = vrot.slane %v5182_v53, 2  ;;  %v5145_v12 = vadd.f32 %v5144_v29, %v14394_v8  ;;  %v2466_v20 = vmin.f32 %v11035_v18, %v2465_v51 }
 0x2d3   : > { %6254 = vmatprep.subr.msk.bf16.mxu0 %vm6253_vm15, %v14316_v63  ;;  %v5169_v0 = vadd.f32 %v5168_v31, %v14395_v13  ;;  %v2428_v49 = vrot.slane %v2427_v37, 4  ;;  %v2502_v23 = vrot.slane %v2501_v47, 4  ;;  %vm2545_vm12 = vcmp.eq.f32.partialorder %v14108_v56, %v11150_v15 }
 0x2d4   : > { %v5146_v51 = vrot.slane %v5145_v12, 1  ;;  %v2467_v18 = vrot.slane %v2466_v20, 2  ;;  %vm2553_vm5 = vcmp.eq.f32.partialorder %v14396_v45, %v11150_v15  ;;  %v5158_v8 = vadd.f32 %v5157_v32, %v5156_v48  ;;  %v14398_v45 = vld [vmem:[#allocation75_spill] sm:$0xff] }
 0x2d5   : > { %v5170_v29 = vrot.slane %v5169_v0, 2  ;;  %v2429_v31 = vmin.f32 %v2427_v37, %v2428_v49  ;;  %v2503_v57 = vmin.f32 %v2501_v47, %v2502_v23  ;;  %v5184_v13 = vadd.f32 %v5183_v36, %v5182_v53 }
 0x2d6   : > { %v5147_v50 = vadd.f32 %v5146_v51, %v5145_v12  ;;  %v2801_v27 = vsel %vm2545_vm12, %v14303_v5, 256  ;;  %v2809_v2 = vsel %vm2553_vm5, %v14306_v19, 256  ;;  %v2468_v21 = vmin.f32 %v2466_v20, %v2467_v18  ;;  %v14405_v51 = vld [vmem:[#allocation223_spill] sm:$0xff] }
 0x2d7   : > { %v5171_v54 = vadd.f32 %v5170_v29, %v5169_v0  ;;  %v2430_v38 = vrot.slane %v2429_v31, 2  ;;  %vm2561_vm8 = vcmp.eq.f32.partialorder %v14397_v9, %v11150_v15  ;;  %v2504_v37 = vrot.slane %v2503_v57, 2  ;;  %v14406_v29 = vld [vmem:[#allocation166_spill] sm:$0xff] }
 0x2d8   : > { %v5159_v49 = vrot.slane %v5158_v8, 1  ;;  %v5185_v56 = vrot.slane %v5184_v13, 1  ;;  %vm2569_vm0 = vcmp.eq.f32.partialorder %v14398_v45, %v11150_v15  ;;  %vm3337_vm13 = vcmp.lt.s32.totalorder %v2801_v27, %v2809_v2 }
 0x2d9   : > { %v5172_v4 = vrot.slane %v5171_v54, 1  ;;  %v11188_v47 = vadd.f32 %v5147_v50, %v11150_v15  ;;  %v2817_v53 = vsel %vm2561_vm8, %v14310_v58, 256  ;;  %v3338_v23 = vsel %vm3337_vm13, %v2801_v27, %v2809_v2  ;;  %v14424_v27 = vld [vmem:[#allocation170_spill] sm:$0xff] }
 0x2da   : > { %v2469_v48 = vrot.slane %v2468_v21, 1  ;;  %v11191_v32 = vmin.f32 %v2429_v31, %v2430_v38  ;;  %vm2577_vm6 = vcmp.eq.f32.partialorder %v10123_v30, %v11150_v15  ;;  %vm3339_vm15 = vcmp.lt.s32.totalorder %v3338_v23, %v2817_v53 }
 0x2db   : > { %14399 = vst [vmem:[#allocation106_spill] sm:$0xff] %v11188_v47  ;;  %v11195_v9 = vmin.f32 %v2503_v57, %v2504_v37  ;;  %v11197_v36 = vadd.f32 %v5159_v49, %v5158_v8  ;;  %v2825_v12 = vsel %vm2569_vm0, %v14047_v33, 256  ;;  %v3340_v0 = vsel %vm3339_vm15, %v3338_v23, %v2817_v53  ;;  %v14407_v57 = vld [vmem:[#allocation159_spill] sm:$0xff]  ;;  %v14410_v37 = vld [vmem:[#allocation188_spill] sm:$0xff]  ;;  %v14412_v53 = vld [vmem:[#allocation197_spill] sm:$0xff] }
 0x2dc   : > { %v11200_v20 = vadd.f32 %v5185_v56, %v5184_v13  ;;  %v11202_v50 = vadd.f32 %v5172_v4, %v5171_v54  ;;  %vm2585_vm12 = vcmp.eq.f32.partialorder %v10139_v34, %v11150_v15  ;;  %vm3341_vm5 = vcmp.lt.s32.totalorder %v3340_v0, %v2825_v12  ;;  %v14403_v54 = vld [vmem:[#allocation157_spill] sm:$0xff]  ;;  %v14408_v8 = vld [vmem:[#allocation31_spill] sm:$0xff]  ;;  %v14409_v13 = vld [vmem:[#allocation184_spill] sm:$0xff] }
 0x2dd   : > { %14400 = vst [vmem:[#allocation109_spill] sm:$0xff] %v11195_v9  ;;  %14401 = vst [vmem:[#allocation72_spill] sm:$0xff] %v11197_v36  ;;  %v2833_v2 = vsel %vm2577_vm6, %v14321_v1, 256  ;;  %v3342_v38 = vsel %vm3341_vm5, %v3340_v0, %v2825_v12  ;;  %v11207_v30 = vmin.f32 %v2468_v21, %v2469_v48  ;;  %vm2593_vm8 = vcmp.eq.f32.partialorder %v10172_v16, %v11150_v15  ;;  %v14404_v16 = vld [vmem:[#allocation133_spill] sm:$0xff]  ;;  %v14411_v49 = vld [vmem:[#allocation167_spill] sm:$0xff] }
 0x2de   : > { %14402 = vst [vmem:[#allocation74_spill] sm:$0xff] %v11200_v20  ;;  %vm2601_vm0 = vcmp.eq.f32.partialorder %v10204_v59, %v11150_v15  ;;  %vm3343_vm13 = vcmp.lt.s32.totalorder %v3342_v38, %v2833_v2  ;;  %vm2609_vm15 = vcmp.eq.f32.partialorder %v10221_v62, %v11150_v15  ;;  %vm2617_vm6 = vcmp.eq.f32.partialorder %v10251_v10, %v11150_v15  ;;  %v14413_v23 = vld [vmem:[#allocation200_spill] sm:$0xff]  ;;  %v14414_v48 = vld [vmem:[#allocation37_spill] sm:$0xff]  ;;  %v14425_v20 = vld [vmem:[#allocation171_spill] sm:$0xff] }
 0x2df   : > { %v2841_v34 = vsel %vm2585_vm12, %v14322_v6, 256  ;;  %v3344_v21 = vsel %vm3343_vm13, %v3342_v38, %v2833_v2  ;;  %vm2625_vm5 = vcmp.eq.f32.partialorder %v14403_v54, %v11150_v15  ;;  %vm2633_vm11 = vcmp.eq.f32.partialorder %v14404_v16, %v11150_v15  ;;  %v14415_v12 = vld [vmem:[#allocation217_spill] sm:$0xff]  ;;  %v14416_v0 = vld [vmem:[#allocation224_spill] sm:$0xff] }
 0x2e0   : > { %vm2641_vm4 = vcmp.eq.f32.partialorder %v14405_v51, %v11150_v15  ;;  %vm3345_vm1 = vcmp.lt.s32.totalorder %v3344_v21, %v2841_v34  ;;  %v2849_v18 = vsel %vm2593_vm8, %v14406_v29, 256  ;;  %vm2649_vm8 = vcmp.eq.f32.partialorder %v14409_v13, %v11150_v15  ;;  %v14417_v2 = vld [vmem:[#allocation168_spill] sm:$0xff] }
 0x2e1   : > { %v3346_v31 = vsel %vm3345_vm1, %v3344_v21, %v2841_v34  ;;  %vm2657_vm1 = vcmp.eq.f32.partialorder %v14410_v37, %v11150_v15  ;;  %v2857_v56 = vsel %vm2601_vm0, %v14411_v49, 256  ;;  %vm2665_vm7 = vcmp.eq.f32.partialorder %v14412_v53, %v11150_v15  ;;  %v14418_v34 = vld [vmem:[#allocation39_spill] sm:$0xff]  ;;  %v14419_v21 = vld [vmem:[#allocation48_spill] sm:$0xff] }
 0x2e2   : > { %vm3347_vm13 = vcmp.lt.s32.totalorder %v3346_v31, %v2849_v18  ;;  %vm2673_vm10 = vcmp.eq.f32.partialorder %v14413_v23, %v11150_v15  ;;  %vm2697_vm14 = vcmp.eq.f32.partialorder %v14416_v0, %v11150_v15  ;;  %v2865_v59 = vsel %vm2609_vm15, %v14417_v2, 256  ;;  %v14430_v23 = vld [vmem:[#allocation222_spill] sm:$0xff] }
 0x2e3   : > { %v3348_v45 = vsel %vm3347_vm13, %v3346_v31, %v2849_v18  ;;  %vm2705_vm0 = vcmp.eq.f32.partialorder %v14418_v34, %v11150_v15  ;;  %vm2713_vm13 = vcmp.eq.f32.partialorder %v14419_v21, %v11150_v15  ;;  %v14420_v18 = vld [vmem:[#allocation85_spill] sm:$0xff]  ;;  %vm3866_vm9 = vcmp.eq.s32.totalorder %v13819_v14, %v10595_v25 }
 0x2e4   : > { %vm3349_vm12 = vcmp.lt.s32.totalorder %v3348_v45, %v2857_v56  ;;  %vm2721_vm2 = vcmp.eq.f32.partialorder %v14420_v18, %v11150_v15  ;;  %v14421_v31 = vld [vmem:[#allocation169_spill] sm:$0xff]  ;;  %v2881_v47 = vsel %vm2625_vm5, %v14424_v27, 256  ;;  %v2889_v9 = vsel %vm2633_vm11, %v14425_v20, 256 }
 0x2e5   : > { %v3350_v38 = vsel %vm3349_vm12, %v3348_v45, %v2857_v56  ;;  %v2873_v62 = vsel %vm2617_vm6, %v14421_v31, 256  ;;  %v14422_v56 = vld [vmem:[#allocation211_spill] sm:$0xff]  ;;  %v2897_v10 = vsel %vm2641_vm4, %v14426_v17, 256  ;;  %v2913_v54 = vsel %vm2657_vm1, %v14368_v40, 256 }
 0x2e6   : > { %vm3351_vm3 = vcmp.lt.s32.totalorder %v3350_v38, %v2865_v59  ;;  %vm2547_vm15 = vcmp.eq.f32.partialorder %v14422_v56, %v11207_v30  ;;  %v14423_v45 = vld [vmem:[#allocation207_spill] sm:$0xff]  ;;  %v2921_v16 = vsel %vm2665_vm7, %v14369_v22, 256  ;;  %v2929_v51 = vsel %vm2673_vm10, %v13799_v11, 256 }
 0x2e7   : > { %v3352_v4 = vsel %vm3351_vm3, %v3350_v38, %v2865_v59  ;;  %vm2555_vm12 = vcmp.eq.f32.partialorder %v14423_v45, %v11207_v30  ;;  %v14427_v59 = vld [vmem:[#allocation174_spill] sm:$0xff]  ;;  %v2803_v13 = vsel %vm2547_vm15, %v14303_v5, 256  ;;  %vm14428_vm11 = vcmp.eq.f32.partialorder %v14414_v48, %v11150_v15 }
 0x2e8   : > { %vm3353_vm3 = vcmp.lt.s32.totalorder %v3352_v4, %v2873_v62  ;;  %v2905_v38 = vsel %vm2649_vm8, %v14427_v59, 256  ;;  %v2811_v45 = vsel %vm2555_vm12, %v14306_v19, 256  ;;  %v2937_v37 = vsel %vm14428_vm11, %v13801_v61, 256 }
 0x2e9   : > { %v3354_v56 = vsel %vm3353_vm3, %v3352_v4, %v2873_v62  ;;  %vm14429_vm7 = vcmp.eq.f32.partialorder %v14415_v12, %v11150_v15  ;;  %vm2563_vm10 = vcmp.eq.f32.partialorder %v14430_v23, %v11207_v30  ;;  %v11321_v62 = vsel %vm2697_vm14, %v13805_v55, 256 }
 0x2ea   : > { %vm3355_vm4 = vcmp.lt.s32.totalorder %v3354_v56, %v2881_v47  ;;  %v11313_v4 = vsel %vm14429_vm7, %v13803_v7, 256  ;;  %v11327_v48 = vsel %vm2705_vm0, %v13807_v44, 256  ;;  %v11339_v12 = vsel %vm2721_vm2, %v13814_v42, 256 }
 0x2eb   : > { %v3356_v53 = vsel %vm3355_vm4, %v3354_v56, %v2881_v47  ;;  %v11333_v47 = vsel %vm2713_vm13, %v13812_v60, 256  ;;  %v14431_v56 = vld [vmem:[#allocation80_spill] sm:$0xff]  ;;  %vm3479_vm5 = vcmp.lt.s32.totalorder %v2803_v13, %v2811_v45  ;;  %v2819_v34 = vsel %vm2563_vm10, %v14310_v58, 256 }
 0x2ec   : > { %vm3357_vm6 = vcmp.lt.s32.totalorder %v3356_v53, %v2889_v9  ;;  %vm2571_vm14 = vcmp.eq.f32.partialorder %v14431_v56, %v11207_v30  ;;  %v3480_v23 = vsel %vm3479_vm5, %v2803_v13, %v2811_v45  ;;  %v11346_v21 = vadd.f32 %v11202_v50, %v11207_v30 }
 0x2ed   : > { %v3358_v0 = vsel %vm3357_vm6, %v3356_v53, %v2889_v9  ;;  %vm14433_vm1 = vcmp.eq.f32.partialorder %v10631_v52, %v11150_v15  ;;  %v14434_v9 = vld [vmem:[#allocation98_spill] sm:$0xff]  ;;  %vm3481_vm0 = vcmp.lt.s32.totalorder %v3480_v23, %v2819_v34  ;;  %v2827_v53 = vsel %vm2571_vm14, %v14047_v33, 256 }
 0x2ee   : > { %vm3359_vm8 = vcmp.lt.s32.totalorder %v3358_v0, %v2897_v10  ;;  %14432 = vst [vmem:[#allocation110_spill] sm:$0xff] %v11346_v21  ;;  %v11352_v18 = vsel %vm14433_vm1, %v13816_v41, 256  ;;  %vm2579_vm2 = vcmp.eq.f32.partialorder %v14434_v9, %v11207_v30  ;;  %v3482_v56 = vsel %vm3481_vm0, %v3480_v23, %v2819_v34  ;;  %v14440_v34 = vld [vmem:[#allocation125_spill] sm:$0xff]  ;;  %v14449_v21 = vld [vmem:[#allocation202_spill] sm:$0xff] }
 0x2ef   : > { %v3360_v36 = vsel %vm3359_vm8, %v3358_v0, %v2897_v10  ;;  %vm3874_vm15 = vcmp.eq.s32.totalorder %v14389_v46, %v10595_v25  ;;  %vm14435_vm12 = vcmp.eq.f32.partialorder %v10672_v43, %v11150_v15  ;;  %v14436_v10 = vld [vmem:[#allocation112_spill] sm:$0xff]  ;;  %vm3483_vm4 = vcmp.lt.s32.totalorder %v3482_v56, %v2827_v53  ;;  %v14450_v25 = vld [vmem:[#allocation65_spill] sm:$0xff] }
 0x2f0   : > { %vm3361_vm13 = vcmp.lt.s32.totalorder %v3360_v36, %v2905_v38  ;;  %v11363_v50 = vsel %vm14435_vm12, %v13819_v14, 256  ;;  %vm2587_vm3 = vcmp.eq.f32.partialorder %v14436_v10, %v11207_v30  ;;  %vm6317_vm11 = vmpackc.low %vm3874_vm15, %vm3866_vm9  ;;  %vm14437_vm7 = vcmp.eq.f32.partialorder %v10708_v28, %v11150_v15  ;;  %v14441_v28 = vld [vmem:[#allocation192_spill] sm:$0xff]  ;;  %v14446_v10 = vld [vmem:[#allocation201_spill] sm:$0xff] }
 0x2f1   : > { %v3362_v52 = vsel %vm3361_vm13, %v3360_v36, %v2905_v38  ;;  %v11374_v13 = vsel %vm14437_vm7, %v14389_v46, 256  ;;  %v2835_v43 = vsel %vm2579_vm2, %v14321_v1, 256  ;;  %v3484_v45 = vsel %vm3483_vm4, %v3482_v56, %v2827_v53  ;;  %6318 = vmatprep.subr.msk.bf16.mxu1 %vm6317_vm11, %v14316_v63  ;;  %v14438_v36 = vld [vmem:[#allocation191_spill] sm:$0xff]  ;;  %v14443_v56 = vld [vmem:[#allocation194_spill] sm:$0xff] }
 0x2f2   : > { %vm3363_vm10 = vcmp.lt.s32.totalorder %v3362_v52, %v2913_v54  ;;  %vm14439_vm6 = vcmp.eq.f32.partialorder %v10773_v24, %v11150_v15  ;;  %vm2595_vm9 = vcmp.eq.f32.partialorder %v14440_v34, %v11207_v30  ;;  %vm3485_vm14 = vcmp.lt.s32.totalorder %v3484_v45, %v2835_v43  ;;  %v14447_v34 = vld [vmem:[#allocation60_spill] sm:$0xff]  ;;  %v14454_v63 = vld [vmem:[#allocation79_spill] sm:$0xff] }
 0x2f3   : > { %v11382_v38 = vsel %vm14439_vm6, %v14438_v36, 256  ;;  %v3364_v0 = vsel %vm3363_vm10, %v3362_v52, %v2913_v54  ;;  %vm14442_vm5 = vcmp.eq.f32.partialorder %v10822_v39, %v11150_v15  ;;  %v2843_v9 = vsel %vm2587_vm3, %v14322_v6, 256  ;;  %v14445_v52 = vld [vmem:[#allocation131_spill] sm:$0xff] }
 0x2f4   : > { %v11390_v23 = vsel %vm14442_vm5, %v14441_v28, 256  ;;  %vm3365_vm8 = vcmp.lt.s32.totalorder %v3364_v0, %v2921_v16  ;;  %v3486_v53 = vsel %vm3485_vm14, %v3484_v45, %v2835_v43  ;;  %vm14444_vm1 = vcmp.eq.f32.partialorder %v10864_v3, %v11150_v15 }
 0x2f5   : > { %v11397_v24 = vsel %vm14444_vm1, %v14443_v56, 256  ;;  %v3366_v54 = vsel %vm3365_vm8, %v3364_v0, %v2921_v16  ;;  %vm2603_vm2 = vcmp.eq.f32.partialorder %v14445_v52, %v11207_v30  ;;  %vm3487_vm0 = vcmp.lt.s32.totalorder %v3486_v53, %v2843_v9  ;;  %v14452_v0 = vld [vmem:[#allocation143_spill] sm:$0xff]  ;;  %v14453_v52 = vld [vmem:[#allocation206_spill] sm:$0xff] }
 0x2f6   : > { %vm14448_vm13 = vcmp.eq.f32.partialorder %v14447_v34, %v11150_v15  ;;  %vm3367_vm15 = vcmp.lt.s32.totalorder %v3366_v54, %v2929_v51  ;;  %v2851_v43 = vsel %vm2595_vm9, %v14406_v29, 256  ;;  %v3488_v45 = vsel %vm3487_vm0, %v3486_v53, %v2843_v9 }
 0x2f7   : > { %v11405_v39 = vsel %vm14448_vm13, %v14446_v10, 256  ;;  %vm14451_vm12 = vcmp.eq.f32.partialorder %v14450_v25, %v11150_v15  ;;  %v3368_v16 = vsel %vm3367_vm15, %v3366_v54, %v2929_v51  ;;  %vm2611_vm3 = vcmp.eq.f32.partialorder %v14452_v0, %v11207_v30  ;;  %v14456_v25 = vld [vmem:[#allocation152_spill] sm:$0xff] }
 0x2f8   : > { %v11412_v3 = vsel %vm14451_vm12, %v14449_v21, 256  ;;  %vm3489_vm4 = vcmp.lt.s32.totalorder %v3488_v45, %v2851_v43  ;;  %vm14455_vm11 = vcmp.eq.f32.partialorder %v14454_v63, %v11150_v15  ;;  %vm3369_vm7 = vcmp.lt.s32.totalorder %v3368_v16, %v2937_v37  ;;  %v14457_v51 = vld [vmem:[#allocation28_spill] sm:$0xff] }
 0x2f9   : > { %v11420_v34 = vsel %vm14455_vm11, %v14453_v52, 256  ;;  %v2859_v9 = vsel %vm2603_vm2, %v14411_v49, 256  ;;  %v3490_v53 = vsel %vm3489_vm4, %v3488_v45, %v2851_v43  ;;  %v3370_v29 = vsel %vm3369_vm7, %v3368_v16, %v2937_v37  ;;  %v14458_v54 = vld [vmem:[#allocation220_spill] sm:$0xff]  ;;  %v14460_v37 = vld [vmem:[#allocation15_spill] sm:$0xff] }
 0x2fa   : > { %vm2619_vm10 = vcmp.eq.f32.partialorder %v14456_v25, %v11207_v30  ;;  %vm2627_vm6 = vcmp.eq.f32.partialorder %v14457_v51, %v11207_v30  ;;  %vm3491_vm9 = vcmp.lt.s32.totalorder %v3490_v53, %v2859_v9  ;;  %vm3371_vm14 = vcmp.lt.s32.totalorder %v3370_v29, %v11313_v4  ;;  %v14459_v43 = vld [vmem:[#allocation24_spill] sm:$0xff]  ;;  %v14461_v45 = vld [vmem:[#allocation195_spill] sm:$0xff] }
 0x2fb   : > { %vm2635_vm5 = vcmp.eq.f32.partialorder %v14458_v54, %v11207_v30  ;;  %v2867_v63 = vsel %vm2611_vm3, %v14417_v2, 256  ;;  %v3492_v15 = vsel %vm3491_vm9, %v3490_v53, %v2859_v9  ;;  %v3372_v0 = vsel %vm3371_vm14, %v3370_v29, %v11313_v4  ;;  %v14462_v9 = vld [vmem:[#allocation199_spill] sm:$0xff]  ;;  %v14463_v29 = vld [vmem:[#allocation33_spill] sm:$0xff] }
 0x2fc   : > { %vm2643_vm8 = vcmp.eq.f32.partialorder %v14459_v43, %v11207_v30  ;;  %vm2651_vm1 = vcmp.eq.f32.partialorder %v14460_v37, %v11207_v30  ;;  %vm3493_vm2 = vcmp.lt.s32.totalorder %v3492_v15, %v2867_v63  ;;  %vm3373_vm0 = vcmp.lt.s32.totalorder %v3372_v0, %v11321_v62  ;;  %v14464_v4 = vld [vmem:[#allocation205_spill] sm:$0xff] }
 0x2fd   : > { %vm2659_vm13 = vcmp.eq.f32.partialorder %v14461_v45, %v11207_v30  ;;  %v2875_v16 = vsel %vm2619_vm10, %v14421_v31, 256  ;;  %v3494_v25 = vsel %vm3493_vm2, %v3492_v15, %v2867_v63  ;;  %v3374_v2 = vsel %vm3373_vm0, %v3372_v0, %v11321_v62  ;;  %v14465_v15 = vld [vmem:[#allocation216_spill] sm:$0xff]  ;;  %v14466_v0 = vld [vmem:[#allocation42_spill] sm:$0xff] }
 0x2fe   : > { %vm2667_vm15 = vcmp.eq.f32.partialorder %v14462_v9, %v11207_v30  ;;  %vm2675_vm12 = vcmp.eq.f32.partialorder %v14463_v29, %v11207_v30  ;;  %vm3495_vm3 = vcmp.lt.s32.totalorder %v3494_v25, %v2875_v16  ;;  %vm3375_vm4 = vcmp.lt.s32.totalorder %v3374_v2, %v11327_v48  ;;  %v14467_v31 = vld [vmem:[#allocation44_spill] sm:$0xff] }
 0x2ff   : > { %vm2683_vm11 = vcmp.eq.f32.partialorder %v14464_v4, %v11207_v30  ;;  %v2883_v53 = vsel %vm2627_vm6, %v14424_v27, 256  ;;  %v3496_v63 = vsel %vm3495_vm3, %v3494_v25, %v2875_v16  ;;  %v3376_v62 = vsel %vm3375_vm4, %v3374_v2, %v11327_v48  ;;  %v14468_v48 = vld [vmem:[#allocation54_spill] sm:$0xff]  ;;  %v14470_v27 = vld [vmem:[#allocation55_spill] sm:$0xff] }
 0x300   : > { %vm2691_vm7 = vcmp.eq.f32.partialorder %v14465_v15, %v11207_v30  ;;  %vm2699_vm10 = vcmp.eq.f32.partialorder %v14466_v0, %v11207_v30  ;;  %vm3497_vm9 = vcmp.lt.s32.totalorder %v3496_v63, %v2883_v53  ;;  %vm3377_vm14 = vcmp.lt.s32.totalorder %v3376_v62, %v11333_v47  ;;  %v14469_v25 = vld [vmem:[#allocation178_spill] sm:$0xff] }
 0x301   : > { %v2891_v51 = vsel %vm2635_vm5, %v14425_v20, 256  ;;  %v3498_v16 = vsel %vm3497_vm9, %v3496_v63, %v2883_v53  ;;  %v3378_v2 = vsel %vm3377_vm14, %v3376_v62, %v11333_v47  ;;  %vm2715_vm6 = vcmp.eq.f32.partialorder %v14468_v48, %v11207_v30  ;;  %v14471_v63 = vld [vmem:[#allocation22_spill] sm:$0xff]  ;;  %v14472_v62 = vld [vmem:[#allocation59_spill] sm:$0xff]  ;;  %v14473_v20 = vld [vmem:[#allocation17_spill] sm:$0xff] }
 0x302   : > { %vm3499_vm3 = vcmp.lt.s32.totalorder %v3498_v16, %v2891_v51  ;;  %vm3379_vm4 = vcmp.lt.s32.totalorder %v3378_v2, %v11339_v12  ;;  %v2899_v54 = vsel %vm2643_vm8, %v14426_v17, 256  ;;  %vm2739_vm5 = vcmp.eq.f32.partialorder %v14471_v63, %v11207_v30 }
 0x303   : > { %v3500_v53 = vsel %vm3499_vm3, %v3498_v16, %v2891_v51  ;;  %v3380_v47 = vsel %vm3379_vm4, %v3378_v2, %v11339_v12  ;;  %vm2747_vm9 = vcmp.eq.f32.partialorder %v14472_v62, %v11207_v30  ;;  %vm2755_vm2 = vcmp.eq.f32.partialorder %v14473_v20, %v11207_v30 }
 0x304   : > { %vm3501_vm14 = vcmp.lt.s32.totalorder %v3500_v53, %v2899_v54  ;;  %vm3381_vm0 = vcmp.lt.s32.totalorder %v3380_v47, %v11352_v18  ;;  %v2907_v43 = vsel %vm2651_vm1, %v14427_v59, 256  ;;  %v2915_v16 = vsel %vm2659_vm13, %v14368_v40, 256 }
 0x305   : > { %v3502_v51 = vsel %vm3501_vm14, %v3500_v53, %v2899_v54  ;;  %v3382_v12 = vsel %vm3381_vm0, %v3380_v47, %v11352_v18  ;;  %v2923_v2 = vsel %vm2667_vm15, %v14369_v22, 256  ;;  %v2931_v37 = vsel %vm2675_vm12, %v13799_v11, 256 }
 0x306   : > { %vm3503_vm8 = vcmp.lt.s32.totalorder %v3502_v51, %v2907_v43  ;;  %vm3383_vm3 = vcmp.lt.s32.totalorder %v3382_v12, %v11363_v50  ;;  %v2939_v18 = vsel %vm2683_vm11, %v13801_v61, 256  ;;  %v2947_v9 = vsel %vm2691_vm7, %v13803_v7, 256 }
 0x307   : > { %v3504_v45 = vsel %vm3503_vm8, %v3502_v51, %v2907_v43  ;;  %v3384_v54 = vsel %vm3383_vm3, %v3382_v12, %v11363_v50  ;;  %v14474_v53 = vrot.slane %v11191_v32, 1  ;;  %v2955_v29 = vsel %vm2699_vm10, %v13805_v55, 256  ;;  %v14479_v51 = vld [vmem:[#allocation208_spill] sm:$0xff] }
 0x308   : > { %vm3505_vm1 = vcmp.lt.s32.totalorder %v3504_v45, %v2915_v16  ;;  %vm3385_vm13 = vcmp.lt.s32.totalorder %v3384_v54, %v11374_v13  ;;  %vm14475_vm15 = vcmp.eq.f32.partialorder %v14467_v31, %v11207_v30  ;;  %vm14476_vm12 = vcmp.eq.f32.partialorder %v14469_v25, %v11207_v30  ;;  %v14478_v25 = vld [vmem:[#allocation212_spill] sm:$0xff] }
 0x309   : > { %v11514_v47 = vmin.f32 %v11191_v32, %v14474_v53  ;;  %v2963_v50 = vsel %vm14475_vm15, %v13807_v44, 256  ;;  %v3506_v4 = vsel %vm3505_vm1, %v3504_v45, %v2915_v16  ;;  %v3386_v15 = vsel %vm3385_vm13, %v3384_v54, %v11374_v13  ;;  %v14486_v54 = vld [vmem:[#allocation72_spill] sm:$0xff] }
 0x30a   : > { %v2971_v32 = vsel %vm2715_vm6, %v13812_v60, 256  ;;  %v2979_v43 = vsel %vm14476_vm12, %v13814_v42, 256  ;;  %vm3507_vm11 = vcmp.lt.s32.totalorder %v3506_v4, %v2923_v2  ;;  %vm3387_vm7 = vcmp.lt.s32.totalorder %v3386_v15, %v11382_v38 }
 0x30b   : > { %vm14477_vm10 = vcmp.eq.f32.partialorder %v14470_v27, %v11207_v30  ;;  %v11545_v13 = vsel %vm2739_vm5, %v13819_v14, 256  ;;  %v3508_v0 = vsel %vm3507_vm11, %v3506_v4, %v2923_v2  ;;  %v3388_v48 = vsel %vm3387_vm7, %v3386_v15, %v11382_v38 }
 0x30c   : > { %v11539_v31 = vsel %vm14477_vm10, %v13816_v41, 256  ;;  %vm3509_vm6 = vcmp.lt.s32.totalorder %v3508_v0, %v2931_v37  ;;  %vm2546_vm0 = vcmp.eq.f32.partialorder %v14478_v25, %v11514_v47  ;;  %vm2554_vm4 = vcmp.eq.f32.partialorder %v14479_v51, %v11514_v47 }
 0x30d   : > { %vm3389_vm14 = vcmp.lt.s32.totalorder %v3388_v48, %v11390_v23  ;;  %v11557_v27 = vsel %vm2747_vm9, %v14389_v46, 256  ;;  %v11563_v38 = vsel %vm2755_vm2, %v14438_v36, 256  ;;  %v3510_v63 = vsel %vm3509_vm6, %v3508_v0, %v2931_v37 }
 0x30e   : > { %v3390_v12 = vsel %vm3389_vm14, %v3388_v48, %v11390_v23  ;;  %vm14480_vm5 = vcmp.eq.f32.partialorder %v14407_v57, %v11207_v30  ;;  %vm14481_vm9 = vcmp.eq.f32.partialorder %v14408_v8, %v11207_v30  ;;  %vm3511_vm8 = vcmp.lt.s32.totalorder %v3510_v63, %v2939_v18  ;;  %v14483_v8 = vld [vmem:[#allocation62_spill] sm:$0xff] }
 0x30f   : > { %v11570_v16 = vsel %vm14480_vm5, %v14441_v28, 256  ;;  %v11576_v62 = vsel %vm14481_vm9, %v14443_v56, 256  ;;  %vm3391_vm3 = vcmp.lt.s32.totalorder %v3390_v12, %v11397_v24  ;;  %v3512_v20 = vsel %vm3511_vm8, %v3510_v63, %v2939_v18 }
 0x310   : > { %v2802_v2 = vsel %vm2546_vm0, %v14303_v5, 256  ;;  %v2810_v23 = vsel %vm2554_vm4, %v14306_v19, 256  ;;  %v3392_v37 = vsel %vm3391_vm3, %v3390_v12, %v11397_v24  ;;  %vm14482_vm2 = vcmp.eq.f32.partialorder %v10926_v35, %v11207_v30  ;;  %v14485_v24 = vld [vmem:[#allocation84_spill] sm:$0xff] }
 0x311   : > { %v11586_v57 = vsel %vm14482_vm2, %v14446_v10, 256  ;;  %vm3513_vm1 = vcmp.lt.s32.totalorder %v3512_v20, %v2947_v9  ;;  %vm2562_vm13 = vcmp.eq.f32.partialorder %v14483_v8, %v11514_v47  ;;  %vm3393_vm15 = vcmp.lt.s32.totalorder %v3392_v37, %v11405_v39 }
 0x312   : > { %vm14484_vm12 = vcmp.eq.f32.partialorder %v10975_v26, %v11207_v30  ;;  %v3514_v45 = vsel %vm3513_vm1, %v3512_v20, %v2947_v9  ;;  %vm2570_vm11 = vcmp.eq.f32.partialorder %v14485_v24, %v11514_v47  ;;  %v3394_v35 = vsel %vm3393_vm15, %v3392_v37, %v11405_v39  ;;  %v14488_v9 = vld [vmem:[#allocation101_spill] sm:$0xff]  ;;  %v14496_v24 = vld [vmem:[#allocation146_spill] sm:$0xff] }
 0x313   : > { %v11595_v18 = vsel %vm14484_vm12, %v14449_v21, 256  ;;  %vm3515_vm7 = vcmp.lt.s32.totalorder %v3514_v45, %v2955_v29  ;;  %vm3408_vm10 = vcmp.lt.s32.totalorder %v2802_v2, %v2810_v23  ;;  %v11602_v53 = vadd.f32 %v14486_v54, %v11514_v47 }
 0x314   : > { %vm3395_vm6 = vcmp.lt.s32.totalorder %v3394_v35, %v11412_v3  ;;  %v3516_v4 = vsel %vm3515_vm7, %v3514_v45, %v2955_v29  ;;  %v2818_v15 = vsel %vm2562_vm13, %v14310_v58, 256  ;;  %v3409_v26 = vsel %vm3408_vm10, %v2802_v2, %v2810_v23  ;;  %v14489_v29 = vld [vmem:[#allocation115_spill] sm:$0xff]  ;;  %v14495_v45 = vld [vmem:[#allocation134_spill] sm:$0xff] }
 0x315   : > { %14487 = vst [vmem:[#allocation114_spill] sm:$0xff] %v11602_v53  ;;  %v3396_v0 = vsel %vm3395_vm6, %v3394_v35, %v11412_v3  ;;  %vm3517_vm0 = vcmp.lt.s32.totalorder %v3516_v4, %v2963_v50  ;;  %vm2578_vm4 = vcmp.eq.f32.partialorder %v14488_v9, %v11514_v47  ;;  %vm3410_vm14 = vcmp.lt.s32.totalorder %v3409_v26, %v2818_v15  ;;  %v14490_v3 = vld [vmem:[#allocation69_spill] sm:$0xff]  ;;  %v14492_v2 = vld [vmem:[#allocation163_spill] sm:$0xff]  ;;  %v14501_v9 = vld [vmem:[#allocation136_spill] sm:$0xff] }
 0x316   : > { %vm3397_vm5 = vcmp.lt.s32.totalorder %v3396_v0, %v11420_v34  ;;  %v3518_v39 = vsel %vm3517_vm0, %v3516_v4, %v2963_v50  ;;  %v2826_v48 = vsel %vm2570_vm11, %v14047_v33, 256  ;;  %v3411_v25 = vsel %vm3410_vm14, %v3409_v26, %v2818_v15  ;;  %v14497_v35 = vld [vmem:[#allocation155_spill] sm:$0xff]  ;;  %v14498_v4 = vld [vmem:[#allocation172_spill] sm:$0xff]  ;;  %v14519_v53 = vld [vmem:[#allocation66_spill] sm:$0xff] }
 0x317   : > { %v11612_v51 = vsel %vm3397_vm5, %v3396_v0, %v11420_v34  ;;  %vm3519_vm9 = vcmp.lt.s32.totalorder %v3518_v39, %v2971_v32  ;;  %vm2586_vm8 = vcmp.eq.f32.partialorder %v14489_v29, %v11514_v47  ;;  %vm3412_vm3 = vcmp.lt.s32.totalorder %v3411_v25, %v2826_v48  ;;  %v14493_v34 = vld [vmem:[#allocation109_spill] sm:$0xff]  ;;  %v14500_v0 = vld [vmem:[#allocation16_spill] sm:$0xff] }
 0x318   : > { %vm14491_vm2 = vcmp.eq.f32.partialorder %v14490_v3, %v11207_v30  ;;  %v3520_v12 = vsel %vm3519_vm9, %v3518_v39, %v2971_v32  ;;  %v2834_v50 = vsel %vm2578_vm4, %v14321_v1, 256  ;;  %v3413_v20 = vsel %vm3412_vm3, %v3411_v25, %v2826_v48  ;;  %v14502_v48 = vld [vmem:[#allocation139_spill] sm:$0xff]  ;;  %v14503_v29 = vld [vmem:[#allocation193_spill] sm:$0xff]  ;;  %v14504_v3 = vld [vmem:[#allocation198_spill] sm:$0xff] }
 0x319   : > { %v11620_v63 = vsel %vm14491_vm2, %v14453_v52, 256  ;;  %vm3521_vm1 = vcmp.lt.s32.totalorder %v3520_v12, %v2979_v43  ;;  %vm2594_vm13 = vcmp.eq.f32.partialorder %v14492_v2, %v11514_v47  ;;  %vm3414_vm15 = vcmp.lt.s32.totalorder %v3413_v20, %v2834_v50 }
 0x31a   : > { %v14494_v23 = vrot.slane %v14493_v34, 1  ;;  %v3522_v8 = vsel %vm3521_vm1, %v3520_v12, %v2979_v43  ;;  %vm2602_vm12 = vcmp.eq.f32.partialorder %v14495_v45, %v11514_v47  ;;  %v2842_v30 = vsel %vm2586_vm8, %v14322_v6, 256  ;;  %v14499_v43 = vld [vmem:[#allocation166_spill] sm:$0xff]  ;;  %v14505_v12 = vld [vmem:[#allocation204_spill] sm:$0xff] }
 0x31b   : > { %v3415_v32 = vsel %vm3414_vm15, %v3413_v20, %v2834_v50  ;;  %vm3523_vm11 = vcmp.lt.s32.totalorder %v3522_v8, %v11539_v31  ;;  %vm2610_vm7 = vcmp.eq.f32.partialorder %v14496_v24, %v11514_v47  ;;  %vm2618_vm10 = vcmp.eq.f32.partialorder %v14497_v35, %v11514_v47  ;;  %v14506_v50 = vld [vmem:[#allocation168_spill] sm:$0xff]  ;;  %v14509_v45 = vld [vmem:[#allocation34_spill] sm:$0xff]  ;;  %v14512_v24 = vld [vmem:[#allocation169_spill] sm:$0xff] }
 0x31c   : > { %v11628_v37 = vmin.f32 %v14493_v34, %v14494_v23  ;;  %vm3416_vm6 = vcmp.lt.s32.totalorder %v3415_v32, %v2842_v30  ;;  %v3524_v54 = vsel %vm3523_vm11, %v3522_v8, %v11539_v31  ;;  %vm2626_vm0 = vcmp.eq.f32.partialorder %v14498_v4, %v11514_v47  ;;  %v14507_v23 = vld [vmem:[#allocation213_spill] sm:$0xff]  ;;  %v14508_v8 = vld [vmem:[#allocation218_spill] sm:$0xff]  ;;  %v14517_v35 = vld [vmem:[#allocation63_spill] sm:$0xff] }
 0x31d   : > { %v2850_v15 = vsel %vm2594_vm13, %v14499_v43, 256  ;;  %v3417_v26 = vsel %vm3416_vm6, %v3415_v32, %v2842_v30  ;;  %vm3525_vm4 = vcmp.lt.s32.totalorder %v3524_v54, %v11545_v13  ;;  %vm2634_vm14 = vcmp.eq.f32.partialorder %v14500_v0, %v11514_v47  ;;  %v14510_v30 = vld [vmem:[#allocation51_spill] sm:$0xff] }
 0x31e   : > { %vm2642_vm5 = vcmp.eq.f32.partialorder %v14501_v9, %v11514_v47  ;;  %vm3418_vm9 = vcmp.lt.s32.totalorder %v3417_v26, %v2850_v15  ;;  %v3526_v39 = vsel %vm3525_vm4, %v3524_v54, %v11545_v13  ;;  %vm2650_vm8 = vcmp.eq.f32.partialorder %v14502_v48, %v11514_v47  ;;  %v14511_v32 = vld [vmem:[#allocation71_spill] sm:$0xff] }
 0x31f   : > { %v2858_v31 = vsel %vm2602_vm12, %v14411_v49, 256  ;;  %v3419_v25 = vsel %vm3418_vm9, %v3417_v26, %v2850_v15  ;;  %vm3527_vm3 = vcmp.lt.s32.totalorder %v3526_v39, %v11557_v27  ;;  %vm2658_vm2 = vcmp.eq.f32.partialorder %v14503_v29, %v11514_v47  ;;  %v14513_v26 = vld [vmem:[#allocation52_spill] sm:$0xff] }
 0x320   : > { %vm2666_vm1 = vcmp.eq.f32.partialorder %v14504_v3, %v11514_v47  ;;  %vm3420_vm13 = vcmp.lt.s32.totalorder %v3419_v25, %v2858_v31  ;;  %v3528_v13 = vsel %vm3527_vm3, %v3526_v39, %v11557_v27  ;;  %vm2674_vm15 = vcmp.eq.f32.partialorder %v14505_v12, %v11514_v47  ;;  %v14515_v39 = vld [vmem:[#allocation182_spill] sm:$0xff] }
 0x321   : > { %v2866_v20 = vsel %vm2610_vm7, %v14506_v50, 256  ;;  %v3421_v2 = vsel %vm3420_vm13, %v3419_v25, %v2858_v31  ;;  %v3399_v34 = vrot.slane %v11612_v51, 4  ;;  %vm3529_vm12 = vcmp.lt.s32.totalorder %v3528_v13, %v11563_v38  ;;  %v14516_v25 = vld [vmem:[#allocation40_spill] sm:$0xff] }
 0x322   : > { %vm2682_vm11 = vcmp.eq.f32.partialorder %v14507_v23, %v11514_v47  ;;  %vm3422_vm4 = vcmp.lt.s32.totalorder %v3421_v2, %v2866_v20  ;;  %v3530_v27 = vsel %vm3529_vm12, %v3528_v13, %v11563_v38  ;;  %v2874_v54 = vsel %vm2618_vm10, %v14512_v24, 256  ;;  %v14514_v38 = vld [vmem:[#allocation179_spill] sm:$0xff]  ;;  %v14518_v13 = vld [vmem:[#allocation170_spill] sm:$0xff] }
 0x323   : > { %v3423_v15 = vsel %vm3422_vm4, %v3421_v2, %v2866_v20  ;;  %vm3531_vm13 = vcmp.lt.s32.totalorder %v3530_v27, %v11570_v16  ;;  %vm2722_vm12 = vcmp.eq.f32.partialorder %v14513_v26, %v11514_v47  ;;  %v2882_v20 = vsel %vm2626_vm0, %v14518_v13, 256  ;;  %v14521_v24 = vld [vmem:[#allocation171_spill] sm:$0xff] }
 0x324   : > { %vm3424_vm6 = vcmp.lt.s32.totalorder %v3423_v15, %v2874_v54  ;;  %v3532_v31 = vsel %vm3531_vm13, %v3530_v27, %v11570_v16  ;;  %vm3400_vm4 = vcmp.lt.s32.totalorder %v11612_v51, %v3399_v34  ;;  %v14520_v27 = vld [vmem:[#allocation83_spill] sm:$0xff]  ;;  %v2890_v4 = vsel %vm2634_vm14, %v14521_v24, 256 }
 0x325   : > { %v3425_v2 = vsel %vm3424_vm6, %v3423_v15, %v2874_v54  ;;  %vm3533_vm9 = vcmp.lt.s32.totalorder %v3532_v31, %v11576_v62  ;;  %vm2770_vm3 = vcmp.eq.f32.partialorder %v14520_v27, %v11514_v47  ;;  %v14522_v54 = vld [vmem:[#allocation90_spill] sm:$0xff]  ;;  %v14523_v15 = vld [vmem:[#allocation93_spill] sm:$0xff]  ;;  %v2898_v0 = vsel %vm2642_vm5, %v14426_v17, 256 }
 0x326   : > { %vm3426_vm13 = vcmp.lt.s32.totalorder %v3425_v2, %v2882_v20  ;;  %v3534_v16 = vsel %vm3533_vm9, %v3532_v31, %v11576_v62  ;;  %vm2778_vm6 = vcmp.eq.f32.partialorder %v14522_v54, %v11514_v47  ;;  %vm2786_vm7 = vcmp.eq.f32.partialorder %v14523_v15, %v11514_v47  ;;  %v14536_v15 = vld [vmem:[#allocation67_spill] sm:$0xff] }
 0x327   : > { %v3427_v13 = vsel %vm3426_vm13, %v3425_v2, %v2882_v20  ;;  %vm3535_vm0 = vcmp.lt.s32.totalorder %v3534_v16, %v11586_v57  ;;  %v3401_v62 = vsel %vm3400_vm4, %v11612_v51, %v3399_v34  ;;  %v14524_v20 = vld [vmem:[#allocation100_spill] sm:$0xff]  ;;  %v2906_v2 = vsel %vm2650_vm8, %v14427_v59, 256 }
 0x328   : > { %vm3428_vm10 = vcmp.lt.s32.totalorder %v3427_v13, %v2890_v4  ;;  %v3536_v31 = vsel %vm3535_vm0, %v3534_v16, %v11586_v57  ;;  %vm2794_vm9 = vcmp.eq.f32.partialorder %v14524_v20, %v11514_v47  ;;  %v2914_v57 = vsel %vm2658_vm2, %v14368_v40, 256  ;;  %v14538_v20 = vld [vmem:[#allocation105_spill] sm:$0xff] }
 0x329   : > { %v3429_v24 = vsel %vm3428_vm10, %v3427_v13, %v2890_v4  ;;  %vm3537_vm14 = vcmp.lt.s32.totalorder %v3536_v31, %v11595_v18  ;;  %v2922_v9 = vsel %vm2666_vm1, %v14369_v22, 256  ;;  %v3402_v13 = vrot.slane %v3401_v62, 2 }
 0x32a   : > { %vm3430_vm13 = vcmp.lt.s32.totalorder %v3429_v24, %v2898_v0  ;;  %v3538_v51 = vsel %vm3537_vm14, %v3536_v31, %v11595_v18  ;;  %v2930_v48 = vsel %vm2674_vm15, %v13799_v11, 256  ;;  %v11742_v18 = vpop.trf.xlu0  ;;  %v2938_v3 = vsel %vm2682_vm11, %v13801_v61, 256  ;;  %v14534_v31 = vld [vmem:[#allocation214_spill] sm:$0xff] }
 0x32b   : > { %v3431_v34 = vsel %vm3430_vm13, %v3429_v24, %v2898_v0  ;;  %vm3539_vm5 = vcmp.lt.s32.totalorder %v3538_v51, %v11620_v63  ;;  %vm14525_vm2 = vcmp.eq.f32.partialorder %v14508_v8, %v11514_v47  ;;  %vm14526_vm1 = vcmp.eq.f32.partialorder %v14509_v45, %v11514_v47 }
 0x32c   : > { %vm3432_vm8 = vcmp.lt.s32.totalorder %v3431_v34, %v2906_v2  ;;  %v11745_v29 = vsel %vm3539_vm5, %v3538_v51, %v11620_v63  ;;  %v2946_v24 = vsel %vm14525_vm2, %v13803_v7, 256  ;;  %v2954_v12 = vsel %vm14526_vm1, %v13805_v55, 256  ;;  %v14535_v51 = vld [vmem:[#allocation209_spill] sm:$0xff] }
 0x32d   : > { %v3433_v16 = vsel %vm3432_vm8, %v3431_v34, %v2906_v2  ;;  %vm14527_vm15 = vcmp.eq.f32.partialorder %v14510_v30, %v11514_v47  ;;  %vm14528_vm11 = vcmp.eq.f32.partialorder %v14511_v32, %v11514_v47  ;;  %v11771_v8 = vsel %vm2722_vm12, %v13814_v42, 256  ;;  %v14541_v34 = vld [vmem:[#allocation137_spill] sm:$0xff] }
 0x32e   : > { %v2962_v63 = vsel %vm14527_vm15, %v13807_v44, 256  ;;  %v2970_v23 = vsel %vm14528_vm11, %v13812_v60, 256  ;;  %vm3434_vm10 = vcmp.lt.s32.totalorder %v3433_v16, %v2914_v57  ;;  %vm14529_vm4 = vcmp.eq.f32.partialorder %v14514_v38, %v11514_v47  ;;  %v11829_v54 = vpop.trf.xlu0 }
 0x32f   : > { %v11777_v45 = vsel %vm14529_vm4, %v13816_v41, 256  ;;  %vm14530_vm0 = vcmp.eq.f32.partialorder %v14515_v39, %v11514_v47  ;;  %v3435_v32 = vsel %vm3434_vm10, %v3433_v16, %v2914_v57  ;;  %vm3403_vm14 = vcmp.lt.s32.totalorder %v3401_v62, %v3402_v13  ;;  %v14539_v57 = vld [vmem:[#allocation121_spill] sm:$0xff]  ;;  %v14543_v16 = vld [vmem:[#allocation158_spill] sm:$0xff] }
 0x330   : > { %v11783_v30 = vsel %vm14530_vm0, %v13819_v14, 256  ;;  %vm14531_vm13 = vcmp.eq.f32.partialorder %v14516_v25, %v11514_v47  ;;  %vm14532_vm12 = vcmp.eq.f32.partialorder %v14517_v35, %v11514_v47  ;;  %vm3436_vm5 = vcmp.lt.s32.totalorder %v3435_v32, %v2922_v9 }
 0x331   : > { %v11789_v26 = vsel %vm14531_vm13, %v14389_v46, 256  ;;  %v11795_v38 = vsel %vm14532_vm12, %v14438_v36, 256  ;;  %vm14533_vm8 = vcmp.eq.f32.partialorder %v14519_v53, %v11514_v47  ;;  %v11807_v25 = vsel %vm2770_vm3, %v14443_v56, 256  ;;  %v14537_v47 = vld [vmem:[#allocation94_spill] sm:$0xff] }
 0x332   : > { %v11801_v39 = vsel %vm14533_vm8, %v14441_v28, 256  ;;  %v11813_v35 = vsel %vm2778_vm6, %v14446_v10, 256  ;;  %v3437_v4 = vsel %vm3436_vm5, %v3435_v32, %v2922_v9  ;;  %v11819_v53 = vsel %vm2786_vm7, %v14449_v21, 256  ;;  %v14544_v32 = vld [vmem:[#allocation127_spill] sm:$0xff] }
 0x333   : > { %v11825_v27 = vsel %vm2794_vm9, %v14453_v52, 256  ;;  %vm3438_vm3 = vcmp.lt.s32.totalorder %v3437_v4, %v2930_v48  ;;  %vm2548_vm2 = vcmp.eq.f32.partialorder %v14534_v31, %v11628_v37  ;;  %v11831_v0 = vsel %vm3403_vm14, %v3401_v62, %v3402_v13  ;;  %v14540_v62 = vld [vmem:[#allocation128_spill] sm:$0xff]  ;;  %v14542_v13 = vld [vmem:[#allocation149_spill] sm:$0xff] }
 0x334   : > { %v3439_v2 = vsel %vm3438_vm3, %v3437_v4, %v2930_v48  ;;  %vm2556_vm6 = vcmp.eq.f32.partialorder %v14535_v51, %v11628_v37  ;;  %vm2564_vm7 = vcmp.eq.f32.partialorder %v14536_v15, %v11628_v37  ;;  %vm2572_vm9 = vcmp.eq.f32.partialorder %v14537_v47, %v11628_v37 }
 0x335   : > { %vm3440_vm1 = vcmp.lt.s32.totalorder %v3439_v2, %v2938_v3  ;;  %vm2580_vm15 = vcmp.eq.f32.partialorder %v14538_v20, %v11628_v37  ;;  %vm2588_vm11 = vcmp.eq.f32.partialorder %v14539_v57, %v11628_v37  ;;  %vm2596_vm10 = vcmp.eq.f32.partialorder %v14540_v62, %v11628_v37  ;;  %v14546_v62 = vld [vmem:[#allocation74_spill] sm:$0xff] }
 0x336   : > { %v3441_v9 = vsel %vm3440_vm1, %v3439_v2, %v2938_v3  ;;  %vm2604_vm4 = vcmp.eq.f32.partialorder %v14541_v34, %v11628_v37  ;;  %vm2612_vm0 = vcmp.eq.f32.partialorder %v14542_v13, %v11628_v37  ;;  %vm2620_vm13 = vcmp.eq.f32.partialorder %v14543_v16, %v11628_v37  ;;  %v14548_v13 = vld [vmem:[#allocation170_spill] sm:$0xff] }
 0x337   : > { %vm3442_vm14 = vcmp.lt.s32.totalorder %v3441_v9, %v2946_v24  ;;  %vm2628_vm12 = vcmp.eq.f32.partialorder %v14544_v32, %v11628_v37  ;;  %v2804_v3 = vsel %vm2548_vm2, %v14303_v5, 256  ;;  %v2812_v2 = vsel %vm2556_vm6, %v14306_v19, 256  ;;  %v14552_v32 = vld [vmem:[#allocation68_spill] sm:$0xff] }
 0x338   : > { %v3443_v4 = vsel %vm3442_vm14, %v3441_v9, %v2946_v24  ;;  %v2820_v48 = vsel %vm2564_vm7, %v14310_v58, 256  ;;  %v2828_v24 = vsel %vm2572_vm9, %v14047_v33, 256  ;;  %v2836_v31 = vsel %vm2580_vm15, %v14321_v1, 256  ;;  %v11878_v9 = vpop.trf.xlu0 }
 0x339   : > { %vm3444_vm5 = vcmp.lt.s32.totalorder %v3443_v4, %v2954_v12  ;;  %v2844_v51 = vsel %vm2588_vm11, %v14322_v6, 256  ;;  %v11884_v41 = vsel %vm2596_vm10, %v14499_v43, 256  ;;  %v11890_v47 = vsel %vm2604_vm4, %v14411_v49, 256  ;;  %v14547_v43 = vld [vmem:[#allocation124_spill] sm:$0xff] }
 0x33a   : > { %v3445_v15 = vsel %vm3444_vm5, %v3443_v4, %v2954_v12  ;;  %v11896_v20 = vsel %vm2612_vm0, %v14506_v50, 256  ;;  %v14545_v12 = vld [vmem:[#allocation169_spill] sm:$0xff]  ;;  %vm3550_vm3 = vcmp.lt.s32.totalorder %v2804_v3, %v2812_v2  ;;  %v11906_v4 = vadd.f32 %v14546_v62, %v11628_v37 }
 0x33b   : > { %vm3446_vm8 = vcmp.lt.s32.totalorder %v3445_v15, %v2962_v63  ;;  %v11902_v57 = vsel %vm2620_vm13, %v14545_v12, 256  ;;  %v3551_v49 = vsel %vm3550_vm3, %v2804_v3, %v2812_v2  ;;  %vm3863_vm2 = vcmp.eq.s32.totalorder %v13819_v14, %v14547_v43  ;;  %v14549_v12 = vld [vmem:[#allocation119_spill] sm:$0xff]  ;;  %v14553_v62 = vld [vmem:[#allocation181_spill] sm:$0xff] }
 0x33c   : > { %v3447_v34 = vsel %vm3446_vm8, %v3445_v15, %v2962_v63  ;;  %vm3871_vm6 = vcmp.eq.s32.totalorder %v14389_v46, %v14547_v43  ;;  %v11916_v16 = vsel %vm2628_vm12, %v14548_v13, 256  ;;  %vm3552_vm1 = vcmp.lt.s32.totalorder %v3551_v49, %v2820_v48  ;;  %v14551_v15 = vld [vmem:[#allocation58_spill] sm:$0xff] }
 0x33d   : > { %vm3448_vm7 = vcmp.lt.s32.totalorder %v3447_v34, %v2970_v23  ;;  %vm6255_vm9 = vmpackc.low %vm3871_vm6, %vm3863_vm2  ;;  %vm3865_vm15 = vcmp.eq.s32.totalorder %v13819_v14, %v14549_v12  ;;  %v3553_v3 = vsel %vm3552_vm1, %v3551_v49, %v2820_v48  ;;  %v14550_v2 = vmov 1.0|1.0  }
 0x33e   : > { %v3449_v63 = vsel %vm3448_vm7, %v3447_v34, %v2970_v23  ;;  %6256 = vmatpush1.bf16.msk.msra.mxu0 %vm6255_vm9, %v14550_v2  ;;  %vm3873_vm11 = vcmp.eq.s32.totalorder %v14389_v46, %v14549_v12  ;;  %vm3880_vm10 = vcmp.eq.s32.totalorder %v14438_v36, %v14551_v15  ;;  %vm3554_vm0 = vcmp.lt.s32.totalorder %v3553_v3, %v2828_v24  ;;  %v11930_v23 = vpop.trf.xlu0  ;;  %v14554_v34 = vld [vmem:[#allocation177_spill] sm:$0xff] }
 0x33f   : > { %vm3450_vm4 = vcmp.lt.s32.totalorder %v3449_v63, %v11771_v8  ;;  %vm6319_vm14 = vmpackc.low %vm3873_vm11, %vm3865_vm15  ;;  %vm3888_vm13 = vcmp.eq.s32.totalorder %v14441_v28, %v14551_v15  ;;  %vm3882_vm12 = vcmp.eq.s32.totalorder %v14438_v36, %v14552_v32  ;;  %v3555_v48 = vsel %vm3554_vm0, %v3553_v3, %v2828_v24  ;;  %v14555_v3 = vld [vmem:[#allocation141_spill] sm:$0xff] }
 0x340   : > { %v3451_v49 = vsel %vm3450_vm4, %v3449_v63, %v11771_v8  ;;  %6320 = vmatpush1.bf16.msk.msra.mxu1 %vm6319_vm14, %v14550_v2  ;;  %vm6257_vm5 = vmpackc.low %vm3888_vm13, %vm3880_vm10  ;;  %vm3890_vm8 = vcmp.eq.s32.totalorder %v14441_v28, %v14552_v32  ;;  %vm3879_vm3 = vcmp.eq.s32.totalorder %v14438_v36, %v14547_v43  ;;  %vm2636_vm6 = vcmp.eq.f32.partialorder %v14553_v62, %v11628_v37 }
 0x341   : > { %vm3452_vm2 = vcmp.lt.s32.totalorder %v3451_v49, %v11777_v45  ;;  %vm3556_vm7 = vcmp.lt.s32.totalorder %v3555_v48, %v2836_v31  ;;  %6258 = vmatprep.subr.msk.bf16.mxu0 %vm6257_vm5, %v14550_v2  ;;  %vm6321_vm1 = vmpackc.low %vm3890_vm8, %vm3882_vm12  ;;  %vm3887_vm9 = vcmp.eq.s32.totalorder %v14441_v28, %v14547_v43  ;;  %vm3881_vm15 = vcmp.eq.s32.totalorder %v14438_v36, %v14549_v12 }
 0x342   : > { %v3453_v8 = vsel %vm3452_vm2, %v3451_v49, %v11777_v45  ;;  %v3557_v24 = vsel %vm3556_vm7, %v3555_v48, %v2836_v31  ;;  %6322 = vmatprep.subr.msk.bf16.mxu1 %vm6321_vm1, %v14550_v2  ;;  %vm6259_vm11 = vmpackc.low %vm3887_vm9, %vm3879_vm3  ;;  %vm3889_vm10 = vcmp.eq.s32.totalorder %v14441_v28, %v14549_v12  ;;  %vm3896_vm4 = vcmp.eq.s32.totalorder %v14443_v56, %v14551_v15  ;;  %v14556_v49 = vld [vmem:[#allocation196_spill] sm:$0xff] }
 0x343   : > { %vm3454_vm0 = vcmp.lt.s32.totalorder %v3453_v8, %v11783_v30  ;;  %vm3558_vm14 = vcmp.lt.s32.totalorder %v3557_v24, %v2844_v51  ;;  %6260 = vmatpush1.bf16.msk.msra.mxu0 %vm6259_vm11, %v14550_v2  ;;  %vm6323_vm13 = vmpackc.low %vm3889_vm10, %vm3881_vm15  ;;  %vm3904_vm12 = vcmp.eq.s32.totalorder %v14446_v10, %v14551_v15  ;;  %vm3898_vm5 = vcmp.eq.s32.totalorder %v14443_v56, %v14552_v32 }
 0x344   : > { %v3455_v45 = vsel %vm3454_vm0, %v3453_v8, %v11783_v30  ;;  %v3559_v31 = vsel %vm3558_vm14, %v3557_v24, %v2844_v51  ;;  %6324 = vmatpush1.bf16.msk.msra.mxu1 %vm6323_vm13, %v14550_v2  ;;  %vm6261_vm8 = vmpackc.low %vm3904_vm12, %vm3896_vm4  ;;  %vm3906_vm3 = vcmp.eq.s32.totalorder %v14446_v10, %v14552_v32  ;;  %vm3895_vm2 = vcmp.eq.s32.totalorder %v14443_v56, %v14547_v43  ;;  %v11973_v30 = vpop.trf.xlu0  ;;  %v14558_v24 = vld [vmem:[#allocation210_spill] sm:$0xff] }
 0x345   : > { %vm3456_vm7 = vcmp.lt.s32.totalorder %v3455_v45, %v11789_v26  ;;  %vm2644_vm1 = vcmp.eq.f32.partialorder %v14554_v34, %v11628_v37  ;;  %vm3560_vm9 = vcmp.lt.s32.totalorder %v3559_v31, %v11884_v41  ;;  %6262 = vmatprep.subr.msk.bf16.mxu0 %vm6261_vm8, %v14550_v2  ;;  %vm6325_vm15 = vmpackc.low %vm3906_vm3, %vm3898_vm5  ;;  %vm3903_vm11 = vcmp.eq.s32.totalorder %v14446_v10, %v14547_v43 }
 0x346   : > { %vm3897_vm10 = vcmp.eq.s32.totalorder %v14443_v56, %v14549_v12  ;;  %v3457_v51 = vsel %vm3456_vm7, %v3455_v45, %v11789_v26  ;;  %v3561_v63 = vsel %vm3560_vm9, %v3559_v31, %v11884_v41  ;;  %6326 = vmatprep.subr.msk.bf16.mxu1 %vm6325_vm15, %v14550_v2  ;;  %vm6263_vm4 = vmpackc.low %vm3903_vm11, %vm3895_vm2  ;;  %vm3905_vm0 = vcmp.eq.s32.totalorder %v14446_v10, %v14549_v12  ;;  %v14559_v45 = vld [vmem:[#allocation171_spill] sm:$0xff] }
 0x347   : > { %vm3912_vm14 = vcmp.eq.s32.totalorder %v14449_v21, %v14551_v15  ;;  %vm3458_vm13 = vcmp.lt.s32.totalorder %v3457_v51, %v11795_v38  ;;  %vm2652_vm12 = vcmp.eq.f32.partialorder %v14555_v3, %v11628_v37  ;;  %vm3562_vm5 = vcmp.lt.s32.totalorder %v3561_v63, %v11890_v47  ;;  %6264 = vmatpush1.bf16.msk.msra.mxu0 %vm6263_vm4, %v14550_v2  ;;  %vm6327_vm8 = vmpackc.low %vm3905_vm0, %vm3897_vm10 }
 0x348   : > { %vm3920_vm3 = vcmp.eq.s32.totalorder %v14453_v52, %v14551_v15  ;;  %vm3914_vm2 = vcmp.eq.s32.totalorder %v14449_v21, %v14552_v32  ;;  %v3459_v41 = vsel %vm3458_vm13, %v3457_v51, %v11795_v38  ;;  %v3563_v26 = vsel %vm3562_vm5, %v3561_v63, %v11890_v47  ;;  %6328 = vmatpush1.bf16.msk.msra.mxu1 %vm6327_vm8, %v14550_v2  ;;  %v14557_v47 = vld [vmem:[#allocation29_spill] sm:$0xff] }
 0x349   : > { %vm6265_vm7 = vmpackc.low %vm3920_vm3, %vm3912_vm14  ;;  %vm3922_vm9 = vcmp.eq.s32.totalorder %v14453_v52, %v14552_v32  ;;  %vm3911_vm15 = vcmp.eq.s32.totalorder %v14449_v21, %v14547_v43  ;;  %vm3460_vm11 = vcmp.lt.s32.totalorder %v3459_v41, %v11801_v39  ;;  %vm2660_vm10 = vcmp.eq.f32.partialorder %v14556_v49, %v11628_v37 }
 0x34a   : > { %vm3564_vm4 = vcmp.lt.s32.totalorder %v3563_v26, %v11896_v20  ;;  %6266 = vmatprep.subr.msk.bf16.mxu0 %vm6265_vm7, %v14550_v2  ;;  %vm6329_vm0 = vmpackc.low %vm3922_vm9, %vm3914_vm2  ;;  %vm3919_vm13 = vcmp.eq.s32.totalorder %v14453_v52, %v14547_v43  ;;  %vm3913_vm14 = vcmp.eq.s32.totalorder %v14449_v21, %v14549_v12  ;;  %v3461_v38 = vsel %vm3460_vm11, %v3459_v41, %v11801_v39  ;;  %v12022_v39 = vpop.trf.xlu0 }
 0x34b   : > { %vm2668_vm5 = vcmp.eq.f32.partialorder %v14557_v47, %v11628_v37  ;;  %v3565_v48 = vsel %vm3564_vm4, %v3563_v26, %v11896_v20  ;;  %6330 = vmatprep.subr.msk.bf16.mxu1 %vm6329_vm0, %v14550_v2  ;;  %vm6267_vm8 = vmpackc.low %vm3919_vm13, %vm3911_vm15  ;;  %vm3921_vm3 = vcmp.eq.s32.totalorder %v14453_v52, %v14549_v12  ;;  %v12015_v8 = vunpack.i.h.bf16 %v11742_v18 }
 0x34c   : > { %vm3462_vm2 = vcmp.lt.s32.totalorder %v3461_v38, %v11807_v25  ;;  %vm2676_vm7 = vcmp.eq.f32.partialorder %v14558_v24, %v11628_v37  ;;  %vm3566_vm9 = vcmp.lt.s32.totalorder %v3565_v48, %v11902_v57  ;;  %6268 = vmatpush1.bf16.msk.msra.mxu0 %vm6267_vm8, %v14550_v2  ;;  %vm6331_vm11 = vmpackc.low %vm3921_vm3, %vm3913_vm14  ;;  %v2892_v31 = vsel %vm2636_vm6, %v14559_v45, 256 }
 0x34d   : > { %v3463_v20 = vsel %vm3462_vm2, %v3461_v38, %v11807_v25  ;;  %v3567_v51 = vsel %vm3566_vm9, %v3565_v48, %v11902_v57  ;;  %6332 = vmatpush1.bf16.msk.msra.mxu1 %vm6331_vm11, %v14550_v2  ;;  %v12032_v63 = vunpack.i.l.bf16 %v11742_v18  ;;  %v14560_v41 = vrot.slane %v11831_v0, 1  ;;  %v14563_v38 = vld [vmem:[#allocation215_spill] sm:$0xff]  ;;  %v14567_v25 = vld [vmem:[#allocation49_spill] sm:$0xff] }
 0x34e   : > { %vm3464_vm15 = vcmp.lt.s32.totalorder %v3463_v20, %v11813_v35  ;;  %vm3568_vm4 = vcmp.lt.s32.totalorder %v3567_v51, %v11916_v16  ;;  %v12048_v18 = vunpack.i.h.bf16 %v11829_v54  ;;  %v12051_v26 = vunpack.i.l.bf16 %v11829_v54 }
 0x34f   : > { %vm12039_vm0 = vcmp.lt.s32.totalorder %v11831_v0, %v14560_v41  ;;  %v3465_v62 = vsel %vm3464_vm15, %v3463_v20, %v11813_v35  ;;  %v3569_v57 = vsel %vm3568_vm4, %v3567_v51, %v11916_v16  ;;  %4567 = vmatprep.mubr.f32.mxu0 %v12032_v63  ;;  %4680 = vmatprep.mubr.f32.mxu1 %v12032_v63  ;;  %v2900_v16 = vsel %vm2644_vm1, %v14426_v17, 256  ;;  %v12069_v20 = vpop.trf.xlu0 }
 0x350   : > { %vm3466_vm6 = vcmp.lt.s32.totalorder %v3465_v62, %v11819_v53  ;;  %vm2684_vm13 = vcmp.eq.f32.partialorder %v14563_v38, %v11628_v37  ;;  %vm3570_vm14 = vcmp.lt.s32.totalorder %v3569_v57, %v2892_v31  ;;  %4568 = vmatmul.mubr.f32.vlgmr.msra.gmra.mrb[128].mxu0 %v12015_v8  ;;  %4681 = vmatmul.mubr.f32.vlgmr.msra.gmra.mrb[128].mxu1 %v12015_v8  ;;  %v12066_v54 = vunpack.i.l.bf16 %v11878_v9 }
 0x351   : > { %v3467_v35 = vsel %vm3466_vm6, %v3465_v62, %v11819_v53  ;;  %v3571_v48 = vsel %vm3570_vm14, %v3569_v57, %v2892_v31  ;;  %4573 = vmatprep.mubr.f32.mxu0 %v12051_v26  ;;  %4686 = vmatprep.mubr.f32.mxu1 %v12051_v26  ;;  %v2908_v34 = vsel %vm2652_vm12, %v14427_v59, 256  ;;  %v12077_v51 = vunpack.i.h.bf16 %v11878_v9 }
 0x352   : > { %vm3468_vm8 = vcmp.lt.s32.totalorder %v3467_v35, %v11825_v27  ;;  %vm3572_vm3 = vcmp.lt.s32.totalorder %v3571_v48, %v2900_v16  ;;  %v12088_v3 = vunpack.i.l.bf16 %v11930_v23  ;;  %v2924_v9 = vsel %vm2668_vm5, %v14369_v22, 256 }
 0x353   : > { %v3469_v53 = vsel %vm3468_vm8, %v3467_v35, %v11825_v27  ;;  %v3573_v31 = vsel %vm3572_vm3, %v3571_v48, %v2900_v16  ;;  %v2916_v27 = vsel %vm2660_vm10, %v14368_v40, 256  ;;  %v2932_v49 = vsel %vm2676_vm7, %v13799_v11, 256 }
 0x354   : > { %v3470_v41 = vrot.slane %v3469_v53, 4  ;;  %vm3574_vm1 = vcmp.lt.s32.totalorder %v3573_v31, %v2908_v34  ;;  %4574 = vmatmul.mubr.f32.gmra.mrb[130].mxu0 %v12048_v18  ;;  %4687 = vmatmul.mubr.f32.gmra.mrb[130].mxu1 %v12048_v18  ;;  %v12099_v48 = vunpack.i.h.bf16 %v11930_v23  ;;  %v12108_v24 = vunpack.i.l.bf16 %v11973_v30 }
 0x355   : > { %v3575_v62 = vsel %vm3574_vm1, %v3573_v31, %v2908_v34  ;;  %4579 = vmatprep.mubr.f32.mxu0 %v12066_v54  ;;  %4692 = vmatprep.mubr.f32.mxu1 %v12066_v54  ;;  %v12103_v34 = vpop.trf.xlu0  ;;  %v14565_v31 = vld [vmem:[#allocation221_spill] sm:$0xff]  ;;  %vm2708_vm15 = vcmp.eq.f32.partialorder %v14567_v25, %v11628_v37 }
 0x356   : > { %vm3471_vm12 = vcmp.lt.s32.totalorder %v3469_v53, %v3470_v41  ;;  %vm3576_vm2 = vcmp.lt.s32.totalorder %v3575_v62, %v2916_v27  ;;  %vm2692_vm7 = vcmp.eq.f32.partialorder %v14565_v31, %v11628_v37 }
 0x357   : > { %v3472_v57 = vsel %vm3471_vm12, %v3469_v53, %v3470_v41  ;;  %v3577_v35 = vsel %vm3576_vm2, %v3575_v62, %v2916_v27  ;;  %v14564_v53 = vrot.slane %v11831_v0, 1  ;;  %v14566_v27 = vld [vmem:[#allocation46_spill] sm:$0xff]  ;;  %v2940_v62 = vsel %vm2684_vm13, %v13801_v61, 256 }
 0x358   : > { %v3473_v16 = vrot.slane %v3472_v57, 2  ;;  %vm3578_vm10 = vcmp.lt.s32.totalorder %v3577_v35, %v2924_v9  ;;  %4580 = vmatmul.mubr.f32.gmra.mrb[132].mxu0 %v12077_v51  ;;  %4693 = vmatmul.mubr.f32.gmra.mrb[132].mxu1 %v12077_v51  ;;  %vm2700_vm11 = vcmp.eq.f32.partialorder %v14566_v27, %v11628_v37  ;;  %v2964_v27 = vsel %vm2708_vm15, %v13807_v44, 256 }
 0x359   : > { %v3579_v47 = vsel %vm3578_vm10, %v3577_v35, %v2924_v9  ;;  %4585 = vmatprep.mubr.f32.mxu0 %v12088_v3  ;;  %4698 = vmatprep.mubr.f32.mxu1 %v12088_v3  ;;  %v12115_v23 = vsel %vm12039_vm0, %v11831_v0, %v14564_v53  ;;  %v12128_v0 = vunpack.i.h.bf16 %v11973_v30  ;;  %v3541_v30 = vrot.slane %v11745_v29, 4 }
 0x35a   : > { %vm3474_vm5 = vcmp.lt.s32.totalorder %v3472_v57, %v3473_v16  ;;  %vm3580_vm9 = vcmp.lt.s32.totalorder %v3579_v47, %v2932_v49  ;;  %vm3675_vm14 = vcmp.eq.s32.totalorder %v14303_v5, %v12115_v23  ;;  %vm3683_vm8 = vcmp.eq.s32.totalorder %v14306_v19, %v12115_v23 }
 0x35b   : > { %v3475_v41 = vsel %vm3474_vm5, %v3472_v57, %v3473_v16  ;;  %v3581_v9 = vsel %vm3580_vm9, %v3579_v47, %v2932_v49  ;;  %v14568_v57 = vld [vmem:[#allocation77_spill] sm:$0xff]  ;;  %v2948_v16 = vsel %vm2692_vm7, %v13803_v7, 256  ;;  %v12138_v49 = vunpack.i.l.bf16 %v12022_v39  ;;  %vm6335_vm9 = vmpackc.low %vm3683_vm8, %vm3675_vm14 }
 0x35c   : > { %v3476_v35 = vrot.slane %v3475_v41, 1  ;;  %vm3582_vm4 = vcmp.lt.s32.totalorder %v3581_v9, %v2940_v62  ;;  %4586 = vmatmul.mubr.f32.gmra.mrb[134].mxu0 %v12099_v48  ;;  %4699 = vmatmul.mubr.f32.gmra.mrb[134].mxu1 %v12099_v48  ;;  %vm2716_vm0 = vcmp.eq.f32.partialorder %v14568_v57, %v11628_v37  ;;  %v2956_v47 = vsel %vm2700_vm11, %v13805_v55, 256  ;;  %v14573_v57 = vld [vmem:[#allocation189_spill] sm:$0xff] }
 0x35d   : > { %v3583_v38 = vsel %vm3582_vm4, %v3581_v9, %v2940_v62  ;;  %4591 = vmatprep.mubr.f32.mxu0 %v12108_v24  ;;  %4704 = vmatprep.mubr.f32.mxu1 %v12108_v24  ;;  %v12152_v62 = vunpack.i.h.bf16 %v12022_v39  ;;  %v12169_v9 = vunpack.i.l.bf16 %v12069_v20  ;;  %vm12172_vm5 = vcmp.lt.s32.totalorder %v11745_v29, %v3541_v30 }
 0x35e   : > { %vm3477_vm6 = vcmp.lt.s32.totalorder %v3475_v41, %v3476_v35  ;;  %vm3584_vm13 = vcmp.lt.s32.totalorder %v3583_v38, %v2948_v16  ;;  %v2972_v25 = vsel %vm2716_vm0, %v13812_v60, 256  ;;  %vm3691_vm4 = vcmp.eq.s32.totalorder %v14310_v58, %v12115_v23 }
 0x35f   : > { %v12145_v53 = vsel %vm3477_vm6, %v3475_v41, %v3476_v35  ;;  %v3585_v31 = vsel %vm3584_vm13, %v3583_v38, %v2948_v16  ;;  %v14569_v41 = vld [vmem:[#allocation88_spill] sm:$0xff]  ;;  %vm3699_vm6 = vcmp.eq.s32.totalorder %v14047_v33, %v12115_v23  ;;  %vm2740_vm0 = vcmp.eq.f32.partialorder %v14573_v57, %v11628_v37  ;;  %v14575_v35 = vld [vmem:[#allocation47_spill] sm:$0xff]  ;;  %v14579_v57 = vld [vmem:[#allocation166_spill] sm:$0xff] }
 0x360   : > { %vm3586_vm3 = vcmp.lt.s32.totalorder %v3585_v31, %v2956_v47  ;;  %4592 = vmatmul.mubr.f32.gmra.mrb[136].mxu0 %v12128_v0  ;;  %4705 = vmatmul.mubr.f32.gmra.mrb[136].mxu1 %v12128_v0  ;;  %vm3676_vm1 = vcmp.eq.s32.totalorder %v14303_v5, %v12145_v53  ;;  %vm3684_vm12 = vcmp.eq.s32.totalorder %v14306_v19, %v12145_v53  ;;  %v14572_v38 = vld [vmem:[#allocation180_spill] sm:$0xff] }
 0x361   : > { %vm2724_vm2 = vcmp.eq.f32.partialorder %v14569_v41, %v11628_v37  ;;  %v3587_v39 = vsel %vm3586_vm3, %v3585_v31, %v2956_v47  ;;  %4597 = vmatprep.mubr.f32.mxu0 %v12138_v49  ;;  %4710 = vmatprep.mubr.f32.mxu1 %v12138_v49  ;;  %vm6333_vm10 = vmpackc.low %vm3684_vm12, %vm3676_vm1  ;;  %vm3692_vm11 = vcmp.eq.s32.totalorder %v14310_v58, %v12145_v53  ;;  %v12199_v47 = vunpack.i.h.bf16 %v12069_v20 }
 0x362   : > { %vm3588_vm7 = vcmp.lt.s32.totalorder %v3587_v39, %v2964_v27  ;;  %6334 = vmatprep.subr.msk.bf16.mxu0 %vm6333_vm10, %v14550_v2  ;;  %vm3700_vm15 = vcmp.eq.s32.totalorder %v14047_v33, %v12145_v53  ;;  %vm2732_vm13 = vcmp.eq.f32.partialorder %v14572_v38, %v11628_v37  ;;  %v2980_v31 = vsel %vm2724_vm2, %v13814_v42, 256  ;;  %vm6339_vm1 = vmpackc.low %vm3699_vm6, %vm3691_vm4  ;;  %v14578_v38 = vld [vmem:[#allocation73_spill] sm:$0xff] }
 0x363   : > { %v3589_v16 = vsel %vm3588_vm7, %v3587_v39, %v2964_v27  ;;  %6336 = vmatpush1.bf16.msk.msra.mxu0 %vm6335_vm9, %v14550_v2  ;;  %v12212_v20 = vunpack.i.l.bf16 %v12103_v34  ;;  %vm6337_vm8 = vmpackc.low %vm3700_vm15, %vm3692_vm11  ;;  %v12223_v41 = vsel %vm12172_vm5, %v11745_v29, %v3541_v30  ;;  %vm3708_vm12 = vcmp.eq.s32.totalorder %v14321_v1, %v12145_v53  ;;  %v14574_v39 = vld [vmem:[#allocation187_spill] sm:$0xff] }
 0x364   : > { %vm3590_vm14 = vcmp.lt.s32.totalorder %v3589_v16, %v2972_v25  ;;  %4598 = vmatmul.mubr.f32.gmra.mrb[138].mxu0 %v12152_v62  ;;  %4711 = vmatmul.mubr.f32.gmra.mrb[138].mxu1 %v12152_v62  ;;  %vm3716_vm2 = vcmp.eq.s32.totalorder %v14322_v6, %v12145_v53  ;;  %v2988_v29 = vsel %vm2732_vm13, %v14574_v39, 256  ;;  %vm3707_vm10 = vcmp.eq.s32.totalorder %v14321_v1, %v12115_v23 }
 0x365   : > { %v3591_v27 = vsel %vm3590_vm14, %v3589_v16, %v2972_v25  ;;  %4603 = vmatprep.mubr.f32.mxu0 %v12169_v9  ;;  %4716 = vmatprep.mubr.f32.mxu1 %v12169_v9  ;;  %vm3715_vm5 = vcmp.eq.s32.totalorder %v14322_v6, %v12115_v23  ;;  %vm2748_vm7 = vcmp.eq.f32.partialorder %v14575_v35, %v11628_v37  ;;  %v12248_v25 = vunpack.i.h.bf16 %v12103_v34  ;;  %v14577_v16 = vld [vmem:[#allocation56_spill] sm:$0xff]  ;;  %vm6341_vm4 = vmpackc.low %vm3716_vm2, %vm3708_vm12  ;;  %v14581_v35 = vld [vmem:[#allocation169_spill] sm:$0xff] }
 0x366   : > { %vm3592_vm3 = vcmp.lt.s32.totalorder %v3591_v27, %v2980_v31  ;;  %6338 = vmatprep.subr.msk.bf16.mxu0 %vm6337_vm8, %v14550_v2  ;;  %vm2756_vm11 = vcmp.eq.f32.partialorder %v14577_v16, %v11628_v37  ;;  %vm2764_vm15 = vcmp.eq.f32.partialorder %v14578_v38, %v11628_v37  ;;  %v3544_v34 = vrot.slane %v12223_v41, 2  ;;  %vm6343_vm13 = vmpackc.low %vm3715_vm5, %vm3707_vm10  ;;  %v14584_v16 = vld [vmem:[#allocation87_spill] sm:$0xff] }
 0x367   : > { %v3593_v30 = vsel %vm3592_vm3, %v3591_v27, %v2980_v31  ;;  %6340 = vmatpush1.bf16.msk.msra.mxu0 %vm6339_vm1, %v14550_v2  ;;  %14576 = vst [vmem:[#allocation117_spill] sm:$0xff] %v12248_v25  ;;  %v2996_v31 = vsel %vm2740_vm0, %v13819_v14, 256  ;;  %vm3724_vm14 = vcmp.eq.s32.totalorder %v14579_v57, %v12145_v53  ;;  %vm3723_vm8 = vcmp.eq.s32.totalorder %v14579_v57, %v12115_v23 }
 0x368   : > { %vm3594_vm9 = vcmp.lt.s32.totalorder %v3593_v30, %v2988_v29  ;;  %4604 = vmatmul.mubr.f32.gmra.mrb[140].mxu0 %v12199_v47  ;;  %4717 = vmatmul.mubr.f32.gmra.mrb[140].mxu1 %v12199_v47  ;;  %vm3740_vm12 = vcmp.eq.s32.totalorder %v14506_v50, %v12145_v53  ;;  %vm3748_vm2 = vcmp.eq.s32.totalorder %v14581_v35, %v12145_v53 }
 0x369   : > { %v3595_v27 = vsel %vm3594_vm9, %v3593_v30, %v2988_v29  ;;  %4609 = vmatprep.mubr.f32.mxu0 %v12212_v20  ;;  %4722 = vmatprep.mubr.f32.mxu1 %v12212_v20  ;;  %v14580_v29 = vld [vmem:[#allocation167_spill] sm:$0xff]  ;;  %v3004_v30 = vsel %vm2748_vm7, %v14389_v46, 256  ;;  %vm12308_vm5 = vcmp.lt.s32.totalorder %v12223_v41, %v3544_v34  ;;  %vm2772_vm7 = vcmp.eq.f32.partialorder %v14584_v16, %v11628_v37  ;;  %v14586_v16 = vld [vmem:[#allocation97_spill] sm:$0xff] }
 0x36a   : > { %vm3596_vm6 = vcmp.lt.s32.totalorder %v3595_v27, %v2996_v31  ;;  %6342 = vmatprep.subr.msk.bf16.mxu0 %vm6341_vm4, %v14550_v2  ;;  %vm3732_vm0 = vcmp.eq.s32.totalorder %v14580_v29, %v12145_v53  ;;  %vm3731_vm3 = vcmp.eq.s32.totalorder %v14580_v29, %v12115_v23  ;;  %vm6349_vm4 = vmpackc.low %vm3748_vm2, %vm3740_vm12  ;;  %v3028_v38 = vsel %vm2772_vm7, %v14443_v56, 256 }
 0x36b   : > { %v3597_v12 = vsel %vm3596_vm6, %v3595_v27, %v2996_v31  ;;  %6344 = vmatpush1.bf16.msk.msra.mxu0 %vm6343_vm13, %v14550_v2  ;;  %v3012_v31 = vsel %vm2756_vm11, %v14438_v36, 256  ;;  %vm6345_vm10 = vmpackc.low %vm3732_vm0, %vm3724_vm14  ;;  %vm3739_vm6 = vcmp.eq.s32.totalorder %v14506_v50, %v12115_v23  ;;  %vm3747_vm13 = vcmp.eq.s32.totalorder %v14581_v35, %v12115_v23 }
 0x36c   : > { %vm3598_vm1 = vcmp.lt.s32.totalorder %v3597_v12, %v3004_v30  ;;  %4610 = vmatmul.mubr.f32.gmra.mrb[142].mxu0 %v12248_v25  ;;  %4723 = vmatmul.mubr.f32.gmra.mrb[142].mxu1 %v12248_v25  ;;  %vm6347_vm11 = vmpackc.low %vm3731_vm3, %vm3723_vm8  ;;  %vm3764_vm8 = vcmp.eq.s32.totalorder %v14559_v45, %v12145_v53  ;;  %vm2788_vm3 = vcmp.eq.f32.partialorder %v14586_v16, %v11628_v37 }
 0x36d   : > { %v3599_v27 = vsel %vm3598_vm1, %v3597_v12, %v3004_v30  ;;  %4793 = vmatprep.mubr.f32.mxu0 %v12032_v63  ;;  %4906 = vmatprep.mubr.f32.mxu1 %v12032_v63  ;;  %v3020_v12 = vsel %vm2764_vm15, %v14441_v28, 256  ;;  %v14585_v30 = vld [vmem:[#allocation92_spill] sm:$0xff]  ;;  %vm3756_vm15 = vcmp.eq.s32.totalorder %v14548_v13, %v12145_v53  ;;  %vm6351_vm2 = vmpackc.low %vm3747_vm13, %vm3739_vm6  ;;  %vm3755_vm7 = vcmp.eq.s32.totalorder %v14548_v13, %v12115_v23 }
 0x36e   : > { %vm3600_vm9 = vcmp.lt.s32.totalorder %v3599_v27, %v3012_v31  ;;  %6346 = vmatprep.subr.msk.bf16.mxu0 %vm6345_vm10, %v14550_v2  ;;  %vm2780_vm14 = vcmp.eq.f32.partialorder %v14585_v30, %v11628_v37  ;;  %v14587_v30 = vld [vmem:[#allocation103_spill] sm:$0xff]  ;;  %vm6353_vm10 = vmpackc.low %vm3764_vm8, %vm3756_vm15  ;;  %v3044_v32 = vsel %vm2788_vm3, %v14449_v21, 256  ;;  %vm3779_vm15 = vcmp.eq.s32.totalorder %v14427_v59, %v12115_v23 }
 0x36f   : > { %v3601_v63 = vsel %vm3600_vm9, %v3599_v27, %v3012_v31  ;;  %6348 = vmatpush1.bf16.msk.msra.mxu0 %vm6347_vm11, %v14550_v2  ;;  %v3546_v27 = vsel %vm12308_vm5, %v12223_v41, %v3544_v34  ;;  %vm2796_vm1 = vcmp.eq.f32.partialorder %v14587_v30, %v11628_v37  ;;  %v3036_v43 = vsel %vm2780_vm14, %v14446_v10, 256  ;;  %v14591_v30 = vld [vmem:[#allocation110_spill] sm:$0xff] }
 0x370   : > { %vm3602_vm0 = vcmp.lt.s32.totalorder %v3601_v63, %v3020_v12  ;;  %6350 = vmatprep.subr.msk.bf16.mxu0 %vm6349_vm4, %v14550_v2  ;;  %vm3763_vm5 = vcmp.eq.s32.totalorder %v14559_v45, %v12115_v23  ;;  %vm3772_vm11 = vcmp.eq.s32.totalorder %v14426_v17, %v12145_v53  ;;  %vm3780_vm4 = vcmp.eq.s32.totalorder %v14427_v59, %v12145_v53 }
 0x371   : > { %v3603_v31 = vsel %vm3602_vm0, %v3601_v63, %v3020_v12  ;;  %v3547_v34 = vrot.slane %v3546_v27, 1  ;;  %v3052_v12 = vsel %vm2796_vm1, %v14453_v52, 256  ;;  %vm6355_vm13 = vmpackc.low %vm3763_vm5, %vm3755_vm7  ;;  %vm3771_vm0 = vcmp.eq.s32.totalorder %v14426_v17, %v12115_v23 }
 0x372   : > { %vm3604_vm12 = vcmp.lt.s32.totalorder %v3603_v31, %v3028_v38  ;;  %vm6357_vm14 = vmpackc.low %vm3780_vm4, %vm3772_vm11  ;;  %vm3788_vm3 = vcmp.eq.s32.totalorder %v14368_v40, %v12145_v53  ;;  %vm3796_vm1 = vcmp.eq.s32.totalorder %v14369_v22, %v12145_v53  ;;  %vm3787_vm7 = vcmp.eq.s32.totalorder %v14368_v40, %v12115_v23 }
 0x373   : > { %v3605_v15 = vsel %vm3604_vm12, %v3603_v31, %v3028_v38  ;;  %6352 = vmatpush1.bf16.msk.msra.mxu0 %vm6351_vm2, %v14550_v2  ;;  %v6827_v38 = vmov 1966171168   ;;  %vm12374_vm12 = vcmp.lt.s32.totalorder %v3546_v27, %v3547_v34  ;;  %v14590_v31 = vld [vmem:[#allocation106_spill] sm:$0xff]  ;;  %vm6359_vm2 = vmpackc.low %vm3779_vm15, %vm3771_vm0  ;;  %vm3795_vm5 = vcmp.eq.s32.totalorder %v14369_v22, %v12115_v23 }
 0x374   : > { %vm3606_vm9 = vcmp.lt.s32.totalorder %v3605_v15, %v3036_v43  ;;  %6354 = vmatprep.subr.msk.bf16.mxu0 %vm6353_vm10, %v14550_v2  ;;  %v5199_v16 = vmax.f32 %v14590_v31, 0.0  ;;  %vm6361_vm10 = vmpackc.low %vm3796_vm1, %vm3788_vm3  ;;  %vm3804_vm11 = vcmp.eq.s32.totalorder %v13799_v11, %v12145_v53  ;;  %vm3812_vm4 = vcmp.eq.s32.totalorder %v13801_v61, %v12145_v53 }
 0x375   : > { %v3607_v41 = vsel %vm3606_vm9, %v3605_v15, %v3036_v43  ;;  %v3626_v43 = vunpack.c.l.s4 %v6827_v38  ;;  %v14592_v38 = vld [vmem:[#allocation114_spill] sm:$0xff]  ;;  %vm3811_vm0 = vcmp.eq.s32.totalorder %v13801_v61, %v12115_v23  ;;  %vm3828_vm3 = vcmp.eq.s32.totalorder %v13805_v55, %v12145_v53  ;;  %v14593_v15 = vld [vmem:[#allocation140_spill] sm:$0xff] }
 0x376   : > { %vm3608_vm6 = vcmp.lt.s32.totalorder %v3607_v41, %v3044_v32  ;;  %v5200_v25 = vmax.f32 %v14592_v38, 0.0 }
 0x377   : > { %v3609_v63 = vsel %vm3608_vm6, %v3607_v41, %v3044_v32  ;;  %6356 = vmatpush1.bf16.msk.msra.mxu0 %vm6355_vm13, %v14550_v2  ;;  %v5201_v32 = vmax.f32 %v14591_v30, 0.0  ;;  %v12394_v30 = vsel %vm12374_vm12, %v3546_v27, %v3547_v34  ;;  %vm6363_vm6 = vmpackc.low %vm3795_vm5, %vm3787_vm7  ;;  %vm3803_vm13 = vcmp.eq.s32.totalorder %v13799_v11, %v12115_v23 }
 0x378   : > { %vm3610_vm8 = vcmp.lt.s32.totalorder %v3609_v63, %v3052_v12  ;;  %6358 = vmatprep.subr.msk.bf16.mxu0 %vm6357_vm14, %v14550_v2  ;;  %vm6365_vm14 = vmpackc.low %vm3812_vm4, %vm3804_vm11  ;;  %vm3677_vm1 = vcmp.eq.s32.totalorder %v14303_v5, %v12394_v30  ;;  %vm3685_vm12 = vcmp.eq.s32.totalorder %v14306_v19, %v12394_v30  ;;  %vm3819_vm7 = vcmp.eq.s32.totalorder %v13803_v7, %v12115_v23 }
 0x379   : > { %v3611_v37 = vsel %vm3610_vm8, %v3609_v63, %v3052_v12  ;;  %v3627_v12 = vunpack.c.0.s8 %v3626_v43  ;;  %v5202_v63 = vmax.f32 %v11906_v4, 0.0  ;;  %v3623_v4 = vcombine.low %v12115_v23, %v12145_v53  ;;  %vm12438_vm11 = vmpackc.low %vm3685_vm12, %vm3677_vm1 }
 0x37a   : > { %v3612_v41 = vrot.slane %v3611_v37, 4  ;;  %vm3820_vm8 = vcmp.eq.s32.totalorder %v13803_v7, %v12145_v53  ;;  %vm3827_vm5 = vcmp.eq.s32.totalorder %v13805_v55, %v12115_v23  ;;  %vm3693_vm4 = vcmp.eq.s32.totalorder %v14310_v58, %v12394_v30 }
 0x37b   : > { %6360 = vmatpush1.bf16.msk.msra.mxu0 %vm6359_vm2, %v14550_v2  ;;  %v12404_v43 = vsub.s32 %v3627_v12, %v14303_v5  ;;  %v5214_v27 = vcombine.low %v5201_v32, %v5202_v63  ;;  %vm6367_vm2 = vmpackc.low %vm3811_vm0, %vm3803_vm13  ;;  %vm3836_vm1 = vcmp.eq.s32.totalorder %v13807_v44, %v12145_v53  ;;  %vm3844_vm12 = vcmp.eq.s32.totalorder %v13812_v60, %v12145_v53 }
 0x37c   : > { %vm3613_vm9 = vcmp.lt.s32.totalorder %v3611_v37, %v3612_v41  ;;  %6362 = vmatprep.subr.msk.bf16.mxu0 %vm6361_vm10, %v14550_v2  ;;  %vm6369_vm10 = vmpackc.low %vm3828_vm3, %vm3820_vm8 }
 0x37d   : > { %v3614_v31 = vsel %vm3613_vm9, %v3611_v37, %v3612_v41  ;;  %v5213_v37 = vcombine.low %v5199_v16, %v5200_v25  ;;  %v5221_v25 = vrot.slane %v14593_v15, %v12404_v43  ;;  %v14594_v41 = vld [vmem:[#allocation57_spill] sm:$0xff]  ;;  %v5242_v63 = vrot.slane %v5214_v27, %v12404_v43  ;;  %vm6371_vm8 = vmpackc.low %vm3827_vm5, %vm3819_vm7 }
 0x37e   : > { %v3615_v38 = vrot.slane %v3614_v31, 2  ;;  %v5228_v12 = vrot.slane %v14594_v41, %v12404_v43  ;;  %vm3843_vm7 = vcmp.eq.s32.totalorder %v13812_v60, %v12115_v23 }
 0x37f   : > { %6364 = vmatpush1.bf16.msk.msra.mxu0 %vm6363_vm6, %v14550_v2  ;;  %v5235_v32 = vrot.slane %v5213_v37, %v12404_v43  ;;  %vm3701_vm6 = vcmp.eq.s32.totalorder %v14047_v33, %v12394_v30 }
 0x380   : > { %vm3616_vm15 = vcmp.lt.s32.totalorder %v3614_v31, %v3615_v38  ;;  %6366 = vmatprep.subr.msk.bf16.mxu0 %vm6365_vm14, %v14550_v2 }
 0x381   : > { %v3617_v34 = vsel %vm3616_vm15, %v3614_v31, %v3615_v38  ;;  %v5243_v31 = vcombine.low %v5221_v25, %v5228_v12  ;;  %v5244_v38 = vcombine.low %v5235_v32, %v5242_v63 }
 0x382   : > { %v3618_v16 = vrot.slane %v3617_v34, 1 }
 0x383   : > { %6368 = vmatpush1.bf16.msk.msra.mxu0 %vm6367_vm2, %v14550_v2  ;;  %vm12460_vm2 = vmpackc.low %vm3701_vm6, %vm3693_vm4  ;;  %vm3860_vm4 = vcmp.eq.s32.totalorder %v14574_v39, %v12145_v53 }
 0x384   : > { %vm3619_vm9 = vcmp.lt.s32.totalorder %v3617_v34, %v3618_v16  ;;  %6370 = vmatprep.subr.msk.bf16.mxu0 %vm6369_vm10, %v14550_v2  ;;  %vm3835_vm10 = vcmp.eq.s32.totalorder %v13807_v44, %v12115_v23 }
 0x385   : > { %v12430_v15 = vsel %vm3619_vm9, %v3617_v34, %v3618_v16  ;;  %vm3852_vm9 = vcmp.eq.s32.totalorder %v13814_v42, %v12145_v53 }
 0x386   : > { %vm3678_vm13 = vcmp.eq.s32.totalorder %v14303_v5, %v12430_v15  ;;  %vm3686_vm14 = vcmp.eq.s32.totalorder %v14306_v19, %v12430_v15  ;;  %vm3694_vm0 = vcmp.eq.s32.totalorder %v14310_v58, %v12430_v15  ;;  %vm3702_vm15 = vcmp.eq.s32.totalorder %v14047_v33, %v12430_v15 }
 0x387   : > { %vm6397_vm3 = vmpackc.low %vm3686_vm14, %vm3678_vm13  ;;  %6372 = vmatpush1.bf16.msk.msra.mxu0 %vm6371_vm8, %v14550_v2  ;;  %vm3710_vm6 = vcmp.eq.s32.totalorder %v14321_v1, %v12430_v15  ;;  %vm3718_vm13 = vcmp.eq.s32.totalorder %v14322_v6, %v12430_v15  ;;  %v3624_v33 = vcombine.low %v12394_v30, %v12430_v15  ;;  %v5251_v19 = vrot.slane %v5243_v31, %v12404_v43 }
 0x388   : > { %6398 = vmatprep.subr.msk.bf16.mxu1 %vm6397_vm3, %v14550_v2  ;;  %vm6401_vm5 = vmpackc.low %vm3702_vm15, %vm3694_vm0  ;;  %vm3717_vm0 = vcmp.eq.s32.totalorder %v14322_v6, %v12394_v30  ;;  %vm3851_vm3 = vcmp.eq.s32.totalorder %v13814_v42, %v12115_v23  ;;  %v5258_v58 = vrot.slane %v5244_v38, %v12404_v43 }
 0x389   : > { %6400 = vmatpush1.bf16.msk.msra.mxu1 %vm12438_vm11, %v14550_v2  ;;  %vm6373_vm14 = vmpackc.low %vm3844_vm12, %vm3836_vm1  ;;  %vm3709_vm11 = vcmp.eq.s32.totalorder %v14321_v1, %v12394_v30  ;;  %vm3726_vm12 = vcmp.eq.s32.totalorder %v14579_v57, %v12430_v15 }
 0x38a   : > { %6402 = vmatprep.subr.msk.bf16.mxu1 %vm6401_vm5, %v14550_v2  ;;  %6374 = vmatprep.subr.msk.bf16.mxu0 %vm6373_vm14, %v14550_v2  ;;  %vm6375_vm15 = vmpackc.low %vm3843_vm7, %vm3835_vm10  ;;  %vm3859_vm5 = vcmp.eq.s32.totalorder %v14574_v39, %v12115_v23  ;;  %vm3868_vm10 = vcmp.eq.s32.totalorder %v13819_v14, %v12145_v53  ;;  %vm3876_vm7 = vcmp.eq.s32.totalorder %v14389_v46, %v12145_v53 }
 0x38b   : > { %6376 = vmatpush1.bf16.msk.msra.mxu0 %vm6375_vm15, %v14550_v2  ;;  %vm6377_vm8 = vmpackc.low %vm3860_vm4, %vm3852_vm9  ;;  %vm3734_vm9 = vcmp.eq.s32.totalorder %v14580_v29, %v12430_v15  ;;  %vm3725_vm4 = vcmp.eq.s32.totalorder %v14579_v57, %v12394_v30  ;;  %v5259_v1 = vcombine.low %v5251_v19, %v5258_v58 }
 0x38c   : > { %vm6405_vm1 = vmpackc.low %vm3718_vm13, %vm3710_vm6  ;;  %6378 = vmatprep.subr.msk.bf16.mxu0 %vm6377_vm8, %v14550_v2  ;;  %vm3733_vm6 = vcmp.eq.s32.totalorder %v14580_v29, %v12394_v30  ;;  %vm3884_vm8 = vcmp.eq.s32.totalorder %v14438_v36, %v12145_v53 }
 0x38d   : > { %6404 = vmatpush1.bf16.msk.msra.mxu1 %vm12460_vm2, %v14550_v2  ;;  %vm6407_vm2 = vmpackc.low %vm3717_vm0, %vm3709_vm11  ;;  %vm3867_vm11 = vcmp.eq.s32.totalorder %v13819_v14, %v12115_v23  ;;  %vm3875_vm0 = vcmp.eq.s32.totalorder %v14389_v46, %v12115_v23  ;;  %5261 = vst [vmem:[%s12545_s29] sm:$0xff] %v5259_v1 }
 0x38e   : > { %6406 = vmatprep.subr.msk.bf16.mxu1 %vm6405_vm1, %v14550_v2  ;;  %vm6379_vm13 = vmpackc.low %vm3859_vm5, %vm3851_vm3  ;;  %vm3892_vm3 = vcmp.eq.s32.totalorder %v14441_v28, %v12145_v53  ;;  %vm3742_vm1 = vcmp.eq.s32.totalorder %v14506_v50, %v12430_v15 }
 0x38f   : > { %6380 = vmatpush1.bf16.msk.msra.mxu0 %vm6379_vm13, %v14550_v2  ;;  %vm6381_vm14 = vmpackc.low %vm3876_vm7, %vm3868_vm10  ;;  %vm3750_vm10 = vcmp.eq.s32.totalorder %v14581_v35, %v12430_v15  ;;  %vm3749_vm7 = vcmp.eq.s32.totalorder %v14581_v35, %v12394_v30 }
 0x390   : > { %vm6409_vm15 = vmpackc.low %vm3734_vm9, %vm3726_vm12  ;;  %6382 = vmatprep.subr.msk.bf16.mxu0 %vm6381_vm14, %v14550_v2  ;;  %vm3741_vm12 = vcmp.eq.s32.totalorder %v14506_v50, %v12394_v30  ;;  %vm3900_vm14 = vcmp.eq.s32.totalorder %v14443_v56, %v12145_v53 }
 0x391   : > { %6408 = vmatpush1.bf16.msk.msra.mxu1 %vm6407_vm2, %v14550_v2  ;;  %vm6411_vm5 = vmpackc.low %vm3733_vm6, %vm3725_vm4  ;;  %vm3883_vm4 = vcmp.eq.s32.totalorder %v14438_v36, %v12115_v23  ;;  %vm3891_vm6 = vcmp.eq.s32.totalorder %v14441_v28, %v12115_v23 }
 0x392   : > { %6410 = vmatprep.subr.msk.bf16.mxu1 %vm6409_vm15, %v14550_v2  ;;  %vm6383_vm2 = vmpackc.low %vm3875_vm0, %vm3867_vm11  ;;  %vm3908_vm11 = vcmp.eq.s32.totalorder %v14446_v10, %v12145_v53  ;;  %vm3758_vm15 = vcmp.eq.s32.totalorder %v14548_v13, %v12430_v15 }
 0x393   : > { %6384 = vmatpush1.bf16.msk.msra.mxu0 %vm6383_vm2, %v14550_v2  ;;  %vm6385_vm9 = vmpackc.low %vm3892_vm3, %vm3884_vm8  ;;  %vm3766_vm8 = vcmp.eq.s32.totalorder %v14559_v45, %v12430_v15  ;;  %vm3757_vm3 = vcmp.eq.s32.totalorder %v14548_v13, %v12394_v30  ;;  %vm3899_vm2 = vcmp.eq.s32.totalorder %v14443_v56, %v12115_v23 }
 0x394   : > { %vm6413_vm13 = vmpackc.low %vm3750_vm10, %vm3742_vm1  ;;  %6386 = vmatprep.subr.msk.bf16.mxu0 %vm6385_vm9, %v14550_v2  ;;  %vm3916_vm9 = vcmp.eq.s32.totalorder %v14449_v21, %v12145_v53 }
 0x395   : > { %6412 = vmatpush1.bf16.msk.msra.mxu1 %vm6411_vm5, %v14550_v2  ;;  %vm6415_vm0 = vmpackc.low %vm3749_vm7, %vm3741_vm12  ;;  %vm3765_vm5 = vcmp.eq.s32.totalorder %v14559_v45, %v12394_v30  ;;  %vm3907_vm12 = vcmp.eq.s32.totalorder %v14446_v10, %v12115_v23 }
 0x396   : > { %6414 = vmatprep.subr.msk.bf16.mxu1 %vm6413_vm13, %v14550_v2  ;;  %vm6387_vm1 = vmpackc.low %vm3891_vm6, %vm3883_vm4  ;;  %vm3924_vm4 = vcmp.eq.s32.totalorder %v14453_v52, %v12145_v53  ;;  %vm3774_vm13 = vcmp.eq.s32.totalorder %v14426_v17, %v12430_v15 }
 0x397   : > { %6388 = vmatpush1.bf16.msk.msra.mxu0 %vm6387_vm1, %v14550_v2  ;;  %vm6389_vm10 = vmpackc.low %vm3908_vm11, %vm3900_vm14  ;;  %vm3782_vm14 = vcmp.eq.s32.totalorder %v14427_v59, %v12430_v15 }
 0x398   : > { %vm6417_vm7 = vmpackc.low %vm3766_vm8, %vm3758_vm15  ;;  %6390 = vmatprep.subr.msk.bf16.mxu0 %vm6389_vm10, %v14550_v2  ;;  %vm3915_vm15 = vcmp.eq.s32.totalorder %v14449_v21, %v12115_v23  ;;  %vm3923_vm8 = vcmp.eq.s32.totalorder %v14453_v52, %v12115_v23  ;;  %vm3790_vm10 = vcmp.eq.s32.totalorder %v14368_v40, %v12430_v15 }
 0x399   : > { %6416 = vmatpush1.bf16.msk.msra.mxu1 %vm6415_vm0, %v14550_v2  ;;  %vm6419_vm6 = vmpackc.low %vm3765_vm5, %vm3757_vm3  ;;  %vm3773_vm3 = vcmp.eq.s32.totalorder %v14426_v17, %v12394_v30  ;;  %vm3781_vm5 = vcmp.eq.s32.totalorder %v14427_v59, %v12394_v30 }
 0x39a   : > { %6418 = vmatprep.subr.msk.bf16.mxu1 %vm6417_vm7, %v14550_v2  ;;  %vm6391_vm11 = vmpackc.low %vm3907_vm12, %vm3899_vm2  ;;  %vm3798_vm2 = vcmp.eq.s32.totalorder %v14369_v22, %v12430_v15 }
 0x39b   : > { %6392 = vmatpush1.bf16.msk.msra.mxu0 %vm6391_vm11, %v14550_v2  ;;  %vm6393_vm0 = vmpackc.low %vm3924_vm4, %vm3916_vm9  ;;  %vm3789_vm4 = vcmp.eq.s32.totalorder %v14368_v40, %v12394_v30  ;;  %v3645_v40 = vrot.slane %v3623_v4, %v12404_v43 }
 0x39c   : > { %vm6421_vm1 = vmpackc.low %vm3782_vm14, %vm3774_vm13  ;;  %6394 = vmatprep.subr.msk.bf16.mxu0 %vm6393_vm0, %v14550_v2  ;;  %vm3806_vm13 = vcmp.eq.s32.totalorder %v13799_v11, %v12430_v15  ;;  %vm3814_vm14 = vcmp.eq.s32.totalorder %v13801_v61, %v12430_v15 }
 0x39d   : > { %6420 = vmatpush1.bf16.msk.msra.mxu1 %vm6419_vm6, %v14550_v2  ;;  %vm6395_vm12 = vmpackc.low %vm3923_vm8, %vm3915_vm15  ;;  %vm3797_vm6 = vcmp.eq.s32.totalorder %v14369_v22, %v12394_v30  ;;  %vm3805_vm15 = vcmp.eq.s32.totalorder %v13799_v11, %v12394_v30  ;;  %vm3813_vm8 = vcmp.eq.s32.totalorder %v13801_v61, %v12394_v30  ;;  %v14602_v11 = vld [vmem:[#allocation68_spill] sm:$0xff]  ;;  %v3652_v22 = vrot.slane %v3624_v33, %v12404_v43 }
 0x39e   : > { %6422 = vmatprep.subr.msk.bf16.mxu1 %vm6421_vm1, %v14550_v2  ;;  %vm6423_vm7 = vmpackc.low %vm3781_vm5, %vm3773_vm3  ;;  %vm3822_vm1 = vcmp.eq.s32.totalorder %v13803_v7, %v12430_v15  ;;  %vm3830_vm3 = vcmp.eq.s32.totalorder %v13805_v55, %v12430_v15 }
 0x39f   : > { %6396 = vmatpush1.bf16.msk.msra.mxu0 %vm6395_vm12, %v14550_v2  ;;  %vm6425_vm9 = vmpackc.low %vm3798_vm2, %vm3790_vm10  ;;  %vm3821_vm2 = vcmp.eq.s32.totalorder %v13803_v7, %v12394_v30  ;;  %vm3829_vm12 = vcmp.eq.s32.totalorder %v13805_v55, %v12394_v30  ;;  %v14600_v7 = vld [vmem:[#allocation58_spill] sm:$0xff]  ;;  %v14601_v55 = vld [vmem:[#allocation124_spill] sm:$0xff] }
 0x3a0   : > { %vm6427_vm11 = vmpackc.low %vm3797_vm6, %vm3789_vm4  ;;  %v3621_v61 = vcombine.low %v14601_v55, %v14600_v7 }
 0x3a1   : > { %6424 = vmatpush1.bf16.msk.msra.mxu1 %vm6423_vm7, %v14550_v2  ;;  %vm6429_vm0 = vmpackc.low %vm3814_vm14, %vm3806_vm13  ;;  %vm3838_vm7 = vcmp.eq.s32.totalorder %v13807_v44, %v12430_v15  ;;  %vm3837_vm13 = vcmp.eq.s32.totalorder %v13807_v44, %v12394_v30  ;;  %vm3845_vm14 = vcmp.eq.s32.totalorder %v13812_v60, %v12394_v30  ;;  %v14603_v44 = vld [vmem:[#allocation119_spill] sm:$0xff] }
 0x3a2   : > { %6426 = vmatprep.subr.msk.bf16.mxu1 %vm6425_vm9, %v14550_v2  ;;  %4794 = vmatmul.mubr.f32.vlgmr.msra.gmra.mrb[144].mxu0 %v12015_v8  ;;  %vm6431_vm5 = vmpackc.low %vm3813_vm8, %vm3805_vm15  ;;  %vm3846_vm9 = vcmp.eq.s32.totalorder %v13812_v60, %v12430_v15  ;;  %v3622_v60 = vcombine.low %v14603_v44, %v14602_v11 }
 0x3a3   : > { %4799 = vmatprep.mubr.f32.mxu0 %v12051_v26  ;;  %vm6433_vm10 = vmpackc.low %vm3830_vm3, %vm3822_vm1  ;;  %vm3853_vm1 = vcmp.eq.s32.totalorder %v13814_v42, %v12394_v30  ;;  %vm3861_vm3 = vcmp.eq.s32.totalorder %v14574_v39, %v12394_v30 }
 0x3a4   : > { %vm6435_vm4 = vmpackc.low %vm3829_vm12, %vm3821_vm2  ;;  %v3638_v6 = vrot.slane %v3622_v60, %v12404_v43 }
 0x3a5   : > { %6428 = vmatpush1.bf16.msk.msra.mxu1 %vm6427_vm11, %v14550_v2  ;;  %vm6437_vm6 = vmpackc.low %vm3846_vm9, %vm3838_vm7  ;;  %vm3854_vm11 = vcmp.eq.s32.totalorder %v13814_v42, %v12430_v15  ;;  %vm3869_vm7 = vcmp.eq.s32.totalorder %v13819_v14, %v12394_v30  ;;  %vm3877_vm9 = vcmp.eq.s32.totalorder %v14389_v46, %v12394_v30  ;;  %v14599_v42 = vld [vmem:[#allocation117_spill] sm:$0xff] }
 0x3a6   : > { %6430 = vmatprep.subr.msk.bf16.mxu1 %vm6429_vm0, %v14550_v2  ;;  %4800 = vmatmul.mubr.f32.gmra.mrb[146].mxu0 %v12048_v18  ;;  %vm3862_vm0 = vcmp.eq.s32.totalorder %v14574_v39, %v12430_v15  ;;  %vm6439_vm15 = vmpackc.low %vm3845_vm14, %vm3837_vm13 }
 0x3a7   : > { %4805 = vmatprep.mubr.f32.mxu0 %v12066_v54  ;;  %vm6441_vm8 = vmpackc.low %vm3862_vm0, %vm3854_vm11  ;;  %vm3885_vm11 = vcmp.eq.s32.totalorder %v14438_v36, %v12394_v30  ;;  %vm3893_vm0 = vcmp.eq.s32.totalorder %v14441_v28, %v12394_v30 }
 0x3a8   : > { %vm6443_vm2 = vmpackc.low %vm3861_vm3, %vm3853_vm1 }
 0x3a9   : > { %6432 = vmatpush1.bf16.msk.msra.mxu1 %vm6431_vm5, %v14550_v2  ;;  %vm3870_vm5 = vcmp.eq.s32.totalorder %v13819_v14, %v12430_v15  ;;  %vm6447_vm13 = vmpackc.low %vm3877_vm9, %vm3869_vm7  ;;  %v3631_v14 = vrot.slane %v3621_v61, %v12404_v43 }
 0x3aa   : > { %6434 = vmatprep.subr.msk.bf16.mxu1 %vm6433_vm10, %v14550_v2  ;;  %4806 = vmatmul.mubr.f32.gmra.mrb[148].mxu0 %v12077_v51  ;;  %vm3878_vm10 = vcmp.eq.s32.totalorder %v14389_v46, %v12430_v15  ;;  %vm6451_vm1 = vmpackc.low %vm3893_vm0, %vm3885_vm11  ;;  %v3654_v46 = vcombine.low %v3645_v40, %v3652_v22 }
 0x3ab   : > { %4811 = vmatprep.mubr.f32.mxu0 %v12088_v3  ;;  %vm6445_vm12 = vmpackc.low %vm3878_vm10, %vm3870_vm5  ;;  %vm3901_vm5 = vcmp.eq.s32.totalorder %v14443_v56, %v12394_v30  ;;  %vm3909_vm10 = vcmp.eq.s32.totalorder %v14446_v10, %v12394_v30  ;;  %v3653_v17 = vcombine.low %v3631_v14, %v3638_v6 }
 0x3ac   : > { %vm6455_vm7 = vmpackc.low %vm3909_vm10, %vm3901_vm5 }
 0x3ad   : > { %6436 = vmatpush1.bf16.msk.msra.mxu1 %vm6435_vm4, %v14550_v2  ;;  %vm3886_vm4 = vcmp.eq.s32.totalorder %v14438_v36, %v12430_v15  ;;  %v3661_v59 = vrot.slane %v3653_v17, %v12404_v43 }
 0x3ae   : > { %6438 = vmatprep.subr.msk.bf16.mxu1 %vm6437_vm6, %v14550_v2  ;;  %4812 = vmatmul.mubr.f32.gmra.mrb[150].mxu0 %v12099_v48  ;;  %vm3894_vm6 = vcmp.eq.s32.totalorder %v14441_v28, %v12430_v15 }
 0x3af   : > { %4817 = vmatprep.mubr.f32.mxu0 %v12108_v24  ;;  %vm6449_vm14 = vmpackc.low %vm3894_vm6, %vm3886_vm4  ;;  %vm3917_vm4 = vcmp.eq.s32.totalorder %v14449_v21, %v12394_v30  ;;  %vm3925_vm6 = vcmp.eq.s32.totalorder %v14453_v52, %v12394_v30 }
 0x3b1   : > { %6440 = vmatpush1.bf16.msk.msra.mxu1 %vm6439_vm15, %v14550_v2  ;;  %vm3902_vm15 = vcmp.eq.s32.totalorder %v14443_v56, %v12430_v15 }
 0x3b2   : > { %6442 = vmatprep.subr.msk.bf16.mxu1 %vm6441_vm8, %v14550_v2  ;;  %4818 = vmatmul.mubr.f32.gmra.mrb[152].mxu0 %v12128_v0  ;;  %vm3910_vm8 = vcmp.eq.s32.totalorder %v14446_v10, %v12430_v15 }
 0x3b3   : > { %4823 = vmatprep.mubr.f32.mxu0 %v12138_v49  ;;  %vm6453_vm3 = vmpackc.low %vm3910_vm8, %vm3902_vm15 }
 0x3b5   : > { %6444 = vmatpush1.bf16.msk.msra.mxu1 %vm6443_vm2, %v14550_v2  ;;  %vm3918_vm2 = vcmp.eq.s32.totalorder %v14449_v21, %v12430_v15  ;;  %v3668_v21 = vrot.slane %v3654_v46, %v12404_v43 }
 0x3b6   : > { %6446 = vmatprep.subr.msk.bf16.mxu1 %vm6445_vm12, %v14550_v2  ;;  %4824 = vmatmul.mubr.f32.gmra.mrb[154].mxu0 %v12152_v62  ;;  %vm3926_vm12 = vcmp.eq.s32.totalorder %v14453_v52, %v12430_v15 }
 0x3b7   : > { %4829 = vmatprep.mubr.f32.mxu0 %v12169_v9  ;;  %vm6457_vm9 = vmpackc.low %vm3926_vm12, %vm3918_vm2  ;;  %v3669_v36 = vcombine.low %v3661_v59, %v3668_v21 }
 0x3b9   : > { %6448 = vmatpush1.bf16.msk.msra.mxu1 %vm6447_vm13, %v14550_v2  ;;  %vm6459_vm13 = vmpackc.low %vm3925_vm6, %vm3917_vm4  ;;  %3670 = vst [vmem:[%s12737_s28] sm:$0xff] %v3669_v36  ;;  %s6683_s28 = scalar_lea.vmem %s6682_s11, 256 }
 0x3ba   : > { %6450 = vmatprep.subr.msk.bf16.mxu1 %vm6449_vm14, %v14550_v2  ;;  %4830 = vmatmul.mubr.f32.gmra.mrb[156].mxu0 %v12199_v47  ;;  %p6685_p13 = scmp.lt.s32.totalorder %s6683_s28, %s6677_s10 }
 0x3bb   : > { %4835 = vmatprep.mubr.f32.mxu0 %v12212_v20 }
 0x3bc   : > { %p6686_p2 = por %p6685_p13, %p6684_p6 }
 0x3bd   : > { %6452 = vmatpush1.bf16.msk.msra.mxu1 %vm6451_vm1, %v14550_v2 }
 0x3be   : > { %6454 = vmatprep.subr.msk.bf16.mxu1 %vm6453_vm3, %v14550_v2  ;;  %4836 = vmatmul.mubr.f32.gmra.mrb[158].mxu0 %v14599_v42  ;;  %p6687_p5 = pnand %p6686_p2, %p6680_p0 }
 0x3c1   : > { %6456 = vmatpush1.bf16.msk.msra.mxu1 %vm6455_vm7, %v14550_v2 }
 0x3c2   : > { %6458 = vmatprep.subr.msk.bf16.mxu1 %vm6457_vm9, %v14550_v2 }
 0x3c5   : > { %6460 = vmatpush1.bf16.msk.msra.mxu1 %vm6459_vm13, %v14550_v2 }
 0x3c8   : > { %4907 = vmatmul.mubr.f32.vlgmr.msra.gmra.mrb[144].mxu1 %v12015_v8 }
 0x3c9   : > { %4912 = vmatprep.mubr.f32.mxu1 %v12051_v26 }
 0x3cc   : > { %4913 = vmatmul.mubr.f32.gmra.mrb[146].mxu1 %v12048_v18 }
 0x3cd   : > { %4918 = vmatprep.mubr.f32.mxu1 %v12066_v54 }
 0x3d0   : > { %4919 = vmatmul.mubr.f32.gmra.mrb[148].mxu1 %v12077_v51 }
 0x3d1   : > { %4924 = vmatprep.mubr.f32.mxu1 %v12088_v3 }
 0x3d4   : > { %4925 = vmatmul.mubr.f32.gmra.mrb[150].mxu1 %v12099_v48 }
 0x3d5   : > { %4930 = vmatprep.mubr.f32.mxu1 %v12108_v24 }
 0x3d8   : > { %4931 = vmatmul.mubr.f32.gmra.mrb[152].mxu1 %v12128_v0 }
 0x3d9   : > { %4936 = vmatprep.mubr.f32.mxu1 %v12138_v49 }
 0x3dc   : > { %4937 = vmatmul.mubr.f32.gmra.mrb[154].mxu1 %v12152_v62 }
 0x3dd   : > { %4942 = vmatprep.mubr.f32.mxu1 %v12169_v9 }
 0x3e0   : > { %4943 = vmatmul.mubr.f32.gmra.mrb[156].mxu1 %v12199_v47 }
 0x3e1   : > { %4948 = vmatprep.mubr.f32.mxu1 %v12212_v20 }
 0x3e4   : > { %4949 = vmatmul.mubr.f32.gmra.mrb[158].mxu1 %v14599_v42 }
 0x423   : > { %v4569_v28 = vpop.f32.mrb[128].mxu0  ;;  %v4682_v56 = vpop.f32.mrb[128].mxu1 }
 0x424   : > { %4955 = vst [vmem:[%s12751_s9] sm:$0xff] %v4569_v28  ;;  %4957 = vst [vmem:[%s12751_s9 + $0x10] sm:$0xff] %v4682_v56  ;;  %v4571_v10 = vpop.f32.mrb[129].mxu0  ;;  %v4684_v52 = vpop.f32.mrb[129].mxu1 }
 0x425   : > { %4956 = vst [vmem:[%s12751_s9 + $0x8] sm:$0xff] %v4571_v10  ;;  %4958 = vst [vmem:[%s12751_s9 + $0x18] sm:$0xff] %v4684_v52 }
 0x427   : > { %v4575_v50 = vpop.f32.mrb[130].mxu0  ;;  %v4688_v13 = vpop.f32.mrb[130].mxu1 }
 0x428   : > { %4963 = vst [vmem:[%s12751_s9 + $0x40] sm:$0xff] %v4575_v50  ;;  %4965 = vst [vmem:[%s12751_s9 + $0x50] sm:$0xff] %v4688_v13  ;;  %v4577_v2 = vpop.f32.mrb[131].mxu0  ;;  %v4690_v8 = vpop.f32.mrb[131].mxu1 }
 0x429   : > { %4964 = vst [vmem:[%s12751_s9 + $0x48] sm:$0xff] %v4577_v2  ;;  %4966 = vst [vmem:[%s12751_s9 + $0x58] sm:$0xff] %v4690_v8 }
 0x42b   : > { %v4581_v45 = vpop.f32.mrb[132].mxu0  ;;  %v4694_v18 = vpop.f32.mrb[132].mxu1 }
 0x42c   : > { %4971 = vst [vmem:[%s12751_s9 + $0x80] sm:$0xff] %v4581_v45  ;;  %4973 = vst [vmem:[%s12751_s9 + $0x90] sm:$0xff] %v4694_v18  ;;  %v4583_v26 = vpop.f32.mrb[133].mxu0  ;;  %v4696_v54 = vpop.f32.mrb[133].mxu1 }
 0x42d   : > { %4972 = vst [vmem:[%s12751_s9 + $0x88] sm:$0xff] %v4583_v26  ;;  %4974 = vst [vmem:[%s12751_s9 + $0x98] sm:$0xff] %v4696_v54 }
 0x42f   : > { %v4587_v51 = vpop.f32.mrb[134].mxu0  ;;  %v4700_v3 = vpop.f32.mrb[134].mxu1 }
 0x430   : > { %4979 = vst [vmem:[%s12751_s9 + $0xc0] sm:$0xff] %v4587_v51  ;;  %4981 = vst [vmem:[%s12751_s9 + $0xd0] sm:$0xff] %v4700_v3  ;;  %v4589_v48 = vpop.f32.mrb[135].mxu0  ;;  %v4702_v24 = vpop.f32.mrb[135].mxu1 }
 0x431   : > { %4980 = vst [vmem:[%s12751_s9 + $0xc8] sm:$0xff] %v4589_v48  ;;  %4982 = vst [vmem:[%s12751_s9 + $0xd8] sm:$0xff] %v4702_v24 }
 0x433   : > { %v4593_v23 = vpop.f32.mrb[136].mxu0  ;;  %v4706_v0 = vpop.f32.mrb[136].mxu1 }
 0x434   : > { %4987 = vst [vmem:[%s12751_s9 + $0x100] sm:$0xff] %v4593_v23  ;;  %4989 = vst [vmem:[%s12751_s9 + $0x110] sm:$0xff] %v4706_v0  ;;  %v4595_v49 = vpop.f32.mrb[137].mxu0  ;;  %v4708_v53 = vpop.f32.mrb[137].mxu1 }
 0x435   : > { %4988 = vst [vmem:[%s12751_s9 + $0x108] sm:$0xff] %v4595_v49  ;;  %4990 = vst [vmem:[%s12751_s9 + $0x118] sm:$0xff] %v4708_v53 }
 0x437   : > { %v4599_v62 = vpop.f32.mrb[138].mxu0  ;;  %v4712_v9 = vpop.f32.mrb[138].mxu1 }
 0x438   : > { %4995 = vst [vmem:[%s12751_s9 + $0x140] sm:$0xff] %v4599_v62  ;;  %4997 = vst [vmem:[%s12751_s9 + $0x150] sm:$0xff] %v4712_v9  ;;  %v4601_v47 = vpop.f32.mrb[139].mxu0  ;;  %v4714_v20 = vpop.f32.mrb[139].mxu1 }
 0x439   : > { %4996 = vst [vmem:[%s12751_s9 + $0x148] sm:$0xff] %v4601_v47  ;;  %4998 = vst [vmem:[%s12751_s9 + $0x158] sm:$0xff] %v4714_v20 }
 0x43b   : > { %v4605_v39 = vpop.f32.mrb[140].mxu0  ;;  %v4718_v57 = vpop.f32.mrb[140].mxu1 }
 0x43c   : > { %5003 = vst [vmem:[%s12751_s9 + $0x180] sm:$0xff] %v4605_v39  ;;  %5005 = vst [vmem:[%s12751_s9 + $0x190] sm:$0xff] %v4718_v57  ;;  %v4607_v29 = vpop.f32.mrb[141].mxu0  ;;  %v4720_v35 = vpop.f32.mrb[141].mxu1 }
 0x43d   : > { %5004 = vst [vmem:[%s12751_s9 + $0x188] sm:$0xff] %v4607_v29  ;;  %5006 = vst [vmem:[%s12751_s9 + $0x198] sm:$0xff] %v4720_v35 }
 0x43e   : > { %6690 = shalt.err (!%p6687_p5)
}
 0x43f   : > { %s6691_s13 = scalar_lea.hbm %s12784_s17, 128  ;;  %s6695_s15 = scalar_lea.hbm %s12941_s4, 256 }
 0x440   : > { %p6692_p4 = scmp.ne.s32.totalorder %s12784_s17, %s6691_s13  ;;  %p6696_p12 = scmp.lt.u32.totalorder %s12784_s17, %s12941_s4 }
 0x441   : > { %p6697_p1 = scmp.lt.u32.totalorder %s6695_s15, %s6691_s13  ;;  %p6699_p8 = scmp.lt.u32.totalorder %s6691_s13, %s12784_s17 }
 0x442   : > { %p6693_p7 = pnand %p6692_p4, %p14604_p9 }
 0x443   : > { %p6698_p3 = por %p6697_p1, %p6696_p12 }
 0x444   : > { %p6694_p10 = pneg %p6693_p7 }
 0x445   : > { %p6700_p11 = por %p6699_p8, %p6698_p3 }
 0x447   : > { %p6701_p0 = pnand %p6700_p11, %p6694_p10 }
 0x449   : > { %6704 = shalt.err (!%p6701_p0)
}
 0x44a   : > { %6464 = dma.vmem_to_hbm [thread:$0]  (%p14604_p9), %s12789_s27, 128, %s12784_s17, %s12793_s24   ;;  %v4611_v30 = vpop.f32.mrb[142].mxu0  ;;  %v4724_v4 = vpop.f32.mrb[142].mxu1 }
 0x44b   : > { %5011 = vst [vmem:[%s12751_s9 + $0x1c0] sm:$0xff] %v4611_v30  ;;  %5013 = vst [vmem:[%s12751_s9 + $0x1d0] sm:$0xff] %v4724_v4  ;;  %v4613_v43 = vpop.f32.mrb[143].mxu0  ;;  %v4726_v27 = vpop.f32.mrb[143].mxu1  ;;  %s12824_s28 = scalar_lea.hbm %s12942_s5, %s6139_s30  ;;  %s5323_s13 = sshll.u32 %s12545_s29, 4  ;;  %s5324_s13 = int_to_ptr.vmem [resolvable:$true] %s5323_s13 }
 0x44c   : > { %5012 = vst [vmem:[%s12751_s9 + $0x1c8] sm:$0xff] %v4613_v43  ;;  %5014 = vst [vmem:[%s12751_s9 + $0x1d8] sm:$0xff] %v4726_v27  ;;  %s6705_s14 = scalar_lea.vmem %s5324_s13, 128  ;;  %s6829_s17 = smov [#allocation8]  }
 0x44d   : > { %p6706_p6 = scmp.ne.s32.totalorder %s5324_s13, %s6705_s14  ;;  %s6709_s27 = sshll.u32 %s6829_s17, 4  ;;  %s6710_s27 = int_to_ptr.vmem [resolvable:$false] %s6709_s27 }
 0x44e   : > { %s6711_s16 = scalar_lea.vmem %s6710_s27, 256  ;;  %p6712_p5 = scmp.lt.s32.totalorder %s5324_s13, %s6710_s27 }
 0x44f   : > { %p6707_p13 = pnand %p6706_p6, %p14604_p9  ;;  %p6713_p4 = scmp.lt.s32.totalorder %s6711_s16, %s6705_s14 }
 0x451   : > { %p6708_p2 = pneg %p6707_p13  ;;  %p6714_p7 = por %p6713_p4, %p6712_p5 }
 0x453   : > { %p6715_p10 = pnand %p6714_p7, %p6708_p2 }
 0x455   : > { %6718 = shalt.err (!%p6715_p10)
}
 0x456   : > { %s6719_s29 = scalar_lea.hbm %s12824_s28, 128  ;;  %s6723_s11 = scalar_lea.hbm %s12942_s5, 256 }
 0x457   : > { %p6720_p12 = scmp.ne.s32.totalorder %s12824_s28, %s6719_s29  ;;  %p6724_p8 = scmp.lt.u32.totalorder %s12824_s28, %s12942_s5 }
 0x458   : > { %p6725_p11 = scmp.lt.u32.totalorder %s6723_s11, %s6719_s29  ;;  %p6727_p6 = scmp.lt.u32.totalorder %s6719_s29, %s12824_s28 }
 0x459   : > { %p6721_p1 = pnand %p6720_p12, %p14604_p9 }
 0x45a   : > { %p6726_p0 = por %p6725_p11, %p6724_p8 }
 0x45b   : > { %p6722_p3 = pneg %p6721_p1 }
 0x45c   : > { %p6728_p13 = por %p6727_p6, %p6726_p0 }
 0x45e   : > { %p6729_p2 = pnand %p6728_p13, %p6722_p3 }
 0x460   : > { %6732 = shalt.err (!%p6729_p2)
}
 0x461   : > { %6465 = dma.vmem_to_hbm [thread:$0]  (%p14604_p9), %s5324_s13, 128, %s12824_s28, %s12793_s24  }
 0x462   : > { %s6138_s24 = sshll.u32 %s6811_s21, 13  ;;  %s5288_s28 = sshll.u32 %s12751_s9, 4  ;;  %s12884_s28 = int_to_ptr.vmem [resolvable:$true] %s5288_s28 }
 0x463   : > { %s12882_s17 = scalar_lea.hbm %s12940_s3, %s6138_s24  ;;  %s5263_s27 = scalar_lea.sflag [#allocation4], %s6981_s12 }
 0x464   : > { %s6733_s21 = scalar_lea.vmem %s12884_s28, 8192  ;;  %s6830_s16 = smov [#allocation5]  }
 0x465   : > { %p6734_p5 = scmp.ne.s32.totalorder %s12884_s28, %s6733_s21  ;;  %s6737_s29 = sshll.u32 %s6830_s16, 4  ;;  %s6738_s29 = int_to_ptr.vmem [resolvable:$false] %s6737_s29 }
 0x466   : > { %s6739_s30 = scalar_lea.vmem %s6738_s29, 16384  ;;  %p6740_p10 = scmp.lt.s32.totalorder %s12884_s28, %s6738_s29 }
 0x467   : > { %p6735_p4 = pnand %p6734_p5, %p14604_p9  ;;  %p6741_p12 = scmp.lt.s32.totalorder %s6739_s30, %s6733_s21 }
 0x469   : > { %p6736_p7 = pneg %p6735_p4  ;;  %p6742_p1 = por %p6741_p12, %p6740_p10 }
 0x46b   : > { %p6743_p3 = pnand %p6742_p1, %p6736_p7 }
 0x475   : > { %v4795_v34 = vpop.f32.mrb[144].mxu0 }
 0x476   : > { %4959 = vst [vmem:[%s12751_s9 + $0x20] sm:$0xff] %v4795_v34  ;;  %v4797_v25 = vpop.f32.mrb[145].mxu0 }
 0x477   : > { %4960 = vst [vmem:[%s12751_s9 + $0x28] sm:$0xff] %v4797_v25 }
 0x479   : > { %v4801_v16 = vpop.f32.mrb[146].mxu0 }
 0x47a   : > { %4967 = vst [vmem:[%s12751_s9 + $0x60] sm:$0xff] %v4801_v16  ;;  %v4803_v41 = vpop.f32.mrb[147].mxu0 }
 0x47b   : > { %4968 = vst [vmem:[%s12751_s9 + $0x68] sm:$0xff] %v4803_v41 }
 0x47d   : > { %v4807_v12 = vpop.f32.mrb[148].mxu0 }
 0x47e   : > { %4975 = vst [vmem:[%s12751_s9 + $0xa0] sm:$0xff] %v4807_v12  ;;  %v4809_v32 = vpop.f32.mrb[149].mxu0 }
 0x47f   : > { %4976 = vst [vmem:[%s12751_s9 + $0xa8] sm:$0xff] %v4809_v32 }
 0x481   : > { %v4813_v63 = vpop.f32.mrb[150].mxu0 }
 0x482   : > { %4983 = vst [vmem:[%s12751_s9 + $0xe0] sm:$0xff] %v4813_v63  ;;  %v4815_v31 = vpop.f32.mrb[151].mxu0 }
 0x483   : > { %4984 = vst [vmem:[%s12751_s9 + $0xe8] sm:$0xff] %v4815_v31 }
 0x485   : > { %v4819_v38 = vpop.f32.mrb[152].mxu0 }
 0x486   : > { %4991 = vst [vmem:[%s12751_s9 + $0x120] sm:$0xff] %v4819_v38  ;;  %v4821_v15 = vpop.f32.mrb[153].mxu0 }
 0x487   : > { %4992 = vst [vmem:[%s12751_s9 + $0x128] sm:$0xff] %v4821_v15 }
 0x489   : > { %v4825_v37 = vpop.f32.mrb[154].mxu0 }
 0x48a   : > { %4999 = vst [vmem:[%s12751_s9 + $0x160] sm:$0xff] %v4825_v37  ;;  %v4827_v5 = vpop.f32.mrb[155].mxu0 }
 0x48b   : > { %5000 = vst [vmem:[%s12751_s9 + $0x168] sm:$0xff] %v4827_v5 }
 0x48d   : > { %v4831_v33 = vpop.f32.mrb[156].mxu0 }
 0x48e   : > { %5007 = vst [vmem:[%s12751_s9 + $0x1a0] sm:$0xff] %v4831_v33  ;;  %v4833_v19 = vpop.f32.mrb[157].mxu0 }
 0x48f   : > { %5008 = vst [vmem:[%s12751_s9 + $0x1a8] sm:$0xff] %v4833_v19 }
 0x491   : > { %v4837_v58 = vpop.f32.mrb[158].mxu0 }
 0x492   : > { %5015 = vst [vmem:[%s12751_s9 + $0x1e0] sm:$0xff] %v4837_v58  ;;  %v4839_v1 = vpop.f32.mrb[159].mxu0 }
 0x493   : > { %5016 = vst [vmem:[%s12751_s9 + $0x1e8] sm:$0xff] %v4839_v1 }
 0x49b   : > { %v4908_v42 = vpop.f32.mrb[144].mxu1 }
 0x49c   : > { %4961 = vst [vmem:[%s12751_s9 + $0x30] sm:$0xff] %v4908_v42  ;;  %v4910_v7 = vpop.f32.mrb[145].mxu1 }
 0x49d   : > { %4962 = vst [vmem:[%s12751_s9 + $0x38] sm:$0xff] %v4910_v7 }
 0x49f   : > { %v4914_v55 = vpop.f32.mrb[146].mxu1 }
 0x4a0   : > { %4969 = vst [vmem:[%s12751_s9 + $0x70] sm:$0xff] %v4914_v55  ;;  %v4916_v61 = vpop.f32.mrb[147].mxu1 }
 0x4a1   : > { %4970 = vst [vmem:[%s12751_s9 + $0x78] sm:$0xff] %v4916_v61 }
 0x4a3   : > { %v4920_v11 = vpop.f32.mrb[148].mxu1 }
 0x4a4   : > { %4977 = vst [vmem:[%s12751_s9 + $0xb0] sm:$0xff] %v4920_v11  ;;  %v4922_v44 = vpop.f32.mrb[149].mxu1 }
 0x4a5   : > { %4978 = vst [vmem:[%s12751_s9 + $0xb8] sm:$0xff] %v4922_v44 }
 0x4a7   : > { %v4926_v60 = vpop.f32.mrb[150].mxu1 }
 0x4a8   : > { %4985 = vst [vmem:[%s12751_s9 + $0xf0] sm:$0xff] %v4926_v60  ;;  %v4928_v14 = vpop.f32.mrb[151].mxu1 }
 0x4a9   : > { %4986 = vst [vmem:[%s12751_s9 + $0xf8] sm:$0xff] %v4928_v14 }
 0x4ab   : > { %v4932_v6 = vpop.f32.mrb[152].mxu1 }
 0x4ac   : > { %4993 = vst [vmem:[%s12751_s9 + $0x130] sm:$0xff] %v4932_v6  ;;  %v4934_v40 = vpop.f32.mrb[153].mxu1 }
 0x4ad   : > { %4994 = vst [vmem:[%s12751_s9 + $0x138] sm:$0xff] %v4934_v40 }
 0x4af   : > { %v4938_v22 = vpop.f32.mrb[154].mxu1 }
 0x4b0   : > { %5001 = vst [vmem:[%s12751_s9 + $0x170] sm:$0xff] %v4938_v22  ;;  %v4940_v17 = vpop.f32.mrb[155].mxu1 }
 0x4b1   : > { %5002 = vst [vmem:[%s12751_s9 + $0x178] sm:$0xff] %v4940_v17 }
 0x4b3   : > { %v4944_v46 = vpop.f32.mrb[156].mxu1 }
 0x4b4   : > { %5009 = vst [vmem:[%s12751_s9 + $0x1b0] sm:$0xff] %v4944_v46  ;;  %v4946_v59 = vpop.f32.mrb[157].mxu1 }
 0x4b5   : > { %5010 = vst [vmem:[%s12751_s9 + $0x1b8] sm:$0xff] %v4946_v59 }
 0x4b7   : > { %v4950_v21 = vpop.f32.mrb[158].mxu1 }
 0x4b8   : > { %5017 = vst [vmem:[%s12751_s9 + $0x1f0] sm:$0xff] %v4950_v21  ;;  %v4952_v36 = vpop.f32.mrb[159].mxu1 }
 0x4b9   : > { %5018 = vst [vmem:[%s12751_s9 + $0x1f8] sm:$0xff] %v4952_v36 }
 0x4ba   : > { %6746 = shalt.err (!%p6743_p3)
}
 0x4bb   : > { %s6747_s9 = scalar_lea.hbm %s12882_s17, 8192  ;;  %s6751_s25 = scalar_lea.hbm %s12940_s3, 16384 }
 0x4bc   : > { %p6748_p8 = scmp.ne.s32.totalorder %s12882_s17, %s6747_s9  ;;  %p6752_p6 = scmp.lt.u32.totalorder %s12882_s17, %s12940_s3 }
 0x4bd   : > { %p6753_p13 = scmp.lt.u32.totalorder %s6751_s25, %s6747_s9  ;;  %p6755_p5 = scmp.lt.u32.totalorder %s6747_s9, %s12882_s17 }
 0x4be   : > { %p6749_p11 = pnand %p6748_p8, %p14604_p9 }
 0x4bf   : > { %p6754_p2 = por %p6753_p13, %p6752_p6 }
 0x4c0   : > { %p6750_p0 = pneg %p6749_p11 }
 0x4c1   : > { %p6756_p4 = por %p6755_p5, %p6754_p2 }
 0x4c3   : > { %p6757_p7 = pnand %p6756_p4, %p6750_p0 }
 0x4c5   : > { %6760 = shalt.err (!%p6757_p7)
}
 0x4c6   : > { %s6831_s13 = smov 1024   ;;  %s6832_s14 = smov 64  }
 0x4c7   : > { %6463 = dma.vmem_to_hbm [thread:$0]  (%p14604_p9), %s12884_s28, 8192, %s12882_s17, %s5263_s27, %s6831_s13, %s6831_s13, %s6832_s14  }
 0x4c8 PF: > { %s5335_s21 = sand.u32 1, %s6799_s18   ;;  %p14605_p10 = scmp.ne.s32.totalorder %s13541_s8, 0 }
 0x4c9   : > { %p14606_p12 = scmp.ge.s32.totalorder %s6819_s23, 2  ;;  %s5336_s16 = scalar_lea.sflag [#allocation4], %s5335_s21 }
 0x4cb   : > { %p6474_p1 = pnand %p14606_p12, %p14605_p10 }
 0x4cd   : > { %6790 = dma.done.wait (!%p6474_p1), %s5336_s16, 8192  }
 0x4ce   : > { %6792 = vsyncadd (!%p6474_p1), %s5336_s16, 4294959104  ;;  %s14607_s29 = sadd.s32 4294967294, %s6819_s23  }
 0x4cf   : > { %s5344_s30 = sand.u32 1, %s14607_s29  }
 0x4d0   : > { %s5345_s9 = scalar_lea.sflag [#allocation7], %s5344_s30 }
 0x4d1   : > { %6794 = dma.done.wait (!%p6474_p1), %s5345_s9, 256  }
 0x4d2   : > { %6796 = vsyncadd (!%p6474_p1), %s5345_s9, 4294967040  ;;  %s25_s23 = sadd.s32 1, %s6819_s23   ;;  %s14608_s18 = smov %s6803_s19 }
 0x4d3   : > { %p22_p9 = scmp.ge.s32.totalorder %s25_s23, 4   ;;  %s14609_s19 = smov %s6807_s20 }
 0x4d4   : > { %s14610_s20 = smov %s6925_s7  ;;  %s14611_s21 = smov %s6815_s22 }
 0x4d5   : > { %s14612_s22 = smov %s14614_s26  ;;  %24 = sbr.rel (!%p22_p9) target bundleno = 8 (0x8), region = 109 }
 0x4dc   :  { %5359 = vsyncpa [#allocation3], 1 }
 0x4dd   :  { %5361 = vsyncpa [#allocation3 + $0x1], 1 }
 0x4de   :  { %5362 = vsyncpa [#allocation4], 1 }
 0x4df   :  { %5364 = vsyncpa [#allocation4 + $0x1], 1 }
 0x4e0   :  { %5365 = vsyncpa [#allocation7], 1 }
 0x4e1   :  { %5367 = vsyncpa [#allocation7 + $0x1], 1 }

</bundles_post_ra>
